<compile_context>
chip_gen: v5e
topology: v5e:2x2
jax: 0.10.0
libtpu: 0.0.40
codegen_flags: <defaults>
</compile_context>

<pallas_src>
import jax
import jax.numpy as jnp
from jax.experimental import pallas as pl
from jax.experimental.pallas import tpu as pltpu


def _kan_mlp_kernel(x_ref, w1t_ref, b1_ref, w2_ref, b2_ref, o_ref):
    """Fused 2-layer MLP on a natural-layout (batch_tile, IN) slab.

    x_ref  : (TB, IN)   VMEM  -- x tile in its HBM layout (no transpose)
    w1t_ref: (H, IN)    VMEM  -- first Linear weight, row j = weights of unit j
    b1_ref : (H,)       SMEM
    w2_ref : (H*OUT,)   SMEM  -- flattened, w2[j, o] == w2_ref[j*OUT + o]
    b2_ref : (OUT,)     SMEM
    o_ref  : (TB, OUT)  VMEM
    """
    TB, IN = x_ref.shape
    H = b1_ref.shape[0]
    OUT = b2_ref.shape[0]

    x = x_ref[...]  # (TB, IN) f32, loaded once; reused for every hidden unit

    # ---- Layer 1: Linear(IN -> H) + ReLU.  Dropout(0.1) == identity at eval.
    # VPU broadcast-multiply against the (1, IN) weight row, then a minor-axis
    # (lane) reduce.  No MXU: K=16 / N=2 would leave the systolic array <2%
    # utilized for zero benefit.
    hs = []
    for j in range(H):
        p = x * w1t_ref[j:j + 1, :]                 # (TB, IN)
        hj = jnp.sum(p, axis=1, keepdims=True)      # (TB, 1)
        hs.append(jnp.maximum(hj + b1_ref[j], 0.0))

    # ---- Layer 2: Linear(H -> OUT) as scalar FMAs on (TB, 1) columns.
    for o in range(OUT):
        acc = hs[0] * w2_ref[o] + b2_ref[o]
        for j in range(1, H):
            acc = acc + hs[j] * w2_ref[j * OUT + o]
        o_ref[:, o:o + 1] = acc


def kan_wrapper_forward(x, w1, b1, w2, b2, *, tb_max=8192, min_pallas_batch=1024):
    """Fallback-MLP forward of KANWrapper (eval mode).

    x : (B, IN) float32
    w1: (IN, H), b1: (H,)    -- first Linear, stored as (in, out) == torch W.T
    w2: (H, OUT), b2: (OUT,) -- second Linear, stored as (in, out)
    returns (B, OUT) float32
    """
    B, IN = x.shape
    IN_w, H = w1.shape
    H_w, OUT = w2.shape
    assert IN == IN_w and H == H_w

    if B < min_pallas_batch:
        # Small batches: a fused XLA HLO beats kernel launch + grid overhead.
        return jnp.maximum(x @ w1 + b1, 0.0) @ w2 + b2

    # Tile the batch (sublane) axis.  >= 2 (even) grid steps so both v7x
    # TensorCores get work; tb capped by VMEM (lane padding makes the VMEM
    # footprint ~2 KiB per row for double-buffered x + out blocks).
    n_tiles = max(2, pl.cdiv(B, tb_max))
    if n_tiles % 2:
        n_tiles += 1
    tb = ((pl.cdiv(B, n_tiles) + 7) // 8) * 8       # multiple of 8 sublanes
    n_tiles = pl.cdiv(B, tb)                        # ragged last tile clipped by Pallas

    out = pl.pallas_call(
        _kan_mlp_kernel,
        out_shape=jax.ShapeDtypeStruct((B, OUT), jnp.float32),
        grid_spec=pltpu.PrefetchScalarGridSpec(
            num_scalar_prefetch=0,
            grid=(n_tiles,),
            in_specs=[
                # x tile in its natural (B, IN) layout -- no host transpose/pad.
                pl.BlockSpec((tb, IN), lambda i: (i, 0)),
                # Tiny first-layer weight (H, IN), constant across the grid.
                pl.BlockSpec((H, IN), lambda i: (0, 0)),
                # Biases and second-layer weights as SMEM scalars.
                pl.BlockSpec(memory_space=pltpu.MemorySpace.SMEM),
                pl.BlockSpec(memory_space=pltpu.MemorySpace.SMEM),
                pl.BlockSpec(memory_space=pltpu.MemorySpace.SMEM),
            ],
            out_specs=pl.BlockSpec((tb, OUT), lambda i: (i, 0)),
        ),
        compiler_params=pltpu.CompilerParams(
            dimension_semantics=("parallel",),
            # Lane-padded (tb, 16)/(tb, 1) blocks cost ~2 KiB/row double-buffered;
            # 32 MiB covers tb_max=8192 on v5e (16 MiB default scoped VMEM) and
            # stays within v7x's 64 MiB physical VMEM.
            vmem_limit_bytes=32 * 1024 * 1024,
        ),
    )(x, w1.T, b1, w2.reshape(-1), b2)   # w1.T is (2, 16) -- negligible

    return out


def init_params(key, input_size, width):
    """Deterministic init mirroring torch.nn.Linear's uniform(-1/sqrt(fan_in), +)."""
    params = []
    dims = list(width)
    dims[0] = input_size
    for i in range(len(dims) - 1):
        fan_in, fan_out = dims[i], dims[i + 1]
        key, kw, kb = jax.random.split(key, 3)
        bound = 1.0 / jnp.sqrt(jnp.float32(fan_in))
        # Stored as (in_features, out_features) == torch weight.T
        w = jax.random.uniform(kw, (fan_in, fan_out), jnp.float32, -bound, bound)
        b = jax.random.uniform(kb, (fan_out,), jnp.float32, -bound, bound)
        params.append((w, b))
    return params


def _reference(x, w1, b1, w2, b2):
    return jnp.maximum(x @ w1 + b1, 0.0) @ w2 + b2


if __name__ == "__main__":
    input_size = 16
    width = [input_size, 2, 1]   # KANWrapper default: [input_size, 2, 1]

    key = jax.random.PRNGKey(0)
    key, kx = jax.random.split(key)
    (w1, b1), (w2, b2) = init_params(key, input_size, width)

    # Main Pallas path: 2-step "parallel" grid (both v7x cores), divisible tiles.
    batch = 4096
    x = jax.random.normal(kx, (batch, input_size), dtype=jnp.float32)
    out = jax.block_until_ready(kan_wrapper_forward(x, w1, b1, w2, b2))
    assert out.shape == (batch, 1)
    assert jnp.allclose(out, _reference(x, w1, b1, w2, b2), atol=1e-5, rtol=1e-5)

    # Ragged batch: exercises the clipped last block (no host-side padding).
    xb = x[:2500]
    out_r = jax.block_until_ready(kan_wrapper_forward(xb, w1, b1, w2, b2))
    assert out_r.shape == (2500, 1)
    assert jnp.allclose(out_r, _reference(xb, w1, b1, w2, b2), atol=1e-5, rtol=1e-5)

    # Tiny batch dispatches to the fused-XLA path (no kernel launch).
    xs = x[:8]
    out_s = jax.block_until_ready(kan_wrapper_forward(xs, w1, b1, w2, b2))
    assert out_s.shape == (8, 1)
    assert jnp.allclose(out_s, _reference(xs, w1, b1, w2, b2), atol=1e-5, rtol=1e-5)

    print("KERNEL_OK")
</pallas_src>

<mosaic_0001>
module attributes {stable_mosaic.version = 11 : i64} {
  func.func @_kan_mlp_kernel(%arg0: i32, %arg1: memref<2048x16xf32, #tpu.memory_space<vmem>>, %arg2: memref<2x16xf32, #tpu.memory_space<vmem>>, %arg3: memref<2xf32, #tpu.memory_space<smem>>, %arg4: memref<2xf32, #tpu.memory_space<smem>>, %arg5: memref<1xf32, #tpu.memory_space<smem>>, %arg6: memref<2048x1xf32, #tpu.memory_space<vmem>>) attributes {dimension_semantics = [#tpu.dimension_semantics<parallel>], iteration_bounds = array<i64: 2>, scalar_prefetch = 0 : i64, scratch_operands = 0 : i64, tpu.core_type = #tpu.core_type<tc>, window_params = [{transform_indices = @transform_0, window_bounds = array<i64: 2048, 16>}, {pipeline_mode = #tpu.pipeline_mode<synchronous>, transform_indices = @transform_1, window_bounds = array<i64: 2, 16>}, {transform_indices = @transform_2, window_bounds = array<i64: 2>}, {transform_indices = @transform_3, window_bounds = array<i64: 2>}, {transform_indices = @transform_4, window_bounds = array<i64: 1>}, {transform_indices = @transform_5, window_bounds = array<i64: 2048, 1>}]} {
    %c0 = arith.constant 0 : index
    %c0_0 = arith.constant 0 : index
    %0 = vector.load %arg1[%c0, %c0_0] : memref<2048x16xf32, #tpu.memory_space<vmem>>, vector<2048x16xf32>
    %c0_1 = arith.constant 0 : index
    %c0_2 = arith.constant 0 : index
    %1 = vector.load %arg2[%c0_1, %c0_2] : memref<2x16xf32, #tpu.memory_space<vmem>>, vector<1x16xf32>
    %2 = vector.broadcast %1 : vector<1x16xf32> to vector<2048x16xf32>
    %3 = arith.mulf %0, %2 : vector<2048x16xf32>
    %cst = arith.constant dense<0.000000e+00> : vector<2048xf32>
    %4 = vector.multi_reduction <add>, %3, %cst [1] : vector<2048x16xf32> to vector<2048xf32>
    %5 = vector.shape_cast %4 : vector<2048xf32> to vector<2048x1xf32>
    %c0_3 = arith.constant 0 : index
    %6 = memref.load %arg3[%c0_3] : memref<2xf32, #tpu.memory_space<smem>>
    %7 = vector.broadcast %6 : f32 to vector<2048x1xf32>
    %8 = arith.addf %5, %7 : vector<2048x1xf32>
    %cst_4 = arith.constant 0.000000e+00 : f32
    %9 = vector.broadcast %cst_4 : f32 to vector<2048x1xf32>
    %10 = arith.maximumf %8, %9 : vector<2048x1xf32>
    %c1 = arith.constant 1 : index
    %c0_5 = arith.constant 0 : index
    %11 = vector.load %arg2[%c1, %c0_5] : memref<2x16xf32, #tpu.memory_space<vmem>>, vector<1x16xf32>
    %12 = vector.broadcast %11 : vector<1x16xf32> to vector<2048x16xf32>
    %13 = arith.mulf %0, %12 : vector<2048x16xf32>
    %cst_6 = arith.constant dense<0.000000e+00> : vector<2048xf32>
    %14 = vector.multi_reduction <add>, %13, %cst_6 [1] : vector<2048x16xf32> to vector<2048xf32>
    %15 = vector.shape_cast %14 : vector<2048xf32> to vector<2048x1xf32>
    %c1_7 = arith.constant 1 : index
    %16 = memref.load %arg3[%c1_7] : memref<2xf32, #tpu.memory_space<smem>>
    %17 = vector.broadcast %16 : f32 to vector<2048x1xf32>
    %18 = arith.addf %15, %17 : vector<2048x1xf32>
    %cst_8 = arith.constant 0.000000e+00 : f32
    %19 = vector.broadcast %cst_8 : f32 to vector<2048x1xf32>
    %20 = arith.maximumf %18, %19 : vector<2048x1xf32>
    %c0_9 = arith.constant 0 : index
    %21 = memref.load %arg4[%c0_9] : memref<2xf32, #tpu.memory_space<smem>>
    %22 = vector.broadcast %21 : f32 to vector<2048x1xf32>
    %23 = arith.mulf %10, %22 : vector<2048x1xf32>
    %c0_10 = arith.constant 0 : index
    %24 = memref.load %arg5[%c0_10] : memref<1xf32, #tpu.memory_space<smem>>
    %25 = vector.broadcast %24 : f32 to vector<2048x1xf32>
    %26 = arith.addf %23, %25 : vector<2048x1xf32>
    %c1_11 = arith.constant 1 : index
    %27 = memref.load %arg4[%c1_11] : memref<2xf32, #tpu.memory_space<smem>>
    %28 = vector.broadcast %27 : f32 to vector<2048x1xf32>
    %29 = arith.mulf %20, %28 : vector<2048x1xf32>
    %30 = arith.addf %26, %29 : vector<2048x1xf32>
    %c0_12 = arith.constant 0 : index
    %c0_13 = arith.constant 0 : index
    %31 = vector.load %arg6[%c0_12, %c0_13] : memref<2048x1xf32, #tpu.memory_space<vmem>>, vector<2048x1xf32>
    tpu.vector_store %arg6[%c0_12, %c0_13], %30 {strides = array<i32>} : memref<2048x1xf32, #tpu.memory_space<vmem>>, vector<2048x1xf32>,
    return
  }
  func.func @transform_0(%arg0: i32) -> (i32, i32) {
    %c0_i32 = arith.constant 0 : i32
    %c0_i32_0 = arith.constant 0 : i32
    return %arg0, %c0_i32 : i32, i32
  }
  func.func @transform_1(%arg0: i32) -> (i32, i32) {
    %c0_i32 = arith.constant 0 : i32
    %c0_i32_0 = arith.constant 0 : i32
    %c0_i32_1 = arith.constant 0 : i32
    return %c0_i32, %c0_i32_0 : i32, i32
  }
  func.func @transform_2(%arg0: i32) -> i32 {
    %c0_i32 = arith.constant 0 : i32
    %c0_i32_0 = arith.constant 0 : i32
    return %c0_i32 : i32
  }
  func.func @transform_3(%arg0: i32) -> i32 {
    %c0_i32 = arith.constant 0 : i32
    %c0_i32_0 = arith.constant 0 : i32
    return %c0_i32 : i32
  }
  func.func @transform_4(%arg0: i32) -> i32 {
    %c0_i32 = arith.constant 0 : i32
    %c0_i32_0 = arith.constant 0 : i32
    return %c0_i32 : i32
  }
  func.func @transform_5(%arg0: i32) -> (i32, i32) {
    %c0_i32 = arith.constant 0 : i32
    %c0_i32_0 = arith.constant 0 : i32
    return %arg0, %c0_i32 : i32, i32
  }
}

</mosaic_0001>

<bundles_post_ra>
// kernel: tpu_custom_call.1
= control target key start
LH: loop header
LB: loop body
LE: loop exit
PB: predicated region body
PF: predicated region fallthrough
CT: control target
= control target key end

     0   :  { %s9549_s0 = inlined_call_operand.vmem [shape: f32[4096,16], index: 0, kind: input, shape index: {}]   ;;  %s9550_s1 = inlined_call_operand.vmem [shape: f32[2,16], index: 1, kind: input, shape index: {}]   ;;  %s9551_s2 = inlined_call_operand.vmem [shape: f32[2], index: 2, kind: input, shape index: {}]   ;;  %s9552_s3 = inlined_call_operand.vmem [shape: f32[2], index: 3, kind: input, shape index: {}]   ;;  %s9553_s4 = inlined_call_operand.<no memory space> [shape: f32[1], index: 4, kind: input, shape index: {}]   ;;  %s9554_s5 = inlined_call_operand.vmem [shape: f32[4096,1], index: 5, kind: output, shape index: {}]  }
   0x1   :  { %10 = sst [smem:[#allocation2]] %s9553_s4 }
   0x2   :  { %11 = vsyncpa [#allocation4], 0 }
   0x3   :  { %12 = vsyncpa [#allocation6], 0  ;;  %s5350_s20 = smov 0  }
   0x4 LB: > { %s4958_s21 = sadd.s32 4294967295, %s5313_s20   ;;  %p4960_p0 = scmp.ge.s32.totalorder %s5313_s20, 1  ;;  %s5313_s20 = sphi %s5350_s20, %s18_s20  }
   0x5   : > { %p159_p1 = scmp.lt.s32.totalorder %s5313_s20, 3  ;;  %s174_s24 = sshll.u32 %s9551_s2, 4  ;;  %s175_s24 = int_to_ptr.vmem [resolvable:$true] %s174_s24 }
   0x6   : > { %p5361_p3 = scmp.eq.s32.totalorder %s4958_s21, 0  ;;  %s184_s27 = sshll.u32 %s9552_s3, 4  ;;  %s185_s27 = int_to_ptr.vmem [resolvable:$true] %s184_s27 }
   0x7   : > { %p160_p2 = pnand %p4960_p0, %p159_p1  ;;  %s5315_s28 = smov [#allocation3]  }
   0x8   : > { %s5316_s29 = smov [#allocation5]  }
   0x9   : > { %p4983_p4 = pneg %p160_p2 }
   0xa   : > { %209 = sbr.rel (%p160_p2) target bundleno = 1516 (0x5ec), region = 40 }
   0xb   : > { %p4984_p5 = pnand %p5361_p3, %p4983_p4 }
   0xd   : > { %4986 = dma.vmem_to_smem (!%p4984_p5), %s175_s24, 16, %s5315_s28, [#allocation4]  }
   0xe   : > { %4989 = dma.vmem_to_smem (!%p4984_p5), %s185_s27, 16, %s5316_s29, [#allocation6]  }
   0xf   : > { %5304 = dma.done.wait (%p5361_p3), [#allocation4], 16  }
  0x10   : > { %5306 = vsyncadd (%p5361_p3), [#allocation4], 4294967280 }
  0x11   : > { %5308 = dma.done.wait (%p5361_p3), [#allocation6], 16  }
  0x12   : > { %5310 = vsyncadd (%p5361_p3), [#allocation6], 4294967280 }
  0x13   : > { %221 = sfence }
  0x14   : > { %s4967_s30 = sshll.u32 %s4958_s21, 8  ;;  %v5383_v0 = vld [vmem:[%s9550_s1] ss:$0 sm:$0xff]  ;;  %vm770_vm0 = vcmask 130048   ;;  %s1539_s18 = sld [smem:[#allocation3]]  ;;  %vm4623_vm1 = vcmask 7168  }
  0x15   : > { %p245_p6 = scmp.lt.s32.totalorder %s4967_s30, 511  ;;  %s3593_s19 = sld [smem:[#allocation5]] }
  0x16   : > { %s4971_s21 = sld [smem:[#allocation3 + $0x1]] }
  0x17   : > { %s9985_s30 = smov (!%p245_p6, %s4967_s30), 511  ;;  %s3851_s22 = sld [smem:[#allocation2]] }
  0x18   : > { %s4968_s8 = sshll.u32 %s9985_s30, 3  ;;  %s4972_s23 = sld [smem:[#allocation5 + $0x1]] }
  0x19   : > { %s5391_s11 = scalar_lea.vmem %s9549_s0, %s4968_s8  ;;  %s6862_s25 = scalar_lea.vmem %s9554_s5, %s4968_s8 }
  0x1a   : > { %v260_v1 = vld [vmem:[%s5391_s11 + $0x20] sm:$0xff]  ;;  %v258_v2 = vld [vmem:[%s5391_s11 + $0x10] sm:$0xff]  ;;  %v261_v7 = vld [vmem:[%s5391_s11 + $0x28] sm:$0xff] }
  0x1b   : > { %v256_v3 = vld [vmem:[%s5391_s11] sm:$0xff]  ;;  %v518_v4 = vmul.f32 %v5383_v0, %v260_v1  ;;  %v516_v5 = vmul.f32 %v5383_v0, %v258_v2  ;;  %v259_v8 = vld [vmem:[%s5391_s11 + $0x18] sm:$0xff]  ;;  %v257_v12 = vld [vmem:[%s5391_s11 + $0x8] sm:$0xff]  ;;  %v519_v13 = vmul.f32 %v5383_v0, %v261_v7 }
  0x1c   : > { %v514_v6 = vmul.f32 %v5383_v0, %v256_v3  ;;  %v517_v14 = vmul.f32 %v5383_v0, %v259_v8  ;;  %v515_v15 = vmul.f32 %v5383_v0, %v257_v12  ;;  %v264_v19 = vld [vmem:[%s5391_s11 + $0x40] sm:$0xff]  ;;  %v263_v20 = vld [vmem:[%s5391_s11 + $0x38] sm:$0xff]  ;;  %v262_v21 = vld [vmem:[%s5391_s11 + $0x30] sm:$0xff] }
  0x1d   : > { %v783_v9 = vsel %vm770_vm0, %v518_v4, 0.0  ;;  %v777_v10 = vsel %vm770_vm0, %v516_v5, 0.0  ;;  %v786_v16 = vsel %vm770_vm0, %v519_v13, 0.0  ;;  %v522_v22 = vmul.f32 %v5383_v0, %v264_v19  ;;  %v267_v28 = vld [vmem:[%s5391_s11 + $0x58] sm:$0xff]  ;;  %v266_v29 = vld [vmem:[%s5391_s11 + $0x50] sm:$0xff]  ;;  %v265_v30 = vld [vmem:[%s5391_s11 + $0x48] sm:$0xff] }
  0x1e   : > { %v771_v11 = vsel %vm770_vm0, %v514_v6, 0.0  ;;  %784 = vadd.xlane.f32.xlu2 %v783_v9  ;;  %778 = vadd.xlane.f32.xlu1 %v777_v10  ;;  %v780_v17 = vsel %vm770_vm0, %v517_v14, 0.0  ;;  %v774_v18 = vsel %vm770_vm0, %v515_v15, 0.0  ;;  %v521_v23 = vmul.f32 %v5383_v0, %v263_v20  ;;  %v270_v37 = vld [vmem:[%s5391_s11 + $0x70] sm:$0xff]  ;;  %v269_v38 = vld [vmem:[%s5391_s11 + $0x68] sm:$0xff]  ;;  %v268_v39 = vld [vmem:[%s5391_s11 + $0x60] sm:$0xff] }
  0x1f   : > { %772 = vadd.xlane.f32.xlu0 %v771_v11  ;;  %v520_v24 = vmul.f32 %v5383_v0, %v262_v21  ;;  %v795_v25 = vsel %vm770_vm0, %v522_v22, 0.0  ;;  %v525_v31 = vmul.f32 %v5383_v0, %v267_v28  ;;  %v524_v32 = vmul.f32 %v5383_v0, %v266_v29  ;;  %v273_v46 = vld [vmem:[%s5391_s11 + $0x88] sm:$0xff]  ;;  %v272_v47 = vld [vmem:[%s5391_s11 + $0x80] sm:$0xff]  ;;  %v271_v48 = vld [vmem:[%s5391_s11 + $0x78] sm:$0xff] }
  0x20   : > { %v792_v26 = vsel %vm770_vm0, %v521_v23, 0.0  ;;  %v523_v33 = vmul.f32 %v5383_v0, %v265_v30  ;;  %v528_v40 = vmul.f32 %v5383_v0, %v270_v37  ;;  %v527_v41 = vmul.f32 %v5383_v0, %v269_v38  ;;  %v276_v55 = vld [vmem:[%s5391_s11 + $0xa0] sm:$0xff]  ;;  %v275_v56 = vld [vmem:[%s5391_s11 + $0x98] sm:$0xff]  ;;  %v274_v57 = vld [vmem:[%s5391_s11 + $0x90] sm:$0xff] }
  0x21   : > { %v789_v27 = vsel %vm770_vm0, %v520_v24, 0.0  ;;  %v804_v34 = vsel %vm770_vm0, %v525_v31, 0.0  ;;  %v801_v35 = vsel %vm770_vm0, %v524_v32, 0.0  ;;  %v526_v42 = vmul.f32 %v5383_v0, %v268_v39  ;;  %v279_v1 = vld [vmem:[%s5391_s11 + $0xb8] sm:$0xff]  ;;  %v278_v2 = vld [vmem:[%s5391_s11 + $0xb0] sm:$0xff]  ;;  %v277_v3 = vld [vmem:[%s5391_s11 + $0xa8] sm:$0xff] }
  0x22   : > { %v798_v36 = vsel %vm770_vm0, %v523_v33, 0.0  ;;  %v813_v43 = vsel %vm770_vm0, %v528_v40, 0.0  ;;  %v810_v44 = vsel %vm770_vm0, %v527_v41, 0.0  ;;  %v531_v49 = vmul.f32 %v5383_v0, %v273_v46  ;;  %v282_v10 = vld [vmem:[%s5391_s11 + $0xd0] sm:$0xff]  ;;  %v281_v11 = vld [vmem:[%s5391_s11 + $0xc8] sm:$0xff]  ;;  %v280_v12 = vld [vmem:[%s5391_s11 + $0xc0] sm:$0xff] }
  0x23   : > { %v807_v45 = vsel %vm770_vm0, %v526_v42, 0.0  ;;  %v530_v50 = vmul.f32 %v5383_v0, %v272_v47  ;;  %v529_v51 = vmul.f32 %v5383_v0, %v271_v48  ;;  %v534_v58 = vmul.f32 %v5383_v0, %v276_v55  ;;  %v285_v19 = vld [vmem:[%s5391_s11 + $0xe8] sm:$0xff]  ;;  %v284_v20 = vld [vmem:[%s5391_s11 + $0xe0] sm:$0xff]  ;;  %v283_v21 = vld [vmem:[%s5391_s11 + $0xd8] sm:$0xff] }
  0x24   : > { %v822_v52 = vsel %vm770_vm0, %v531_v49, 0.0  ;;  %v533_v59 = vmul.f32 %v5383_v0, %v275_v56  ;;  %v532_v60 = vmul.f32 %v5383_v0, %v274_v57  ;;  %v537_v4 = vmul.f32 %v5383_v0, %v279_v1  ;;  %v288_v28 = vld [vmem:[%s5391_s11 + $0x100] sm:$0xff]  ;;  %v287_v29 = vld [vmem:[%s5391_s11 + $0xf8] sm:$0xff]  ;;  %v286_v30 = vld [vmem:[%s5391_s11 + $0xf0] sm:$0xff] }
  0x25   : > { %v819_v53 = vsel %vm770_vm0, %v530_v50, 0.0  ;;  %v816_v54 = vsel %vm770_vm0, %v529_v51, 0.0  ;;  %v831_v61 = vsel %vm770_vm0, %v534_v58, 0.0  ;;  %v536_v5 = vmul.f32 %v5383_v0, %v278_v2  ;;  %v291_v37 = vld [vmem:[%s5391_s11 + $0x118] sm:$0xff]  ;;  %v290_v38 = vld [vmem:[%s5391_s11 + $0x110] sm:$0xff]  ;;  %v289_v39 = vld [vmem:[%s5391_s11 + $0x108] sm:$0xff] }
  0x26   : > { %787 = vadd.xlane.f32.xlu2 %v786_v16  ;;  %781 = vadd.xlane.f32.xlu1 %v780_v17  ;;  %v828_v62 = vsel %vm770_vm0, %v533_v59, 0.0  ;;  %v825_v63 = vsel %vm770_vm0, %v532_v60, 0.0  ;;  %v535_v6 = vmul.f32 %v5383_v0, %v277_v3  ;;  %v840_v7 = vsel %vm770_vm0, %v537_v4, 0.0  ;;  %v294_v46 = vld [vmem:[%s5391_s11 + $0x130] sm:$0xff]  ;;  %v293_v47 = vld [vmem:[%s5391_s11 + $0x128] sm:$0xff]  ;;  %v292_v48 = vld [vmem:[%s5391_s11 + $0x120] sm:$0xff] }
  0x27   : > { %775 = vadd.xlane.f32.xlu0 %v774_v18  ;;  %v837_v8 = vsel %vm770_vm0, %v536_v5, 0.0  ;;  %v540_v13 = vmul.f32 %v5383_v0, %v282_v10  ;;  %v539_v14 = vmul.f32 %v5383_v0, %v281_v11  ;;  %v538_v15 = vmul.f32 %v5383_v0, %v280_v12  ;;  %v297_v55 = vld [vmem:[%s5391_s11 + $0x148] sm:$0xff]  ;;  %v296_v56 = vld [vmem:[%s5391_s11 + $0x140] sm:$0xff]  ;;  %v295_v57 = vld [vmem:[%s5391_s11 + $0x138] sm:$0xff] }
  0x28   : > { %v834_v9 = vsel %vm770_vm0, %v535_v6, 0.0  ;;  %v543_v22 = vmul.f32 %v5383_v0, %v285_v19  ;;  %v542_v23 = vmul.f32 %v5383_v0, %v284_v20  ;;  %v541_v24 = vmul.f32 %v5383_v0, %v283_v21  ;;  %v300_v1 = vld [vmem:[%s5391_s11 + $0x160] sm:$0xff]  ;;  %v299_v2 = vld [vmem:[%s5391_s11 + $0x158] sm:$0xff]  ;;  %v298_v3 = vld [vmem:[%s5391_s11 + $0x150] sm:$0xff] }
  0x29   : > { %v849_v16 = vsel %vm770_vm0, %v540_v13, 0.0  ;;  %v846_v17 = vsel %vm770_vm0, %v539_v14, 0.0  ;;  %v843_v18 = vsel %vm770_vm0, %v538_v15, 0.0  ;;  %v546_v31 = vmul.f32 %v5383_v0, %v288_v28  ;;  %v303_v10 = vld [vmem:[%s5391_s11 + $0x178] sm:$0xff]  ;;  %v302_v11 = vld [vmem:[%s5391_s11 + $0x170] sm:$0xff]  ;;  %v301_v12 = vld [vmem:[%s5391_s11 + $0x168] sm:$0xff] }
  0x2a   : > { %v545_v32 = vmul.f32 %v5383_v0, %v287_v29  ;;  %v544_v33 = vmul.f32 %v5383_v0, %v286_v30  ;;  %v549_v40 = vmul.f32 %v5383_v0, %v291_v37  ;;  %v548_v41 = vmul.f32 %v5383_v0, %v290_v38 }
  0x2b   : > { %v547_v42 = vmul.f32 %v5383_v0, %v289_v39  ;;  %v552_v49 = vmul.f32 %v5383_v0, %v294_v46  ;;  %v551_v50 = vmul.f32 %v5383_v0, %v293_v47  ;;  %v550_v51 = vmul.f32 %v5383_v0, %v292_v48  ;;  %v312_v46 = vld [vmem:[%s5391_s11 + $0x1c0] sm:$0xff]  ;;  %v311_v47 = vld [vmem:[%s5391_s11 + $0x1b8] sm:$0xff]  ;;  %v310_v48 = vld [vmem:[%s5391_s11 + $0x1b0] sm:$0xff] }
  0x2c   : > { %v555_v58 = vmul.f32 %v5383_v0, %v297_v55  ;;  %v554_v59 = vmul.f32 %v5383_v0, %v296_v56  ;;  %v553_v60 = vmul.f32 %v5383_v0, %v295_v57  ;;  %v558_v4 = vmul.f32 %v5383_v0, %v300_v1 }
  0x2d   : > { %v557_v5 = vmul.f32 %v5383_v0, %v299_v2  ;;  %v556_v6 = vmul.f32 %v5383_v0, %v298_v3  ;;  %v561_v13 = vmul.f32 %v5383_v0, %v303_v10  ;;  %v560_v14 = vmul.f32 %v5383_v0, %v302_v11 }
  0x2e   : > { %796 = vadd.xlane.f32.xlu2 %v795_v25  ;;  %793 = vadd.xlane.f32.xlu1 %v792_v26  ;;  %v858_v25 = vsel %vm770_vm0, %v543_v22, 0.0  ;;  %v855_v26 = vsel %vm770_vm0, %v542_v23, 0.0  ;;  %v559_v15 = vmul.f32 %v5383_v0, %v301_v12  ;;  %v306_v22 = vld [vmem:[%s5391_s11 + $0x190] sm:$0xff]  ;;  %v305_v23 = vld [vmem:[%s5391_s11 + $0x188] sm:$0xff] }
  0x2f   : > { %790 = vadd.xlane.f32.xlu0 %v789_v27  ;;  %v852_v27 = vsel %vm770_vm0, %v541_v24, 0.0  ;;  %v912_v19 = vsel %vm770_vm0, %v561_v13, 0.0  ;;  %v909_v20 = vsel %vm770_vm0, %v560_v14, 0.0  ;;  %v304_v24 = vld [vmem:[%s5391_s11 + $0x180] sm:$0xff] }
  0x30   : > { %v906_v21 = vsel %vm770_vm0, %v559_v15, 0.0 }
  0x36   : > { %805 = vadd.xlane.f32.xlu2 %v804_v34  ;;  %802 = vadd.xlane.f32.xlu1 %v801_v35  ;;  %v867_v34 = vsel %vm770_vm0, %v546_v31, 0.0  ;;  %v864_v35 = vsel %vm770_vm0, %v545_v32, 0.0 }
  0x37   : > { %799 = vadd.xlane.f32.xlu0 %v798_v36  ;;  %v861_v36 = vsel %vm770_vm0, %v544_v33, 0.0 }
  0x3e   : > { %814 = vadd.xlane.f32.xlu2 %v813_v43  ;;  %811 = vadd.xlane.f32.xlu1 %v810_v44  ;;  %v876_v43 = vsel %vm770_vm0, %v549_v40, 0.0  ;;  %v873_v44 = vsel %vm770_vm0, %v548_v41, 0.0 }
  0x3f   : > { %808 = vadd.xlane.f32.xlu0 %v807_v45  ;;  %v870_v45 = vsel %vm770_vm0, %v547_v42, 0.0 }
  0x46   : > { %823 = vadd.xlane.f32.xlu2 %v822_v52  ;;  %820 = vadd.xlane.f32.xlu1 %v819_v53  ;;  %v885_v52 = vsel %vm770_vm0, %v552_v49, 0.0  ;;  %v882_v53 = vsel %vm770_vm0, %v551_v50, 0.0  ;;  %v570_v49 = vmul.f32 %v5383_v0, %v312_v46  ;;  %v569_v50 = vmul.f32 %v5383_v0, %v311_v47 }
  0x47   : > { %817 = vadd.xlane.f32.xlu0 %v816_v54  ;;  %v879_v54 = vsel %vm770_vm0, %v550_v51, 0.0  ;;  %v568_v51 = vmul.f32 %v5383_v0, %v310_v48 }
  0x48   : > { %v939_v55 = vsel %vm770_vm0, %v570_v49, 0.0  ;;  %v936_v56 = vsel %vm770_vm0, %v569_v50, 0.0 }
  0x49   : > { %v933_v57 = vsel %vm770_vm0, %v568_v51, 0.0 }
  0x4e   : > { %832 = vadd.xlane.f32.xlu2 %v831_v61  ;;  %829 = vadd.xlane.f32.xlu1 %v828_v62  ;;  %v894_v61 = vsel %vm770_vm0, %v555_v58, 0.0  ;;  %v891_v62 = vsel %vm770_vm0, %v554_v59, 0.0  ;;  %v315_v58 = vld [vmem:[%s5391_s11 + $0x1d8] sm:$0xff]  ;;  %v314_v59 = vld [vmem:[%s5391_s11 + $0x1d0] sm:$0xff] }
  0x4f   : > { %826 = vadd.xlane.f32.xlu0 %v825_v63  ;;  %v888_v63 = vsel %vm770_vm0, %v553_v60, 0.0  ;;  %v313_v60 = vld [vmem:[%s5391_s11 + $0x1c8] sm:$0xff] }
  0x56   : > { %841 = vadd.xlane.f32.xlu2 %v840_v7  ;;  %838 = vadd.xlane.f32.xlu1 %v837_v8  ;;  %v903_v7 = vsel %vm770_vm0, %v558_v4, 0.0  ;;  %v900_v8 = vsel %vm770_vm0, %v557_v5, 0.0 }
  0x57   : > { %835 = vadd.xlane.f32.xlu0 %v834_v9  ;;  %v897_v9 = vsel %vm770_vm0, %v556_v6, 0.0 }
  0x5e   : > { %850 = vadd.xlane.f32.xlu2 %v849_v16  ;;  %847 = vadd.xlane.f32.xlu1 %v846_v17 }
  0x5f   : > { %844 = vadd.xlane.f32.xlu0 %v843_v18 }
  0x66   : > { %859 = vadd.xlane.f32.xlu2 %v858_v25  ;;  %856 = vadd.xlane.f32.xlu1 %v855_v26  ;;  %v564_v25 = vmul.f32 %v5383_v0, %v306_v22  ;;  %v563_v26 = vmul.f32 %v5383_v0, %v305_v23  ;;  %v321_v22 = vld [vmem:[%s5391_s11 + $0x208] sm:$0xff]  ;;  %v320_v23 = vld [vmem:[%s5391_s11 + $0x200] sm:$0xff] }
  0x67   : > { %853 = vadd.xlane.f32.xlu0 %v852_v27  ;;  %v562_v27 = vmul.f32 %v5383_v0, %v304_v24  ;;  %v319_v24 = vld [vmem:[%s5391_s11 + $0x1f8] sm:$0xff] }
  0x68   : > { %v921_v31 = vsel %vm770_vm0, %v564_v25, 0.0  ;;  %v918_v32 = vsel %vm770_vm0, %v563_v26, 0.0  ;;  %v579_v25 = vmul.f32 %v5383_v0, %v321_v22  ;;  %v578_v26 = vmul.f32 %v5383_v0, %v320_v23 }
  0x69   : > { %v915_v33 = vsel %vm770_vm0, %v562_v27, 0.0  ;;  %v577_v27 = vmul.f32 %v5383_v0, %v319_v24 }
  0x6e   : > { %868 = vadd.xlane.f32.xlu2 %v867_v34  ;;  %865 = vadd.xlane.f32.xlu1 %v864_v35  ;;  %v309_v34 = vld [vmem:[%s5391_s11 + $0x1a8] sm:$0xff]  ;;  %v308_v35 = vld [vmem:[%s5391_s11 + $0x1a0] sm:$0xff] }
  0x6f   : > { %862 = vadd.xlane.f32.xlu0 %v861_v36  ;;  %v307_v36 = vld [vmem:[%s5391_s11 + $0x198] sm:$0xff]  ;;  %v567_v37 = vmul.f32 %v5383_v0, %v309_v34  ;;  %v566_v38 = vmul.f32 %v5383_v0, %v308_v35  ;;  %v966_v34 = vsel %vm770_vm0, %v579_v25, 0.0  ;;  %v963_v35 = vsel %vm770_vm0, %v578_v26, 0.0  ;;  %v333_v25 = vld [vmem:[%s5391_s11 + $0x268] sm:$0xff]  ;;  %v332_v26 = vld [vmem:[%s5391_s11 + $0x260] sm:$0xff] }
  0x70   : > { %v565_v39 = vmul.f32 %v5383_v0, %v307_v36  ;;  %v960_v36 = vsel %vm770_vm0, %v577_v27, 0.0  ;;  %v331_v27 = vld [vmem:[%s5391_s11 + $0x258] sm:$0xff] }
  0x76   : > { %877 = vadd.xlane.f32.xlu2 %v876_v43  ;;  %874 = vadd.xlane.f32.xlu1 %v873_v44  ;;  %v930_v43 = vsel %vm770_vm0, %v567_v37, 0.0  ;;  %v927_v44 = vsel %vm770_vm0, %v566_v38, 0.0  ;;  %v324_v37 = vld [vmem:[%s5391_s11 + $0x220] sm:$0xff]  ;;  %v323_v38 = vld [vmem:[%s5391_s11 + $0x218] sm:$0xff] }
  0x77   : > { %871 = vadd.xlane.f32.xlu0 %v870_v45  ;;  %v924_v45 = vsel %vm770_vm0, %v565_v39, 0.0  ;;  %v322_v39 = vld [vmem:[%s5391_s11 + $0x210] sm:$0xff] }
  0x7e   : > { %886 = vadd.xlane.f32.xlu2 %v885_v52  ;;  %883 = vadd.xlane.f32.xlu1 %v882_v53 }
  0x7f   : > { %880 = vadd.xlane.f32.xlu0 %v879_v54 }
  0x86   : > { %895 = vadd.xlane.f32.xlu2 %v894_v61  ;;  %892 = vadd.xlane.f32.xlu1 %v891_v62  ;;  %v573_v61 = vmul.f32 %v5383_v0, %v315_v58  ;;  %v572_v62 = vmul.f32 %v5383_v0, %v314_v59 }
  0x87   : > { %889 = vadd.xlane.f32.xlu0 %v888_v63  ;;  %v571_v63 = vmul.f32 %v5383_v0, %v313_v60 }
  0x88   : > { %v948_v4 = vsel %vm770_vm0, %v573_v61, 0.0  ;;  %v945_v5 = vsel %vm770_vm0, %v572_v62, 0.0 }
  0x89   : > { %v942_v6 = vsel %vm770_vm0, %v571_v63, 0.0 }
  0x8e   : > { %904 = vadd.xlane.f32.xlu2 %v903_v7  ;;  %901 = vadd.xlane.f32.xlu1 %v900_v8  ;;  %v318_v7 = vld [vmem:[%s5391_s11 + $0x1f0] sm:$0xff]  ;;  %v317_v8 = vld [vmem:[%s5391_s11 + $0x1e8] sm:$0xff] }
  0x8f   : > { %898 = vadd.xlane.f32.xlu0 %v897_v9  ;;  %v316_v9 = vld [vmem:[%s5391_s11 + $0x1e0] sm:$0xff]  ;;  %v576_v10 = vmul.f32 %v5383_v0, %v318_v7  ;;  %v575_v11 = vmul.f32 %v5383_v0, %v317_v8  ;;  %v330_v7 = vld [vmem:[%s5391_s11 + $0x250] sm:$0xff]  ;;  %v329_v8 = vld [vmem:[%s5391_s11 + $0x248] sm:$0xff] }
  0x90   : > { %v574_v12 = vmul.f32 %v5383_v0, %v316_v9  ;;  %v328_v9 = vld [vmem:[%s5391_s11 + $0x240] sm:$0xff] }
  0x91   : > { %v5534_v16 = vpop.xlane.xlu2 %784  ;;  %v5536_v17 = vpop.xlane.xlu1 %778 }
  0x92   : > { %v5538_v18 = vpop.xlane.xlu0 %772 }
  0x96   : > { %913 = vadd.xlane.f32.xlu2 %v912_v19  ;;  %910 = vadd.xlane.f32.xlu1 %v909_v20  ;;  %v957_v19 = vsel %vm770_vm0, %v576_v10, 0.0  ;;  %v954_v20 = vsel %vm770_vm0, %v575_v11, 0.0  ;;  %v588_v10 = vmul.f32 %v5383_v0, %v330_v7  ;;  %v587_v11 = vmul.f32 %v5383_v0, %v329_v8  ;;  %v339_v7 = vld [vmem:[%s5391_s11 + $0x298] sm:$0xff]  ;;  %v338_v8 = vld [vmem:[%s5391_s11 + $0x290] sm:$0xff] }
  0x97   : > { %907 = vadd.xlane.f32.xlu0 %v906_v21  ;;  %v951_v21 = vsel %vm770_vm0, %v574_v12, 0.0  ;;  %v586_v12 = vmul.f32 %v5383_v0, %v328_v9  ;;  %v337_v9 = vld [vmem:[%s5391_s11 + $0x288] sm:$0xff] }
  0x98   : > { %v993_v22 = vsel %vm770_vm0, %v588_v10, 0.0  ;;  %v990_v23 = vsel %vm770_vm0, %v587_v11, 0.0  ;;  %v597_v10 = vmul.f32 %v5383_v0, %v339_v7  ;;  %v596_v11 = vmul.f32 %v5383_v0, %v338_v8 }
  0x99   : > { %v5549_v28 = vpop.xlane.xlu2 %787  ;;  %v5551_v29 = vpop.xlane.xlu1 %781  ;;  %v987_v24 = vsel %vm770_vm0, %v586_v12, 0.0  ;;  %v595_v12 = vmul.f32 %v5383_v0, %v337_v9 }
  0x9a   : > { %v5553_v30 = vpop.xlane.xlu0 %775 }
  0x9e   : > { %922 = vadd.xlane.f32.xlu2 %v921_v31  ;;  %919 = vadd.xlane.f32.xlu1 %v918_v32 }
  0x9f   : > { %916 = vadd.xlane.f32.xlu0 %v915_v33 }
  0xa1   : > { %v5564_v40 = vpop.xlane.xlu2 %796  ;;  %v5566_v41 = vpop.xlane.xlu1 %793 }
  0xa2   : > { %v5568_v42 = vpop.xlane.xlu0 %790 }
  0xa6   : > { %931 = vadd.xlane.f32.xlu2 %v930_v43  ;;  %928 = vadd.xlane.f32.xlu1 %v927_v44  ;;  %v582_v43 = vmul.f32 %v5383_v0, %v324_v37  ;;  %v581_v44 = vmul.f32 %v5383_v0, %v323_v38 }
  0xa7   : > { %925 = vadd.xlane.f32.xlu0 %v924_v45  ;;  %v580_v45 = vmul.f32 %v5383_v0, %v322_v39 }
  0xa8   : > { %v975_v49 = vsel %vm770_vm0, %v582_v43, 0.0  ;;  %v972_v50 = vsel %vm770_vm0, %v581_v44, 0.0 }
  0xa9   : > { %v5579_v52 = vpop.xlane.xlu2 %805  ;;  %v5581_v53 = vpop.xlane.xlu1 %802  ;;  %v969_v51 = vsel %vm770_vm0, %v580_v45, 0.0 }
  0xaa   : > { %v5583_v54 = vpop.xlane.xlu0 %799 }
  0xae   : > { %940 = vadd.xlane.f32.xlu2 %v939_v55  ;;  %937 = vadd.xlane.f32.xlu1 %v936_v56  ;;  %v327_v55 = vld [vmem:[%s5391_s11 + $0x238] sm:$0xff]  ;;  %v326_v56 = vld [vmem:[%s5391_s11 + $0x230] sm:$0xff] }
  0xaf   : > { %934 = vadd.xlane.f32.xlu0 %v933_v57  ;;  %v325_v57 = vld [vmem:[%s5391_s11 + $0x228] sm:$0xff]  ;;  %v585_v58 = vmul.f32 %v5383_v0, %v327_v55  ;;  %v584_v59 = vmul.f32 %v5383_v0, %v326_v56 }
  0xb0   : > { %v583_v60 = vmul.f32 %v5383_v0, %v325_v57 }
  0xb1   : > { %v5594_v1 = vpop.xlane.xlu2 %814  ;;  %v5596_v2 = vpop.xlane.xlu1 %811 }
  0xb2   : > { %v5598_v3 = vpop.xlane.xlu0 %808 }
  0xb6   : > { %949 = vadd.xlane.f32.xlu2 %v948_v4  ;;  %946 = vadd.xlane.f32.xlu1 %v945_v5  ;;  %v984_v4 = vsel %vm770_vm0, %v585_v58, 0.0  ;;  %v981_v5 = vsel %vm770_vm0, %v584_v59, 0.0 }
  0xb7   : > { %943 = vadd.xlane.f32.xlu0 %v942_v6  ;;  %v978_v6 = vsel %vm770_vm0, %v583_v60, 0.0 }
  0xb9   : > { %v5609_v13 = vpop.xlane.xlu2 %823  ;;  %v5611_v14 = vpop.xlane.xlu1 %820 }
  0xba   : > { %v5613_v15 = vpop.xlane.xlu0 %817 }
  0xbe   : > { %958 = vadd.xlane.f32.xlu2 %v957_v19  ;;  %955 = vadd.xlane.f32.xlu1 %v954_v20 }
  0xbf   : > { %952 = vadd.xlane.f32.xlu0 %v951_v21 }
  0xc1   : > { %v5624_v31 = vpop.xlane.xlu2 %832  ;;  %v5626_v32 = vpop.xlane.xlu1 %829 }
  0xc2   : > { %v5628_v33 = vpop.xlane.xlu0 %826 }
  0xc6   : > { %967 = vadd.xlane.f32.xlu2 %v966_v34  ;;  %964 = vadd.xlane.f32.xlu1 %v963_v35  ;;  %v591_v34 = vmul.f32 %v5383_v0, %v333_v25  ;;  %v590_v35 = vmul.f32 %v5383_v0, %v332_v26  ;;  %v1020_v25 = vsel %vm770_vm0, %v597_v10, 0.0  ;;  %v1017_v26 = vsel %vm770_vm0, %v596_v11, 0.0 }
  0xc7   : > { %961 = vadd.xlane.f32.xlu0 %v960_v36  ;;  %v589_v36 = vmul.f32 %v5383_v0, %v331_v27  ;;  %v1014_v27 = vsel %vm770_vm0, %v595_v12, 0.0 }
  0xc8   : > { %v1002_v43 = vsel %vm770_vm0, %v591_v34, 0.0  ;;  %v999_v44 = vsel %vm770_vm0, %v590_v35, 0.0  ;;  %v342_v34 = vld [vmem:[%s5391_s11 + $0x2b0] sm:$0xff]  ;;  %v341_v35 = vld [vmem:[%s5391_s11 + $0x2a8] sm:$0xff] }
  0xc9   : > { %v5639_v46 = vpop.xlane.xlu2 %841  ;;  %v5641_v47 = vpop.xlane.xlu1 %838  ;;  %v996_v45 = vsel %vm770_vm0, %v589_v36, 0.0  ;;  %v340_v36 = vld [vmem:[%s5391_s11 + $0x2a0] sm:$0xff] }
  0xca   : > { %v5643_v48 = vpop.xlane.xlu0 %835 }
  0xce   : > { %976 = vadd.xlane.f32.xlu2 %v975_v49  ;;  %973 = vadd.xlane.f32.xlu1 %v972_v50  ;;  %v336_v49 = vld [vmem:[%s5391_s11 + $0x280] sm:$0xff]  ;;  %v335_v50 = vld [vmem:[%s5391_s11 + $0x278] sm:$0xff] }
  0xcf   : > { %970 = vadd.xlane.f32.xlu0 %v969_v51  ;;  %v334_v51 = vld [vmem:[%s5391_s11 + $0x270] sm:$0xff]  ;;  %v594_v55 = vmul.f32 %v5383_v0, %v336_v49  ;;  %v593_v56 = vmul.f32 %v5383_v0, %v335_v50 }
  0xd0   : > { %v592_v57 = vmul.f32 %v5383_v0, %v334_v51 }
  0xd1   : > { %v5654_v61 = vpop.xlane.xlu2 %850  ;;  %v5656_v62 = vpop.xlane.xlu1 %847 }
  0xd2   : > { %v5658_v63 = vpop.xlane.xlu0 %844 }
  0xd6   : > { %985 = vadd.xlane.f32.xlu2 %v984_v4  ;;  %982 = vadd.xlane.f32.xlu1 %v981_v5  ;;  %v1011_v4 = vsel %vm770_vm0, %v594_v55, 0.0  ;;  %v1008_v5 = vsel %vm770_vm0, %v593_v56, 0.0 }
  0xd7   : > { %979 = vadd.xlane.f32.xlu0 %v978_v6  ;;  %v1005_v6 = vsel %vm770_vm0, %v592_v57, 0.0 }
  0xd9   : > { %v5669_v19 = vpop.xlane.xlu2 %859  ;;  %v5671_v20 = vpop.xlane.xlu1 %856 }
  0xda   : > { %v5673_v21 = vpop.xlane.xlu0 %853 }
  0xde   : > { %994 = vadd.xlane.f32.xlu2 %v993_v22  ;;  %991 = vadd.xlane.f32.xlu1 %v990_v23 }
  0xdf   : > { %988 = vadd.xlane.f32.xlu0 %v987_v24 }
  0xe1   : > { %v5684_v37 = vpop.xlane.xlu2 %868  ;;  %v5686_v38 = vpop.xlane.xlu1 %865 }
  0xe2   : > { %v5688_v39 = vpop.xlane.xlu0 %862 }
  0xe6   : > { %1003 = vadd.xlane.f32.xlu2 %v1002_v43  ;;  %1000 = vadd.xlane.f32.xlu1 %v999_v44  ;;  %v600_v43 = vmul.f32 %v5383_v0, %v342_v34  ;;  %v599_v44 = vmul.f32 %v5383_v0, %v341_v35  ;;  %v348_v34 = vld [vmem:[%s5391_s11 + $0x2e0] sm:$0xff]  ;;  %v347_v35 = vld [vmem:[%s5391_s11 + $0x2d8] sm:$0xff] }
  0xe7   : > { %997 = vadd.xlane.f32.xlu0 %v996_v45  ;;  %v598_v45 = vmul.f32 %v5383_v0, %v340_v36  ;;  %v346_v36 = vld [vmem:[%s5391_s11 + $0x2d0] sm:$0xff] }
  0xe8   : > { %v1029_v55 = vsel %vm770_vm0, %v600_v43, 0.0  ;;  %v1026_v56 = vsel %vm770_vm0, %v599_v44, 0.0  ;;  %v606_v43 = vmul.f32 %v5383_v0, %v348_v34  ;;  %v605_v44 = vmul.f32 %v5383_v0, %v347_v35 }
  0xe9   : > { %v5699_v58 = vpop.xlane.xlu2 %877  ;;  %v5701_v59 = vpop.xlane.xlu1 %874  ;;  %v1023_v57 = vsel %vm770_vm0, %v598_v45, 0.0  ;;  %v604_v45 = vmul.f32 %v5383_v0, %v346_v36 }
  0xea   : > { %v5703_v60 = vpop.xlane.xlu0 %871 }
  0xee   : > { %1012 = vadd.xlane.f32.xlu2 %v1011_v4  ;;  %1009 = vadd.xlane.f32.xlu1 %v1008_v5  ;;  %v345_v4 = vld [vmem:[%s5391_s11 + $0x2c8] sm:$0xff]  ;;  %v344_v5 = vld [vmem:[%s5391_s11 + $0x2c0] sm:$0xff] }
  0xef   : > { %1006 = vadd.xlane.f32.xlu0 %v1005_v6  ;;  %v343_v6 = vld [vmem:[%s5391_s11 + $0x2b8] sm:$0xff]  ;;  %v603_v7 = vmul.f32 %v5383_v0, %v345_v4  ;;  %v602_v8 = vmul.f32 %v5383_v0, %v344_v5  ;;  %v1047_v4 = vsel %vm770_vm0, %v606_v43, 0.0  ;;  %v1044_v5 = vsel %vm770_vm0, %v605_v44, 0.0 }
  0xf0   : > { %v601_v9 = vmul.f32 %v5383_v0, %v343_v6  ;;  %v1041_v6 = vsel %vm770_vm0, %v604_v45, 0.0 }
  0xf1   : > { %v5714_v22 = vpop.xlane.xlu2 %886  ;;  %v5716_v23 = vpop.xlane.xlu1 %883 }
  0xf2   : > { %v5718_v24 = vpop.xlane.xlu0 %880 }
  0xf6   : > { %1021 = vadd.xlane.f32.xlu2 %v1020_v25  ;;  %1018 = vadd.xlane.f32.xlu1 %v1017_v26  ;;  %v1038_v25 = vsel %vm770_vm0, %v603_v7, 0.0  ;;  %v1035_v26 = vsel %vm770_vm0, %v602_v8, 0.0  ;;  %v351_v7 = vld [vmem:[%s5391_s11 + $0x2f8] sm:$0xff]  ;;  %v350_v8 = vld [vmem:[%s5391_s11 + $0x2f0] sm:$0xff] }
  0xf7   : > { %1015 = vadd.xlane.f32.xlu0 %v1014_v27  ;;  %v1032_v27 = vsel %vm770_vm0, %v601_v9, 0.0  ;;  %v349_v9 = vld [vmem:[%s5391_s11 + $0x2e8] sm:$0xff] }
  0xf9   : > { %v5729_v49 = vpop.xlane.xlu2 %895  ;;  %v5731_v50 = vpop.xlane.xlu1 %892 }
  0xfa   : > { %9556 = vst [vmem:[#allocation9_spill] sm:$0xff] %v5729_v49  ;;  %v5733_v51 = vpop.xlane.xlu0 %889 }
  0xfe   : > { %1030 = vadd.xlane.f32.xlu2 %v1029_v55  ;;  %1027 = vadd.xlane.f32.xlu1 %v1026_v56 }
  0xff   : > { %1024 = vadd.xlane.f32.xlu0 %v1023_v57 }
 0x101   : > { %v5744_v10 = vpop.xlane.xlu2 %904  ;;  %v5746_v11 = vpop.xlane.xlu1 %901 }
 0x102   : > { %9557 = vst [vmem:[#allocation10_spill] sm:$0xff] %v5744_v10  ;;  %v5748_v12 = vpop.xlane.xlu0 %898 }
 0x103   : > { %9558 = vst [vmem:[#allocation11_spill] sm:$0xff] %v5748_v12 }
 0x106   : > { %1039 = vadd.xlane.f32.xlu2 %v1038_v25  ;;  %1036 = vadd.xlane.f32.xlu1 %v1035_v26  ;;  %v609_v25 = vmul.f32 %v5383_v0, %v351_v7  ;;  %v608_v26 = vmul.f32 %v5383_v0, %v350_v8 }
 0x107   : > { %1033 = vadd.xlane.f32.xlu0 %v1032_v27  ;;  %v607_v27 = vmul.f32 %v5383_v0, %v349_v9 }
 0x108   : > { %v1056_v43 = vsel %vm770_vm0, %v609_v25, 0.0  ;;  %v1053_v44 = vsel %vm770_vm0, %v608_v26, 0.0 }
 0x109   : > { %v5759_v55 = vpop.xlane.xlu2 %913  ;;  %v5761_v56 = vpop.xlane.xlu1 %910  ;;  %v1050_v45 = vsel %vm770_vm0, %v607_v27, 0.0 }
 0x10a   : > { %9559 = vst [vmem:[#allocation12_spill] sm:$0xff] %v5759_v55  ;;  %v5763_v57 = vpop.xlane.xlu0 %907 }
 0x10b   : > { %9560 = vst [vmem:[#allocation13_spill] sm:$0xff] %v5761_v56 }
 0x10c   : > { %9561 = vst [vmem:[#allocation14_spill] sm:$0xff] %v5763_v57 }
 0x10e   : > { %1048 = vadd.xlane.f32.xlu2 %v1047_v4  ;;  %1045 = vadd.xlane.f32.xlu1 %v1044_v5  ;;  %v354_v4 = vld [vmem:[%s5391_s11 + $0x310] sm:$0xff]  ;;  %v353_v5 = vld [vmem:[%s5391_s11 + $0x308] sm:$0xff] }
 0x10f   : > { %1042 = vadd.xlane.f32.xlu0 %v1041_v6  ;;  %v352_v6 = vld [vmem:[%s5391_s11 + $0x300] sm:$0xff]  ;;  %v612_v7 = vmul.f32 %v5383_v0, %v354_v4  ;;  %v611_v8 = vmul.f32 %v5383_v0, %v353_v5  ;;  %v355_v4 = vld [vmem:[%s5391_s11 + $0x318] sm:$0xff] }
 0x110   : > { %v610_v9 = vmul.f32 %v5383_v0, %v352_v6 }
 0x111   : > { %v5774_v34 = vpop.xlane.xlu2 %922  ;;  %v5776_v35 = vpop.xlane.xlu1 %919  ;;  %v1062_v55 = vsel %vm770_vm0, %v611_v8, 0.0 }
 0x112   : > { %9562 = vst [vmem:[#allocation15_spill] sm:$0xff] %v5774_v34  ;;  %v5778_v36 = vpop.xlane.xlu0 %916  ;;  %v1065_v34 = vsel %vm770_vm0, %v612_v7, 0.0 }
 0x113   : > { %9563 = vst [vmem:[#allocation16_spill] sm:$0xff] %v5776_v35  ;;  %v6834_v35 = vstv %s3851_s22 }
 0x114   : > { %9564 = vst [vmem:[#allocation17_spill] sm:$0xff] %v5778_v36  ;;  %v5054_v36 = vld [vmem:[%s5391_s11 + $0x160] sm:$0xff] }
 0x116   : > { %1057 = vadd.xlane.f32.xlu2 %v1056_v43  ;;  %1054 = vadd.xlane.f32.xlu1 %v1053_v44  ;;  %v1059_v43 = vsel %vm770_vm0, %v610_v9, 0.0  ;;  %v357_v44 = vld [vmem:[%s5391_s11 + $0x328] sm:$0xff] }
 0x117   : > { %1051 = vadd.xlane.f32.xlu0 %v1050_v45  ;;  %v356_v45 = vld [vmem:[%s5391_s11 + $0x320] sm:$0xff]  ;;  %v615_v5 = vmul.f32 %v5383_v0, %v357_v44  ;;  %v358_v44 = vld [vmem:[%s5391_s11 + $0x330] sm:$0xff] }
 0x118   : > { %v614_v6 = vmul.f32 %v5383_v0, %v356_v45 }
 0x119   : > { %v5789_v25 = vpop.xlane.xlu2 %931  ;;  %v5791_v26 = vpop.xlane.xlu1 %928 }
 0x11a   : > { %9565 = vst [vmem:[#allocation18_spill] sm:$0xff] %v5789_v25  ;;  %v5793_v27 = vpop.xlane.xlu0 %925  ;;  %v613_v25 = vmul.f32 %v5383_v0, %v355_v4 }
 0x11b   : > { %9566 = vst [vmem:[#allocation19_spill] sm:$0xff] %v5791_v26  ;;  %v1071_v26 = vsel %vm770_vm0, %v614_v6, 0.0 }
 0x11c   : > { %9567 = vst [vmem:[#allocation20_spill] sm:$0xff] %v5793_v27  ;;  %v1074_v27 = vsel %vm770_vm0, %v615_v5, 0.0 }
 0x11e   : > { %1066 = vadd.xlane.f32.xlu2 %v1065_v34  ;;  %1063 = vadd.xlane.f32.xlu1 %v1062_v55  ;;  %v1068_v34 = vsel %vm770_vm0, %v613_v25, 0.0  ;;  %v360_v55 = vld [vmem:[%s5391_s11 + $0x340] sm:$0xff] }
 0x11f   : > { %1060 = vadd.xlane.f32.xlu0 %v1059_v43  ;;  %v359_v43 = vld [vmem:[%s5391_s11 + $0x338] sm:$0xff]  ;;  %v618_v45 = vmul.f32 %v5383_v0, %v360_v55  ;;  %v361_v55 = vld [vmem:[%s5391_s11 + $0x348] sm:$0xff] }
 0x120   : > { %v617_v4 = vmul.f32 %v5383_v0, %v359_v43 }
 0x121   : > { %v5804_v7 = vpop.xlane.xlu2 %940  ;;  %v5806_v8 = vpop.xlane.xlu1 %937 }
 0x122   : > { %9568 = vst [vmem:[#allocation21_spill] sm:$0xff] %v5804_v7  ;;  %v5808_v9 = vpop.xlane.xlu0 %934  ;;  %v616_v7 = vmul.f32 %v5383_v0, %v358_v44 }
 0x123   : > { %9569 = vst [vmem:[#allocation22_spill] sm:$0xff] %v5806_v8  ;;  %v1080_v8 = vsel %vm770_vm0, %v617_v4, 0.0 }
 0x124   : > { %9570 = vst [vmem:[#allocation23_spill] sm:$0xff] %v5808_v9  ;;  %v1083_v9 = vsel %vm770_vm0, %v618_v45, 0.0 }
 0x126   : > { %1075 = vadd.xlane.f32.xlu2 %v1074_v27  ;;  %1072 = vadd.xlane.f32.xlu1 %v1071_v26  ;;  %v1077_v27 = vsel %vm770_vm0, %v616_v7, 0.0  ;;  %v363_v26 = vld [vmem:[%s5391_s11 + $0x358] sm:$0xff] }
 0x127   : > { %1069 = vadd.xlane.f32.xlu0 %v1068_v34  ;;  %v362_v34 = vld [vmem:[%s5391_s11 + $0x350] sm:$0xff]  ;;  %v621_v43 = vmul.f32 %v5383_v0, %v363_v26  ;;  %v364_v26 = vld [vmem:[%s5391_s11 + $0x360] sm:$0xff] }
 0x128   : > { %v620_v44 = vmul.f32 %v5383_v0, %v362_v34 }
 0x129   : > { %v5819_v5 = vpop.xlane.xlu2 %949  ;;  %v5821_v6 = vpop.xlane.xlu1 %946 }
 0x12a   : > { %9571 = vst [vmem:[#allocation24_spill] sm:$0xff] %v5819_v5  ;;  %v5823_v25 = vpop.xlane.xlu0 %943  ;;  %v619_v5 = vmul.f32 %v5383_v0, %v361_v55 }
 0x12b   : > { %9572 = vst [vmem:[#allocation25_spill] sm:$0xff] %v5821_v6  ;;  %v1089_v6 = vsel %vm770_vm0, %v620_v44, 0.0 }
 0x12c   : > { %9573 = vst [vmem:[#allocation26_spill] sm:$0xff] %v5823_v25  ;;  %v1092_v25 = vsel %vm770_vm0, %v621_v43, 0.0 }
 0x12e   : > { %1084 = vadd.xlane.f32.xlu2 %v1083_v9  ;;  %1081 = vadd.xlane.f32.xlu1 %v1080_v8  ;;  %v1086_v9 = vsel %vm770_vm0, %v619_v5, 0.0  ;;  %v366_v8 = vld [vmem:[%s5391_s11 + $0x370] sm:$0xff] }
 0x12f   : > { %1078 = vadd.xlane.f32.xlu0 %v1077_v27  ;;  %v365_v27 = vld [vmem:[%s5391_s11 + $0x368] sm:$0xff]  ;;  %v624_v34 = vmul.f32 %v5383_v0, %v366_v8  ;;  %v367_v8 = vld [vmem:[%s5391_s11 + $0x378] sm:$0xff] }
 0x130   : > { %v623_v55 = vmul.f32 %v5383_v0, %v365_v27 }
 0x131   : > { %v5834_v45 = vpop.xlane.xlu2 %958  ;;  %v5836_v4 = vpop.xlane.xlu1 %955 }
 0x132   : > { %9574 = vst [vmem:[#allocation27_spill] sm:$0xff] %v5834_v45  ;;  %v5838_v7 = vpop.xlane.xlu0 %952  ;;  %v622_v45 = vmul.f32 %v5383_v0, %v364_v26  ;;  %v5864_v0 = vld [vmem:[%s9550_s1] ss:$0 sm:$0xff] }
 0x133   : > { %9575 = vst [vmem:[#allocation28_spill] sm:$0xff] %v5836_v4  ;;  %v1098_v4 = vsel %vm770_vm0, %v623_v55, 0.0 }
 0x134   : > { %9576 = vst [vmem:[#allocation29_spill] sm:$0xff] %v5838_v7  ;;  %v1101_v7 = vsel %vm770_vm0, %v624_v34, 0.0 }
 0x136   : > { %1093 = vadd.xlane.f32.xlu2 %v1092_v25  ;;  %1090 = vadd.xlane.f32.xlu1 %v1089_v6  ;;  %v1095_v25 = vsel %vm770_vm0, %v622_v45, 0.0  ;;  %v369_v6 = vld [vmem:[%s5391_s11 + $0x388] sm:$0xff]  ;;  %v625_v45 = vmul.f32 %v5864_v0, %v367_v8 }
 0x137   : > { %1087 = vadd.xlane.f32.xlu0 %v1086_v9  ;;  %v368_v9 = vld [vmem:[%s5391_s11 + $0x380] sm:$0xff]  ;;  %v627_v27 = vmul.f32 %v5864_v0, %v369_v6  ;;  %v371_v6 = vld [vmem:[%s5391_s11 + $0x398] sm:$0xff] }
 0x138   : > { %v626_v26 = vmul.f32 %v5864_v0, %v368_v9  ;;  %v370_v9 = vld [vmem:[%s5391_s11 + $0x390] sm:$0xff] }
 0x139   : > { %v5849_v43 = vpop.xlane.xlu2 %967  ;;  %v5851_v44 = vpop.xlane.xlu1 %964 }
 0x13a   : > { %9577 = vst [vmem:[#allocation30_spill] sm:$0xff] %v5849_v43  ;;  %v5853_v5 = vpop.xlane.xlu0 %961 }
 0x13b   : > { %9578 = vst [vmem:[#allocation31_spill] sm:$0xff] %v5851_v44 }
 0x13c   : > { %9579 = vst [vmem:[#allocation32_spill] sm:$0xff] %v5853_v5  ;;  %v372_v5 = vld [vmem:[%s5391_s11 + $0x3a0] sm:$0xff] }
 0x13d   : > { %v630_v8 = vmul.f32 %v5864_v0, %v372_v5  ;;  %v374_v5 = vld [vmem:[%s5391_s11 + $0x3b0] sm:$0xff] }
 0x13e   : > { %1102 = vadd.xlane.f32.xlu2 %v1101_v7  ;;  %1099 = vadd.xlane.f32.xlu1 %v1098_v4  ;;  %v1110_v4 = vsel %vm770_vm0, %v627_v27, 0.0  ;;  %v1107_v7 = vsel %vm770_vm0, %v626_v26, 0.0 }
 0x13f   : > { %1096 = vadd.xlane.f32.xlu0 %v1095_v25  ;;  %v1104_v25 = vsel %vm770_vm0, %v625_v45, 0.0 }
 0x141   : > { %v5869_v34 = vpop.xlane.xlu2 %976  ;;  %v5871_v55 = vpop.xlane.xlu1 %973 }
 0x142   : > { %9580 = vst [vmem:[#allocation33_spill] sm:$0xff] %v5869_v34  ;;  %v5873_v43 = vpop.xlane.xlu0 %970  ;;  %v629_v34 = vmul.f32 %v5864_v0, %v371_v6 }
 0x143   : > { %9581 = vst [vmem:[#allocation34_spill] sm:$0xff] %v5871_v55  ;;  %v1119_v55 = vsel %vm770_vm0, %v630_v8, 0.0 }
 0x144   : > { %9582 = vst [vmem:[#allocation35_spill] sm:$0xff] %v5873_v43  ;;  %v628_v43 = vmul.f32 %v5864_v0, %v370_v9  ;;  %v1116_v44 = vsel %vm770_vm0, %v629_v34, 0.0  ;;  %v632_v9 = vmul.f32 %v5864_v0, %v374_v5 }
 0x146   : > { %1111 = vadd.xlane.f32.xlu2 %v1110_v4  ;;  %1108 = vadd.xlane.f32.xlu1 %v1107_v7  ;;  %v1113_v4 = vsel %vm770_vm0, %v628_v43, 0.0  ;;  %v375_v7 = vld [vmem:[%s5391_s11 + $0x3b8] sm:$0xff] }
 0x147   : > { %1105 = vadd.xlane.f32.xlu0 %v1104_v25  ;;  %v373_v25 = vld [vmem:[%s5391_s11 + $0x3a8] sm:$0xff]  ;;  %v633_v6 = vmul.f32 %v5864_v0, %v375_v7  ;;  %v376_v7 = vld [vmem:[%s5391_s11 + $0x3c0] sm:$0xff] }
 0x149   : > { %v5884_v27 = vpop.xlane.xlu2 %985  ;;  %v5886_v26 = vpop.xlane.xlu1 %982 }
 0x14a   : > { %9583 = vst [vmem:[#allocation36_spill] sm:$0xff] %v5884_v27  ;;  %v5888_v45 = vpop.xlane.xlu0 %979  ;;  %v631_v27 = vmul.f32 %v5864_v0, %v373_v25 }
 0x14b   : > { %9584 = vst [vmem:[#allocation37_spill] sm:$0xff] %v5886_v26  ;;  %v1125_v26 = vsel %vm770_vm0, %v632_v9, 0.0 }
 0x14c   : > { %9585 = vst [vmem:[#allocation38_spill] sm:$0xff] %v5888_v45  ;;  %v1128_v45 = vsel %vm770_vm0, %v633_v6, 0.0 }
 0x14e   : > { %1120 = vadd.xlane.f32.xlu2 %v1119_v55  ;;  %1117 = vadd.xlane.f32.xlu1 %v1116_v44  ;;  %v1122_v55 = vsel %vm770_vm0, %v631_v27, 0.0  ;;  %v378_v44 = vld [vmem:[%s5391_s11 + $0x3d0] sm:$0xff] }
 0x14f   : > { %1114 = vadd.xlane.f32.xlu0 %v1113_v4  ;;  %v377_v4 = vld [vmem:[%s5391_s11 + $0x3c8] sm:$0xff]  ;;  %v636_v5 = vmul.f32 %v5864_v0, %v378_v44  ;;  %v379_v44 = vld [vmem:[%s5391_s11 + $0x3d8] sm:$0xff] }
 0x150   : > { %v635_v25 = vmul.f32 %v5864_v0, %v377_v4 }
 0x151   : > { %v5899_v8 = vpop.xlane.xlu2 %994  ;;  %v5901_v34 = vpop.xlane.xlu1 %991 }
 0x152   : > { %9586 = vst [vmem:[#allocation39_spill] sm:$0xff] %v5899_v8  ;;  %v5903_v43 = vpop.xlane.xlu0 %988  ;;  %v634_v8 = vmul.f32 %v5864_v0, %v376_v7 }
 0x153   : > { %9587 = vst [vmem:[#allocation40_spill] sm:$0xff] %v5901_v34  ;;  %v1134_v34 = vsel %vm770_vm0, %v635_v25, 0.0 }
 0x154   : > { %9588 = vst [vmem:[#allocation41_spill] sm:$0xff] %v5903_v43  ;;  %v1137_v43 = vsel %vm770_vm0, %v636_v5, 0.0 }
 0x156   : > { %1129 = vadd.xlane.f32.xlu2 %v1128_v45  ;;  %1126 = vadd.xlane.f32.xlu1 %v1125_v26  ;;  %v1131_v45 = vsel %vm770_vm0, %v634_v8, 0.0  ;;  %v381_v26 = vld [vmem:[%s5391_s11 + $0x3e8] sm:$0xff] }
 0x157   : > { %1123 = vadd.xlane.f32.xlu0 %v1122_v55  ;;  %v380_v55 = vld [vmem:[%s5391_s11 + $0x3e0] sm:$0xff]  ;;  %v639_v4 = vmul.f32 %v5864_v0, %v381_v26  ;;  %v382_v26 = vld [vmem:[%s5391_s11 + $0x3f0] sm:$0xff] }
 0x158   : > { %v638_v7 = vmul.f32 %v5864_v0, %v380_v55 }
 0x159   : > { %v5914_v6 = vpop.xlane.xlu2 %1003  ;;  %v5916_v9 = vpop.xlane.xlu1 %1000 }
 0x15a   : > { %9589 = vst [vmem:[#allocation42_spill] sm:$0xff] %v5914_v6  ;;  %v5918_v27 = vpop.xlane.xlu0 %997  ;;  %v637_v6 = vmul.f32 %v5864_v0, %v379_v44 }
 0x15b   : > { %9590 = vst [vmem:[#allocation43_spill] sm:$0xff] %v5916_v9  ;;  %v1143_v9 = vsel %vm770_vm0, %v638_v7, 0.0 }
 0x15c   : > { %9591 = vst [vmem:[#allocation44_spill] sm:$0xff] %v5918_v27  ;;  %v1146_v27 = vsel %vm770_vm0, %v639_v4, 0.0 }
 0x15e   : > { %1138 = vadd.xlane.f32.xlu2 %v1137_v43  ;;  %1135 = vadd.xlane.f32.xlu1 %v1134_v34  ;;  %v1140_v43 = vsel %vm770_vm0, %v637_v6, 0.0  ;;  %v384_v34 = vld [vmem:[%s5391_s11 + $0x400] sm:$0xff] }
 0x15f   : > { %1132 = vadd.xlane.f32.xlu0 %v1131_v45  ;;  %v383_v45 = vld [vmem:[%s5391_s11 + $0x3f8] sm:$0xff]  ;;  %v642_v55 = vmul.f32 %v5864_v0, %v384_v34  ;;  %v385_v34 = vld [vmem:[%s5391_s11 + $0x408] sm:$0xff] }
 0x160   : > { %v641_v44 = vmul.f32 %v5864_v0, %v383_v45 }
 0x161   : > { %v5929_v5 = vpop.xlane.xlu2 %1012  ;;  %v5931_v25 = vpop.xlane.xlu1 %1009 }
 0x162   : > { %9592 = vst [vmem:[#allocation45_spill] sm:$0xff] %v5929_v5  ;;  %v5933_v8 = vpop.xlane.xlu0 %1006  ;;  %v640_v5 = vmul.f32 %v5864_v0, %v382_v26 }
 0x163   : > { %9593 = vst [vmem:[#allocation46_spill] sm:$0xff] %v5931_v25  ;;  %v1152_v25 = vsel %vm770_vm0, %v641_v44, 0.0 }
 0x164   : > { %9594 = vst [vmem:[#allocation47_spill] sm:$0xff] %v5933_v8  ;;  %v1155_v8 = vsel %vm770_vm0, %v642_v55, 0.0 }
 0x166   : > { %1147 = vadd.xlane.f32.xlu2 %v1146_v27  ;;  %1144 = vadd.xlane.f32.xlu1 %v1143_v9  ;;  %v1149_v27 = vsel %vm770_vm0, %v640_v5, 0.0  ;;  %v387_v9 = vld [vmem:[%s5391_s11 + $0x418] sm:$0xff] }
 0x167   : > { %1141 = vadd.xlane.f32.xlu0 %v1140_v43  ;;  %v386_v43 = vld [vmem:[%s5391_s11 + $0x410] sm:$0xff]  ;;  %v645_v45 = vmul.f32 %v5864_v0, %v387_v9  ;;  %v388_v9 = vld [vmem:[%s5391_s11 + $0x420] sm:$0xff] }
 0x168   : > { %v644_v26 = vmul.f32 %v5864_v0, %v386_v43 }
 0x169   : > { %v5944_v4 = vpop.xlane.xlu2 %1021  ;;  %v5946_v7 = vpop.xlane.xlu1 %1018 }
 0x16a   : > { %9595 = vst [vmem:[#allocation48_spill] sm:$0xff] %v5944_v4  ;;  %v5948_v6 = vpop.xlane.xlu0 %1015  ;;  %v643_v4 = vmul.f32 %v5864_v0, %v385_v34 }
 0x16b   : > { %9596 = vst [vmem:[#allocation49_spill] sm:$0xff] %v5946_v7  ;;  %v1161_v7 = vsel %vm770_vm0, %v644_v26, 0.0 }
 0x16c   : > { %9597 = vst [vmem:[#allocation50_spill] sm:$0xff] %v5948_v6  ;;  %v1164_v6 = vsel %vm770_vm0, %v645_v45, 0.0 }
 0x16e   : > { %1156 = vadd.xlane.f32.xlu2 %v1155_v8  ;;  %1153 = vadd.xlane.f32.xlu1 %v1152_v25  ;;  %v1158_v8 = vsel %vm770_vm0, %v643_v4, 0.0  ;;  %v390_v25 = vld [vmem:[%s5391_s11 + $0x430] sm:$0xff] }
 0x16f   : > { %1150 = vadd.xlane.f32.xlu0 %v1149_v27  ;;  %v389_v27 = vld [vmem:[%s5391_s11 + $0x428] sm:$0xff]  ;;  %v648_v43 = vmul.f32 %v5864_v0, %v390_v25  ;;  %v391_v25 = vld [vmem:[%s5391_s11 + $0x438] sm:$0xff] }
 0x170   : > { %v647_v34 = vmul.f32 %v5864_v0, %v389_v27 }
 0x171   : > { %v5959_v55 = vpop.xlane.xlu2 %1030  ;;  %v5961_v44 = vpop.xlane.xlu1 %1027 }
 0x172   : > { %9598 = vst [vmem:[#allocation51_spill] sm:$0xff] %v5959_v55  ;;  %v5963_v5 = vpop.xlane.xlu0 %1024  ;;  %v646_v55 = vmul.f32 %v5864_v0, %v388_v9 }
 0x173   : > { %9599 = vst [vmem:[#allocation52_spill] sm:$0xff] %v5961_v44  ;;  %v1170_v44 = vsel %vm770_vm0, %v647_v34, 0.0 }
 0x174   : > { %9600 = vst [vmem:[#allocation53_spill] sm:$0xff] %v5963_v5  ;;  %v1173_v5 = vsel %vm770_vm0, %v648_v43, 0.0 }
 0x176   : > { %1165 = vadd.xlane.f32.xlu2 %v1164_v6  ;;  %1162 = vadd.xlane.f32.xlu1 %v1161_v7  ;;  %v1167_v6 = vsel %vm770_vm0, %v646_v55, 0.0  ;;  %v393_v7 = vld [vmem:[%s5391_s11 + $0x448] sm:$0xff] }
 0x177   : > { %1159 = vadd.xlane.f32.xlu0 %v1158_v8  ;;  %v392_v8 = vld [vmem:[%s5391_s11 + $0x440] sm:$0xff]  ;;  %v651_v27 = vmul.f32 %v5864_v0, %v393_v7  ;;  %v394_v7 = vld [vmem:[%s5391_s11 + $0x450] sm:$0xff] }
 0x178   : > { %v650_v9 = vmul.f32 %v5864_v0, %v392_v8 }
 0x179   : > { %v5974_v45 = vpop.xlane.xlu2 %1039  ;;  %v5976_v26 = vpop.xlane.xlu1 %1036 }
 0x17a   : > { %9601 = vst [vmem:[#allocation54_spill] sm:$0xff] %v5974_v45  ;;  %v5978_v4 = vpop.xlane.xlu0 %1033  ;;  %v649_v45 = vmul.f32 %v5864_v0, %v391_v25 }
 0x17b   : > { %9602 = vst [vmem:[#allocation55_spill] sm:$0xff] %v5976_v26  ;;  %v1179_v26 = vsel %vm770_vm0, %v650_v9, 0.0 }
 0x17c   : > { %9603 = vst [vmem:[#allocation56_spill] sm:$0xff] %v5978_v4  ;;  %v1182_v4 = vsel %vm770_vm0, %v651_v27, 0.0 }
 0x17e   : > { %1174 = vadd.xlane.f32.xlu2 %v1173_v5  ;;  %1171 = vadd.xlane.f32.xlu1 %v1170_v44  ;;  %v1176_v5 = vsel %vm770_vm0, %v649_v45, 0.0  ;;  %v396_v44 = vld [vmem:[%s5391_s11 + $0x460] sm:$0xff] }
 0x17f   : > { %1168 = vadd.xlane.f32.xlu0 %v1167_v6  ;;  %v395_v6 = vld [vmem:[%s5391_s11 + $0x458] sm:$0xff]  ;;  %v654_v8 = vmul.f32 %v5864_v0, %v396_v44  ;;  %v397_v44 = vld [vmem:[%s5391_s11 + $0x468] sm:$0xff] }
 0x180   : > { %v653_v25 = vmul.f32 %v5864_v0, %v395_v6 }
 0x181   : > { %v5989_v43 = vpop.xlane.xlu2 %1048  ;;  %v5991_v34 = vpop.xlane.xlu1 %1045 }
 0x182   : > { %9604 = vst [vmem:[#allocation57_spill] sm:$0xff] %v5989_v43  ;;  %v5993_v55 = vpop.xlane.xlu0 %1042  ;;  %v652_v43 = vmul.f32 %v5864_v0, %v394_v7 }
 0x183   : > { %9605 = vst [vmem:[#allocation58_spill] sm:$0xff] %v5991_v34  ;;  %v1188_v34 = vsel %vm770_vm0, %v653_v25, 0.0 }
 0x184   : > { %9606 = vst [vmem:[#allocation59_spill] sm:$0xff] %v5993_v55  ;;  %v1191_v55 = vsel %vm770_vm0, %v654_v8, 0.0 }
 0x186   : > { %1183 = vadd.xlane.f32.xlu2 %v1182_v4  ;;  %1180 = vadd.xlane.f32.xlu1 %v1179_v26  ;;  %v1185_v4 = vsel %vm770_vm0, %v652_v43, 0.0  ;;  %v399_v26 = vld [vmem:[%s5391_s11 + $0x478] sm:$0xff] }
 0x187   : > { %1177 = vadd.xlane.f32.xlu0 %v1176_v5  ;;  %v398_v5 = vld [vmem:[%s5391_s11 + $0x470] sm:$0xff]  ;;  %v657_v6 = vmul.f32 %v5864_v0, %v399_v26  ;;  %v400_v26 = vld [vmem:[%s5391_s11 + $0x480] sm:$0xff] }
 0x188   : > { %v656_v7 = vmul.f32 %v5864_v0, %v398_v5 }
 0x189   : > { %v6004_v27 = vpop.xlane.xlu2 %1057  ;;  %v6006_v9 = vpop.xlane.xlu1 %1054 }
 0x18a   : > { %9607 = vst [vmem:[#allocation60_spill] sm:$0xff] %v6004_v27  ;;  %v6008_v45 = vpop.xlane.xlu0 %1051  ;;  %v655_v27 = vmul.f32 %v5864_v0, %v397_v44 }
 0x18b   : > { %9608 = vst [vmem:[#allocation61_spill] sm:$0xff] %v6006_v9  ;;  %v1197_v9 = vsel %vm770_vm0, %v656_v7, 0.0 }
 0x18c   : > { %9609 = vst [vmem:[#allocation62_spill] sm:$0xff] %v6008_v45  ;;  %v1200_v45 = vsel %vm770_vm0, %v657_v6, 0.0 }
 0x18e   : > { %1192 = vadd.xlane.f32.xlu2 %v1191_v55  ;;  %1189 = vadd.xlane.f32.xlu1 %v1188_v34  ;;  %v1194_v55 = vsel %vm770_vm0, %v655_v27, 0.0  ;;  %v402_v34 = vld [vmem:[%s5391_s11 + $0x490] sm:$0xff] }
 0x18f   : > { %1186 = vadd.xlane.f32.xlu0 %v1185_v4  ;;  %v401_v4 = vld [vmem:[%s5391_s11 + $0x488] sm:$0xff]  ;;  %v660_v5 = vmul.f32 %v5864_v0, %v402_v34  ;;  %v403_v34 = vld [vmem:[%s5391_s11 + $0x498] sm:$0xff] }
 0x190   : > { %v659_v44 = vmul.f32 %v5864_v0, %v401_v4 }
 0x191   : > { %v6019_v8 = vpop.xlane.xlu2 %1066  ;;  %v6021_v25 = vpop.xlane.xlu1 %1063 }
 0x192   : > { %9610 = vst [vmem:[#allocation63_spill] sm:$0xff] %v6019_v8  ;;  %v6023_v43 = vpop.xlane.xlu0 %1060  ;;  %v658_v8 = vmul.f32 %v5864_v0, %v400_v26 }
 0x193   : > { %9611 = vst [vmem:[#allocation64_spill] sm:$0xff] %v6021_v25  ;;  %v1206_v25 = vsel %vm770_vm0, %v659_v44, 0.0 }
 0x194   : > { %9612 = vst [vmem:[#allocation65_spill] sm:$0xff] %v6023_v43  ;;  %v1209_v43 = vsel %vm770_vm0, %v660_v5, 0.0 }
 0x196   : > { %1201 = vadd.xlane.f32.xlu2 %v1200_v45  ;;  %1198 = vadd.xlane.f32.xlu1 %v1197_v9  ;;  %v1203_v45 = vsel %vm770_vm0, %v658_v8, 0.0  ;;  %v405_v9 = vld [vmem:[%s5391_s11 + $0x4a8] sm:$0xff] }
 0x197   : > { %1195 = vadd.xlane.f32.xlu0 %v1194_v55  ;;  %v404_v55 = vld [vmem:[%s5391_s11 + $0x4a0] sm:$0xff]  ;;  %v663_v4 = vmul.f32 %v5864_v0, %v405_v9  ;;  %v406_v9 = vld [vmem:[%s5391_s11 + $0x4b0] sm:$0xff] }
 0x198   : > { %v662_v26 = vmul.f32 %v5864_v0, %v404_v55 }
 0x199   : > { %v6034_v6 = vpop.xlane.xlu2 %1075  ;;  %v6036_v7 = vpop.xlane.xlu1 %1072 }
 0x19a   : > { %9613 = vst [vmem:[#allocation66_spill] sm:$0xff] %v6034_v6  ;;  %v6038_v27 = vpop.xlane.xlu0 %1069  ;;  %v661_v6 = vmul.f32 %v5864_v0, %v403_v34 }
 0x19b   : > { %9614 = vst [vmem:[#allocation67_spill] sm:$0xff] %v6036_v7  ;;  %v1215_v7 = vsel %vm770_vm0, %v662_v26, 0.0 }
 0x19c   : > { %9615 = vst [vmem:[#allocation68_spill] sm:$0xff] %v6038_v27  ;;  %v1218_v27 = vsel %vm770_vm0, %v663_v4, 0.0 }
 0x19e   : > { %1210 = vadd.xlane.f32.xlu2 %v1209_v43  ;;  %1207 = vadd.xlane.f32.xlu1 %v1206_v25  ;;  %v1212_v43 = vsel %vm770_vm0, %v661_v6, 0.0  ;;  %v408_v25 = vld [vmem:[%s5391_s11 + $0x4c0] sm:$0xff] }
 0x19f   : > { %1204 = vadd.xlane.f32.xlu0 %v1203_v45  ;;  %v407_v45 = vld [vmem:[%s5391_s11 + $0x4b8] sm:$0xff]  ;;  %v666_v55 = vmul.f32 %v5864_v0, %v408_v25  ;;  %v409_v25 = vld [vmem:[%s5391_s11 + $0x4c8] sm:$0xff] }
 0x1a0   : > { %v665_v34 = vmul.f32 %v5864_v0, %v407_v45 }
 0x1a1   : > { %v6049_v5 = vpop.xlane.xlu2 %1084  ;;  %v6051_v44 = vpop.xlane.xlu1 %1081 }
 0x1a2   : > { %9616 = vst [vmem:[#allocation69_spill] sm:$0xff] %v6049_v5  ;;  %v6053_v8 = vpop.xlane.xlu0 %1078  ;;  %v664_v5 = vmul.f32 %v5864_v0, %v406_v9 }
 0x1a3   : > { %9617 = vst [vmem:[#allocation70_spill] sm:$0xff] %v6051_v44  ;;  %v1224_v44 = vsel %vm770_vm0, %v665_v34, 0.0 }
 0x1a4   : > { %9618 = vst [vmem:[#allocation71_spill] sm:$0xff] %v6053_v8  ;;  %v1227_v8 = vsel %vm770_vm0, %v666_v55, 0.0 }
 0x1a6   : > { %1219 = vadd.xlane.f32.xlu2 %v1218_v27  ;;  %1216 = vadd.xlane.f32.xlu1 %v1215_v7  ;;  %v1221_v27 = vsel %vm770_vm0, %v664_v5, 0.0  ;;  %v411_v7 = vld [vmem:[%s5391_s11 + $0x4d8] sm:$0xff] }
 0x1a7   : > { %1213 = vadd.xlane.f32.xlu0 %v1212_v43  ;;  %v410_v43 = vld [vmem:[%s5391_s11 + $0x4d0] sm:$0xff]  ;;  %v669_v45 = vmul.f32 %v5864_v0, %v411_v7  ;;  %v412_v7 = vld [vmem:[%s5391_s11 + $0x4e0] sm:$0xff] }
 0x1a8   : > { %v668_v9 = vmul.f32 %v5864_v0, %v410_v43 }
 0x1a9   : > { %v6064_v4 = vpop.xlane.xlu2 %1093  ;;  %v6066_v26 = vpop.xlane.xlu1 %1090 }
 0x1aa   : > { %9619 = vst [vmem:[#allocation72_spill] sm:$0xff] %v6064_v4  ;;  %v6068_v6 = vpop.xlane.xlu0 %1087  ;;  %v667_v4 = vmul.f32 %v5864_v0, %v409_v25 }
 0x1ab   : > { %9620 = vst [vmem:[#allocation73_spill] sm:$0xff] %v6066_v26  ;;  %v1233_v26 = vsel %vm770_vm0, %v668_v9, 0.0 }
 0x1ac   : > { %9621 = vst [vmem:[#allocation74_spill] sm:$0xff] %v6068_v6  ;;  %v1236_v6 = vsel %vm770_vm0, %v669_v45, 0.0 }
 0x1ae   : > { %1228 = vadd.xlane.f32.xlu2 %v1227_v8  ;;  %1225 = vadd.xlane.f32.xlu1 %v1224_v44  ;;  %v1230_v8 = vsel %vm770_vm0, %v667_v4, 0.0  ;;  %v414_v44 = vld [vmem:[%s5391_s11 + $0x4f0] sm:$0xff] }
 0x1af   : > { %1222 = vadd.xlane.f32.xlu0 %v1221_v27  ;;  %v413_v27 = vld [vmem:[%s5391_s11 + $0x4e8] sm:$0xff]  ;;  %v672_v43 = vmul.f32 %v5864_v0, %v414_v44  ;;  %v415_v44 = vld [vmem:[%s5391_s11 + $0x4f8] sm:$0xff] }
 0x1b0   : > { %v671_v25 = vmul.f32 %v5864_v0, %v413_v27 }
 0x1b1   : > { %v6079_v55 = vpop.xlane.xlu2 %1102  ;;  %v6081_v34 = vpop.xlane.xlu1 %1099 }
 0x1b2   : > { %9622 = vst [vmem:[#allocation75_spill] sm:$0xff] %v6079_v55  ;;  %v6083_v5 = vpop.xlane.xlu0 %1096  ;;  %v670_v55 = vmul.f32 %v5864_v0, %v412_v7 }
 0x1b3   : > { %9623 = vst [vmem:[#allocation76_spill] sm:$0xff] %v6081_v34  ;;  %v1242_v34 = vsel %vm770_vm0, %v671_v25, 0.0 }
 0x1b4   : > { %9624 = vst [vmem:[#allocation77_spill] sm:$0xff] %v6083_v5  ;;  %v1245_v5 = vsel %vm770_vm0, %v672_v43, 0.0 }
 0x1b6   : > { %1237 = vadd.xlane.f32.xlu2 %v1236_v6  ;;  %1234 = vadd.xlane.f32.xlu1 %v1233_v26  ;;  %v1239_v6 = vsel %vm770_vm0, %v670_v55, 0.0  ;;  %v417_v26 = vld [vmem:[%s5391_s11 + $0x508] sm:$0xff] }
 0x1b7   : > { %1231 = vadd.xlane.f32.xlu0 %v1230_v8  ;;  %v416_v8 = vld [vmem:[%s5391_s11 + $0x500] sm:$0xff]  ;;  %v675_v27 = vmul.f32 %v5864_v0, %v417_v26  ;;  %v418_v26 = vld [vmem:[%s5391_s11 + $0x510] sm:$0xff] }
 0x1b8   : > { %v674_v7 = vmul.f32 %v5864_v0, %v416_v8 }
 0x1b9   : > { %v6094_v45 = vpop.xlane.xlu2 %1111  ;;  %v6096_v9 = vpop.xlane.xlu1 %1108 }
 0x1ba   : > { %9625 = vst [vmem:[#allocation78_spill] sm:$0xff] %v6094_v45  ;;  %v6098_v4 = vpop.xlane.xlu0 %1105  ;;  %v673_v45 = vmul.f32 %v5864_v0, %v415_v44 }
 0x1bb   : > { %9626 = vst [vmem:[#allocation79_spill] sm:$0xff] %v6096_v9  ;;  %v1251_v9 = vsel %vm770_vm0, %v674_v7, 0.0 }
 0x1bc   : > { %9627 = vst [vmem:[#allocation80_spill] sm:$0xff] %v6098_v4  ;;  %v1254_v4 = vsel %vm770_vm0, %v675_v27, 0.0 }
 0x1be   : > { %1246 = vadd.xlane.f32.xlu2 %v1245_v5  ;;  %1243 = vadd.xlane.f32.xlu1 %v1242_v34  ;;  %v1248_v5 = vsel %vm770_vm0, %v673_v45, 0.0  ;;  %v420_v34 = vld [vmem:[%s5391_s11 + $0x520] sm:$0xff] }
 0x1bf   : > { %1240 = vadd.xlane.f32.xlu0 %v1239_v6  ;;  %v419_v6 = vld [vmem:[%s5391_s11 + $0x518] sm:$0xff]  ;;  %v678_v8 = vmul.f32 %v5864_v0, %v420_v34  ;;  %v421_v34 = vld [vmem:[%s5391_s11 + $0x528] sm:$0xff] }
 0x1c0   : > { %v677_v44 = vmul.f32 %v5864_v0, %v419_v6 }
 0x1c1   : > { %v6109_v43 = vpop.xlane.xlu2 %1120  ;;  %v6111_v25 = vpop.xlane.xlu1 %1117 }
 0x1c2   : > { %9628 = vst [vmem:[#allocation81_spill] sm:$0xff] %v6109_v43  ;;  %v6113_v55 = vpop.xlane.xlu0 %1114  ;;  %v676_v43 = vmul.f32 %v5864_v0, %v418_v26 }
 0x1c3   : > { %9629 = vst [vmem:[#allocation82_spill] sm:$0xff] %v6111_v25  ;;  %v1260_v25 = vsel %vm770_vm0, %v677_v44, 0.0 }
 0x1c4   : > { %9630 = vst [vmem:[#allocation83_spill] sm:$0xff] %v6113_v55  ;;  %v1263_v55 = vsel %vm770_vm0, %v678_v8, 0.0 }
 0x1c6   : > { %1255 = vadd.xlane.f32.xlu2 %v1254_v4  ;;  %1252 = vadd.xlane.f32.xlu1 %v1251_v9  ;;  %v1257_v4 = vsel %vm770_vm0, %v676_v43, 0.0  ;;  %v423_v9 = vld [vmem:[%s5391_s11 + $0x538] sm:$0xff] }
 0x1c7   : > { %1249 = vadd.xlane.f32.xlu0 %v1248_v5  ;;  %v422_v5 = vld [vmem:[%s5391_s11 + $0x530] sm:$0xff]  ;;  %v681_v6 = vmul.f32 %v5864_v0, %v423_v9  ;;  %v424_v9 = vld [vmem:[%s5391_s11 + $0x540] sm:$0xff] }
 0x1c8   : > { %v680_v26 = vmul.f32 %v5864_v0, %v422_v5 }
 0x1c9   : > { %v6124_v27 = vpop.xlane.xlu2 %1129  ;;  %v6126_v7 = vpop.xlane.xlu1 %1126 }
 0x1ca   : > { %9631 = vst [vmem:[#allocation84_spill] sm:$0xff] %v6124_v27  ;;  %v6128_v45 = vpop.xlane.xlu0 %1123  ;;  %v679_v27 = vmul.f32 %v5864_v0, %v421_v34 }
 0x1cb   : > { %9632 = vst [vmem:[#allocation85_spill] sm:$0xff] %v6126_v7  ;;  %v1269_v7 = vsel %vm770_vm0, %v680_v26, 0.0 }
 0x1cc   : > { %9633 = vst [vmem:[#allocation86_spill] sm:$0xff] %v6128_v45  ;;  %v1272_v45 = vsel %vm770_vm0, %v681_v6, 0.0 }
 0x1ce   : > { %1264 = vadd.xlane.f32.xlu2 %v1263_v55  ;;  %1261 = vadd.xlane.f32.xlu1 %v1260_v25  ;;  %v1266_v55 = vsel %vm770_vm0, %v679_v27, 0.0  ;;  %v426_v25 = vld [vmem:[%s5391_s11 + $0x550] sm:$0xff] }
 0x1cf   : > { %1258 = vadd.xlane.f32.xlu0 %v1257_v4  ;;  %v425_v4 = vld [vmem:[%s5391_s11 + $0x548] sm:$0xff]  ;;  %v684_v5 = vmul.f32 %v5864_v0, %v426_v25  ;;  %v427_v25 = vld [vmem:[%s5391_s11 + $0x558] sm:$0xff] }
 0x1d0   : > { %v683_v34 = vmul.f32 %v5864_v0, %v425_v4 }
 0x1d1   : > { %v6139_v8 = vpop.xlane.xlu2 %1138  ;;  %v6141_v44 = vpop.xlane.xlu1 %1135 }
 0x1d2   : > { %9634 = vst [vmem:[#allocation87_spill] sm:$0xff] %v6139_v8  ;;  %v6143_v43 = vpop.xlane.xlu0 %1132  ;;  %v682_v8 = vmul.f32 %v5864_v0, %v424_v9 }
 0x1d3   : > { %9635 = vst [vmem:[#allocation88_spill] sm:$0xff] %v6141_v44  ;;  %v1278_v44 = vsel %vm770_vm0, %v683_v34, 0.0 }
 0x1d4   : > { %9636 = vst [vmem:[#allocation89_spill] sm:$0xff] %v6143_v43  ;;  %v1281_v43 = vsel %vm770_vm0, %v684_v5, 0.0 }
 0x1d6   : > { %1273 = vadd.xlane.f32.xlu2 %v1272_v45  ;;  %1270 = vadd.xlane.f32.xlu1 %v1269_v7  ;;  %v1275_v45 = vsel %vm770_vm0, %v682_v8, 0.0  ;;  %v429_v7 = vld [vmem:[%s5391_s11 + $0x568] sm:$0xff] }
 0x1d7   : > { %1267 = vadd.xlane.f32.xlu0 %v1266_v55  ;;  %v428_v55 = vld [vmem:[%s5391_s11 + $0x560] sm:$0xff]  ;;  %v687_v4 = vmul.f32 %v5864_v0, %v429_v7  ;;  %v430_v7 = vld [vmem:[%s5391_s11 + $0x570] sm:$0xff] }
 0x1d8   : > { %v686_v9 = vmul.f32 %v5864_v0, %v428_v55 }
 0x1d9   : > { %v6154_v6 = vpop.xlane.xlu2 %1147  ;;  %v6156_v26 = vpop.xlane.xlu1 %1144 }
 0x1da   : > { %9637 = vst [vmem:[#allocation90_spill] sm:$0xff] %v6154_v6  ;;  %v6158_v27 = vpop.xlane.xlu0 %1141  ;;  %v685_v6 = vmul.f32 %v5864_v0, %v427_v25 }
 0x1db   : > { %9638 = vst [vmem:[#allocation91_spill] sm:$0xff] %v6156_v26  ;;  %v1287_v26 = vsel %vm770_vm0, %v686_v9, 0.0 }
 0x1dc   : > { %9639 = vst [vmem:[#allocation92_spill] sm:$0xff] %v6158_v27  ;;  %v1290_v27 = vsel %vm770_vm0, %v687_v4, 0.0 }
 0x1de   : > { %1282 = vadd.xlane.f32.xlu2 %v1281_v43  ;;  %1279 = vadd.xlane.f32.xlu1 %v1278_v44  ;;  %v1284_v43 = vsel %vm770_vm0, %v685_v6, 0.0  ;;  %v432_v44 = vld [vmem:[%s5391_s11 + $0x580] sm:$0xff] }
 0x1df   : > { %1276 = vadd.xlane.f32.xlu0 %v1275_v45  ;;  %v431_v45 = vld [vmem:[%s5391_s11 + $0x578] sm:$0xff]  ;;  %v690_v55 = vmul.f32 %v5864_v0, %v432_v44  ;;  %v433_v44 = vld [vmem:[%s5391_s11 + $0x588] sm:$0xff] }
 0x1e0   : > { %v689_v25 = vmul.f32 %v5864_v0, %v431_v45 }
 0x1e1   : > { %v6169_v5 = vpop.xlane.xlu2 %1156  ;;  %v6171_v34 = vpop.xlane.xlu1 %1153 }
 0x1e2   : > { %9640 = vst [vmem:[#allocation93_spill] sm:$0xff] %v6169_v5  ;;  %v6173_v8 = vpop.xlane.xlu0 %1150  ;;  %v688_v5 = vmul.f32 %v5864_v0, %v430_v7 }
 0x1e3   : > { %9641 = vst [vmem:[#allocation94_spill] sm:$0xff] %v6171_v34  ;;  %v1296_v34 = vsel %vm770_vm0, %v689_v25, 0.0 }
 0x1e4   : > { %9642 = vst [vmem:[#allocation95_spill] sm:$0xff] %v6173_v8  ;;  %v1299_v8 = vsel %vm770_vm0, %v690_v55, 0.0 }
 0x1e6   : > { %1291 = vadd.xlane.f32.xlu2 %v1290_v27  ;;  %1288 = vadd.xlane.f32.xlu1 %v1287_v26  ;;  %v1293_v27 = vsel %vm770_vm0, %v688_v5, 0.0  ;;  %v435_v26 = vld [vmem:[%s5391_s11 + $0x598] sm:$0xff] }
 0x1e7   : > { %1285 = vadd.xlane.f32.xlu0 %v1284_v43  ;;  %v434_v43 = vld [vmem:[%s5391_s11 + $0x590] sm:$0xff]  ;;  %v693_v45 = vmul.f32 %v5864_v0, %v435_v26  ;;  %v436_v26 = vld [vmem:[%s5391_s11 + $0x5a0] sm:$0xff] }
 0x1e8   : > { %v692_v7 = vmul.f32 %v5864_v0, %v434_v43 }
 0x1e9   : > { %v6184_v4 = vpop.xlane.xlu2 %1165  ;;  %v6186_v9 = vpop.xlane.xlu1 %1162 }
 0x1ea   : > { %9643 = vst [vmem:[#allocation96_spill] sm:$0xff] %v6184_v4  ;;  %v6188_v6 = vpop.xlane.xlu0 %1159  ;;  %v691_v4 = vmul.f32 %v5864_v0, %v433_v44 }
 0x1eb   : > { %9644 = vst [vmem:[#allocation97_spill] sm:$0xff] %v6186_v9  ;;  %v1305_v9 = vsel %vm770_vm0, %v692_v7, 0.0 }
 0x1ec   : > { %9645 = vst [vmem:[#allocation98_spill] sm:$0xff] %v6188_v6  ;;  %v1308_v6 = vsel %vm770_vm0, %v693_v45, 0.0 }
 0x1ee   : > { %1300 = vadd.xlane.f32.xlu2 %v1299_v8  ;;  %1297 = vadd.xlane.f32.xlu1 %v1296_v34  ;;  %v1302_v8 = vsel %vm770_vm0, %v691_v4, 0.0  ;;  %v438_v34 = vld [vmem:[%s5391_s11 + $0x5b0] sm:$0xff] }
 0x1ef   : > { %1294 = vadd.xlane.f32.xlu0 %v1293_v27  ;;  %v437_v27 = vld [vmem:[%s5391_s11 + $0x5a8] sm:$0xff]  ;;  %v696_v43 = vmul.f32 %v5864_v0, %v438_v34  ;;  %v439_v34 = vld [vmem:[%s5391_s11 + $0x5b8] sm:$0xff] }
 0x1f0   : > { %v695_v44 = vmul.f32 %v5864_v0, %v437_v27 }
 0x1f1   : > { %v6199_v55 = vpop.xlane.xlu2 %1174  ;;  %v6201_v25 = vpop.xlane.xlu1 %1171 }
 0x1f2   : > { %9646 = vst [vmem:[#allocation99_spill] sm:$0xff] %v6199_v55  ;;  %v6203_v5 = vpop.xlane.xlu0 %1168  ;;  %v694_v55 = vmul.f32 %v5864_v0, %v436_v26 }
 0x1f3   : > { %9647 = vst [vmem:[#allocation100_spill] sm:$0xff] %v6201_v25  ;;  %v1314_v25 = vsel %vm770_vm0, %v695_v44, 0.0 }
 0x1f4   : > { %9648 = vst [vmem:[#allocation101_spill] sm:$0xff] %v6203_v5  ;;  %v1317_v5 = vsel %vm770_vm0, %v696_v43, 0.0 }
 0x1f6   : > { %1309 = vadd.xlane.f32.xlu2 %v1308_v6  ;;  %1306 = vadd.xlane.f32.xlu1 %v1305_v9  ;;  %v1311_v6 = vsel %vm770_vm0, %v694_v55, 0.0  ;;  %v441_v9 = vld [vmem:[%s5391_s11 + $0x5c8] sm:$0xff] }
 0x1f7   : > { %1303 = vadd.xlane.f32.xlu0 %v1302_v8  ;;  %v440_v8 = vld [vmem:[%s5391_s11 + $0x5c0] sm:$0xff]  ;;  %v699_v27 = vmul.f32 %v5864_v0, %v441_v9  ;;  %v442_v9 = vld [vmem:[%s5391_s11 + $0x5d0] sm:$0xff] }
 0x1f8   : > { %v698_v26 = vmul.f32 %v5864_v0, %v440_v8 }
 0x1f9   : > { %v6214_v45 = vpop.xlane.xlu2 %1183  ;;  %v6216_v7 = vpop.xlane.xlu1 %1180 }
 0x1fa   : > { %9649 = vst [vmem:[#allocation102_spill] sm:$0xff] %v6214_v45  ;;  %v6218_v4 = vpop.xlane.xlu0 %1177  ;;  %v697_v45 = vmul.f32 %v5864_v0, %v439_v34 }
 0x1fb   : > { %9650 = vst [vmem:[#allocation103_spill] sm:$0xff] %v6216_v7  ;;  %v1323_v7 = vsel %vm770_vm0, %v698_v26, 0.0 }
 0x1fc   : > { %9651 = vst [vmem:[#allocation104_spill] sm:$0xff] %v6218_v4  ;;  %v1326_v4 = vsel %vm770_vm0, %v699_v27, 0.0 }
 0x1fe   : > { %1318 = vadd.xlane.f32.xlu2 %v1317_v5  ;;  %1315 = vadd.xlane.f32.xlu1 %v1314_v25  ;;  %v1320_v5 = vsel %vm770_vm0, %v697_v45, 0.0  ;;  %v444_v25 = vld [vmem:[%s5391_s11 + $0x5e0] sm:$0xff] }
 0x1ff   : > { %1312 = vadd.xlane.f32.xlu0 %v1311_v6  ;;  %v443_v6 = vld [vmem:[%s5391_s11 + $0x5d8] sm:$0xff]  ;;  %v702_v8 = vmul.f32 %v5864_v0, %v444_v25  ;;  %v445_v25 = vld [vmem:[%s5391_s11 + $0x5e8] sm:$0xff] }
 0x200   : > { %v701_v34 = vmul.f32 %v5864_v0, %v443_v6 }
 0x201   : > { %v6229_v43 = vpop.xlane.xlu2 %1192  ;;  %v6231_v44 = vpop.xlane.xlu1 %1189 }
 0x202   : > { %9652 = vst [vmem:[#allocation105_spill] sm:$0xff] %v6229_v43  ;;  %v6233_v55 = vpop.xlane.xlu0 %1186  ;;  %v700_v43 = vmul.f32 %v5864_v0, %v442_v9 }
 0x203   : > { %9653 = vst [vmem:[#allocation106_spill] sm:$0xff] %v6231_v44  ;;  %v1332_v44 = vsel %vm770_vm0, %v701_v34, 0.0 }
 0x204   : > { %9654 = vst [vmem:[#allocation107_spill] sm:$0xff] %v6233_v55  ;;  %v1335_v55 = vsel %vm770_vm0, %v702_v8, 0.0 }
 0x206   : > { %1327 = vadd.xlane.f32.xlu2 %v1326_v4  ;;  %1324 = vadd.xlane.f32.xlu1 %v1323_v7  ;;  %v1329_v4 = vsel %vm770_vm0, %v700_v43, 0.0  ;;  %v447_v7 = vld [vmem:[%s5391_s11 + $0x5f8] sm:$0xff] }
 0x207   : > { %1321 = vadd.xlane.f32.xlu0 %v1320_v5  ;;  %v446_v5 = vld [vmem:[%s5391_s11 + $0x5f0] sm:$0xff]  ;;  %v705_v6 = vmul.f32 %v5864_v0, %v447_v7  ;;  %v448_v7 = vld [vmem:[%s5391_s11 + $0x600] sm:$0xff] }
 0x208   : > { %v704_v9 = vmul.f32 %v5864_v0, %v446_v5 }
 0x209   : > { %v6244_v27 = vpop.xlane.xlu2 %1201  ;;  %v6246_v26 = vpop.xlane.xlu1 %1198 }
 0x20a   : > { %9655 = vst [vmem:[#allocation108_spill] sm:$0xff] %v6244_v27  ;;  %v6248_v45 = vpop.xlane.xlu0 %1195  ;;  %v703_v27 = vmul.f32 %v5864_v0, %v445_v25 }
 0x20b   : > { %9656 = vst [vmem:[#allocation109_spill] sm:$0xff] %v6246_v26  ;;  %v1341_v26 = vsel %vm770_vm0, %v704_v9, 0.0 }
 0x20c   : > { %9657 = vst [vmem:[#allocation110_spill] sm:$0xff] %v6248_v45  ;;  %v1344_v45 = vsel %vm770_vm0, %v705_v6, 0.0 }
 0x20e   : > { %1336 = vadd.xlane.f32.xlu2 %v1335_v55  ;;  %1333 = vadd.xlane.f32.xlu1 %v1332_v44  ;;  %v1338_v55 = vsel %vm770_vm0, %v703_v27, 0.0  ;;  %v450_v44 = vld [vmem:[%s5391_s11 + $0x610] sm:$0xff] }
 0x20f   : > { %1330 = vadd.xlane.f32.xlu0 %v1329_v4  ;;  %v449_v4 = vld [vmem:[%s5391_s11 + $0x608] sm:$0xff]  ;;  %v708_v5 = vmul.f32 %v5864_v0, %v450_v44  ;;  %v451_v44 = vld [vmem:[%s5391_s11 + $0x618] sm:$0xff] }
 0x210   : > { %v707_v25 = vmul.f32 %v5864_v0, %v449_v4 }
 0x211   : > { %v6259_v8 = vpop.xlane.xlu2 %1210  ;;  %v6261_v34 = vpop.xlane.xlu1 %1207 }
 0x212   : > { %9658 = vst [vmem:[#allocation111_spill] sm:$0xff] %v6259_v8  ;;  %v6263_v43 = vpop.xlane.xlu0 %1204  ;;  %v706_v8 = vmul.f32 %v5864_v0, %v448_v7 }
 0x213   : > { %9659 = vst [vmem:[#allocation112_spill] sm:$0xff] %v6261_v34  ;;  %v1350_v34 = vsel %vm770_vm0, %v707_v25, 0.0 }
 0x214   : > { %9660 = vst [vmem:[#allocation113_spill] sm:$0xff] %v6263_v43  ;;  %v1353_v43 = vsel %vm770_vm0, %v708_v5, 0.0 }
 0x216   : > { %1345 = vadd.xlane.f32.xlu2 %v1344_v45  ;;  %1342 = vadd.xlane.f32.xlu1 %v1341_v26  ;;  %v1347_v45 = vsel %vm770_vm0, %v706_v8, 0.0  ;;  %v453_v26 = vld [vmem:[%s5391_s11 + $0x628] sm:$0xff] }
 0x217   : > { %1339 = vadd.xlane.f32.xlu0 %v1338_v55  ;;  %v452_v55 = vld [vmem:[%s5391_s11 + $0x620] sm:$0xff]  ;;  %v711_v4 = vmul.f32 %v5864_v0, %v453_v26  ;;  %v454_v26 = vld [vmem:[%s5391_s11 + $0x630] sm:$0xff] }
 0x218   : > { %v710_v7 = vmul.f32 %v5864_v0, %v452_v55 }
 0x219   : > { %v6274_v6 = vpop.xlane.xlu2 %1219  ;;  %v6276_v9 = vpop.xlane.xlu1 %1216 }
 0x21a   : > { %9661 = vst [vmem:[#allocation114_spill] sm:$0xff] %v6274_v6  ;;  %v6278_v27 = vpop.xlane.xlu0 %1213  ;;  %v709_v6 = vmul.f32 %v5864_v0, %v451_v44 }
 0x21b   : > { %9662 = vst [vmem:[#allocation115_spill] sm:$0xff] %v6276_v9  ;;  %v1359_v9 = vsel %vm770_vm0, %v710_v7, 0.0 }
 0x21c   : > { %9663 = vst [vmem:[#allocation116_spill] sm:$0xff] %v6278_v27  ;;  %v1362_v27 = vsel %vm770_vm0, %v711_v4, 0.0 }
 0x21e   : > { %1354 = vadd.xlane.f32.xlu2 %v1353_v43  ;;  %1351 = vadd.xlane.f32.xlu1 %v1350_v34  ;;  %v1356_v43 = vsel %vm770_vm0, %v709_v6, 0.0  ;;  %v456_v34 = vld [vmem:[%s5391_s11 + $0x640] sm:$0xff] }
 0x21f   : > { %1348 = vadd.xlane.f32.xlu0 %v1347_v45  ;;  %v455_v45 = vld [vmem:[%s5391_s11 + $0x638] sm:$0xff]  ;;  %v714_v55 = vmul.f32 %v5864_v0, %v456_v34  ;;  %v457_v34 = vld [vmem:[%s5391_s11 + $0x648] sm:$0xff] }
 0x220   : > { %v713_v44 = vmul.f32 %v5864_v0, %v455_v45 }
 0x221   : > { %v6289_v5 = vpop.xlane.xlu2 %1228  ;;  %v6291_v25 = vpop.xlane.xlu1 %1225 }
 0x222   : > { %9664 = vst [vmem:[#allocation117_spill] sm:$0xff] %v6289_v5  ;;  %v6293_v8 = vpop.xlane.xlu0 %1222  ;;  %v712_v5 = vmul.f32 %v5864_v0, %v454_v26 }
 0x223   : > { %9665 = vst [vmem:[#allocation118_spill] sm:$0xff] %v6291_v25  ;;  %v1368_v25 = vsel %vm770_vm0, %v713_v44, 0.0 }
 0x224   : > { %9666 = vst [vmem:[#allocation119_spill] sm:$0xff] %v6293_v8  ;;  %v1371_v8 = vsel %vm770_vm0, %v714_v55, 0.0 }
 0x226   : > { %1363 = vadd.xlane.f32.xlu2 %v1362_v27  ;;  %1360 = vadd.xlane.f32.xlu1 %v1359_v9  ;;  %v1365_v27 = vsel %vm770_vm0, %v712_v5, 0.0  ;;  %v459_v9 = vld [vmem:[%s5391_s11 + $0x658] sm:$0xff] }
 0x227   : > { %1357 = vadd.xlane.f32.xlu0 %v1356_v43  ;;  %v458_v43 = vld [vmem:[%s5391_s11 + $0x650] sm:$0xff]  ;;  %v717_v45 = vmul.f32 %v5864_v0, %v459_v9  ;;  %v460_v9 = vld [vmem:[%s5391_s11 + $0x660] sm:$0xff] }
 0x228   : > { %v716_v26 = vmul.f32 %v5864_v0, %v458_v43 }
 0x229   : > { %v6304_v4 = vpop.xlane.xlu2 %1237  ;;  %v6306_v7 = vpop.xlane.xlu1 %1234 }
 0x22a   : > { %9667 = vst [vmem:[#allocation120_spill] sm:$0xff] %v6304_v4  ;;  %v6308_v6 = vpop.xlane.xlu0 %1231  ;;  %v715_v4 = vmul.f32 %v5864_v0, %v457_v34 }
 0x22b   : > { %9668 = vst [vmem:[#allocation121_spill] sm:$0xff] %v6306_v7  ;;  %v1377_v7 = vsel %vm770_vm0, %v716_v26, 0.0 }
 0x22c   : > { %9669 = vst [vmem:[#allocation122_spill] sm:$0xff] %v6308_v6  ;;  %v1380_v6 = vsel %vm770_vm0, %v717_v45, 0.0 }
 0x22e   : > { %1372 = vadd.xlane.f32.xlu2 %v1371_v8  ;;  %1369 = vadd.xlane.f32.xlu1 %v1368_v25  ;;  %v1374_v8 = vsel %vm770_vm0, %v715_v4, 0.0  ;;  %v462_v25 = vld [vmem:[%s5391_s11 + $0x670] sm:$0xff] }
 0x22f   : > { %1366 = vadd.xlane.f32.xlu0 %v1365_v27  ;;  %v461_v27 = vld [vmem:[%s5391_s11 + $0x668] sm:$0xff]  ;;  %v720_v43 = vmul.f32 %v5864_v0, %v462_v25  ;;  %v463_v25 = vld [vmem:[%s5391_s11 + $0x678] sm:$0xff] }
 0x230   : > { %v719_v34 = vmul.f32 %v5864_v0, %v461_v27 }
 0x231   : > { %v6319_v55 = vpop.xlane.xlu2 %1246  ;;  %v6321_v44 = vpop.xlane.xlu1 %1243 }
 0x232   : > { %9670 = vst [vmem:[#allocation123_spill] sm:$0xff] %v6319_v55  ;;  %v6323_v5 = vpop.xlane.xlu0 %1240  ;;  %v718_v55 = vmul.f32 %v5864_v0, %v460_v9 }
 0x233   : > { %9671 = vst [vmem:[#allocation124_spill] sm:$0xff] %v6321_v44  ;;  %v1386_v44 = vsel %vm770_vm0, %v719_v34, 0.0 }
 0x234   : > { %9672 = vst [vmem:[#allocation125_spill] sm:$0xff] %v6323_v5  ;;  %v1389_v5 = vsel %vm770_vm0, %v720_v43, 0.0 }
 0x236   : > { %1381 = vadd.xlane.f32.xlu2 %v1380_v6  ;;  %1378 = vadd.xlane.f32.xlu1 %v1377_v7  ;;  %v1383_v6 = vsel %vm770_vm0, %v718_v55, 0.0  ;;  %v465_v7 = vld [vmem:[%s5391_s11 + $0x688] sm:$0xff] }
 0x237   : > { %1375 = vadd.xlane.f32.xlu0 %v1374_v8  ;;  %v464_v8 = vld [vmem:[%s5391_s11 + $0x680] sm:$0xff]  ;;  %v723_v27 = vmul.f32 %v5864_v0, %v465_v7  ;;  %v466_v7 = vld [vmem:[%s5391_s11 + $0x690] sm:$0xff] }
 0x238   : > { %v722_v9 = vmul.f32 %v5864_v0, %v464_v8 }
 0x239   : > { %v6334_v45 = vpop.xlane.xlu2 %1255  ;;  %v6336_v26 = vpop.xlane.xlu1 %1252 }
 0x23a   : > { %9673 = vst [vmem:[#allocation126_spill] sm:$0xff] %v6334_v45  ;;  %v6338_v4 = vpop.xlane.xlu0 %1249  ;;  %v721_v45 = vmul.f32 %v5864_v0, %v463_v25 }
 0x23b   : > { %9674 = vst [vmem:[#allocation127_spill] sm:$0xff] %v6336_v26  ;;  %v1395_v26 = vsel %vm770_vm0, %v722_v9, 0.0 }
 0x23c   : > { %9675 = vst [vmem:[#allocation128_spill] sm:$0xff] %v6338_v4  ;;  %v1398_v4 = vsel %vm770_vm0, %v723_v27, 0.0 }
 0x23e   : > { %1390 = vadd.xlane.f32.xlu2 %v1389_v5  ;;  %1387 = vadd.xlane.f32.xlu1 %v1386_v44  ;;  %v1392_v5 = vsel %vm770_vm0, %v721_v45, 0.0  ;;  %v468_v44 = vld [vmem:[%s5391_s11 + $0x6a0] sm:$0xff] }
 0x23f   : > { %1384 = vadd.xlane.f32.xlu0 %v1383_v6  ;;  %v467_v6 = vld [vmem:[%s5391_s11 + $0x698] sm:$0xff]  ;;  %v726_v8 = vmul.f32 %v5864_v0, %v468_v44  ;;  %v469_v44 = vld [vmem:[%s5391_s11 + $0x6a8] sm:$0xff] }
 0x240   : > { %v725_v25 = vmul.f32 %v5864_v0, %v467_v6 }
 0x241   : > { %v6349_v43 = vpop.xlane.xlu2 %1264  ;;  %v6351_v34 = vpop.xlane.xlu1 %1261 }
 0x242   : > { %9676 = vst [vmem:[#allocation129_spill] sm:$0xff] %v6349_v43  ;;  %v6353_v55 = vpop.xlane.xlu0 %1258  ;;  %v724_v43 = vmul.f32 %v5864_v0, %v466_v7 }
 0x243   : > { %9677 = vst [vmem:[#allocation130_spill] sm:$0xff] %v6351_v34  ;;  %v1404_v34 = vsel %vm770_vm0, %v725_v25, 0.0 }
 0x244   : > { %9678 = vst [vmem:[#allocation131_spill] sm:$0xff] %v6353_v55  ;;  %v1407_v55 = vsel %vm770_vm0, %v726_v8, 0.0  ;;  %v6381_v8 = vld [vmem:[%s9550_s1] ss:$0 sm:$0xff] }
 0x246   : > { %1399 = vadd.xlane.f32.xlu2 %v1398_v4  ;;  %1396 = vadd.xlane.f32.xlu1 %v1395_v26  ;;  %v1401_v4 = vsel %vm770_vm0, %v724_v43, 0.0  ;;  %v471_v26 = vld [vmem:[%s5391_s11 + $0x6b8] sm:$0xff]  ;;  %v727_v43 = vmul.f32 %v6381_v8, %v469_v44 }
 0x247   : > { %1393 = vadd.xlane.f32.xlu0 %v1392_v5  ;;  %v470_v5 = vld [vmem:[%s5391_s11 + $0x6b0] sm:$0xff]  ;;  %v729_v6 = vmul.f32 %v5864_v0, %v471_v26  ;;  %v473_v26 = vld [vmem:[%s5391_s11 + $0x6c8] sm:$0xff] }
 0x248   : > { %v728_v7 = vmul.f32 %v5864_v0, %v470_v5  ;;  %v474_v0 = vld [vmem:[%s5391_s11 + $0x6d0] sm:$0xff]  ;;  %v472_v5 = vld [vmem:[%s5391_s11 + $0x6c0] sm:$0xff] }
 0x249   : > { %v6364_v27 = vpop.xlane.xlu2 %1273  ;;  %v6366_v9 = vpop.xlane.xlu1 %1270  ;;  %v732_v44 = vmul.f32 %v6381_v8, %v474_v0  ;;  %v475_v0 = vld [vmem:[%s5391_s11 + $0x6d8] sm:$0xff] }
 0x24a   : > { %9679 = vst [vmem:[#allocation132_spill] sm:$0xff] %v6364_v27  ;;  %v6368_v45 = vpop.xlane.xlu0 %1267 }
 0x24b   : > { %9680 = vst [vmem:[#allocation133_spill] sm:$0xff] %v6366_v9 }
 0x24c   : > { %9681 = vst [vmem:[#allocation134_spill] sm:$0xff] %v6368_v45 }
 0x24e   : > { %1408 = vadd.xlane.f32.xlu2 %v1407_v55  ;;  %1405 = vadd.xlane.f32.xlu1 %v1404_v34  ;;  %v1416_v34 = vsel %vm770_vm0, %v729_v6, 0.0  ;;  %v1413_v55 = vsel %vm770_vm0, %v728_v7, 0.0 }
 0x24f   : > { %1402 = vadd.xlane.f32.xlu0 %v1401_v4  ;;  %v1410_v4 = vsel %vm770_vm0, %v727_v43, 0.0 }
 0x251   : > { %v6384_v25 = vpop.xlane.xlu2 %1282  ;;  %v6386_v27 = vpop.xlane.xlu1 %1279 }
 0x252   : > { %9682 = vst [vmem:[#allocation135_spill] sm:$0xff] %v6384_v25  ;;  %v6388_v45 = vpop.xlane.xlu0 %1276  ;;  %v731_v25 = vmul.f32 %v6381_v8, %v473_v26 }
 0x253   : > { %9683 = vst [vmem:[#allocation136_spill] sm:$0xff] %v6386_v27  ;;  %v1425_v27 = vsel %vm770_vm0, %v732_v44, 0.0 }
 0x254   : > { %9684 = vst [vmem:[#allocation137_spill] sm:$0xff] %v6388_v45  ;;  %v730_v45 = vmul.f32 %v6381_v8, %v472_v5  ;;  %v1422_v9 = vsel %vm770_vm0, %v731_v25, 0.0 }
 0x256   : > { %1417 = vadd.xlane.f32.xlu2 %v1416_v34  ;;  %1414 = vadd.xlane.f32.xlu1 %v1413_v55  ;;  %v1419_v34 = vsel %vm770_vm0, %v730_v45, 0.0  ;;  %v477_v55 = vld [vmem:[%s5391_s11 + $0x6e8] sm:$0xff] }
 0x257   : > { %1411 = vadd.xlane.f32.xlu0 %v1410_v4  ;;  %v476_v4 = vld [vmem:[%s5391_s11 + $0x6e0] sm:$0xff]  ;;  %v735_v26 = vmul.f32 %v6381_v8, %v477_v55  ;;  %v478_v55 = vld [vmem:[%s5391_s11 + $0x6f0] sm:$0xff] }
 0x258   : > { %v734_v5 = vmul.f32 %v6381_v8, %v476_v4 }
 0x259   : > { %v6399_v6 = vpop.xlane.xlu2 %1291  ;;  %v6401_v7 = vpop.xlane.xlu1 %1288 }
 0x25a   : > { %9685 = vst [vmem:[#allocation138_spill] sm:$0xff] %v6399_v6  ;;  %v6403_v43 = vpop.xlane.xlu0 %1285  ;;  %v733_v6 = vmul.f32 %v6381_v8, %v475_v0 }
 0x25b   : > { %9686 = vst [vmem:[#allocation139_spill] sm:$0xff] %v6401_v7  ;;  %v1431_v7 = vsel %vm770_vm0, %v734_v5, 0.0 }
 0x25c   : > { %9687 = vst [vmem:[#allocation140_spill] sm:$0xff] %v6403_v43  ;;  %v1434_v43 = vsel %vm770_vm0, %v735_v26, 0.0 }
 0x25e   : > { %1426 = vadd.xlane.f32.xlu2 %v1425_v27  ;;  %1423 = vadd.xlane.f32.xlu1 %v1422_v9  ;;  %v1428_v27 = vsel %vm770_vm0, %v733_v6, 0.0  ;;  %v480_v9 = vld [vmem:[%s5391_s11 + $0x700] sm:$0xff] }
 0x25f   : > { %1420 = vadd.xlane.f32.xlu0 %v1419_v34  ;;  %v479_v34 = vld [vmem:[%s5391_s11 + $0x6f8] sm:$0xff]  ;;  %v738_v4 = vmul.f32 %v6381_v8, %v480_v9  ;;  %v481_v9 = vld [vmem:[%s5391_s11 + $0x708] sm:$0xff] }
 0x260   : > { %v737_v0 = vmul.f32 %v6381_v8, %v479_v34 }
 0x261   : > { %v6414_v44 = vpop.xlane.xlu2 %1300  ;;  %v6416_v25 = vpop.xlane.xlu1 %1297 }
 0x262   : > { %9688 = vst [vmem:[#allocation141_spill] sm:$0xff] %v6414_v44  ;;  %v6418_v45 = vpop.xlane.xlu0 %1294  ;;  %v736_v44 = vmul.f32 %v6381_v8, %v478_v55 }
 0x263   : > { %9689 = vst [vmem:[#allocation142_spill] sm:$0xff] %v6416_v25  ;;  %v1440_v25 = vsel %vm770_vm0, %v737_v0, 0.0 }
 0x264   : > { %9690 = vst [vmem:[#allocation143_spill] sm:$0xff] %v6418_v45  ;;  %v1443_v45 = vsel %vm770_vm0, %v738_v4, 0.0 }
 0x266   : > { %1435 = vadd.xlane.f32.xlu2 %v1434_v43  ;;  %1432 = vadd.xlane.f32.xlu1 %v1431_v7  ;;  %v1437_v43 = vsel %vm770_vm0, %v736_v44, 0.0  ;;  %v483_v7 = vld [vmem:[%s5391_s11 + $0x718] sm:$0xff] }
 0x267   : > { %1429 = vadd.xlane.f32.xlu0 %v1428_v27  ;;  %v482_v27 = vld [vmem:[%s5391_s11 + $0x710] sm:$0xff]  ;;  %v741_v34 = vmul.f32 %v6381_v8, %v483_v7  ;;  %v484_v7 = vld [vmem:[%s5391_s11 + $0x720] sm:$0xff] }
 0x268   : > { %v740_v55 = vmul.f32 %v6381_v8, %v482_v27 }
 0x269   : > { %v6429_v26 = vpop.xlane.xlu2 %1309  ;;  %v6431_v5 = vpop.xlane.xlu1 %1306 }
 0x26a   : > { %9691 = vst [vmem:[#allocation144_spill] sm:$0xff] %v6429_v26  ;;  %v6433_v6 = vpop.xlane.xlu0 %1303  ;;  %v739_v26 = vmul.f32 %v6381_v8, %v481_v9 }
 0x26b   : > { %9692 = vst [vmem:[#allocation145_spill] sm:$0xff] %v6431_v5  ;;  %v1449_v5 = vsel %vm770_vm0, %v740_v55, 0.0 }
 0x26c   : > { %9693 = vst [vmem:[#allocation146_spill] sm:$0xff] %v6433_v6  ;;  %v1452_v6 = vsel %vm770_vm0, %v741_v34, 0.0 }
 0x26e   : > { %1444 = vadd.xlane.f32.xlu2 %v1443_v45  ;;  %1441 = vadd.xlane.f32.xlu1 %v1440_v25  ;;  %v1446_v45 = vsel %vm770_vm0, %v739_v26, 0.0  ;;  %v486_v25 = vld [vmem:[%s5391_s11 + $0x730] sm:$0xff] }
 0x26f   : > { %1438 = vadd.xlane.f32.xlu0 %v1437_v43  ;;  %v485_v43 = vld [vmem:[%s5391_s11 + $0x728] sm:$0xff]  ;;  %v744_v27 = vmul.f32 %v6381_v8, %v486_v25  ;;  %v487_v25 = vld [vmem:[%s5391_s11 + $0x738] sm:$0xff] }
 0x270   : > { %v743_v9 = vmul.f32 %v6381_v8, %v485_v43 }
 0x271   : > { %v6444_v4 = vpop.xlane.xlu2 %1318  ;;  %v6446_v0 = vpop.xlane.xlu1 %1315 }
 0x272   : > { %9694 = vst [vmem:[#allocation147_spill] sm:$0xff] %v6444_v4  ;;  %v6448_v44 = vpop.xlane.xlu0 %1312  ;;  %v742_v4 = vmul.f32 %v6381_v8, %v484_v7 }
 0x273   : > { %9695 = vst [vmem:[#allocation148_spill] sm:$0xff] %v6446_v0  ;;  %v1458_v0 = vsel %vm770_vm0, %v743_v9, 0.0 }
 0x274   : > { %9696 = vst [vmem:[#allocation149_spill] sm:$0xff] %v6448_v44  ;;  %v1461_v44 = vsel %vm770_vm0, %v744_v27, 0.0 }
 0x276   : > { %1453 = vadd.xlane.f32.xlu2 %v1452_v6  ;;  %1450 = vadd.xlane.f32.xlu1 %v1449_v5  ;;  %v1455_v6 = vsel %vm770_vm0, %v742_v4, 0.0  ;;  %v489_v5 = vld [vmem:[%s5391_s11 + $0x748] sm:$0xff] }
 0x277   : > { %1447 = vadd.xlane.f32.xlu0 %v1446_v45  ;;  %v488_v45 = vld [vmem:[%s5391_s11 + $0x740] sm:$0xff]  ;;  %v747_v43 = vmul.f32 %v6381_v8, %v489_v5  ;;  %v490_v5 = vld [vmem:[%s5391_s11 + $0x750] sm:$0xff] }
 0x278   : > { %v746_v7 = vmul.f32 %v6381_v8, %v488_v45 }
 0x279   : > { %v6459_v34 = vpop.xlane.xlu2 %1327  ;;  %v6461_v55 = vpop.xlane.xlu1 %1324 }
 0x27a   : > { %9697 = vst [vmem:[#allocation150_spill] sm:$0xff] %v6459_v34  ;;  %v6463_v26 = vpop.xlane.xlu0 %1321  ;;  %v745_v34 = vmul.f32 %v6381_v8, %v487_v25 }
 0x27b   : > { %9698 = vst [vmem:[#allocation151_spill] sm:$0xff] %v6461_v55  ;;  %v1467_v55 = vsel %vm770_vm0, %v746_v7, 0.0 }
 0x27c   : > { %9699 = vst [vmem:[#allocation152_spill] sm:$0xff] %v6463_v26  ;;  %v1470_v26 = vsel %vm770_vm0, %v747_v43, 0.0 }
 0x27e   : > { %1462 = vadd.xlane.f32.xlu2 %v1461_v44  ;;  %1459 = vadd.xlane.f32.xlu1 %v1458_v0  ;;  %v1464_v44 = vsel %vm770_vm0, %v745_v34, 0.0  ;;  %v492_v0 = vld [vmem:[%s5391_s11 + $0x760] sm:$0xff] }
 0x27f   : > { %1456 = vadd.xlane.f32.xlu0 %v1455_v6  ;;  %v491_v6 = vld [vmem:[%s5391_s11 + $0x758] sm:$0xff]  ;;  %v750_v45 = vmul.f32 %v6381_v8, %v492_v0  ;;  %v493_v0 = vld [vmem:[%s5391_s11 + $0x768] sm:$0xff] }
 0x280   : > { %v749_v25 = vmul.f32 %v6381_v8, %v491_v6 }
 0x281   : > { %v6474_v27 = vpop.xlane.xlu2 %1336  ;;  %v6476_v9 = vpop.xlane.xlu1 %1333 }
 0x282   : > { %9700 = vst [vmem:[#allocation153_spill] sm:$0xff] %v6474_v27  ;;  %v6478_v4 = vpop.xlane.xlu0 %1330  ;;  %v748_v27 = vmul.f32 %v6381_v8, %v490_v5 }
 0x283   : > { %9701 = vst [vmem:[#allocation154_spill] sm:$0xff] %v6476_v9  ;;  %v1476_v9 = vsel %vm770_vm0, %v749_v25, 0.0 }
 0x284   : > { %9702 = vst [vmem:[#allocation155_spill] sm:$0xff] %v6478_v4  ;;  %v1479_v4 = vsel %vm770_vm0, %v750_v45, 0.0 }
 0x286   : > { %1471 = vadd.xlane.f32.xlu2 %v1470_v26  ;;  %1468 = vadd.xlane.f32.xlu1 %v1467_v55  ;;  %v1473_v26 = vsel %vm770_vm0, %v748_v27, 0.0  ;;  %v495_v55 = vld [vmem:[%s5391_s11 + $0x778] sm:$0xff] }
 0x287   : > { %1465 = vadd.xlane.f32.xlu0 %v1464_v44  ;;  %v494_v44 = vld [vmem:[%s5391_s11 + $0x770] sm:$0xff]  ;;  %v753_v6 = vmul.f32 %v6381_v8, %v495_v55  ;;  %v496_v55 = vld [vmem:[%s5391_s11 + $0x780] sm:$0xff] }
 0x288   : > { %v752_v5 = vmul.f32 %v6381_v8, %v494_v44 }
 0x289   : > { %v6489_v43 = vpop.xlane.xlu2 %1345  ;;  %v6491_v7 = vpop.xlane.xlu1 %1342 }
 0x28a   : > { %9703 = vst [vmem:[#allocation156_spill] sm:$0xff] %v6489_v43  ;;  %v6493_v34 = vpop.xlane.xlu0 %1339  ;;  %v751_v43 = vmul.f32 %v6381_v8, %v493_v0 }
 0x28b   : > { %9704 = vst [vmem:[#allocation157_spill] sm:$0xff] %v6491_v7  ;;  %v1485_v7 = vsel %vm770_vm0, %v752_v5, 0.0 }
 0x28c   : > { %9705 = vst [vmem:[#allocation158_spill] sm:$0xff] %v6493_v34  ;;  %v1488_v34 = vsel %vm770_vm0, %v753_v6, 0.0 }
 0x28e   : > { %1480 = vadd.xlane.f32.xlu2 %v1479_v4  ;;  %1477 = vadd.xlane.f32.xlu1 %v1476_v9  ;;  %v1482_v4 = vsel %vm770_vm0, %v751_v43, 0.0  ;;  %v498_v9 = vld [vmem:[%s5391_s11 + $0x790] sm:$0xff] }
 0x28f   : > { %1474 = vadd.xlane.f32.xlu0 %v1473_v26  ;;  %v497_v26 = vld [vmem:[%s5391_s11 + $0x788] sm:$0xff]  ;;  %v756_v44 = vmul.f32 %v6381_v8, %v498_v9  ;;  %v499_v9 = vld [vmem:[%s5391_s11 + $0x798] sm:$0xff] }
 0x290   : > { %v755_v0 = vmul.f32 %v6381_v8, %v497_v26 }
 0x291   : > { %v6504_v45 = vpop.xlane.xlu2 %1354  ;;  %v6506_v25 = vpop.xlane.xlu1 %1351 }
 0x292   : > { %9706 = vst [vmem:[#allocation159_spill] sm:$0xff] %v6504_v45  ;;  %v6508_v27 = vpop.xlane.xlu0 %1348  ;;  %v754_v45 = vmul.f32 %v6381_v8, %v496_v55 }
 0x293   : > { %9707 = vst [vmem:[#allocation160_spill] sm:$0xff] %v6506_v25  ;;  %v1494_v25 = vsel %vm770_vm0, %v755_v0, 0.0 }
 0x294   : > { %9708 = vst [vmem:[#allocation161_spill] sm:$0xff] %v6508_v27  ;;  %v1497_v27 = vsel %vm770_vm0, %v756_v44, 0.0 }
 0x296   : > { %1489 = vadd.xlane.f32.xlu2 %v1488_v34  ;;  %1486 = vadd.xlane.f32.xlu1 %v1485_v7  ;;  %v1491_v34 = vsel %vm770_vm0, %v754_v45, 0.0  ;;  %v501_v7 = vld [vmem:[%s5391_s11 + $0x7a8] sm:$0xff] }
 0x297   : > { %1483 = vadd.xlane.f32.xlu0 %v1482_v4  ;;  %v500_v4 = vld [vmem:[%s5391_s11 + $0x7a0] sm:$0xff]  ;;  %v759_v26 = vmul.f32 %v6381_v8, %v501_v7  ;;  %v502_v7 = vld [vmem:[%s5391_s11 + $0x7b0] sm:$0xff] }
 0x298   : > { %v758_v55 = vmul.f32 %v6381_v8, %v500_v4 }
 0x299   : > { %v6519_v6 = vpop.xlane.xlu2 %1363  ;;  %v6521_v5 = vpop.xlane.xlu1 %1360 }
 0x29a   : > { %9709 = vst [vmem:[#allocation162_spill] sm:$0xff] %v6519_v6  ;;  %v6523_v43 = vpop.xlane.xlu0 %1357  ;;  %v757_v6 = vmul.f32 %v6381_v8, %v499_v9 }
 0x29b   : > { %9710 = vst [vmem:[#allocation163_spill] sm:$0xff] %v6521_v5  ;;  %v1503_v5 = vsel %vm770_vm0, %v758_v55, 0.0 }
 0x29c   : > { %9711 = vst [vmem:[#allocation164_spill] sm:$0xff] %v6523_v43  ;;  %v1506_v43 = vsel %vm770_vm0, %v759_v26, 0.0 }
 0x29e   : > { %1498 = vadd.xlane.f32.xlu2 %v1497_v27  ;;  %1495 = vadd.xlane.f32.xlu1 %v1494_v25  ;;  %v1500_v27 = vsel %vm770_vm0, %v757_v6, 0.0  ;;  %v504_v25 = vld [vmem:[%s5391_s11 + $0x7c0] sm:$0xff] }
 0x29f   : > { %1492 = vadd.xlane.f32.xlu0 %v1491_v34  ;;  %v503_v34 = vld [vmem:[%s5391_s11 + $0x7b8] sm:$0xff]  ;;  %v762_v4 = vmul.f32 %v6381_v8, %v504_v25  ;;  %v505_v25 = vld [vmem:[%s5391_s11 + $0x7c8] sm:$0xff] }
 0x2a0   : > { %v761_v9 = vmul.f32 %v6381_v8, %v503_v34 }
 0x2a1   : > { %v6534_v44 = vpop.xlane.xlu2 %1372  ;;  %v6536_v0 = vpop.xlane.xlu1 %1369 }
 0x2a2   : > { %9712 = vst [vmem:[#allocation165_spill] sm:$0xff] %v6534_v44  ;;  %v6538_v45 = vpop.xlane.xlu0 %1366  ;;  %v760_v44 = vmul.f32 %v6381_v8, %v502_v7 }
 0x2a3   : > { %9713 = vst [vmem:[#allocation166_spill] sm:$0xff] %v6536_v0  ;;  %v1512_v0 = vsel %vm770_vm0, %v761_v9, 0.0 }
 0x2a4   : > { %9714 = vst [vmem:[#allocation167_spill] sm:$0xff] %v6538_v45  ;;  %v1515_v45 = vsel %vm770_vm0, %v762_v4, 0.0 }
 0x2a6   : > { %1507 = vadd.xlane.f32.xlu2 %v1506_v43  ;;  %1504 = vadd.xlane.f32.xlu1 %v1503_v5  ;;  %v1509_v43 = vsel %vm770_vm0, %v760_v44, 0.0  ;;  %v507_v5 = vld [vmem:[%s5391_s11 + $0x7d8] sm:$0xff] }
 0x2a7   : > { %1501 = vadd.xlane.f32.xlu0 %v1500_v27  ;;  %v506_v27 = vld [vmem:[%s5391_s11 + $0x7d0] sm:$0xff]  ;;  %v765_v34 = vmul.f32 %v6381_v8, %v507_v5  ;;  %v508_v5 = vld [vmem:[%s5391_s11 + $0x7e0] sm:$0xff] }
 0x2a8   : > { %v764_v7 = vmul.f32 %v6381_v8, %v506_v27 }
 0x2a9   : > { %v6549_v26 = vpop.xlane.xlu2 %1381  ;;  %v6551_v55 = vpop.xlane.xlu1 %1378 }
 0x2aa   : > { %9715 = vst [vmem:[#allocation168_spill] sm:$0xff] %v6549_v26  ;;  %v6553_v6 = vpop.xlane.xlu0 %1375  ;;  %v763_v26 = vmul.f32 %v6381_v8, %v505_v25 }
 0x2ab   : > { %9716 = vst [vmem:[#allocation169_spill] sm:$0xff] %v6551_v55  ;;  %v1521_v55 = vsel %vm770_vm0, %v764_v7, 0.0 }
 0x2ac   : > { %9717 = vst [vmem:[#allocation170_spill] sm:$0xff] %v6553_v6  ;;  %v1524_v6 = vsel %vm770_vm0, %v765_v34, 0.0 }
 0x2ae   : > { %1516 = vadd.xlane.f32.xlu2 %v1515_v45  ;;  %1513 = vadd.xlane.f32.xlu1 %v1512_v0  ;;  %v1518_v45 = vsel %vm770_vm0, %v763_v26, 0.0  ;;  %v510_v0 = vld [vmem:[%s5391_s11 + $0x7f0] sm:$0xff] }
 0x2af   : > { %1510 = vadd.xlane.f32.xlu0 %v1509_v43  ;;  %v509_v43 = vld [vmem:[%s5391_s11 + $0x7e8] sm:$0xff]  ;;  %v768_v27 = vmul.f32 %v6381_v8, %v510_v0  ;;  %v511_v0 = vld [vmem:[%s5391_s11 + $0x7f8] sm:$0xff] }
 0x2b0   : > { %v767_v25 = vmul.f32 %v6381_v8, %v509_v43  ;;  %v5008_v43 = vld [vmem:[%s5391_s11 + $0x8] sm:$0xff] }
 0x2b1   : > { %v6564_v4 = vpop.xlane.xlu2 %1390  ;;  %v6566_v9 = vpop.xlane.xlu1 %1387 }
 0x2b2   : > { %9718 = vst [vmem:[#allocation171_spill] sm:$0xff] %v6564_v4  ;;  %v6568_v44 = vpop.xlane.xlu0 %1384  ;;  %v766_v4 = vmul.f32 %v6381_v8, %v508_v5 }
 0x2b3   : > { %9719 = vst [vmem:[#allocation172_spill] sm:$0xff] %v6566_v9  ;;  %v5053_v9 = vld [vmem:[%s5391_s11 + $0x168] sm:$0xff] }
 0x2b4   : > { %9720 = vst [vmem:[#allocation173_spill] sm:$0xff] %v6568_v44  ;;  %v1533_v44 = vsel %vm770_vm0, %v768_v27, 0.0 }
 0x2b6   : > { %1525 = vadd.xlane.f32.xlu2 %v1524_v6  ;;  %1522 = vadd.xlane.f32.xlu1 %v1521_v55  ;;  %v1530_v6 = vsel %vm770_vm0, %v767_v25, 0.0  ;;  %v6590_v55 = vld [vmem:[%s9550_s1 + $0x1] ss:$0 sm:$0xff]  ;;  %v769_v25 = vmul.f32 %v6381_v8, %v511_v0  ;;  %v5011_v8 = vld [vmem:[%s5391_s11 + $0x18] sm:$0xff] }
 0x2b7   : > { %1519 = vadd.xlane.f32.xlu0 %v1518_v45  ;;  %v1527_v45 = vsel %vm770_vm0, %v766_v4, 0.0  ;;  %v2056_v5 = vmul.f32 %v5008_v43, %v6590_v55  ;;  %v5010_v43 = vld [vmem:[%s5391_s11 + $0x20] sm:$0xff]  ;;  %v2058_v0 = vmul.f32 %v5011_v8, %v6590_v55 }
 0x2b9   : > { %v6579_v34 = vpop.xlane.xlu2 %1399  ;;  %v6581_v7 = vpop.xlane.xlu1 %1396 }
 0x2ba   : > { %9721 = vst [vmem:[#allocation174_spill] sm:$0xff] %v6579_v34  ;;  %v6583_v26 = vpop.xlane.xlu0 %1393  ;;  %v5009_v34 = vld [vmem:[%s5391_s11] sm:$0xff] }
 0x2bb   : > { %9722 = vst [vmem:[#allocation175_spill] sm:$0xff] %v6581_v7  ;;  %v2055_v27 = vmul.f32 %v5009_v34, %v6590_v55  ;;  %v2059_v34 = vmul.f32 %v5010_v43, %v6590_v55  ;;  %v5013_v43 = vld [vmem:[%s5391_s11 + $0x38] sm:$0xff] }
 0x2bc   : > { %9723 = vst [vmem:[#allocation176_spill] sm:$0xff] %v6583_v26  ;;  %v2062_v8 = vmul.f32 %v5013_v43, %v6590_v55  ;;  %v5016_v43 = vld [vmem:[%s5391_s11 + $0x50] sm:$0xff] }
 0x2be   : > { %1534 = vadd.xlane.f32.xlu2 %v1533_v44  ;;  %1531 = vadd.xlane.f32.xlu1 %v1530_v6  ;;  %v2314_v44 = vsel %vm770_vm0, %v2056_v5, 0.0  ;;  %v2311_v6 = vsel %vm770_vm0, %v2055_v27, 0.0 }
 0x2bf   : > { %1528 = vadd.xlane.f32.xlu0 %v1527_v45  ;;  %v1536_v45 = vsel %vm770_vm0, %v769_v25, 0.0 }
 0x2c1   : > { %v6599_v26 = vpop.xlane.xlu2 %1408  ;;  %v6601_v7 = vpop.xlane.xlu1 %1405 }
 0x2c2   : > { %9724 = vst [vmem:[#allocation177_spill] sm:$0xff] %v6599_v26  ;;  %v6603_v4 = vpop.xlane.xlu0 %1402  ;;  %v5012_v26 = vld [vmem:[%s5391_s11 + $0x10] sm:$0xff] }
 0x2c3   : > { %9725 = vst [vmem:[#allocation178_spill] sm:$0xff] %v6601_v7  ;;  %v6824_v7 = vstv %s3593_s19 }
 0x2c4   : > { %9726 = vst [vmem:[#allocation179_spill] sm:$0xff] %v6603_v4  ;;  %v2057_v4 = vmul.f32 %v5012_v26, %v6590_v55  ;;  %v5014_v26 = vld [vmem:[%s5391_s11 + $0x30] sm:$0xff] }
 0x2c6   : > { %2315 = vadd.xlane.f32.xlu2 %v2314_v44  ;;  %2312 = vadd.xlane.f32.xlu1 %v2311_v6  ;;  %v2323_v44 = vsel %vm770_vm0, %v2059_v34, 0.0  ;;  %v2320_v6 = vsel %vm770_vm0, %v2058_v0, 0.0 }
 0x2c7   : > { %1537 = vadd.xlane.f32.xlu0 %v1536_v45  ;;  %v2317_v45 = vsel %vm770_vm0, %v2057_v4, 0.0 }
 0x2c9   : > { %v6614_v5 = vpop.xlane.xlu2 %1417  ;;  %v6616_v27 = vpop.xlane.xlu1 %1414 }
 0x2ca   : > { %9727 = vst [vmem:[#allocation180_spill] sm:$0xff] %v6614_v5  ;;  %v6618_v25 = vpop.xlane.xlu0 %1411  ;;  %v2061_v5 = vmul.f32 %v5014_v26, %v6590_v55  ;;  %v2065_v26 = vmul.f32 %v5016_v43, %v6590_v55  ;;  %v5019_v43 = vld [vmem:[%s5391_s11 + $0x68] sm:$0xff] }
 0x2cb   : > { %9728 = vst [vmem:[#allocation181_spill] sm:$0xff] %v6616_v27  ;;  %v5015_v27 = vld [vmem:[%s5391_s11 + $0x28] sm:$0xff] }
 0x2cc   : > { %9729 = vst [vmem:[#allocation182_spill] sm:$0xff] %v6618_v25  ;;  %v2060_v25 = vmul.f32 %v5015_v27, %v6590_v55  ;;  %v5017_v27 = vld [vmem:[%s5391_s11 + $0x48] sm:$0xff] }
 0x2ce   : > { %2324 = vadd.xlane.f32.xlu2 %v2323_v44  ;;  %2321 = vadd.xlane.f32.xlu1 %v2320_v6  ;;  %v2332_v44 = vsel %vm770_vm0, %v2062_v8, 0.0  ;;  %v2329_v6 = vsel %vm770_vm0, %v2061_v5, 0.0 }
 0x2cf   : > { %2318 = vadd.xlane.f32.xlu0 %v2317_v45  ;;  %v2326_v45 = vsel %vm770_vm0, %v2060_v25, 0.0 }
 0x2d1   : > { %v6629_v34 = vpop.xlane.xlu2 %1426  ;;  %v6631_v0 = vpop.xlane.xlu1 %1423 }
 0x2d2   : > { %9730 = vst [vmem:[#allocation183_spill] sm:$0xff] %v6629_v34  ;;  %v6633_v4 = vpop.xlane.xlu0 %1420  ;;  %v2064_v34 = vmul.f32 %v5017_v27, %v6590_v55  ;;  %v2068_v27 = vmul.f32 %v5019_v43, %v6590_v55  ;;  %v5022_v43 = vld [vmem:[%s5391_s11 + $0x80] sm:$0xff] }
 0x2d3   : > { %9731 = vst [vmem:[#allocation184_spill] sm:$0xff] %v6631_v0  ;;  %v5018_v0 = vld [vmem:[%s5391_s11 + $0x40] sm:$0xff] }
 0x2d4   : > { %9732 = vst [vmem:[#allocation185_spill] sm:$0xff] %v6633_v4  ;;  %v2063_v4 = vmul.f32 %v5018_v0, %v6590_v55  ;;  %v5020_v0 = vld [vmem:[%s5391_s11 + $0x60] sm:$0xff] }
 0x2d6   : > { %2333 = vadd.xlane.f32.xlu2 %v2332_v44  ;;  %2330 = vadd.xlane.f32.xlu1 %v2329_v6  ;;  %v2341_v44 = vsel %vm770_vm0, %v2065_v26, 0.0  ;;  %v2338_v6 = vsel %vm770_vm0, %v2064_v34, 0.0 }
 0x2d7   : > { %2327 = vadd.xlane.f32.xlu0 %v2326_v45  ;;  %v2335_v45 = vsel %vm770_vm0, %v2063_v4, 0.0 }
 0x2d9   : > { %v6644_v8 = vpop.xlane.xlu2 %1435  ;;  %v6646_v5 = vpop.xlane.xlu1 %1432 }
 0x2da   : > { %9733 = vst [vmem:[#allocation186_spill] sm:$0xff] %v6644_v8  ;;  %v6648_v25 = vpop.xlane.xlu0 %1429  ;;  %v2067_v8 = vmul.f32 %v5020_v0, %v6590_v55  ;;  %v2071_v0 = vmul.f32 %v5022_v43, %v6590_v55  ;;  %v5025_v43 = vld [vmem:[%s5391_s11 + $0x98] sm:$0xff] }
 0x2db   : > { %9734 = vst [vmem:[#allocation187_spill] sm:$0xff] %v6646_v5  ;;  %v5021_v5 = vld [vmem:[%s5391_s11 + $0x58] sm:$0xff] }
 0x2dc   : > { %9735 = vst [vmem:[#allocation188_spill] sm:$0xff] %v6648_v25  ;;  %v2066_v25 = vmul.f32 %v5021_v5, %v6590_v55  ;;  %v5023_v5 = vld [vmem:[%s5391_s11 + $0x78] sm:$0xff] }
 0x2de   : > { %2342 = vadd.xlane.f32.xlu2 %v2341_v44  ;;  %2339 = vadd.xlane.f32.xlu1 %v2338_v6  ;;  %v2350_v44 = vsel %vm770_vm0, %v2068_v27, 0.0  ;;  %v2347_v6 = vsel %vm770_vm0, %v2067_v8, 0.0 }
 0x2df   : > { %2336 = vadd.xlane.f32.xlu0 %v2335_v45  ;;  %v2344_v45 = vsel %vm770_vm0, %v2066_v25, 0.0 }
 0x2e1   : > { %v6659_v26 = vpop.xlane.xlu2 %1444  ;;  %v6661_v34 = vpop.xlane.xlu1 %1441 }
 0x2e2   : > { %9736 = vst [vmem:[#allocation189_spill] sm:$0xff] %v6659_v26  ;;  %v6663_v4 = vpop.xlane.xlu0 %1438  ;;  %v2070_v26 = vmul.f32 %v5023_v5, %v6590_v55  ;;  %v2074_v5 = vmul.f32 %v5025_v43, %v6590_v55  ;;  %v5028_v43 = vld [vmem:[%s5391_s11 + $0xb0] sm:$0xff] }
 0x2e3   : > { %9737 = vst [vmem:[#allocation190_spill] sm:$0xff] %v6661_v34  ;;  %v5024_v34 = vld [vmem:[%s5391_s11 + $0x70] sm:$0xff] }
 0x2e4   : > { %9738 = vst [vmem:[#allocation191_spill] sm:$0xff] %v6663_v4  ;;  %v2069_v4 = vmul.f32 %v5024_v34, %v6590_v55  ;;  %v5026_v34 = vld [vmem:[%s5391_s11 + $0x90] sm:$0xff] }
 0x2e6   : > { %2351 = vadd.xlane.f32.xlu2 %v2350_v44  ;;  %2348 = vadd.xlane.f32.xlu1 %v2347_v6  ;;  %v2359_v44 = vsel %vm770_vm0, %v2071_v0, 0.0  ;;  %v2356_v6 = vsel %vm770_vm0, %v2070_v26, 0.0 }
 0x2e7   : > { %2345 = vadd.xlane.f32.xlu0 %v2344_v45  ;;  %v2353_v45 = vsel %vm770_vm0, %v2069_v4, 0.0 }
 0x2e9   : > { %v6674_v27 = vpop.xlane.xlu2 %1453  ;;  %v6676_v8 = vpop.xlane.xlu1 %1450 }
 0x2ea   : > { %9739 = vst [vmem:[#allocation192_spill] sm:$0xff] %v6674_v27  ;;  %v6678_v25 = vpop.xlane.xlu0 %1447  ;;  %v2073_v27 = vmul.f32 %v5026_v34, %v6590_v55  ;;  %v2077_v34 = vmul.f32 %v5028_v43, %v6590_v55  ;;  %v5031_v43 = vld [vmem:[%s5391_s11 + $0xc8] sm:$0xff] }
 0x2eb   : > { %9740 = vst [vmem:[#allocation193_spill] sm:$0xff] %v6676_v8  ;;  %v5027_v8 = vld [vmem:[%s5391_s11 + $0x88] sm:$0xff] }
 0x2ec   : > { %9741 = vst [vmem:[#allocation194_spill] sm:$0xff] %v6678_v25  ;;  %v2072_v25 = vmul.f32 %v5027_v8, %v6590_v55  ;;  %v5029_v8 = vld [vmem:[%s5391_s11 + $0xa8] sm:$0xff] }
 0x2ee   : > { %2360 = vadd.xlane.f32.xlu2 %v2359_v44  ;;  %2357 = vadd.xlane.f32.xlu1 %v2356_v6  ;;  %v2368_v44 = vsel %vm770_vm0, %v2074_v5, 0.0  ;;  %v2365_v6 = vsel %vm770_vm0, %v2073_v27, 0.0 }
 0x2ef   : > { %2354 = vadd.xlane.f32.xlu0 %v2353_v45  ;;  %v2362_v45 = vsel %vm770_vm0, %v2072_v25, 0.0 }
 0x2f1   : > { %v6689_v0 = vpop.xlane.xlu2 %1462  ;;  %v6691_v26 = vpop.xlane.xlu1 %1459 }
 0x2f2   : > { %9742 = vst [vmem:[#allocation195_spill] sm:$0xff] %v6689_v0  ;;  %v6693_v4 = vpop.xlane.xlu0 %1456  ;;  %v2076_v0 = vmul.f32 %v5029_v8, %v6590_v55  ;;  %v2080_v8 = vmul.f32 %v5031_v43, %v6590_v55  ;;  %v5034_v43 = vld [vmem:[%s5391_s11 + $0xe0] sm:$0xff] }
 0x2f3   : > { %9743 = vst [vmem:[#allocation196_spill] sm:$0xff] %v6691_v26  ;;  %v5030_v26 = vld [vmem:[%s5391_s11 + $0xa0] sm:$0xff] }
 0x2f4   : > { %9744 = vst [vmem:[#allocation197_spill] sm:$0xff] %v6693_v4  ;;  %v2075_v4 = vmul.f32 %v5030_v26, %v6590_v55  ;;  %v5032_v26 = vld [vmem:[%s5391_s11 + $0xc0] sm:$0xff] }
 0x2f6   : > { %2369 = vadd.xlane.f32.xlu2 %v2368_v44  ;;  %2366 = vadd.xlane.f32.xlu1 %v2365_v6  ;;  %v2377_v44 = vsel %vm770_vm0, %v2077_v34, 0.0  ;;  %v2374_v6 = vsel %vm770_vm0, %v2076_v0, 0.0 }
 0x2f7   : > { %2363 = vadd.xlane.f32.xlu0 %v2362_v45  ;;  %v2371_v45 = vsel %vm770_vm0, %v2075_v4, 0.0 }
 0x2f9   : > { %v6704_v5 = vpop.xlane.xlu2 %1471  ;;  %v6706_v27 = vpop.xlane.xlu1 %1468 }
 0x2fa   : > { %9745 = vst [vmem:[#allocation198_spill] sm:$0xff] %v6704_v5  ;;  %v6708_v25 = vpop.xlane.xlu0 %1465  ;;  %v2079_v5 = vmul.f32 %v5032_v26, %v6590_v55  ;;  %v2083_v26 = vmul.f32 %v5034_v43, %v6590_v55  ;;  %v5037_v43 = vld [vmem:[%s5391_s11 + $0xf8] sm:$0xff] }
 0x2fb   : > { %9746 = vst [vmem:[#allocation199_spill] sm:$0xff] %v6706_v27  ;;  %v5033_v27 = vld [vmem:[%s5391_s11 + $0xb8] sm:$0xff] }
 0x2fc   : > { %9747 = vst [vmem:[#allocation200_spill] sm:$0xff] %v6708_v25  ;;  %v2078_v25 = vmul.f32 %v5033_v27, %v6590_v55  ;;  %v5035_v27 = vld [vmem:[%s5391_s11 + $0xd8] sm:$0xff] }
 0x2fe   : > { %2378 = vadd.xlane.f32.xlu2 %v2377_v44  ;;  %2375 = vadd.xlane.f32.xlu1 %v2374_v6  ;;  %v2386_v44 = vsel %vm770_vm0, %v2080_v8, 0.0  ;;  %v2383_v6 = vsel %vm770_vm0, %v2079_v5, 0.0 }
 0x2ff   : > { %2372 = vadd.xlane.f32.xlu0 %v2371_v45  ;;  %v2380_v45 = vsel %vm770_vm0, %v2078_v25, 0.0 }
 0x301   : > { %v6719_v34 = vpop.xlane.xlu2 %1480  ;;  %v6721_v0 = vpop.xlane.xlu1 %1477 }
 0x302   : > { %9748 = vst [vmem:[#allocation201_spill] sm:$0xff] %v6719_v34  ;;  %v6723_v4 = vpop.xlane.xlu0 %1474  ;;  %v2082_v34 = vmul.f32 %v5035_v27, %v6590_v55  ;;  %v2086_v27 = vmul.f32 %v5037_v43, %v6590_v55  ;;  %v5040_v43 = vld [vmem:[%s5391_s11 + $0x110] sm:$0xff] }
 0x303   : > { %9749 = vst [vmem:[#allocation202_spill] sm:$0xff] %v6721_v0  ;;  %v5036_v0 = vld [vmem:[%s5391_s11 + $0xd0] sm:$0xff] }
 0x304   : > { %9750 = vst [vmem:[#allocation203_spill] sm:$0xff] %v6723_v4  ;;  %v2081_v4 = vmul.f32 %v5036_v0, %v6590_v55  ;;  %v5038_v0 = vld [vmem:[%s5391_s11 + $0xf0] sm:$0xff] }
 0x306   : > { %2387 = vadd.xlane.f32.xlu2 %v2386_v44  ;;  %2384 = vadd.xlane.f32.xlu1 %v2383_v6  ;;  %v2395_v44 = vsel %vm770_vm0, %v2083_v26, 0.0  ;;  %v2392_v6 = vsel %vm770_vm0, %v2082_v34, 0.0 }
 0x307   : > { %2381 = vadd.xlane.f32.xlu0 %v2380_v45  ;;  %v2389_v45 = vsel %vm770_vm0, %v2081_v4, 0.0 }
 0x309   : > { %v6734_v8 = vpop.xlane.xlu2 %1489  ;;  %v6736_v5 = vpop.xlane.xlu1 %1486 }
 0x30a   : > { %9751 = vst [vmem:[#allocation204_spill] sm:$0xff] %v6734_v8  ;;  %v6738_v25 = vpop.xlane.xlu0 %1483  ;;  %v2085_v8 = vmul.f32 %v5038_v0, %v6590_v55  ;;  %v2089_v0 = vmul.f32 %v5040_v43, %v6590_v55  ;;  %v5043_v43 = vld [vmem:[%s5391_s11 + $0x128] sm:$0xff] }
 0x30b   : > { %9752 = vst [vmem:[#allocation205_spill] sm:$0xff] %v6736_v5  ;;  %v5039_v5 = vld [vmem:[%s5391_s11 + $0xe8] sm:$0xff] }
 0x30c   : > { %9753 = vst [vmem:[#allocation206_spill] sm:$0xff] %v6738_v25  ;;  %v2084_v25 = vmul.f32 %v5039_v5, %v6590_v55  ;;  %v5041_v5 = vld [vmem:[%s5391_s11 + $0x108] sm:$0xff] }
 0x30e   : > { %2396 = vadd.xlane.f32.xlu2 %v2395_v44  ;;  %2393 = vadd.xlane.f32.xlu1 %v2392_v6  ;;  %v2404_v44 = vsel %vm770_vm0, %v2086_v27, 0.0  ;;  %v2401_v6 = vsel %vm770_vm0, %v2085_v8, 0.0 }
 0x30f   : > { %2390 = vadd.xlane.f32.xlu0 %v2389_v45  ;;  %v2398_v45 = vsel %vm770_vm0, %v2084_v25, 0.0 }
 0x311   : > { %v6749_v26 = vpop.xlane.xlu2 %1498  ;;  %v6751_v34 = vpop.xlane.xlu1 %1495 }
 0x312   : > { %9754 = vst [vmem:[#allocation207_spill] sm:$0xff] %v6749_v26  ;;  %v6753_v4 = vpop.xlane.xlu0 %1492  ;;  %v2088_v26 = vmul.f32 %v5041_v5, %v6590_v55  ;;  %v2092_v5 = vmul.f32 %v5043_v43, %v6590_v55  ;;  %v5046_v43 = vld [vmem:[%s5391_s11 + $0x140] sm:$0xff] }
 0x313   : > { %9755 = vst [vmem:[#allocation208_spill] sm:$0xff] %v6751_v34  ;;  %v5042_v34 = vld [vmem:[%s5391_s11 + $0x100] sm:$0xff] }
 0x314   : > { %9756 = vst [vmem:[#allocation209_spill] sm:$0xff] %v6753_v4  ;;  %v2087_v4 = vmul.f32 %v5042_v34, %v6590_v55  ;;  %v5044_v34 = vld [vmem:[%s5391_s11 + $0x120] sm:$0xff] }
 0x316   : > { %2405 = vadd.xlane.f32.xlu2 %v2404_v44  ;;  %2402 = vadd.xlane.f32.xlu1 %v2401_v6  ;;  %v2413_v44 = vsel %vm770_vm0, %v2089_v0, 0.0  ;;  %v2410_v6 = vsel %vm770_vm0, %v2088_v26, 0.0 }
 0x317   : > { %2399 = vadd.xlane.f32.xlu0 %v2398_v45  ;;  %v2407_v45 = vsel %vm770_vm0, %v2087_v4, 0.0 }
 0x319   : > { %v6764_v27 = vpop.xlane.xlu2 %1507  ;;  %v6766_v8 = vpop.xlane.xlu1 %1504 }
 0x31a   : > { %9757 = vst [vmem:[#allocation210_spill] sm:$0xff] %v6764_v27  ;;  %v6768_v25 = vpop.xlane.xlu0 %1501  ;;  %v2091_v27 = vmul.f32 %v5044_v34, %v6590_v55  ;;  %v2095_v34 = vmul.f32 %v5046_v43, %v6590_v55  ;;  %v6803_v43 = vstv %s1539_s18 }
 0x31b   : > { %9758 = vst [vmem:[#allocation211_spill] sm:$0xff] %v6766_v8  ;;  %v5045_v8 = vld [vmem:[%s5391_s11 + $0x118] sm:$0xff] }
 0x31c   : > { %9759 = vst [vmem:[#allocation212_spill] sm:$0xff] %v6768_v25  ;;  %v2090_v25 = vmul.f32 %v5045_v8, %v6590_v55  ;;  %v5047_v8 = vld [vmem:[%s5391_s11 + $0x138] sm:$0xff] }
 0x31e   : > { %2414 = vadd.xlane.f32.xlu2 %v2413_v44  ;;  %2411 = vadd.xlane.f32.xlu1 %v2410_v6  ;;  %v2422_v44 = vsel %vm770_vm0, %v2092_v5, 0.0  ;;  %v2419_v6 = vsel %vm770_vm0, %v2091_v27, 0.0 }
 0x31f   : > { %2408 = vadd.xlane.f32.xlu0 %v2407_v45  ;;  %v2416_v45 = vsel %vm770_vm0, %v2090_v25, 0.0 }
 0x321   : > { %v6779_v0 = vpop.xlane.xlu2 %1516  ;;  %v6781_v26 = vpop.xlane.xlu1 %1513 }
 0x322   : > { %9760 = vst [vmem:[#allocation213_spill] sm:$0xff] %v6779_v0  ;;  %v6783_v4 = vpop.xlane.xlu0 %1510  ;;  %v2094_v0 = vmul.f32 %v5047_v8, %v6590_v55 }
 0x323   : > { %9761 = vst [vmem:[#allocation214_spill] sm:$0xff] %v6781_v26  ;;  %v5048_v26 = vld [vmem:[%s5391_s11 + $0x130] sm:$0xff] }
 0x324   : > { %9762 = vst [vmem:[#allocation215_spill] sm:$0xff] %v6783_v4  ;;  %v2093_v4 = vmul.f32 %v5048_v26, %v6590_v55  ;;  %v5049_v26 = vld [vmem:[%s5391_s11 + $0x158] sm:$0xff] }
 0x325   : > { %v2098_v8 = vmul.f32 %v5049_v26, %v6590_v55 }
 0x326   : > { %2423 = vadd.xlane.f32.xlu2 %v2422_v44  ;;  %2420 = vadd.xlane.f32.xlu1 %v2419_v6  ;;  %v2431_v44 = vsel %vm770_vm0, %v2095_v34, 0.0  ;;  %v2428_v6 = vsel %vm770_vm0, %v2094_v0, 0.0  ;;  %v1541_v0 = vadd.f32 %v6803_v43, %v5538_v18 }
 0x327   : > { %2417 = vadd.xlane.f32.xlu0 %v2416_v45  ;;  %v2425_v45 = vsel %vm770_vm0, %v2093_v4, 0.0 }
 0x328   : > { %v1797_v18 = vmax.f32 %v1541_v0, 0.0  ;;  %v1543_v0 = vadd.f32 %v6803_v43, %v5536_v17 }
 0x329   : > { %v6794_v5 = vpop.xlane.xlu2 %1525  ;;  %v6796_v27 = vpop.xlane.xlu1 %1522 }
 0x32a   : > { %9763 = vst [vmem:[#allocation216_spill] sm:$0xff] %v6794_v5  ;;  %v6798_v25 = vpop.xlane.xlu0 %1519  ;;  %v5050_v5 = vld [vmem:[%s5391_s11 + $0x150] sm:$0xff]  ;;  %v1799_v49 = vmax.f32 %v1543_v0, 0.0 }
 0x32b   : > { %9764 = vst [vmem:[#allocation217_spill] sm:$0xff] %v6796_v27  ;;  %v2097_v27 = vmul.f32 %v5050_v5, %v6590_v55  ;;  %v2440_v5 = vsel %vm770_vm0, %v2098_v8, 0.0  ;;  %v2100_v8 = vmul.f32 %v5053_v9, %v6590_v55 }
 0x32c   : > { %9765 = vst [vmem:[#allocation218_spill] sm:$0xff] %v6798_v25  ;;  %v5051_v25 = vld [vmem:[%s5391_s11 + $0x148] sm:$0xff] }
 0x32d   : > { %v2096_v34 = vmul.f32 %v5051_v25, %v6590_v55  ;;  %v2437_v25 = vsel %vm770_vm0, %v2097_v27, 0.0  ;;  %v2099_v27 = vmul.f32 %v5054_v36, %v6590_v55 }
 0x32e   : > { %2432 = vadd.xlane.f32.xlu2 %v2431_v44  ;;  %2429 = vadd.xlane.f32.xlu1 %v2428_v6  ;;  %v1542_v6 = vadd.f32 %v6803_v43, %v5553_v30  ;;  %v5052_v30 = vld [vmem:[%s5391_s11 + $0x170] sm:$0xff] }
 0x32f   : > { %2426 = vadd.xlane.f32.xlu0 %v2425_v45  ;;  %v2434_v26 = vsel %vm770_vm0, %v2096_v34, 0.0  ;;  %v1545_v34 = vadd.f32 %v6803_v43, %v5534_v16  ;;  %v6848_v16 = vstv %s4972_s23 }
 0x331   : > { %v6813_v4 = vpop.xlane.xlu2 %1534  ;;  %v6815_v44 = vpop.xlane.xlu1 %1531 }
 0x332   : > { %9766 = vst [vmem:[#allocation219_spill] sm:$0xff] %v6813_v4  ;;  %v6819_v45 = vpop.xlane.xlu0 %1528  ;;  %v1798_v4 = vmax.f32 %v1542_v6, 0.0  ;;  %v3595_v6 = vmul.f32 %v6824_v7, %v1797_v18  ;;  %v2446_v18 = vsel %vm770_vm0, %v2100_v8, 0.0  ;;  %v5055_v8 = vld [vmem:[%s5391_s11 + $0x188] sm:$0xff] }
 0x333   : > { %9767 = vst [vmem:[#allocation220_spill] sm:$0xff] %v6815_v44  ;;  %v6826_v44 = vstv %s4971_s21 }
 0x334   : > { %9768 = vst [vmem:[#allocation221_spill] sm:$0xff] %v6819_v45  ;;  %v2101_v45 = vmul.f32 %v5052_v30, %v6590_v55  ;;  %v3596_v9 = vmul.f32 %v6824_v7, %v1798_v4  ;;  %v1801_v4 = vmax.f32 %v1545_v34, 0.0  ;;  %v5056_v34 = vld [vmem:[%s5391_s11 + $0x180] sm:$0xff] }
 0x335   : > { %v2103_v0 = vmul.f32 %v5056_v34, %v6590_v55 }
 0x336   : > { %2441 = vadd.xlane.f32.xlu2 %v2440_v5  ;;  %2438 = vadd.xlane.f32.xlu1 %v2437_v25  ;;  %v2449_v17 = vsel %vm770_vm0, %v2101_v45, 0.0 }
 0x337   : > { %2435 = vadd.xlane.f32.xlu0 %v2434_v26  ;;  %v1544_v26 = vadd.f32 %v6803_v43, %v5551_v29  ;;  %v2443_v29 = vsel %vm770_vm0, %v2099_v27, 0.0  ;;  %v2104_v27 = vmul.f32 %v5055_v8, %v6590_v55  ;;  %v1547_v8 = vadd.f32 %v6803_v43, %v5568_v42 }
 0x339   : > { %v2316_v5 = vpop.xlane.xlu2 %2315  ;;  %v2313_v25 = vpop.xlane.xlu1 %2312 }
 0x33a   : > { %v3082_v30 = vadd.f32 %v6826_v44, %v2316_v5  ;;  %v3081_v36 = vadd.f32 %v6826_v44, %v2313_v25  ;;  %v6846_v57 = vpop.xlane.xlu0 %1537  ;;  %v3853_v5 = vadd.f32 %v6834_v35, %v3595_v6  ;;  %v1800_v25 = vmax.f32 %v1544_v26, 0.0  ;;  %v5057_v6 = vld [vmem:[%s5391_s11 + $0x178] sm:$0xff] }
 0x33b   : > { %9769 = vst [vmem:[#allocation222_spill] sm:$0xff] %v6846_v57  ;;  %v3854_v57 = vadd.f32 %v6834_v35, %v3596_v9  ;;  %v2102_v26 = vmul.f32 %v5057_v6, %v6590_v55  ;;  %v3599_v9 = vmul.f32 %v6824_v7, %v1801_v4  ;;  %v2458_v4 = vsel %vm770_vm0, %v2104_v27, 0.0 }
 0x33c   : > { %v3338_v56 = vmax.f32 %v3082_v30, 0.0  ;;  %v3337_v10 = vmax.f32 %v3081_v36, 0.0  ;;  %v3597_v30 = vmul.f32 %v6824_v7, %v1799_v49  ;;  %v1548_v36 = vadd.f32 %v6803_v43, %v5566_v41 }
 0x33d   : > { %v1546_v49 = vadd.f32 %v6803_v43, %v5549_v28  ;;  %v2452_v34 = vsel %vm770_vm0, %v2102_v26, 0.0 }
 0x33e   : > { %v4112_v12 = vmul.f32 %v6848_v16, %v3338_v56  ;;  %v4111_v45 = vmul.f32 %v6848_v16, %v3337_v10  ;;  %2450 = vadd.xlane.f32.xlu2 %v2449_v17  ;;  %2447 = vadd.xlane.f32.xlu1 %v2446_v18  ;;  %v3855_v6 = vadd.f32 %v6834_v35, %v3597_v30  ;;  %v5059_v30 = vld [vmem:[%s5391_s11 + $0x198] sm:$0xff] }
 0x33f   : > { %2444 = vadd.xlane.f32.xlu0 %v2443_v29  ;;  %v3598_v29 = vmul.f32 %v6824_v7, %v1800_v25  ;;  %v2455_v25 = vsel %vm770_vm0, %v2103_v0, 0.0 }
 0x340   : > { %v4368_v56 = vadd.f32 %v4112_v12, %v3854_v57  ;;  %v4367_v10 = vadd.f32 %v4111_v45, %v3853_v5 }
 0x341   : > { %v2325_v17 = vpop.xlane.xlu2 %2324  ;;  %v2322_v18 = vpop.xlane.xlu1 %2321 }
 0x342   : > { %4625 = vst.msk [vmem:[%s6862_s25 + $0x8] sm:$0xff] %vm4623_vm1, %v4368_v56  ;;  %v3085_v12 = vadd.f32 %v6826_v44, %v2325_v17  ;;  %v3084_v57 = vadd.f32 %v6826_v44, %v2322_v18  ;;  %v2319_v5 = vpop.xlane.xlu0 %2318  ;;  %v3857_v56 = vadd.f32 %v6834_v35, %v3599_v9  ;;  %v1804_v17 = vmax.f32 %v1548_v36, 0.0 }
 0x343   : > { %4624 = vst.msk [vmem:[%s6862_s25] sm:$0xff] %vm4623_vm1, %v4367_v10  ;;  %v3083_v41 = vadd.f32 %v6826_v44, %v2319_v5  ;;  %v3856_v10 = vadd.f32 %v6834_v35, %v3598_v29  ;;  %v1803_v18 = vmax.f32 %v1547_v8, 0.0  ;;  %v2106_v36 = vmul.f32 %v5059_v30, %v6590_v55  ;;  %v5060_v8 = vld [vmem:[%s5391_s11 + $0x190] sm:$0xff] }
 0x344   : > { %v3341_v45 = vmax.f32 %v3085_v12, 0.0  ;;  %v3340_v42 = vmax.f32 %v3084_v57, 0.0  ;;  %v1802_v12 = vmax.f32 %v1546_v49, 0.0  ;;  %v5058_v57 = vld [vmem:[%s5391_s11 + $0x1a0] sm:$0xff]  ;;  %v3602_v49 = vmul.f32 %v6824_v7, %v1804_v17 }
 0x345   : > { %v3339_v28 = vmax.f32 %v3083_v41, 0.0  ;;  %v2107_v9 = vmul.f32 %v5058_v57, %v6590_v55  ;;  %v2105_v41 = vmul.f32 %v5060_v8, %v6590_v55 }
 0x346   : > { %v4115_v27 = vmul.f32 %v6848_v16, %v3341_v45  ;;  %v4114_v0 = vmul.f32 %v6848_v16, %v3340_v42  ;;  %2459 = vadd.xlane.f32.xlu2 %v2458_v4  ;;  %2456 = vadd.xlane.f32.xlu1 %v2455_v25  ;;  %v1549_v4 = vadd.f32 %v6803_v43, %v5564_v40 }
 0x347   : > { %v4113_v26 = vmul.f32 %v6848_v16, %v3339_v28  ;;  %2453 = vadd.xlane.f32.xlu0 %v2452_v34  ;;  %v1551_v25 = vadd.f32 %v6803_v43, %v5581_v53  ;;  %v3601_v28 = vmul.f32 %v6824_v7, %v1803_v18  ;;  %v3600_v17 = vmul.f32 %v6824_v7, %v1802_v12 }
 0x348   : > { %v4371_v5 = vadd.f32 %v4115_v27, %v3857_v56  ;;  %v4370_v29 = vadd.f32 %v4114_v0, %v3856_v10  ;;  %v1550_v56 = vadd.f32 %v6803_v43, %v5583_v54  ;;  %v2464_v18 = vsel %vm770_vm0, %v2106_v36, 0.0 }
 0x349   : > { %v4369_v45 = vadd.f32 %v4113_v26, %v3855_v6  ;;  %v2334_v42 = vpop.xlane.xlu2 %2333  ;;  %v2331_v34 = vpop.xlane.xlu1 %2330  ;;  %v2467_v6 = vsel %vm770_vm0, %v2107_v9, 0.0  ;;  %v2461_v26 = vsel %vm770_vm0, %v2105_v41, 0.0  ;;  %v1805_v57 = vmax.f32 %v1549_v4, 0.0  ;;  %v5061_v4 = vld [vmem:[%s5391_s11 + $0x1b8] sm:$0xff] }
 0x34a   : > { %4628 = vst.msk [vmem:[%s6862_s25 + $0x20] sm:$0xff] %vm4623_vm1, %v4371_v5  ;;  %v3088_v10 = vadd.f32 %v6826_v44, %v2334_v42  ;;  %v3087_v40 = vadd.f32 %v6826_v44, %v2331_v34  ;;  %v2328_v27 = vpop.xlane.xlu0 %2327  ;;  %v3860_v30 = vadd.f32 %v6834_v35, %v3602_v49  ;;  %v1807_v12 = vmax.f32 %v1551_v25, 0.0  ;;  %v5062_v25 = vld [vmem:[%s5391_s11 + $0x1b0] sm:$0xff] }
 0x34b   : > { %4627 = vst.msk [vmem:[%s6862_s25 + $0x18] sm:$0xff] %vm4623_vm1, %v4370_v29  ;;  %v3086_v53 = vadd.f32 %v6826_v44, %v2328_v27  ;;  %v3859_v29 = vadd.f32 %v6834_v35, %v3601_v28  ;;  %v1806_v8 = vmax.f32 %v1550_v56, 0.0  ;;  %v2110_v49 = vmul.f32 %v5061_v4, %v6590_v55  ;;  %v5063_v56 = vld [vmem:[%s5391_s11 + $0x1a8] sm:$0xff] }
 0x34c   : > { %4626 = vst.msk [vmem:[%s6862_s25 + $0x10] sm:$0xff] %vm4623_vm1, %v4369_v45  ;;  %v3344_v54 = vmax.f32 %v3088_v10, 0.0  ;;  %v3343_v0 = vmax.f32 %v3087_v40, 0.0  ;;  %v3858_v45 = vadd.f32 %v6834_v35, %v3600_v17  ;;  %v2109_v42 = vmul.f32 %v5062_v25, %v6590_v55 }
 0x34d   : > { %v3342_v5 = vmax.f32 %v3086_v53, 0.0  ;;  %v2108_v10 = vmul.f32 %v5063_v56, %v6590_v55  ;;  %v3603_v40 = vmul.f32 %v6824_v7, %v1805_v57  ;;  %v3605_v27 = vmul.f32 %v6824_v7, %v1807_v12  ;;  %v5064_v56 = vld [vmem:[%s5391_s11 + $0x1d0] sm:$0xff] }
 0x34e   : > { %v4118_v9 = vmul.f32 %v6848_v16, %v3344_v54  ;;  %v4117_v36 = vmul.f32 %v6848_v16, %v3343_v0  ;;  %2468 = vadd.xlane.f32.xlu2 %v2467_v6  ;;  %2465 = vadd.xlane.f32.xlu1 %v2464_v18  ;;  %v1554_v17 = vadd.f32 %v6803_v43, %v5596_v2 }
 0x34f   : > { %v4116_v41 = vmul.f32 %v6848_v16, %v3342_v5  ;;  %2462 = vadd.xlane.f32.xlu0 %v2461_v26  ;;  %v3604_v54 = vmul.f32 %v6824_v7, %v1806_v8  ;;  %v1553_v0 = vadd.f32 %v6803_v43, %v5598_v3  ;;  %v1552_v12 = vadd.f32 %v6803_v43, %v5579_v52 }
 0x350   : > { %v4374_v34 = vadd.f32 %v4118_v9, %v3860_v30  ;;  %v4373_v28 = vadd.f32 %v4117_v36, %v3859_v29  ;;  %v2476_v5 = vsel %vm770_vm0, %v2110_v49, 0.0  ;;  %v2473_v29 = vsel %vm770_vm0, %v2109_v42, 0.0 }
 0x351   : > { %v4372_v53 = vadd.f32 %v4116_v41, %v3858_v45  ;;  %v2343_v6 = vpop.xlane.xlu2 %2342  ;;  %v2340_v18 = vpop.xlane.xlu1 %2339  ;;  %v2470_v9 = vsel %vm770_vm0, %v2108_v10, 0.0  ;;  %v3861_v36 = vadd.f32 %v6834_v35, %v3603_v40  ;;  %v3863_v52 = vadd.f32 %v6834_v35, %v3605_v27  ;;  %v5065_v40 = vld [vmem:[%s5391_s11 + $0x1c8] sm:$0xff] }
 0x352   : > { %4631 = vst.msk [vmem:[%s6862_s25 + $0x38] sm:$0xff] %vm4623_vm1, %v4374_v34  ;;  %v3091_v26 = vadd.f32 %v6826_v44, %v2343_v6  ;;  %v3090_v57 = vadd.f32 %v6826_v44, %v2340_v18  ;;  %v2337_v30 = vpop.xlane.xlu0 %2336  ;;  %v1810_v45 = vmax.f32 %v1554_v17, 0.0  ;;  %v3862_v4 = vadd.f32 %v6834_v35, %v3604_v54  ;;  %v5066_v6 = vld [vmem:[%s5391_s11 + $0x1c0] sm:$0xff] }
 0x353   : > { %4630 = vst.msk [vmem:[%s6862_s25 + $0x30] sm:$0xff] %vm4623_vm1, %v4373_v28  ;;  %v3089_v2 = vadd.f32 %v6826_v44, %v2337_v30  ;;  %v1809_v49 = vmax.f32 %v1553_v0, 0.0  ;;  %v1808_v34 = vmax.f32 %v1552_v12, 0.0  ;;  %v2113_v10 = vmul.f32 %v5064_v56, %v6590_v55 }
 0x354   : > { %4629 = vst.msk [vmem:[%s6862_s25 + $0x28] sm:$0xff] %vm4623_vm1, %v4372_v53  ;;  %v3347_v3 = vmax.f32 %v3091_v26, 0.0  ;;  %v3346_v8 = vmax.f32 %v3090_v57, 0.0  ;;  %v2112_v27 = vmul.f32 %v5065_v40, %v6590_v55  ;;  %v2111_v18 = vmul.f32 %v5066_v6, %v6590_v55 }
 0x355   : > { %v3345_v41 = vmax.f32 %v3089_v2, 0.0  ;;  %v1555_v54 = vadd.f32 %v6803_v43, %v5594_v1  ;;  %v3608_v0 = vmul.f32 %v6824_v7, %v1810_v45  ;;  %v1557_v26 = vadd.f32 %v6803_v43, %v5611_v14 }
 0x356   : > { %v4121_v25 = vmul.f32 %v6848_v16, %v3347_v3  ;;  %v4120_v42 = vmul.f32 %v6848_v16, %v3346_v8  ;;  %2477 = vadd.xlane.f32.xlu2 %v2476_v5  ;;  %2474 = vadd.xlane.f32.xlu1 %v2473_v29  ;;  %v3607_v2 = vmul.f32 %v6824_v7, %v1809_v49  ;;  %v2479_v45 = vsel %vm770_vm0, %v2111_v18, 0.0 }
 0x357   : > { %v4119_v28 = vmul.f32 %v6848_v16, %v3345_v41  ;;  %2471 = vadd.xlane.f32.xlu0 %v2470_v9  ;;  %v1556_v5 = vadd.f32 %v6803_v43, %v5613_v15  ;;  %v3606_v8 = vmul.f32 %v6824_v7, %v1808_v34  ;;  %v2485_v9 = vsel %vm770_vm0, %v2113_v10, 0.0 }
 0x358   : > { %v4377_v17 = vadd.f32 %v4121_v25, %v3863_v52  ;;  %v4376_v53 = vadd.f32 %v4120_v42, %v3862_v4  ;;  %v1811_v41 = vmax.f32 %v1555_v54, 0.0  ;;  %v3866_v4 = vadd.f32 %v6834_v35, %v3608_v0  ;;  %v5069_v0 = vld [vmem:[%s5391_s11 + $0x1d8] sm:$0xff] }
 0x359   : > { %v4375_v57 = vadd.f32 %v4119_v28, %v3861_v36  ;;  %v2352_v30 = vpop.xlane.xlu2 %2351  ;;  %v2349_v12 = vpop.xlane.xlu1 %2348  ;;  %v2482_v36 = vsel %vm770_vm0, %v2112_v27, 0.0  ;;  %v1813_v49 = vmax.f32 %v1557_v26, 0.0  ;;  %v3865_v42 = vadd.f32 %v6834_v35, %v3607_v2  ;;  %v5067_v27 = vld [vmem:[%s5391_s11 + $0x1e8] sm:$0xff] }
 0x35a   : > { %4634 = vst.msk [vmem:[%s6862_s25 + $0x50] sm:$0xff] %vm4623_vm1, %v4377_v17  ;;  %v3094_v29 = vadd.f32 %v6826_v44, %v2352_v30  ;;  %v3093_v1 = vadd.f32 %v6826_v44, %v2349_v12  ;;  %v2346_v3 = vpop.xlane.xlu0 %2345  ;;  %v1812_v34 = vmax.f32 %v1556_v5, 0.0  ;;  %v3864_v10 = vadd.f32 %v6834_v35, %v3606_v8 }
 0x35b   : > { %4633 = vst.msk [vmem:[%s6862_s25 + $0x48] sm:$0xff] %vm4623_vm1, %v4376_v53  ;;  %v3092_v14 = vadd.f32 %v6826_v44, %v2346_v3  ;;  %v2116_v17 = vmul.f32 %v5067_v27, %v6590_v55  ;;  %v5068_v53 = vld [vmem:[%s5391_s11 + $0x1e0] sm:$0xff]  ;;  %v2114_v26 = vmul.f32 %v5069_v0, %v6590_v55  ;;  %v3611_v30 = vmul.f32 %v6824_v7, %v1813_v49  ;;  %v5072_v0 = vld [vmem:[%s5391_s11 + $0x1f0] sm:$0xff] }
 0x35c   : > { %4632 = vst.msk [vmem:[%s6862_s25 + $0x40] sm:$0xff] %vm4623_vm1, %v4375_v57  ;;  %v3350_v15 = vmax.f32 %v3094_v29, 0.0  ;;  %v3349_v52 = vmax.f32 %v3093_v1, 0.0  ;;  %v2115_v6 = vmul.f32 %v5068_v53, %v6590_v55  ;;  %v3609_v57 = vmul.f32 %v6824_v7, %v1811_v41  ;;  %v5070_v27 = vld [vmem:[%s5391_s11 + $0x200] sm:$0xff]  ;;  %v5071_v53 = vld [vmem:[%s5391_s11 + $0x1f8] sm:$0xff] }
 0x35d   : > { %v3348_v25 = vmax.f32 %v3092_v14, 0.0  ;;  %v1560_v12 = vadd.f32 %v6803_v43, %v5626_v32  ;;  %v3610_v1 = vmul.f32 %v6824_v7, %v1812_v34  ;;  %v1559_v3 = vadd.f32 %v6803_v43, %v5628_v33 }
 0x35e   : > { %v4124_v28 = vmul.f32 %v6848_v16, %v3350_v15  ;;  %v4123_v56 = vmul.f32 %v6848_v16, %v3349_v52  ;;  %2486 = vadd.xlane.f32.xlu2 %v2485_v9  ;;  %2483 = vadd.xlane.f32.xlu1 %v2482_v36  ;;  %v1558_v36 = vadd.f32 %v6803_v43, %v5609_v13  ;;  %v2494_v15 = vsel %vm770_vm0, %v2116_v17, 0.0 }
 0x35f   : > { %v4122_v40 = vmul.f32 %v6848_v16, %v3348_v25  ;;  %2480 = vadd.xlane.f32.xlu0 %v2479_v45  ;;  %v2491_v52 = vsel %vm770_vm0, %v2115_v6, 0.0  ;;  %v2488_v41 = vsel %vm770_vm0, %v2114_v26, 0.0  ;;  %v3869_v13 = vadd.f32 %v6834_v35, %v3611_v30 }
 0x360   : > { %v4380_v18 = vadd.f32 %v4124_v28, %v3866_v4  ;;  %v4379_v54 = vadd.f32 %v4123_v56, %v3865_v42  ;;  %v3867_v4 = vadd.f32 %v6834_v35, %v3609_v57  ;;  %v1816_v49 = vmax.f32 %v1560_v12, 0.0 }
 0x361   : > { %v4378_v2 = vadd.f32 %v4122_v40, %v3864_v10  ;;  %v2361_v5 = vpop.xlane.xlu2 %2360  ;;  %v2358_v29 = vpop.xlane.xlu1 %2357  ;;  %v3868_v42 = vadd.f32 %v6834_v35, %v3610_v1  ;;  %v1815_v34 = vmax.f32 %v1559_v3, 0.0  ;;  %v1814_v10 = vmax.f32 %v1558_v36, 0.0 }
 0x362   : > { %4637 = vst.msk [vmem:[%s6862_s25 + $0x68] sm:$0xff] %vm4623_vm1, %v4380_v18  ;;  %v3097_v8 = vadd.f32 %v6826_v44, %v2361_v5  ;;  %v3096_v14 = vadd.f32 %v6826_v44, %v2358_v29  ;;  %v2355_v9 = vpop.xlane.xlu0 %2354  ;;  %v2119_v17 = vmul.f32 %v5070_v27, %v6590_v55  ;;  %v2118_v6 = vmul.f32 %v5071_v53, %v6590_v55 }
 0x363   : > { %4636 = vst.msk [vmem:[%s6862_s25 + $0x60] sm:$0xff] %vm4623_vm1, %v4379_v54  ;;  %v3095_v32 = vadd.f32 %v6826_v44, %v2355_v9  ;;  %v2117_v26 = vmul.f32 %v5072_v0, %v6590_v55  ;;  %v1561_v57 = vadd.f32 %v6803_v43, %v5624_v31  ;;  %v3614_v30 = vmul.f32 %v6824_v7, %v1816_v49 }
 0x364   : > { %4635 = vst.msk [vmem:[%s6862_s25 + $0x58] sm:$0xff] %vm4623_vm1, %v4378_v2  ;;  %v3353_v33 = vmax.f32 %v3097_v8, 0.0  ;;  %v3352_v45 = vmax.f32 %v3096_v14, 0.0  ;;  %v1563_v12 = vadd.f32 %v6803_v43, %v5641_v47  ;;  %v3613_v1 = vmul.f32 %v6824_v7, %v1815_v34 }
 0x365   : > { %v3351_v25 = vmax.f32 %v3095_v32, 0.0  ;;  %v1562_v3 = vadd.f32 %v6803_v43, %v5643_v48  ;;  %v3612_v9 = vmul.f32 %v6824_v7, %v1814_v10  ;;  %v2503_v36 = vsel %vm770_vm0, %v2119_v17, 0.0 }
 0x366   : > { %v4127_v28 = vmul.f32 %v6848_v16, %v3353_v33  ;;  %v4126_v56 = vmul.f32 %v6848_v16, %v3352_v45  ;;  %2495 = vadd.xlane.f32.xlu2 %v2494_v15  ;;  %2492 = vadd.xlane.f32.xlu1 %v2491_v52  ;;  %v2500_v32 = vsel %vm770_vm0, %v2118_v6, 0.0  ;;  %v2497_v52 = vsel %vm770_vm0, %v2117_v26, 0.0  ;;  %v5075_v6 = vld [vmem:[%s5391_s11 + $0x208] sm:$0xff] }
 0x367   : > { %v4125_v40 = vmul.f32 %v6848_v16, %v3351_v25  ;;  %2489 = vadd.xlane.f32.xlu0 %v2488_v41  ;;  %v1817_v33 = vmax.f32 %v1561_v57, 0.0  ;;  %v3872_v45 = vadd.f32 %v6834_v35, %v3614_v30  ;;  %v1819_v41 = vmax.f32 %v1563_v12, 0.0 }
 0x368   : > { %v4383_v18 = vadd.f32 %v4127_v28, %v3869_v13  ;;  %v4382_v54 = vadd.f32 %v4126_v56, %v3868_v42  ;;  %v3871_v13 = vadd.f32 %v6834_v35, %v3613_v1  ;;  %v1818_v49 = vmax.f32 %v1562_v3, 0.0  ;;  %v5073_v56 = vld [vmem:[%s5391_s11 + $0x218] sm:$0xff] }
 0x369   : > { %v4381_v2 = vadd.f32 %v4125_v40, %v3867_v4  ;;  %v2370_v5 = vpop.xlane.xlu2 %2369  ;;  %v2367_v29 = vpop.xlane.xlu1 %2366  ;;  %v3870_v34 = vadd.f32 %v6834_v35, %v3612_v9  ;;  %v2122_v10 = vmul.f32 %v5073_v56, %v6590_v55  ;;  %v5074_v40 = vld [vmem:[%s5391_s11 + $0x210] sm:$0xff]  ;;  %v3617_v0 = vmul.f32 %v6824_v7, %v1819_v41  ;;  %v5078_v56 = vld [vmem:[%s5391_s11 + $0x220] sm:$0xff] }
 0x36a   : > { %4640 = vst.msk [vmem:[%s6862_s25 + $0x80] sm:$0xff] %vm4623_vm1, %v4383_v18  ;;  %v3100_v8 = vadd.f32 %v6826_v44, %v2370_v5  ;;  %v3099_v31 = vadd.f32 %v6826_v44, %v2367_v29  ;;  %v2364_v14 = vpop.xlane.xlu0 %2363  ;;  %v2121_v27 = vmul.f32 %v5074_v40, %v6590_v55  ;;  %v2120_v18 = vmul.f32 %v5075_v6, %v6590_v55 }
 0x36b   : > { %4639 = vst.msk [vmem:[%s6862_s25 + $0x78] sm:$0xff] %vm4623_vm1, %v4382_v54  ;;  %v3098_v47 = vadd.f32 %v6826_v44, %v2364_v14  ;;  %v3615_v54 = vmul.f32 %v6824_v7, %v1817_v33  ;;  %v1566_v26 = vadd.f32 %v6803_v43, %v5656_v62  ;;  %v1565_v5 = vadd.f32 %v6803_v43, %v5658_v63 }
 0x36c   : > { %4638 = vst.msk [vmem:[%s6862_s25 + $0x70] sm:$0xff] %vm4623_vm1, %v4381_v2  ;;  %v3356_v48 = vmax.f32 %v3100_v8, 0.0  ;;  %v3355_v15 = vmax.f32 %v3099_v31, 0.0  ;;  %v3616_v2 = vmul.f32 %v6824_v7, %v1818_v49  ;;  %v1564_v8 = vadd.f32 %v6803_v43, %v5639_v46 }
 0x36d   : > { %v3354_v4 = vmax.f32 %v3098_v47, 0.0  ;;  %v2512_v31 = vsel %vm770_vm0, %v2122_v10, 0.0  ;;  %v2509_v14 = vsel %vm770_vm0, %v2121_v27, 0.0  ;;  %v2506_v47 = vsel %vm770_vm0, %v2120_v18, 0.0 }
 0x36e   : > { %v4130_v25 = vmul.f32 %v6848_v16, %v3356_v48  ;;  %v4129_v42 = vmul.f32 %v6848_v16, %v3355_v15  ;;  %2504 = vadd.xlane.f32.xlu2 %v2503_v36  ;;  %2501 = vadd.xlane.f32.xlu1 %v2500_v32  ;;  %v3873_v36 = vadd.f32 %v6834_v35, %v3615_v54  ;;  %v1822_v32 = vmax.f32 %v1566_v26, 0.0 }
 0x36f   : > { %v4128_v28 = vmul.f32 %v6848_v16, %v3354_v4  ;;  %2498 = vadd.xlane.f32.xlu0 %v2497_v52  ;;  %v3875_v46 = vadd.f32 %v6834_v35, %v3617_v0  ;;  %v3874_v15 = vadd.f32 %v6834_v35, %v3616_v2  ;;  %v1821_v52 = vmax.f32 %v1565_v5, 0.0 }
 0x370   : > { %v4386_v17 = vadd.f32 %v4130_v25, %v3872_v45  ;;  %v4385_v53 = vadd.f32 %v4129_v42, %v3871_v13  ;;  %v1820_v41 = vmax.f32 %v1564_v8, 0.0  ;;  %v5076_v13 = vld [vmem:[%s5391_s11 + $0x230] sm:$0xff]  ;;  %v5077_v25 = vld [vmem:[%s5391_s11 + $0x228] sm:$0xff]  ;;  %v2123_v10 = vmul.f32 %v5078_v56, %v6590_v55 }
 0x371   : > { %v4384_v57 = vadd.f32 %v4128_v28, %v3870_v34  ;;  %v2379_v30 = vpop.xlane.xlu2 %2378  ;;  %v2376_v12 = vpop.xlane.xlu1 %2375  ;;  %v2125_v49 = vmul.f32 %v5076_v13, %v6590_v55  ;;  %v2124_v42 = vmul.f32 %v5077_v25, %v6590_v55  ;;  %v1567_v40 = vadd.f32 %v6803_v43, %v5654_v61 }
 0x372   : > { %4643 = vst.msk [vmem:[%s6862_s25 + $0x98] sm:$0xff] %vm4623_vm1, %v4386_v17  ;;  %v3103_v29 = vadd.f32 %v6826_v44, %v2379_v30  ;;  %v3102_v1 = vadd.f32 %v6826_v44, %v2376_v12  ;;  %v2373_v3 = vpop.xlane.xlu0 %2372  ;;  %v3620_v27 = vmul.f32 %v6824_v7, %v1822_v32  ;;  %v1569_v17 = vadd.f32 %v6803_v43, %v5671_v20 }
 0x373   : > { %4642 = vst.msk [vmem:[%s6862_s25 + $0x90] sm:$0xff] %vm4623_vm1, %v4385_v53  ;;  %v3101_v62 = vadd.f32 %v6826_v44, %v2373_v3  ;;  %v3619_v54 = vmul.f32 %v6824_v7, %v1821_v52  ;;  %v1568_v0 = vadd.f32 %v6803_v43, %v5673_v21  ;;  %v2521_v30 = vsel %vm770_vm0, %v2125_v49, 0.0 }
 0x374   : > { %4641 = vst.msk [vmem:[%s6862_s25 + $0x88] sm:$0xff] %vm4623_vm1, %v4384_v57  ;;  %v3359_v63 = vmax.f32 %v3103_v29, 0.0  ;;  %v3358_v9 = vmax.f32 %v3102_v1, 0.0  ;;  %v3618_v57 = vmul.f32 %v6824_v7, %v1820_v41  ;;  %v2518_v12 = vsel %vm770_vm0, %v2124_v42, 0.0 }
 0x375   : > { %v3357_v48 = vmax.f32 %v3101_v62, 0.0  ;;  %v2515_v5 = vsel %vm770_vm0, %v2123_v10, 0.0  ;;  %v1823_v29 = vmax.f32 %v1567_v40, 0.0  ;;  %v3878_v1 = vadd.f32 %v6834_v35, %v3620_v27 }
 0x376   : > { %v4133_v33 = vmul.f32 %v6848_v16, %v3359_v63  ;;  %v4132_v45 = vmul.f32 %v6848_v16, %v3358_v9  ;;  %2513 = vadd.xlane.f32.xlu2 %v2512_v31  ;;  %2510 = vadd.xlane.f32.xlu1 %v2509_v14  ;;  %v1825_v3 = vmax.f32 %v1569_v17, 0.0  ;;  %v3877_v62 = vadd.f32 %v6834_v35, %v3619_v54 }
 0x377   : > { %v4131_v4 = vmul.f32 %v6848_v16, %v3357_v48  ;;  %2507 = vadd.xlane.f32.xlu0 %v2506_v47  ;;  %v1824_v31 = vmax.f32 %v1568_v0, 0.0  ;;  %v3876_v9 = vadd.f32 %v6834_v35, %v3618_v57  ;;  %v5081_v48 = vld [vmem:[%s5391_s11 + $0x240] sm:$0xff]  ;;  %v1572_v49 = vadd.f32 %v6803_v43, %v5686_v38 }
 0x378   : > { %v4389_v34 = vadd.f32 %v4133_v33, %v3875_v46  ;;  %v4388_v28 = vadd.f32 %v4132_v45, %v3874_v15  ;;  %v7130_v46 = vld [vmem:[%s9550_s1 + $0x1] ss:$0 sm:$0xff]  ;;  %v5082_v45 = vld [vmem:[%s5391_s11 + $0x238] sm:$0xff]  ;;  %v3623_v13 = vmul.f32 %v6824_v7, %v1825_v3  ;;  %v1571_v56 = vadd.f32 %v6803_v43, %v5688_v39 }
 0x379   : > { %v4387_v53 = vadd.f32 %v4131_v4, %v3873_v36  ;;  %v2388_v6 = vpop.xlane.xlu2 %2387  ;;  %v2385_v18 = vpop.xlane.xlu1 %2384  ;;  %v5079_v36 = vld [vmem:[%s5391_s11 + $0x248] sm:$0xff]  ;;  %v2127_v15 = vmul.f32 %v5081_v48, %v7130_v46  ;;  %v2126_v41 = vmul.f32 %v5082_v45, %v7130_v46  ;;  %v3621_v4 = vmul.f32 %v6824_v7, %v1823_v29  ;;  %v5084_v29 = vld [vmem:[%s5391_s11 + $0x258] sm:$0xff] }
 0x37a   : > { %4646 = vst.msk [vmem:[%s6862_s25 + $0xb0] sm:$0xff] %vm4623_vm1, %v4389_v34  ;;  %v3106_v55 = vadd.f32 %v6826_v44, %v2388_v6  ;;  %v3105_v61 = vadd.f32 %v6826_v44, %v2385_v18  ;;  %v2382_v26 = vpop.xlane.xlu0 %2381  ;;  %v2128_v32 = vmul.f32 %v7130_v46, %v5079_v36  ;;  %v1570_v17 = vadd.f32 %v6803_v43, %v5669_v19 }
 0x37b   : > { %4645 = vst.msk [vmem:[%s6862_s25 + $0xa8] sm:$0xff] %vm4623_vm1, %v4388_v28  ;;  %v3104_v20 = vadd.f32 %v6826_v44, %v2382_v26  ;;  %v3622_v28 = vmul.f32 %v6824_v7, %v1824_v31  ;;  %v2527_v6 = vsel %vm770_vm0, %v2127_v15, 0.0  ;;  %v2524_v54 = vsel %vm770_vm0, %v2126_v41, 0.0 }
 0x37c   : > { %4644 = vst.msk [vmem:[%s6862_s25 + $0xa0] sm:$0xff] %vm4623_vm1, %v4387_v53  ;;  %v3362_v21 = vmax.f32 %v3106_v55, 0.0  ;;  %v3361_v2 = vmax.f32 %v3105_v61, 0.0  ;;  %v2530_v53 = vsel %vm770_vm0, %v2128_v32, 0.0  ;;  %v3879_v0 = vadd.f32 %v6834_v35, %v3621_v4 }
 0x37d   : > { %v3360_v8 = vmax.f32 %v3104_v20, 0.0  ;;  %v3881_v19 = vadd.f32 %v6834_v35, %v3623_v13  ;;  %v1828_v55 = vmax.f32 %v1572_v49, 0.0  ;;  %v3880_v26 = vadd.f32 %v6834_v35, %v3622_v28 }
 0x37e   : > { %v4136_v14 = vmul.f32 %v6848_v16, %v3362_v21  ;;  %v4135_v63 = vmul.f32 %v6848_v16, %v3361_v2  ;;  %2522 = vadd.xlane.f32.xlu2 %v2521_v30  ;;  %2519 = vadd.xlane.f32.xlu1 %v2518_v12  ;;  %v1827_v57 = vmax.f32 %v1571_v56, 0.0  ;;  %v1826_v12 = vmax.f32 %v1570_v17, 0.0  ;;  %v5083_v2 = vld [vmem:[%s5391_s11 + $0x260] sm:$0xff] }
 0x37f   : > { %v4134_v47 = vmul.f32 %v6848_v16, %v3360_v8  ;;  %2516 = vadd.xlane.f32.xlu0 %v2515_v5  ;;  %v2131_v5 = vmul.f32 %v5083_v2, %v7130_v46  ;;  %v1574_v15 = vadd.f32 %v6803_v43, %v5703_v60  ;;  %v1577_v2 = vadd.f32 %v6803_v43, %v5718_v24 }
 0x380   : > { %v4392_v52 = vadd.f32 %v4136_v14, %v3878_v1  ;;  %v4391_v33 = vadd.f32 %v4135_v63, %v3877_v62  ;;  %v2130_v1 = vmul.f32 %v5084_v29, %v7130_v46  ;;  %v5085_v62 = vld [vmem:[%s5391_s11 + $0x250] sm:$0xff]  ;;  %v1573_v14 = vadd.f32 %v6803_v43, %v5684_v37 }
 0x381   : > { %v4390_v25 = vadd.f32 %v4134_v47, %v3876_v9  ;;  %v2397_v42 = vpop.xlane.xlu2 %2396  ;;  %v2394_v34 = vpop.xlane.xlu1 %2393  ;;  %v2129_v31 = vmul.f32 %v5085_v62, %v7130_v46  ;;  %v3626_v63 = vmul.f32 %v6824_v7, %v1828_v55  ;;  %v1575_v9 = vadd.f32 %v6803_v43, %v5701_v59 }
 0x382   : > { %4649 = vst.msk [vmem:[%s6862_s25 + $0xc8] sm:$0xff] %vm4623_vm1, %v4392_v52  ;;  %v3109_v10 = vadd.f32 %v6826_v44, %v2397_v42  ;;  %v3108_v40 = vadd.f32 %v6826_v44, %v2394_v34  ;;  %v2391_v27 = vpop.xlane.xlu0 %2390  ;;  %v3625_v48 = vmul.f32 %v6824_v7, %v1827_v57  ;;  %v3624_v45 = vmul.f32 %v6824_v7, %v1826_v12 }
 0x383   : > { %4648 = vst.msk [vmem:[%s6862_s25 + $0xc0] sm:$0xff] %vm4623_vm1, %v4391_v33  ;;  %v3107_v38 = vadd.f32 %v6826_v44, %v2391_v27  ;;  %v2539_v41 = vsel %vm770_vm0, %v2131_v5, 0.0  ;;  %v2536_v4 = vsel %vm770_vm0, %v2130_v1, 0.0  ;;  %v2533_v49 = vsel %vm770_vm0, %v2129_v31, 0.0 }
 0x384   : > { %4647 = vst.msk [vmem:[%s6862_s25 + $0xb8] sm:$0xff] %vm4623_vm1, %v4390_v25  ;;  %v3365_v39 = vmax.f32 %v3109_v10, 0.0  ;;  %v3364_v18 = vmax.f32 %v3108_v40, 0.0  ;;  %v1829_v25 = vmax.f32 %v1573_v14, 0.0  ;;  %v3884_v42 = vadd.f32 %v6834_v35, %v3626_v63 }
 0x385   : > { %v3363_v61 = vmax.f32 %v3107_v38, 0.0  ;;  %v1831_v34 = vmax.f32 %v1575_v9, 0.0  ;;  %v3883_v56 = vadd.f32 %v6834_v35, %v3625_v48  ;;  %v1830_v10 = vmax.f32 %v1574_v15, 0.0 }
 0x386   : > { %v4139_v20 = vmul.f32 %v6848_v16, %v3365_v39  ;;  %v4138_v30 = vmul.f32 %v6848_v16, %v3364_v18  ;;  %2531 = vadd.xlane.f32.xlu2 %v2530_v53  ;;  %2528 = vadd.xlane.f32.xlu1 %v2527_v6  ;;  %v3882_v17 = vadd.f32 %v6834_v35, %v3624_v45  ;;  %v5086_v53 = vld [vmem:[%s5391_s11 + $0x278] sm:$0xff]  ;;  %v5087_v39 = vld [vmem:[%s5391_s11 + $0x270] sm:$0xff] }
 0x387   : > { %v4137_v21 = vmul.f32 %v6848_v16, %v3363_v61  ;;  %2525 = vadd.xlane.f32.xlu0 %v2524_v54  ;;  %v2134_v6 = vmul.f32 %v5086_v53, %v7130_v46  ;;  %v2133_v18 = vmul.f32 %v5087_v39, %v7130_v46  ;;  %v3627_v61 = vmul.f32 %v6824_v7, %v1829_v25 }
 0x388   : > { %v4395_v3 = vadd.f32 %v4139_v20, %v3881_v19  ;;  %v4394_v8 = vadd.f32 %v4138_v30, %v3880_v26  ;;  %v5088_v19 = vld [vmem:[%s5391_s11 + $0x268] sm:$0xff]  ;;  %v3629_v26 = vmul.f32 %v6824_v7, %v1831_v34  ;;  %v1578_v57 = vadd.f32 %v6803_v43, %v5716_v23 }
 0x389   : > { %v4393_v47 = vadd.f32 %v4137_v21, %v3879_v0  ;;  %v2406_v36 = vpop.xlane.xlu2 %2405  ;;  %v2403_v32 = vpop.xlane.xlu1 %2402  ;;  %v2132_v55 = vmul.f32 %v5088_v19, %v7130_v46  ;;  %v3628_v21 = vmul.f32 %v6824_v7, %v1830_v10  ;;  %v2545_v62 = vsel %vm770_vm0, %v2133_v18, 0.0 }
 0x38a   : > { %4652 = vst.msk [vmem:[%s6862_s25 + $0xe0] sm:$0xff] %vm4623_vm1, %v4395_v3  ;;  %v3112_v52 = vadd.f32 %v6826_v44, %v2406_v36  ;;  %v3111_v37 = vadd.f32 %v6826_v44, %v2403_v32  ;;  %v2400_v33 = vpop.xlane.xlu0 %2399  ;;  %v1576_v3 = vadd.f32 %v6803_v43, %v5699_v58  ;;  %v3885_v63 = vadd.f32 %v6834_v35, %v3627_v61 }
 0x38b   : > { %4651 = vst.msk [vmem:[%s6862_s25 + $0xd8] sm:$0xff] %vm4623_vm1, %v4394_v8  ;;  %v3110_v59 = vadd.f32 %v6826_v44, %v2400_v33  ;;  %v2548_v8 = vsel %vm770_vm0, %v2134_v6, 0.0  ;;  %v2542_v14 = vsel %vm770_vm0, %v2132_v55, 0.0  ;;  %v3887_v58 = vadd.f32 %v6834_v35, %v3629_v26  ;;  %v5089_v33 = vld [vmem:[%s5391_s11 + $0x290] sm:$0xff] }
 0x38c   : > { %4650 = vst.msk [vmem:[%s6862_s25 + $0xd0] sm:$0xff] %vm4623_vm1, %v4393_v47  ;;  %v3368_v60 = vmax.f32 %v3112_v52, 0.0  ;;  %v3367_v13 = vmax.f32 %v3111_v37, 0.0  ;;  %v1834_v9 = vmax.f32 %v1578_v57, 0.0  ;;  %v3886_v36 = vadd.f32 %v6834_v35, %v3628_v21 }
 0x38d   : > { %v3366_v28 = vmax.f32 %v3110_v59, 0.0  ;;  %v1833_v32 = vmax.f32 %v1577_v2, 0.0  ;;  %v1832_v52 = vmax.f32 %v1576_v3, 0.0  ;;  %v2137_v45 = vmul.f32 %v5089_v33, %v7130_v46  ;;  %v5090_v59 = vld [vmem:[%s5391_s11 + $0x288] sm:$0xff] }
 0x38e   : > { %v4142_v40 = vmul.f32 %v6848_v16, %v3368_v60  ;;  %v4141_v27 = vmul.f32 %v6848_v16, %v3367_v13  ;;  %2540 = vadd.xlane.f32.xlu2 %v2539_v41  ;;  %2537 = vadd.xlane.f32.xlu1 %v2536_v4  ;;  %v2136_v41 = vmul.f32 %v5090_v59, %v7130_v46  ;;  %v5091_v13 = vld [vmem:[%s5391_s11 + $0x280] sm:$0xff]  ;;  %v5092_v2 = vld [vmem:[%s5391_s11 + $0x2a8] sm:$0xff] }
 0x38f   : > { %v4140_v38 = vmul.f32 %v6848_v16, %v3366_v28  ;;  %2534 = vadd.xlane.f32.xlu0 %v2533_v49  ;;  %v2135_v49 = vmul.f32 %v5091_v13, %v7130_v46  ;;  %v1579_v25 = vadd.f32 %v6803_v43, %v5714_v22  ;;  %v1581_v34 = vadd.f32 %v6803_v43, %v5731_v50 }
 0x390   : > { %v4398_v54 = vadd.f32 %v4142_v40, %v3884_v42  ;;  %v4397_v0 = vadd.f32 %v4141_v27, %v3883_v56  ;;  %v3632_v42 = vmul.f32 %v6824_v7, %v1834_v9  ;;  %v3631_v40 = vmul.f32 %v6824_v7, %v1833_v32 }
 0x391   : > { %v4396_v20 = vadd.f32 %v4140_v38, %v3882_v17  ;;  %v2415_v30 = vpop.xlane.xlu2 %2414  ;;  %v2412_v12 = vpop.xlane.xlu1 %2411  ;;  %v1580_v27 = vadd.f32 %v6803_v43, %v5733_v51  ;;  %v3630_v53 = vmul.f32 %v6824_v7, %v1832_v52  ;;  %v2557_v6 = vsel %vm770_vm0, %v2137_v45, 0.0 }
 0x392   : > { %4655 = vst.msk [vmem:[%s6862_s25 + $0xf8] sm:$0xff] %vm4623_vm1, %v4398_v54  ;;  %v3115_v5 = vadd.f32 %v6826_v44, %v2415_v30  ;;  %v3114_v29 = vadd.f32 %v6826_v44, %v2412_v12  ;;  %v2409_v1 = vpop.xlane.xlu0 %2408  ;;  %v2554_v39 = vsel %vm770_vm0, %v2136_v41, 0.0  ;;  %v2551_v54 = vsel %vm770_vm0, %v2135_v49, 0.0 }
 0x393   : > { %4654 = vst.msk [vmem:[%s6862_s25 + $0xf0] sm:$0xff] %vm4623_vm1, %v4397_v0  ;;  %v3113_v23 = vadd.f32 %v6826_v44, %v2409_v1  ;;  %v1835_v0 = vmax.f32 %v1579_v25, 0.0  ;;  %v3890_v19 = vadd.f32 %v6834_v35, %v3632_v42  ;;  %v1837_v55 = vmax.f32 %v1581_v34, 0.0 }
 0x394   : > { %4653 = vst.msk [vmem:[%s6862_s25 + $0xe8] sm:$0xff] %vm4623_vm1, %v4396_v20  ;;  %v3371_v24 = vmax.f32 %v3115_v5, 0.0  ;;  %v3370_v31 = vmax.f32 %v3114_v29, 0.0  ;;  %v3889_v26 = vadd.f32 %v6834_v35, %v3631_v40  ;;  %v1836_v57 = vmax.f32 %v1580_v27, 0.0  ;;  %v5093_v29 = vld [vmem:[%s5391_s11 + $0x2a0] sm:$0xff] }
 0x395   : > { %v3369_v47 = vmax.f32 %v3113_v23, 0.0  ;;  %v3888_v12 = vadd.f32 %v6834_v35, %v3630_v53  ;;  %v2140_v5 = vmul.f32 %v5092_v2, %v7130_v46  ;;  %v2139_v1 = vmul.f32 %v5093_v29, %v7130_v46 }
 0x396   : > { %v4145_v48 = vmul.f32 %v6848_v16, %v3371_v24  ;;  %v4144_v15 = vmul.f32 %v6848_v16, %v3370_v31  ;;  %2549 = vadd.xlane.f32.xlu2 %v2548_v8  ;;  %2546 = vadd.xlane.f32.xlu1 %v2545_v62  ;;  %v5094_v8 = vld [vmem:[%s5391_s11 + $0x298] sm:$0xff]  ;;  %v3633_v24 = vmul.f32 %v6824_v7, %v1835_v0 }
 0x397   : > { %v4143_v37 = vmul.f32 %v6848_v16, %v3369_v47  ;;  %2543 = vadd.xlane.f32.xlu0 %v2542_v14  ;;  %v2138_v62 = vmul.f32 %v5094_v8, %v7130_v46  ;;  %v3635_v31 = vmul.f32 %v6824_v7, %v1837_v55  ;;  %v1584_v14 = vadd.f32 %v6803_v43, %v5746_v11 }
 0x398   : > { %v4401_v4 = vadd.f32 %v4145_v48, %v3887_v58  ;;  %v4400_v60 = vadd.f32 %v4144_v15, %v3886_v36  ;;  %v3634_v47 = vmul.f32 %v6824_v7, %v1836_v57  ;;  %v9770_v36 = vld [vmem:[#allocation11_spill] sm:$0xff]  ;;  %v2566_v45 = vsel %vm770_vm0, %v2140_v5, 0.0 }
 0x399   : > { %v4399_v28 = vadd.f32 %v4143_v37, %v3885_v63  ;;  %v2424_v56 = vpop.xlane.xlu2 %2423  ;;  %v2421_v10 = vpop.xlane.xlu1 %2420  ;;  %v1583_v32 = vadd.f32 %v6803_v43, %v9770_v36  ;;  %v9771_v37 = vld [vmem:[#allocation9_spill] sm:$0xff]  ;;  %v2563_v59 = vsel %vm770_vm0, %v2139_v1, 0.0  ;;  %v3891_v13 = vadd.f32 %v6834_v35, %v3633_v24 }
 0x39a   : > { %4658 = vst.msk [vmem:[%s6862_s25 + $0x110] sm:$0xff] %vm4623_vm1, %v4401_v4  ;;  %v3118_v17 = vadd.f32 %v6826_v44, %v2424_v56  ;;  %v3117_v22 = vadd.f32 %v6826_v44, %v2421_v10  ;;  %v2418_v38 = vpop.xlane.xlu0 %2417  ;;  %v1582_v33 = vadd.f32 %v6803_v43, %v9771_v37  ;;  %v3893_v49 = vadd.f32 %v6834_v35, %v3635_v31 }
 0x39b   : > { %4657 = vst.msk [vmem:[%s6862_s25 + $0x108] sm:$0xff] %vm4623_vm1, %v4400_v60  ;;  %v3116_v50 = vadd.f32 %v6826_v44, %v2418_v38  ;;  %v2560_v60 = vsel %vm770_vm0, %v2138_v62, 0.0  ;;  %v1840_v25 = vmax.f32 %v1584_v14, 0.0  ;;  %v3892_v34 = vadd.f32 %v6834_v35, %v3634_v47  ;;  %v5096_v38 = vld [vmem:[%s5391_s11 + $0x2b8] sm:$0xff] }
 0x39c   : > { %4656 = vst.msk [vmem:[%s6862_s25 + $0x100] sm:$0xff] %vm4623_vm1, %v4399_v28  ;;  %v3374_v51 = vmax.f32 %v3118_v17, 0.0  ;;  %v3373_v18 = vmax.f32 %v3117_v22, 0.0  ;;  %v1839_v28 = vmax.f32 %v1583_v32, 0.0  ;;  %v1838_v40 = vmax.f32 %v1582_v33, 0.0  ;;  %v5095_v17 = vld [vmem:[%s5391_s11 + $0x2c0] sm:$0xff] }
 0x39d   : > { %v3372_v61 = vmax.f32 %v3116_v50, 0.0  ;;  %v2143_v22 = vmul.f32 %v5095_v17, %v7130_v46  ;;  %v2142_v53 = vmul.f32 %v5096_v38, %v7130_v46  ;;  %v3638_v0 = vmul.f32 %v6824_v7, %v1840_v25  ;;  %v5099_v33 = vld [vmem:[%s5391_s11 + $0x2d0] sm:$0xff]  ;;  %v9777_v38 = vld [vmem:[#allocation12_spill] sm:$0xff] }
 0x39e   : > { %v4148_v20 = vmul.f32 %v6848_v16, %v3374_v51  ;;  %v4147_v30 = vmul.f32 %v6848_v16, %v3373_v18  ;;  %2558 = vadd.xlane.f32.xlu2 %v2557_v6  ;;  %2555 = vadd.xlane.f32.xlu1 %v2554_v39  ;;  %v5097_v39 = vld [vmem:[%s5391_s11 + $0x2b0] sm:$0xff]  ;;  %v9772_v18 = vld [vmem:[#allocation10_spill] sm:$0xff]  ;;  %v3636_v29 = vmul.f32 %v6824_v7, %v1838_v40 }
 0x39f   : > { %v4146_v21 = vmul.f32 %v6848_v16, %v3372_v61  ;;  %2552 = vadd.xlane.f32.xlu0 %v2551_v54  ;;  %v2141_v51 = vmul.f32 %v5097_v39, %v7130_v46  ;;  %v1585_v54 = vadd.f32 %v6803_v43, %v9772_v18  ;;  %v3896_v14 = vadd.f32 %v6834_v35, %v3638_v0 }
 0x3a0   : > { %v4404_v3 = vadd.f32 %v4148_v20, %v3890_v19  ;;  %v4403_v23 = vadd.f32 %v4147_v30, %v3889_v26  ;;  %v9773_v19 = vld [vmem:[#allocation13_spill] sm:$0xff]  ;;  %v3637_v20 = vmul.f32 %v6824_v7, %v1839_v28  ;;  %v9774_v30 = vld [vmem:[#allocation14_spill] sm:$0xff] }
 0x3a1   : > { %v4402_v63 = vadd.f32 %v4146_v21, %v3888_v12  ;;  %v2433_v58 = vpop.xlane.xlu2 %2432  ;;  %v2430_v9 = vpop.xlane.xlu1 %2429  ;;  %v1587_v55 = vadd.f32 %v6803_v43, %v9773_v19  ;;  %v1586_v12 = vadd.f32 %v6803_v43, %v9774_v30  ;;  %v2569_v24 = vsel %vm770_vm0, %v2141_v51, 0.0 }
 0x3a2   : > { %4661 = vst.msk [vmem:[%s6862_s25 + $0x128] sm:$0xff] %vm4623_vm1, %v4404_v3  ;;  %v3121_v48 = vadd.f32 %v6826_v44, %v2433_v58  ;;  %v3120_v15 = vadd.f32 %v6826_v44, %v2430_v9  ;;  %v2427_v52 = vpop.xlane.xlu0 %2426  ;;  %v2575_v3 = vsel %vm770_vm0, %v2143_v22, 0.0  ;;  %v1841_v31 = vmax.f32 %v1585_v54, 0.0 }
 0x3a3   : > { %4660 = vst.msk [vmem:[%s6862_s25 + $0x120] sm:$0xff] %vm4623_vm1, %v4403_v23  ;;  %v3119_v11 = vadd.f32 %v6826_v44, %v2427_v52  ;;  %v2572_v23 = vsel %vm770_vm0, %v2142_v53, 0.0  ;;  %v3895_v9 = vadd.f32 %v6834_v35, %v3637_v20  ;;  %v1842_v47 = vmax.f32 %v1586_v12, 0.0  ;;  %v5098_v52 = vld [vmem:[%s5391_s11 + $0x2d8] sm:$0xff] }
 0x3a4   : > { %4659 = vst.msk [vmem:[%s6862_s25 + $0x118] sm:$0xff] %vm4623_vm1, %v4402_v63  ;;  %v3377_v41 = vmax.f32 %v3121_v48, 0.0  ;;  %v3376_v4 = vmax.f32 %v3120_v15, 0.0  ;;  %v1843_v63 = vmax.f32 %v1587_v55, 0.0  ;;  %v3894_v48 = vadd.f32 %v6834_v35, %v3636_v29  ;;  %v5102_v29 = vld [vmem:[%s5391_s11 + $0x2e8] sm:$0xff] }
 0x3a5   : > { %v3375_v42 = vmax.f32 %v3119_v11, 0.0  ;;  %v2146_v37 = vmul.f32 %v5098_v52, %v7130_v46  ;;  %v2145_v11 = vmul.f32 %v5099_v33, %v7130_v46  ;;  %v1588_v53 = vadd.f32 %v6803_v43, %v9777_v38 }
 0x3a6   : > { %v4151_v56 = vmul.f32 %v6848_v16, %v3377_v41  ;;  %v4150_v10 = vmul.f32 %v6848_v16, %v3376_v4  ;;  %2567 = vadd.xlane.f32.xlu2 %v2566_v45  ;;  %2564 = vadd.xlane.f32.xlu1 %v2563_v59  ;;  %v5100_v41 = vld [vmem:[%s5391_s11 + $0x2c8] sm:$0xff] }
 0x3a7   : > { %v4149_v27 = vmul.f32 %v6848_v16, %v3375_v42  ;;  %2561 = vadd.xlane.f32.xlu0 %v2560_v60  ;;  %v2144_v4 = vmul.f32 %v5100_v41, %v7130_v46  ;;  %v3639_v60 = vmul.f32 %v6824_v7, %v1841_v31  ;;  %v2581_v39 = vsel %vm770_vm0, %v2145_v11, 0.0 }
 0x3a8   : > { %v4407_v50 = vadd.f32 %v4151_v56, %v3893_v49  ;;  %v4406_v6 = vadd.f32 %v4150_v10, %v3892_v34  ;;  %v9775_v49 = vld [vmem:[#allocation16_spill] sm:$0xff]  ;;  %v3640_v56 = vmul.f32 %v6824_v7, %v1842_v47  ;;  %v9776_v10 = vld [vmem:[#allocation17_spill] sm:$0xff]  ;;  %v1844_v12 = vmax.f32 %v1588_v53, 0.0 }
 0x3a9   : > { %v4405_v61 = vadd.f32 %v4149_v27, %v3891_v13  ;;  %v2442_v26 = vpop.xlane.xlu2 %2441  ;;  %v2439_v57 = vpop.xlane.xlu1 %2438  ;;  %v3641_v13 = vmul.f32 %v6824_v7, %v1843_v63  ;;  %v1590_v25 = vadd.f32 %v6803_v43, %v9775_v49  ;;  %v1589_v40 = vadd.f32 %v6803_v43, %v9776_v10  ;;  %v9779_v63 = vld [vmem:[#allocation19_spill] sm:$0xff]  ;;  %v5105_v53 = vld [vmem:[%s5391_s11 + $0x300] sm:$0xff] }
 0x3aa   : > { %4664 = vst.msk [vmem:[%s6862_s25 + $0x140] sm:$0xff] %vm4623_vm1, %v4407_v50  ;;  %v3124_v21 = vadd.f32 %v6826_v44, %v2442_v26  ;;  %v3123_v2 = vadd.f32 %v6826_v44, %v2439_v57  ;;  %v2436_v5 = vpop.xlane.xlu0 %2435  ;;  %v2578_v54 = vsel %vm770_vm0, %v2144_v4, 0.0  ;;  %v3897_v0 = vadd.f32 %v6834_v35, %v3639_v60 }
 0x3ab   : > { %4663 = vst.msk [vmem:[%s6862_s25 + $0x138] sm:$0xff] %vm4623_vm1, %v4406_v6  ;;  %v3122_v1 = vadd.f32 %v6826_v44, %v2436_v5  ;;  %v2584_v6 = vsel %vm770_vm0, %v2146_v37, 0.0  ;;  %v3899_v19 = vadd.f32 %v6834_v35, %v3641_v13  ;;  %v1846_v55 = vmax.f32 %v1590_v25, 0.0 }
 0x3ac   : > { %4662 = vst.msk [vmem:[%s6862_s25 + $0x130] sm:$0xff] %vm4623_vm1, %v4405_v61  ;;  %v3380_v8 = vmax.f32 %v3124_v21, 0.0  ;;  %v3379_v62 = vmax.f32 %v3123_v2, 0.0  ;;  %v3898_v26 = vadd.f32 %v6834_v35, %v3640_v56  ;;  %v1845_v57 = vmax.f32 %v1589_v40, 0.0  ;;  %v5101_v2 = vld [vmem:[%s5391_s11 + $0x2f0] sm:$0xff] }
 0x3ad   : > { %v3378_v58 = vmax.f32 %v3122_v1, 0.0  ;;  %v2149_v5 = vmul.f32 %v5101_v2, %v7130_v46  ;;  %v2148_v1 = vmul.f32 %v5102_v29, %v7130_v46  ;;  %v3642_v11 = vmul.f32 %v6824_v7, %v1844_v12  ;;  %v9783_v29 = vld [vmem:[#allocation18_spill] sm:$0xff] }
 0x3ae   : > { %v4154_v36 = vmul.f32 %v6848_v16, %v3380_v8  ;;  %v4153_v32 = vmul.f32 %v6848_v16, %v3379_v62  ;;  %2576 = vadd.xlane.f32.xlu2 %v2575_v3  ;;  %2573 = vadd.xlane.f32.xlu1 %v2572_v23  ;;  %v5103_v8 = vld [vmem:[%s5391_s11 + $0x2e0] sm:$0xff] }
 0x3af   : > { %v4152_v15 = vmul.f32 %v6848_v16, %v3378_v58  ;;  %2570 = vadd.xlane.f32.xlu0 %v2569_v24  ;;  %v2147_v62 = vmul.f32 %v5103_v8, %v7130_v46  ;;  %v9778_v24 = vld [vmem:[#allocation15_spill] sm:$0xff]  ;;  %v1593_v58 = vadd.f32 %v6803_v43, %v9779_v63  ;;  %v2590_v41 = vsel %vm770_vm0, %v2148_v1, 0.0 }
 0x3b0   : > { %v4410_v45 = vadd.f32 %v4154_v36, %v3896_v14  ;;  %v4409_v59 = vadd.f32 %v4153_v32, %v3895_v9  ;;  %v1591_v31 = vadd.f32 %v6803_v43, %v9778_v24  ;;  %v3644_v14 = vmul.f32 %v6824_v7, %v1846_v55 }
 0x3b1   : > { %v4408_v42 = vadd.f32 %v4152_v15, %v3894_v48  ;;  %v2451_v34 = vpop.xlane.xlu2 %2450  ;;  %v2448_v28 = vpop.xlane.xlu1 %2447  ;;  %v3643_v32 = vmul.f32 %v6824_v7, %v1845_v57  ;;  %v9780_v48 = vld [vmem:[#allocation20_spill] sm:$0xff]  ;;  %v2587_v13 = vsel %vm770_vm0, %v2147_v62, 0.0  ;;  %v1594_v1 = vadd.f32 %v6803_v43, %v9783_v29 }
 0x3b2   : > { %4667 = vst.msk [vmem:[%s6862_s25 + $0x158] sm:$0xff] %vm4623_vm1, %v4410_v45  ;;  %v3127_v27 = vadd.f32 %v6826_v44, %v2451_v34  ;;  %v3126_v17 = vadd.f32 %v6826_v44, %v2448_v28  ;;  %v2445_v22 = vpop.xlane.xlu0 %2444  ;;  %v1592_v15 = vadd.f32 %v6803_v43, %v9780_v48  ;;  %v1847_v49 = vmax.f32 %v1591_v31, 0.0 }
 0x3b3   : > { %4666 = vst.msk [vmem:[%s6862_s25 + $0x150] sm:$0xff] %vm4623_vm1, %v4409_v59  ;;  %v3125_v50 = vadd.f32 %v6826_v44, %v2445_v22  ;;  %v2593_v59 = vsel %vm770_vm0, %v2149_v5, 0.0  ;;  %v3902_v25 = vadd.f32 %v6834_v35, %v3644_v14  ;;  %v3901_v28 = vadd.f32 %v6834_v35, %v3643_v32  ;;  %v5104_v22 = vld [vmem:[%s5391_s11 + $0x308] sm:$0xff] }
 0x3b4   : > { %4665 = vst.msk [vmem:[%s6862_s25 + $0x148] sm:$0xff] %vm4623_vm1, %v4408_v42  ;;  %v3383_v51 = vmax.f32 %v3127_v27, 0.0  ;;  %v3382_v18 = vmax.f32 %v3126_v17, 0.0  ;;  %v1849_v42 = vmax.f32 %v1593_v58, 0.0  ;;  %v1848_v56 = vmax.f32 %v1592_v15, 0.0 }
 0x3b5   : > { %v3381_v61 = vmax.f32 %v3125_v50, 0.0  ;;  %v3900_v27 = vadd.f32 %v6834_v35, %v3642_v11  ;;  %v2152_v38 = vmul.f32 %v5104_v22, %v7130_v46  ;;  %v2151_v50 = vmul.f32 %v5105_v53, %v7130_v46  ;;  %v5108_v11 = vld [vmem:[%s5391_s11 + $0x318] sm:$0xff] }
 0x3b6   : > { %v4157_v20 = vmul.f32 %v6848_v16, %v3383_v51  ;;  %v4156_v30 = vmul.f32 %v6848_v16, %v3382_v18  ;;  %2585 = vadd.xlane.f32.xlu2 %v2584_v6  ;;  %2582 = vadd.xlane.f32.xlu1 %v2581_v39  ;;  %v5106_v51 = vld [vmem:[%s5391_s11 + $0x2f8] sm:$0xff]  ;;  %v1850_v15 = vmax.f32 %v1594_v1, 0.0  ;;  %v5111_v1 = vld [vmem:[%s5391_s11 + $0x330] sm:$0xff] }
 0x3b7   : > { %v4155_v21 = vmul.f32 %v6848_v16, %v3381_v61  ;;  %2579 = vadd.xlane.f32.xlu0 %v2578_v54  ;;  %v2150_v18 = vmul.f32 %v5106_v51, %v7130_v46  ;;  %v3645_v54 = vmul.f32 %v6824_v7, %v1847_v49  ;;  %v2599_v8 = vsel %vm770_vm0, %v2151_v50, 0.0 }
 0x3b8   : > { %v4413_v3 = vadd.f32 %v4157_v20, %v3899_v19  ;;  %v4412_v23 = vadd.f32 %v4156_v30, %v3898_v26  ;;  %v9781_v19 = vld [vmem:[#allocation22_spill] sm:$0xff]  ;;  %v3646_v20 = vmul.f32 %v6824_v7, %v1848_v56  ;;  %v9782_v30 = vld [vmem:[#allocation23_spill] sm:$0xff]  ;;  %v3648_v50 = vmul.f32 %v6824_v7, %v1850_v15 }
 0x3b9   : > { %v4411_v9 = vadd.f32 %v4155_v21, %v3897_v0  ;;  %v2460_v47 = vpop.xlane.xlu2 %2459  ;;  %v2457_v36 = vpop.xlane.xlu1 %2456  ;;  %v3647_v0 = vmul.f32 %v6824_v7, %v1849_v42  ;;  %v1596_v55 = vadd.f32 %v6803_v43, %v9781_v19  ;;  %v1595_v12 = vadd.f32 %v6803_v43, %v9782_v30  ;;  %v9785_v42 = vld [vmem:[#allocation25_spill] sm:$0xff] }
 0x3ba   : > { %4670 = vst.msk [vmem:[%s6862_s25 + $0x170] sm:$0xff] %vm4623_vm1, %v4413_v3  ;;  %v3130_v52 = vadd.f32 %v6826_v44, %v2460_v47  ;;  %v3129_v37 = vadd.f32 %v6826_v44, %v2457_v36  ;;  %v2454_v33 = vpop.xlane.xlu0 %2453  ;;  %v2596_v31 = vsel %vm770_vm0, %v2150_v18, 0.0  ;;  %v3903_v14 = vadd.f32 %v6834_v35, %v3645_v54 }
 0x3bb   : > { %4669 = vst.msk [vmem:[%s6862_s25 + $0x168] sm:$0xff] %vm4623_vm1, %v4412_v23  ;;  %v3128_v45 = vadd.f32 %v6826_v44, %v2454_v33  ;;  %v2602_v23 = vsel %vm770_vm0, %v2152_v38, 0.0  ;;  %v3905_v63 = vadd.f32 %v6834_v35, %v3647_v0  ;;  %v1852_v58 = vmax.f32 %v1596_v55, 0.0 }
 0x3bc   : > { %4668 = vst.msk [vmem:[%s6862_s25 + $0x160] sm:$0xff] %vm4623_vm1, %v4411_v9  ;;  %v3386_v4 = vmax.f32 %v3130_v52, 0.0  ;;  %v3385_v60 = vmax.f32 %v3129_v37, 0.0  ;;  %v3904_v47 = vadd.f32 %v6834_v35, %v3646_v20  ;;  %v1851_v36 = vmax.f32 %v1595_v12, 0.0  ;;  %v5107_v37 = vld [vmem:[%s5391_s11 + $0x320] sm:$0xff] }
 0x3bd   : > { %v3384_v34 = vmax.f32 %v3128_v45, 0.0  ;;  %v2155_v33 = vmul.f32 %v5107_v37, %v7130_v46  ;;  %v2154_v45 = vmul.f32 %v5108_v11, %v7130_v46  ;;  %v9789_v11 = vld [vmem:[#allocation24_spill] sm:$0xff] }
 0x3be   : > { %v4160_v10 = vmul.f32 %v6848_v16, %v3386_v4  ;;  %v4159_v40 = vmul.f32 %v6848_v16, %v3385_v60  ;;  %2594 = vadd.xlane.f32.xlu2 %v2593_v59  ;;  %2591 = vadd.xlane.f32.xlu1 %v2590_v41  ;;  %v5109_v4 = vld [vmem:[%s5391_s11 + $0x310] sm:$0xff] }
 0x3bf   : > { %v4158_v17 = vmul.f32 %v6848_v16, %v3384_v34  ;;  %2588 = vadd.xlane.f32.xlu0 %v2587_v13  ;;  %v2153_v60 = vmul.f32 %v5109_v4, %v7130_v46  ;;  %v9784_v13 = vld [vmem:[#allocation21_spill] sm:$0xff]  ;;  %v1599_v34 = vadd.f32 %v6803_v43, %v9785_v42  ;;  %v2608_v51 = vsel %vm770_vm0, %v2154_v45, 0.0 }
 0x3c0   : > { %v4416_v6 = vadd.f32 %v4160_v10, %v3902_v25  ;;  %v4415_v39 = vadd.f32 %v4159_v40, %v3901_v28  ;;  %v1597_v49 = vadd.f32 %v6803_v43, %v9784_v13  ;;  %v3650_v25 = vmul.f32 %v6824_v7, %v1852_v58 }
 0x3c1   : > { %v4414_v61 = vadd.f32 %v4158_v17, %v3900_v27  ;;  %v2469_v26 = vpop.xlane.xlu2 %2468  ;;  %v2466_v57 = vpop.xlane.xlu1 %2465  ;;  %v3649_v40 = vmul.f32 %v6824_v7, %v1851_v36  ;;  %v9786_v27 = vld [vmem:[#allocation26_spill] sm:$0xff]  ;;  %v2605_v0 = vsel %vm770_vm0, %v2153_v60, 0.0  ;;  %v1600_v45 = vadd.f32 %v6803_v43, %v9789_v11 }
 0x3c2   : > { %4673 = vst.msk [vmem:[%s6862_s25 + $0x188] sm:$0xff] %vm4623_vm1, %v4416_v6  ;;  %v3133_v21 = vadd.f32 %v6826_v44, %v2469_v26  ;;  %v3132_v2 = vadd.f32 %v6826_v44, %v2466_v57  ;;  %v2463_v5 = vpop.xlane.xlu0 %2462  ;;  %v1598_v17 = vadd.f32 %v6803_v43, %v9786_v27  ;;  %v1853_v19 = vmax.f32 %v1597_v49, 0.0 }
 0x3c3   : > { %4672 = vst.msk [vmem:[%s6862_s25 + $0x180] sm:$0xff] %vm4623_vm1, %v4415_v39  ;;  %v3131_v3 = vadd.f32 %v6826_v44, %v2463_v5  ;;  %v2611_v39 = vsel %vm770_vm0, %v2155_v33, 0.0  ;;  %v3908_v55 = vadd.f32 %v6834_v35, %v3650_v25  ;;  %v3907_v57 = vadd.f32 %v6834_v35, %v3649_v40  ;;  %v5110_v5 = vld [vmem:[%s5391_s11 + $0x338] sm:$0xff] }
 0x3c4   : > { %4671 = vst.msk [vmem:[%s6862_s25 + $0x178] sm:$0xff] %vm4623_vm1, %v4414_v61  ;;  %v3389_v62 = vmax.f32 %v3133_v21, 0.0  ;;  %v3388_v24 = vmax.f32 %v3132_v2, 0.0  ;;  %v1855_v61 = vmax.f32 %v1599_v34, 0.0  ;;  %v1854_v20 = vmax.f32 %v1598_v17, 0.0 }
 0x3c5   : > { %v3387_v9 = vmax.f32 %v3131_v3, 0.0  ;;  %v3906_v21 = vadd.f32 %v6834_v35, %v3648_v50  ;;  %v2158_v29 = vmul.f32 %v5110_v5, %v7130_v46  ;;  %v2157_v3 = vmul.f32 %v5111_v1, %v7130_v46  ;;  %v5114_v50 = vld [vmem:[%s5391_s11 + $0x348] sm:$0xff] }
 0x3c6   : > { %v4163_v32 = vmul.f32 %v6848_v16, %v3389_v62  ;;  %v4162_v48 = vmul.f32 %v6848_v16, %v3388_v24  ;;  %2603 = vadd.xlane.f32.xlu2 %v2602_v23  ;;  %2600 = vadd.xlane.f32.xlu1 %v2599_v8  ;;  %v5112_v62 = vld [vmem:[%s5391_s11 + $0x328] sm:$0xff]  ;;  %v1856_v17 = vmax.f32 %v1600_v45, 0.0  ;;  %v5117_v45 = vld [vmem:[%s5391_s11 + $0x360] sm:$0xff] }
 0x3c7   : > { %v4161_v52 = vmul.f32 %v6848_v16, %v3387_v9  ;;  %2597 = vadd.xlane.f32.xlu0 %v2596_v31  ;;  %v2156_v24 = vmul.f32 %v5112_v62, %v7130_v46  ;;  %v3651_v31 = vmul.f32 %v6824_v7, %v1853_v19  ;;  %v2617_v4 = vsel %vm770_vm0, %v2157_v3, 0.0 }
 0x3c8   : > { %v4419_v59 = vadd.f32 %v4163_v32, %v3905_v63  ;;  %v4418_v41 = vadd.f32 %v4162_v48, %v3904_v47  ;;  %v9787_v63 = vld [vmem:[#allocation28_spill] sm:$0xff]  ;;  %v3652_v32 = vmul.f32 %v6824_v7, %v1854_v20  ;;  %v9788_v48 = vld [vmem:[#allocation29_spill] sm:$0xff]  ;;  %v3654_v3 = vmul.f32 %v6824_v7, %v1856_v17 }
 0x3c9   : > { %v4417_v28 = vadd.f32 %v4161_v52, %v3903_v14  ;;  %v2478_v56 = vpop.xlane.xlu2 %2477  ;;  %v2475_v10 = vpop.xlane.xlu1 %2474  ;;  %v3653_v14 = vmul.f32 %v6824_v7, %v1855_v61  ;;  %v1602_v58 = vadd.f32 %v6803_v43, %v9787_v63  ;;  %v1601_v15 = vadd.f32 %v6803_v43, %v9788_v48  ;;  %v9791_v61 = vld [vmem:[#allocation31_spill] sm:$0xff] }
 0x3ca   : > { %4676 = vst.msk [vmem:[%s6862_s25 + $0x1a0] sm:$0xff] %vm4623_vm1, %v4419_v59  ;;  %v3136_v22 = vadd.f32 %v6826_v44, %v2478_v56  ;;  %v3135_v38 = vadd.f32 %v6826_v44, %v2475_v10  ;;  %v2472_v53 = vpop.xlane.xlu0 %2471  ;;  %v2614_v49 = vsel %vm770_vm0, %v2156_v24, 0.0  ;;  %v3909_v25 = vadd.f32 %v6834_v35, %v3651_v31 }
 0x3cb   : > { %4675 = vst.msk [vmem:[%s6862_s25 + $0x198] sm:$0xff] %vm4623_vm1, %v4418_v41  ;;  %v3134_v6 = vadd.f32 %v6826_v44, %v2472_v53  ;;  %v2620_v41 = vsel %vm770_vm0, %v2158_v29, 0.0  ;;  %v3911_v42 = vadd.f32 %v6834_v35, %v3653_v14  ;;  %v1858_v34 = vmax.f32 %v1602_v58, 0.0 }
 0x3cc   : > { %4674 = vst.msk [vmem:[%s6862_s25 + $0x190] sm:$0xff] %vm4623_vm1, %v4417_v28  ;;  %v3392_v18 = vmax.f32 %v3136_v22, 0.0  ;;  %v3391_v54 = vmax.f32 %v3135_v38, 0.0  ;;  %v3910_v56 = vadd.f32 %v6834_v35, %v3652_v32  ;;  %v1857_v10 = vmax.f32 %v1601_v15, 0.0  ;;  %v5113_v38 = vld [vmem:[%s5391_s11 + $0x350] sm:$0xff] }
 0x3cd   : > { %v3390_v26 = vmax.f32 %v3134_v6, 0.0  ;;  %v2161_v53 = vmul.f32 %v5113_v38, %v7130_v46  ;;  %v2160_v6 = vmul.f32 %v5114_v50, %v7130_v46  ;;  %v9795_v50 = vld [vmem:[#allocation30_spill] sm:$0xff] }
 0x3ce   : > { %v4166_v30 = vmul.f32 %v6848_v16, %v3392_v18  ;;  %v4165_v12 = vmul.f32 %v6848_v16, %v3391_v54  ;;  %2612 = vadd.xlane.f32.xlu2 %v2611_v39  ;;  %2609 = vadd.xlane.f32.xlu1 %v2608_v51  ;;  %v5115_v18 = vld [vmem:[%s5391_s11 + $0x340] sm:$0xff] }
 0x3cf   : > { %v4164_v2 = vmul.f32 %v6848_v16, %v3390_v26  ;;  %2606 = vadd.xlane.f32.xlu0 %v2605_v0  ;;  %v2159_v54 = vmul.f32 %v5115_v18, %v7130_v46  ;;  %v9790_v0 = vld [vmem:[#allocation27_spill] sm:$0xff]  ;;  %v1605_v26 = vadd.f32 %v6803_v43, %v9791_v61  ;;  %v2626_v62 = vsel %vm770_vm0, %v2160_v6, 0.0 }
 0x3d0   : > { %v4422_v23 = vadd.f32 %v4166_v30, %v3908_v55  ;;  %v4421_v8 = vadd.f32 %v4165_v12, %v3907_v57  ;;  %v1603_v19 = vadd.f32 %v6803_v43, %v9790_v0  ;;  %v3656_v55 = vmul.f32 %v6824_v7, %v1858_v34 }
 0x3d1   : > { %v4420_v9 = vadd.f32 %v4164_v2, %v3906_v21  ;;  %v2487_v47 = vpop.xlane.xlu2 %2486  ;;  %v2484_v36 = vpop.xlane.xlu1 %2483  ;;  %v3655_v12 = vmul.f32 %v6824_v7, %v1857_v10  ;;  %v9792_v21 = vld [vmem:[#allocation32_spill] sm:$0xff]  ;;  %v2623_v14 = vsel %vm770_vm0, %v2159_v54, 0.0  ;;  %v1606_v6 = vadd.f32 %v6803_v43, %v9795_v50 }
 0x3d2   : > { %4679 = vst.msk [vmem:[%s6862_s25 + $0x1b8] sm:$0xff] %vm4623_vm1, %v4422_v23  ;;  %v3139_v52 = vadd.f32 %v6826_v44, %v2487_v47  ;;  %v3138_v37 = vadd.f32 %v6826_v44, %v2484_v36  ;;  %v2481_v33 = vpop.xlane.xlu0 %2480  ;;  %v1604_v2 = vadd.f32 %v6803_v43, %v9792_v21  ;;  %v1859_v63 = vmax.f32 %v1603_v19, 0.0 }
 0x3d3   : > { %4678 = vst.msk [vmem:[%s6862_s25 + $0x1b0] sm:$0xff] %vm4623_vm1, %v4421_v8  ;;  %v3137_v59 = vadd.f32 %v6826_v44, %v2481_v33  ;;  %v2629_v8 = vsel %vm770_vm0, %v2161_v53, 0.0  ;;  %v3914_v58 = vadd.f32 %v6834_v35, %v3656_v55  ;;  %v3913_v36 = vadd.f32 %v6834_v35, %v3655_v12  ;;  %v5116_v33 = vld [vmem:[%s5391_s11 + $0x368] sm:$0xff] }
 0x3d4   : > { %4677 = vst.msk [vmem:[%s6862_s25 + $0x1a8] sm:$0xff] %vm4623_vm1, %v4420_v9  ;;  %v3395_v60 = vmax.f32 %v3139_v52, 0.0  ;;  %v3394_v13 = vmax.f32 %v3138_v37, 0.0  ;;  %v1861_v9 = vmax.f32 %v1605_v26, 0.0  ;;  %v1860_v32 = vmax.f32 %v1604_v2, 0.0 }
 0x3d5   : > { %v3393_v28 = vmax.f32 %v3137_v59, 0.0  ;;  %v3912_v52 = vadd.f32 %v6834_v35, %v3654_v3  ;;  %v2164_v11 = vmul.f32 %v5116_v33, %v7130_v46  ;;  %v2163_v59 = vmul.f32 %v5117_v45, %v7130_v46  ;;  %v5120_v3 = vld [vmem:[%s5391_s11 + $0x378] sm:$0xff] }
 0x3d6   : > { %v4169_v40 = vmul.f32 %v6848_v16, %v3395_v60  ;;  %v4168_v27 = vmul.f32 %v6848_v16, %v3394_v13  ;;  %2621 = vadd.xlane.f32.xlu2 %v2620_v41  ;;  %2618 = vadd.xlane.f32.xlu1 %v2617_v4  ;;  %v5118_v60 = vld [vmem:[%s5391_s11 + $0x358] sm:$0xff]  ;;  %v1862_v2 = vmax.f32 %v1606_v6, 0.0  ;;  %v5124_v6 = vld [vmem:[%s5391_s11 + $0x390] sm:$0xff] }
 0x3d7   : > { %v4167_v22 = vmul.f32 %v6848_v16, %v3393_v28  ;;  %2615 = vadd.xlane.f32.xlu0 %v2614_v49  ;;  %v2162_v13 = vmul.f32 %v5118_v60, %v7130_v46  ;;  %v3657_v49 = vmul.f32 %v6824_v7, %v1859_v63  ;;  %v2635_v18 = vsel %vm770_vm0, %v2163_v59, 0.0 }
 0x3d8   : > { %v4425_v39 = vadd.f32 %v4169_v40, %v3911_v42  ;;  %v4424_v51 = vadd.f32 %v4168_v27, %v3910_v56  ;;  %v9793_v42 = vld [vmem:[#allocation34_spill] sm:$0xff]  ;;  %v3658_v40 = vmul.f32 %v6824_v7, %v1860_v32  ;;  %v9794_v27 = vld [vmem:[#allocation35_spill] sm:$0xff]  ;;  %v3660_v45 = vmul.f32 %v6824_v7, %v1862_v2 }
 0x3d9   : > { %v4423_v57 = vadd.f32 %v4167_v22, %v3909_v25  ;;  %v2496_v20 = vpop.xlane.xlu2 %2495  ;;  %v2493_v30 = vpop.xlane.xlu1 %2492  ;;  %v3659_v25 = vmul.f32 %v6824_v7, %v1861_v9  ;;  %v1608_v34 = vadd.f32 %v6803_v43, %v9793_v42  ;;  %v1607_v17 = vadd.f32 %v6803_v43, %v9794_v27  ;;  %v9797_v9 = vld [vmem:[#allocation37_spill] sm:$0xff] }
 0x3da   : > { %4682 = vst.msk [vmem:[%s6862_s25 + $0x1d0] sm:$0xff] %vm4623_vm1, %v4425_v39  ;;  %v3142_v5 = vadd.f32 %v6826_v44, %v2496_v20  ;;  %v3141_v29 = vadd.f32 %v6826_v44, %v2493_v30  ;;  %v2490_v1 = vpop.xlane.xlu0 %2489  ;;  %v2632_v19 = vsel %vm770_vm0, %v2162_v13, 0.0  ;;  %v3915_v55 = vadd.f32 %v6834_v35, %v3657_v49 }
 0x3db   : > { %4681 = vst.msk [vmem:[%s6862_s25 + $0x1c8] sm:$0xff] %vm4623_vm1, %v4424_v51  ;;  %v3140_v23 = vadd.f32 %v6826_v44, %v2490_v1  ;;  %v2638_v51 = vsel %vm770_vm0, %v2164_v11, 0.0  ;;  %v3917_v61 = vadd.f32 %v6834_v35, %v3659_v25  ;;  %v1864_v26 = vmax.f32 %v1608_v34, 0.0 }
 0x3dc   : > { %4680 = vst.msk [vmem:[%s6862_s25 + $0x1c0] sm:$0xff] %vm4623_vm1, %v4423_v57  ;;  %v3398_v24 = vmax.f32 %v3142_v5, 0.0  ;;  %v3397_v31 = vmax.f32 %v3141_v29, 0.0  ;;  %v3916_v20 = vadd.f32 %v6834_v35, %v3658_v40  ;;  %v1863_v30 = vmax.f32 %v1607_v17, 0.0  ;;  %v5119_v29 = vld [vmem:[%s5391_s11 + $0x380] sm:$0xff] }
 0x3dd   : > { %v3396_v47 = vmax.f32 %v3140_v23, 0.0  ;;  %v2167_v1 = vmul.f32 %v5119_v29, %v7130_v46  ;;  %v2166_v23 = vmul.f32 %v5120_v3, %v7130_v46  ;;  %v3918_v17 = vadd.f32 %v6834_v35, %v3660_v45  ;;  %v9801_v3 = vld [vmem:[#allocation36_spill] sm:$0xff]  ;;  %v5127_v45 = vld [vmem:[%s5391_s11 + $0x3a8] sm:$0xff] }
 0x3de   : > { %v4172_v48 = vmul.f32 %v6848_v16, %v3398_v24  ;;  %v4171_v15 = vmul.f32 %v6848_v16, %v3397_v31  ;;  %2630 = vadd.xlane.f32.xlu2 %v2629_v8  ;;  %2627 = vadd.xlane.f32.xlu1 %v2626_v62  ;;  %v5121_v24 = vld [vmem:[%s5391_s11 + $0x370] sm:$0xff] }
 0x3df   : > { %v4170_v37 = vmul.f32 %v6848_v16, %v3396_v47  ;;  %2624 = vadd.xlane.f32.xlu0 %v2623_v14  ;;  %v2165_v31 = vmul.f32 %v5121_v24, %v7130_v46  ;;  %v9796_v14 = vld [vmem:[#allocation33_spill] sm:$0xff]  ;;  %v1611_v47 = vadd.f32 %v6803_v43, %v9797_v9 }
 0x3e0   : > { %v4428_v41 = vadd.f32 %v4172_v48, %v3914_v58  ;;  %v4427_v4 = vadd.f32 %v4171_v15, %v3913_v36  ;;  %v1609_v63 = vadd.f32 %v6803_v43, %v9796_v14  ;;  %v3662_v58 = vmul.f32 %v6824_v7, %v1864_v26 }
 0x3e1   : > { %v4426_v28 = vadd.f32 %v4170_v37, %v3912_v52  ;;  %v2505_v56 = vpop.xlane.xlu2 %2504  ;;  %v2502_v10 = vpop.xlane.xlu1 %2501  ;;  %v3661_v15 = vmul.f32 %v6824_v7, %v1863_v30  ;;  %v9798_v52 = vld [vmem:[#allocation38_spill] sm:$0xff]  ;;  %v2641_v49 = vsel %vm770_vm0, %v2165_v31, 0.0  ;;  %v1867_v34 = vmax.f32 %v1611_v47, 0.0 }
 0x3e2   : > { %4685 = vst.msk [vmem:[%s6862_s25 + $0x1e8] sm:$0xff] %vm4623_vm1, %v4428_v41  ;;  %v3145_v22 = vadd.f32 %v6826_v44, %v2505_v56  ;;  %v3144_v38 = vadd.f32 %v6826_v44, %v2502_v10  ;;  %v2499_v53 = vpop.xlane.xlu0 %2498  ;;  %v1610_v37 = vadd.f32 %v6803_v43, %v9798_v52  ;;  %v2647_v41 = vsel %vm770_vm0, %v2167_v1, 0.0 }
 0x3e3   : > { %4684 = vst.msk [vmem:[%s6862_s25 + $0x1e0] sm:$0xff] %vm4623_vm1, %v4427_v4  ;;  %v3143_v39 = vadd.f32 %v6826_v44, %v2499_v53  ;;  %v2644_v4 = vsel %vm770_vm0, %v2166_v23, 0.0  ;;  %v1865_v25 = vmax.f32 %v1609_v63, 0.0  ;;  %v3920_v42 = vadd.f32 %v6834_v35, %v3662_v58  ;;  %v7597_v53 = vld [vmem:[%s9550_s1 + $0x1] ss:$0 sm:$0xff] }
 0x3e4   : > { %4683 = vst.msk [vmem:[%s6862_s25 + $0x1d8] sm:$0xff] %vm4623_vm1, %v4426_v28  ;;  %v3401_v54 = vmax.f32 %v3145_v22, 0.0  ;;  %v3400_v0 = vmax.f32 %v3144_v38, 0.0  ;;  %v3919_v56 = vadd.f32 %v6834_v35, %v3661_v15  ;;  %v1866_v10 = vmax.f32 %v1610_v37, 0.0  ;;  %v5122_v38 = vld [vmem:[%s5391_s11 + $0x398] sm:$0xff] }
 0x3e5   : > { %v3399_v57 = vmax.f32 %v3143_v39, 0.0  ;;  %v2170_v50 = vmul.f32 %v7597_v53, %v5122_v38  ;;  %v2169_v39 = vmul.f32 %v5124_v6, %v7597_v53  ;;  %v1612_v23 = vadd.f32 %v6803_v43, %v9801_v3 }
 0x3e6   : > { %v4175_v12 = vmul.f32 %v6848_v16, %v3401_v54  ;;  %v4174_v21 = vmul.f32 %v6848_v16, %v3400_v0  ;;  %2639 = vadd.xlane.f32.xlu2 %v2638_v51  ;;  %2636 = vadd.xlane.f32.xlu1 %v2635_v18  ;;  %v5125_v54 = vld [vmem:[%s5391_s11 + $0x388] sm:$0xff] }
 0x3e7   : > { %v4173_v5 = vmul.f32 %v6848_v16, %v3399_v57  ;;  %2633 = vadd.xlane.f32.xlu0 %v2632_v19  ;;  %v2168_v0 = vmul.f32 %v5125_v54, %v7597_v53  ;;  %v3663_v19 = vmul.f32 %v6824_v7, %v1865_v25  ;;  %v2653_v24 = vsel %vm770_vm0, %v2169_v39, 0.0 }
 0x3e8   : > { %v4431_v8 = vadd.f32 %v4175_v12, %v3917_v61  ;;  %v4430_v62 = vadd.f32 %v4174_v21, %v3916_v20  ;;  %v9799_v61 = vld [vmem:[#allocation40_spill] sm:$0xff]  ;;  %v3664_v12 = vmul.f32 %v6824_v7, %v1866_v10  ;;  %v9800_v21 = vld [vmem:[#allocation41_spill] sm:$0xff]  ;;  %v1868_v37 = vmax.f32 %v1612_v23, 0.0 }
 0x3e9   : > { %v4429_v36 = vadd.f32 %v4173_v5, %v3915_v55  ;;  %v2514_v32 = vpop.xlane.xlu2 %2513  ;;  %v2511_v48 = vpop.xlane.xlu1 %2510  ;;  %v3665_v55 = vmul.f32 %v6824_v7, %v1867_v34  ;;  %v1614_v26 = vadd.f32 %v6803_v43, %v9799_v61  ;;  %v1613_v2 = vadd.f32 %v6803_v43, %v9800_v21  ;;  %v9803_v34 = vld [vmem:[#allocation43_spill] sm:$0xff]  ;;  %v5130_v23 = vld [vmem:[%s5391_s11 + $0x3c0] sm:$0xff] }
 0x3ea   : > { %4688 = vst.msk [vmem:[%s6862_s25 + $0x200] sm:$0xff] %vm4623_vm1, %v4431_v8  ;;  %v3148_v46 = vadd.f32 %v6826_v44, %v2514_v32  ;;  %v3147_v33 = vadd.f32 %v6826_v44, %v2511_v48  ;;  %v2508_v11 = vpop.xlane.xlu0 %2507  ;;  %v2650_v63 = vsel %vm770_vm0, %v2168_v0, 0.0  ;;  %v3921_v58 = vadd.f32 %v6834_v35, %v3663_v19 }
 0x3eb   : > { %4687 = vst.msk [vmem:[%s6862_s25 + $0x1f8] sm:$0xff] %vm4623_vm1, %v4430_v62  ;;  %v3146_v59 = vadd.f32 %v6826_v44, %v2508_v11  ;;  %v2656_v62 = vsel %vm770_vm0, %v2170_v50, 0.0  ;;  %v3923_v9 = vadd.f32 %v6834_v35, %v3665_v55  ;;  %v1870_v47 = vmax.f32 %v1614_v26, 0.0 }
 0x3ec   : > { %4686 = vst.msk [vmem:[%s6862_s25 + $0x1f0] sm:$0xff] %vm4623_vm1, %v4429_v36  ;;  %v3404_v60 = vmax.f32 %v3148_v46, 0.0  ;;  %v3403_v13 = vmax.f32 %v3147_v33, 0.0  ;;  %v3922_v32 = vadd.f32 %v6834_v35, %v3664_v12  ;;  %v1869_v48 = vmax.f32 %v1613_v2, 0.0  ;;  %v5126_v33 = vld [vmem:[%s5391_s11 + $0x3b0] sm:$0xff] }
 0x3ed   : > { %v3402_v28 = vmax.f32 %v3146_v59, 0.0  ;;  %v2173_v11 = vmul.f32 %v5126_v33, %v7597_v53  ;;  %v2172_v59 = vmul.f32 %v5127_v45, %v7597_v53  ;;  %v3666_v39 = vmul.f32 %v6824_v7, %v1868_v37  ;;  %v9807_v45 = vld [vmem:[#allocation42_spill] sm:$0xff] }
 0x3ee   : > { %v4178_v40 = vmul.f32 %v6848_v16, %v3404_v60  ;;  %v4177_v27 = vmul.f32 %v6848_v16, %v3403_v13  ;;  %2648 = vadd.xlane.f32.xlu2 %v2647_v41  ;;  %2645 = vadd.xlane.f32.xlu1 %v2644_v4  ;;  %v5128_v60 = vld [vmem:[%s5391_s11 + $0x3a0] sm:$0xff] }
 0x3ef   : > { %v4176_v22 = vmul.f32 %v6848_v16, %v3402_v28  ;;  %2642 = vadd.xlane.f32.xlu0 %v2641_v49  ;;  %v2171_v13 = vmul.f32 %v5128_v60, %v7597_v53  ;;  %v9802_v49 = vld [vmem:[#allocation39_spill] sm:$0xff]  ;;  %v1617_v28 = vadd.f32 %v6803_v43, %v9803_v34  ;;  %v2662_v54 = vsel %vm770_vm0, %v2172_v59, 0.0 }
 0x3f0   : > { %v4434_v51 = vadd.f32 %v4178_v40, %v3920_v42  ;;  %v4433_v18 = vadd.f32 %v4177_v27, %v3919_v56  ;;  %v1615_v25 = vadd.f32 %v6803_v43, %v9802_v49  ;;  %v3668_v42 = vmul.f32 %v6824_v7, %v1870_v47 }
 0x3f1   : > { %v4432_v57 = vadd.f32 %v4176_v22, %v3918_v17  ;;  %v2523_v20 = vpop.xlane.xlu2 %2522  ;;  %v2520_v30 = vpop.xlane.xlu1 %2519  ;;  %v3667_v27 = vmul.f32 %v6824_v7, %v1869_v48  ;;  %v9804_v17 = vld [vmem:[#allocation44_spill] sm:$0xff]  ;;  %v2659_v55 = vsel %vm770_vm0, %v2171_v13, 0.0  ;;  %v1618_v59 = vadd.f32 %v6803_v43, %v9807_v45 }
 0x3f2   : > { %4691 = vst.msk [vmem:[%s6862_s25 + $0x218] sm:$0xff] %vm4623_vm1, %v4434_v51  ;;  %v3151_v5 = vadd.f32 %v6826_v44, %v2523_v20  ;;  %v3150_v29 = vadd.f32 %v6826_v44, %v2520_v30  ;;  %v2517_v1 = vpop.xlane.xlu0 %2516  ;;  %v1616_v22 = vadd.f32 %v6803_v43, %v9804_v17  ;;  %v1871_v61 = vmax.f32 %v1615_v25, 0.0 }
 0x3f3   : > { %4690 = vst.msk [vmem:[%s6862_s25 + $0x210] sm:$0xff] %vm4623_vm1, %v4433_v18  ;;  %v3149_v8 = vadd.f32 %v6826_v44, %v2517_v1  ;;  %v2665_v18 = vsel %vm770_vm0, %v2173_v11, 0.0  ;;  %v3926_v26 = vadd.f32 %v6834_v35, %v3668_v42  ;;  %v3925_v30 = vadd.f32 %v6834_v35, %v3667_v27  ;;  %v5129_v1 = vld [vmem:[%s5391_s11 + $0x3c8] sm:$0xff] }
 0x3f4   : > { %4689 = vst.msk [vmem:[%s6862_s25 + $0x208] sm:$0xff] %vm4623_vm1, %v4432_v57  ;;  %v3407_v31 = vmax.f32 %v3151_v5, 0.0  ;;  %v3406_v14 = vmax.f32 %v3150_v29, 0.0  ;;  %v1873_v57 = vmax.f32 %v1617_v28, 0.0  ;;  %v1872_v12 = vmax.f32 %v1616_v22, 0.0 }
 0x3f5   : > { %v3405_v36 = vmax.f32 %v3149_v8, 0.0  ;;  %v3924_v5 = vadd.f32 %v6834_v35, %v3666_v39  ;;  %v2176_v3 = vmul.f32 %v5129_v1, %v7597_v53  ;;  %v2175_v8 = vmul.f32 %v5130_v23, %v7597_v53  ;;  %v5133_v39 = vld [vmem:[%s5391_s11 + $0x3d8] sm:$0xff] }
 0x3f6   : > { %v4181_v15 = vmul.f32 %v6848_v16, %v3407_v31  ;;  %v4180_v52 = vmul.f32 %v6848_v16, %v3406_v14  ;;  %2657 = vadd.xlane.f32.xlu2 %v2656_v62  ;;  %2654 = vadd.xlane.f32.xlu1 %v2653_v24  ;;  %v5131_v31 = vld [vmem:[%s5391_s11 + $0x3b8] sm:$0xff]  ;;  %v1874_v22 = vmax.f32 %v1618_v59, 0.0  ;;  %v5136_v59 = vld [vmem:[%s5391_s11 + $0x3f0] sm:$0xff] }
 0x3f7   : > { %v4179_v46 = vmul.f32 %v6848_v16, %v3405_v36  ;;  %2651 = vadd.xlane.f32.xlu0 %v2650_v63  ;;  %v2174_v14 = vmul.f32 %v5131_v31, %v7597_v53  ;;  %v3669_v63 = vmul.f32 %v6824_v7, %v1871_v61  ;;  %v2671_v60 = vsel %vm770_vm0, %v2175_v8, 0.0 }
 0x3f8   : > { %v4437_v41 = vadd.f32 %v4181_v15, %v3923_v9  ;;  %v4436_v4 = vadd.f32 %v4180_v52, %v3922_v32  ;;  %v9805_v9 = vld [vmem:[#allocation46_spill] sm:$0xff]  ;;  %v3670_v15 = vmul.f32 %v6824_v7, %v1872_v12  ;;  %v9806_v52 = vld [vmem:[#allocation47_spill] sm:$0xff]  ;;  %v3672_v8 = vmul.f32 %v6824_v7, %v1874_v22 }
 0x3f9   : > { %v4435_v56 = vadd.f32 %v4179_v46, %v3921_v58  ;;  %v2532_v10 = vpop.xlane.xlu2 %2531  ;;  %v2529_v40 = vpop.xlane.xlu1 %2528  ;;  %v3671_v58 = vmul.f32 %v6824_v7, %v1873_v57  ;;  %v1620_v47 = vadd.f32 %v6803_v43, %v9805_v9  ;;  %v1619_v37 = vadd.f32 %v6803_v43, %v9806_v52  ;;  %v9809_v57 = vld [vmem:[#allocation49_spill] sm:$0xff] }
 0x3fa   : > { %4694 = vst.msk [vmem:[%s6862_s25 + $0x230] sm:$0xff] %vm4623_vm1, %v4437_v41  ;;  %v3154_v38 = vadd.f32 %v6826_v44, %v2532_v10  ;;  %v3153_v50 = vadd.f32 %v6826_v44, %v2529_v40  ;;  %v2526_v6 = vpop.xlane.xlu0 %2525  ;;  %v2668_v25 = vsel %vm770_vm0, %v2174_v14, 0.0  ;;  %v3927_v42 = vadd.f32 %v6834_v35, %v3669_v63 }
 0x3fb   : > { %4693 = vst.msk [vmem:[%s6862_s25 + $0x228] sm:$0xff] %vm4623_vm1, %v4436_v4  ;;  %v3152_v51 = vadd.f32 %v6826_v44, %v2526_v6  ;;  %v2674_v4 = vsel %vm770_vm0, %v2176_v3, 0.0  ;;  %v3929_v34 = vadd.f32 %v6834_v35, %v3671_v58  ;;  %v1876_v28 = vmax.f32 %v1620_v47, 0.0 }
 0x3fc   : > { %4692 = vst.msk [vmem:[%s6862_s25 + $0x220] sm:$0xff] %vm4623_vm1, %v4435_v56  ;;  %v3410_v0 = vmax.f32 %v3154_v38, 0.0  ;;  %v3409_v19 = vmax.f32 %v3153_v50, 0.0  ;;  %v3928_v10 = vadd.f32 %v6834_v35, %v3670_v15  ;;  %v1875_v40 = vmax.f32 %v1619_v37, 0.0  ;;  %v5132_v50 = vld [vmem:[%s5391_s11 + $0x3e0] sm:$0xff] }
 0x3fd   : > { %v3408_v20 = vmax.f32 %v3152_v51, 0.0  ;;  %v2179_v6 = vmul.f32 %v5132_v50, %v7597_v53  ;;  %v2178_v51 = vmul.f32 %v5133_v39, %v7597_v53  ;;  %v9813_v39 = vld [vmem:[#allocation48_spill] sm:$0xff] }
 0x3fe   : > { %v4184_v21 = vmul.f32 %v6848_v16, %v3410_v0  ;;  %v4183_v2 = vmul.f32 %v6848_v16, %v3409_v19  ;;  %2666 = vadd.xlane.f32.xlu2 %v2665_v18  ;;  %2663 = vadd.xlane.f32.xlu1 %v2662_v54  ;;  %v5134_v0 = vld [vmem:[%s5391_s11 + $0x3d0] sm:$0xff] }
 0x3ff   : > { %v4182_v29 = vmul.f32 %v6848_v16, %v3408_v20  ;;  %2660 = vadd.xlane.f32.xlu0 %v2659_v55  ;;  %v2177_v19 = vmul.f32 %v5134_v0, %v7597_v53  ;;  %v9808_v55 = vld [vmem:[#allocation45_spill] sm:$0xff]  ;;  %v1623_v20 = vadd.f32 %v6803_v43, %v9809_v57  ;;  %v2680_v31 = vsel %vm770_vm0, %v2178_v51, 0.0 }
 0x400   : > { %v4440_v62 = vadd.f32 %v4184_v21, %v3926_v26  ;;  %v4439_v24 = vadd.f32 %v4183_v2, %v3925_v30  ;;  %v1621_v61 = vadd.f32 %v6803_v43, %v9808_v55  ;;  %v3674_v26 = vmul.f32 %v6824_v7, %v1876_v28 }
 0x401   : > { %v4438_v36 = vadd.f32 %v4182_v29, %v3924_v5  ;;  %v2541_v32 = vpop.xlane.xlu2 %2540  ;;  %v2538_v48 = vpop.xlane.xlu1 %2537  ;;  %v3673_v2 = vmul.f32 %v6824_v7, %v1875_v40  ;;  %v9810_v5 = vld [vmem:[#allocation50_spill] sm:$0xff]  ;;  %v2677_v58 = vsel %vm770_vm0, %v2177_v19, 0.0  ;;  %v1624_v51 = vadd.f32 %v6803_v43, %v9813_v39 }
 0x402   : > { %4697 = vst.msk [vmem:[%s6862_s25 + $0x248] sm:$0xff] %vm4623_vm1, %v4440_v62  ;;  %v3157_v46 = vadd.f32 %v6826_v44, %v2541_v32  ;;  %v3156_v33 = vadd.f32 %v6826_v44, %v2538_v48  ;;  %v2535_v11 = vpop.xlane.xlu0 %2534  ;;  %v1622_v29 = vadd.f32 %v6803_v43, %v9810_v5  ;;  %v1877_v9 = vmax.f32 %v1621_v61, 0.0 }
 0x403   : > { %4696 = vst.msk [vmem:[%s6862_s25 + $0x240] sm:$0xff] %vm4623_vm1, %v4439_v24  ;;  %v3155_v41 = vadd.f32 %v6826_v44, %v2535_v11  ;;  %v2683_v24 = vsel %vm770_vm0, %v2179_v6, 0.0  ;;  %v3932_v47 = vadd.f32 %v6834_v35, %v3674_v26  ;;  %v3931_v48 = vadd.f32 %v6834_v35, %v3673_v2  ;;  %v5135_v11 = vld [vmem:[%s5391_s11 + $0x3f8] sm:$0xff] }
 0x404   : > { %4695 = vst.msk [vmem:[%s6862_s25 + $0x238] sm:$0xff] %vm4623_vm1, %v4438_v36  ;;  %v3413_v13 = vmax.f32 %v3157_v46, 0.0  ;;  %v3412_v49 = vmax.f32 %v3156_v33, 0.0  ;;  %v1879_v36 = vmax.f32 %v1623_v20, 0.0  ;;  %v1878_v15 = vmax.f32 %v1622_v29, 0.0 }
 0x405   : > { %v3411_v56 = vmax.f32 %v3155_v41, 0.0  ;;  %v3930_v46 = vadd.f32 %v6834_v35, %v3672_v8  ;;  %v2182_v45 = vmul.f32 %v5135_v11, %v7597_v53  ;;  %v2181_v41 = vmul.f32 %v5136_v59, %v7597_v53  ;;  %v5139_v8 = vld [vmem:[%s5391_s11 + $0x408] sm:$0xff] }
 0x406   : > { %v4187_v27 = vmul.f32 %v6848_v16, %v3413_v13  ;;  %v4186_v17 = vmul.f32 %v6848_v16, %v3412_v49  ;;  %2675 = vadd.xlane.f32.xlu2 %v2674_v4  ;;  %2672 = vadd.xlane.f32.xlu1 %v2671_v60  ;;  %v5137_v13 = vld [vmem:[%s5391_s11 + $0x3e8] sm:$0xff]  ;;  %v1880_v29 = vmax.f32 %v1624_v51, 0.0  ;;  %v5142_v51 = vld [vmem:[%s5391_s11 + $0x420] sm:$0xff] }
 0x407   : > { %v4185_v38 = vmul.f32 %v6848_v16, %v3411_v56  ;;  %2669 = vadd.xlane.f32.xlu0 %v2668_v25  ;;  %v2180_v49 = vmul.f32 %v5137_v13, %v7597_v53  ;;  %v3675_v25 = vmul.f32 %v6824_v7, %v1877_v9  ;;  %v2689_v0 = vsel %vm770_vm0, %v2181_v41, 0.0 }
 0x408   : > { %v4443_v18 = vadd.f32 %v4187_v27, %v3929_v34  ;;  %v4442_v54 = vadd.f32 %v4186_v17, %v3928_v10  ;;  %v9811_v34 = vld [vmem:[#allocation52_spill] sm:$0xff]  ;;  %v3676_v27 = vmul.f32 %v6824_v7, %v1878_v15  ;;  %v9812_v17 = vld [vmem:[#allocation53_spill] sm:$0xff]  ;;  %v3678_v41 = vmul.f32 %v6824_v7, %v1880_v29 }
 0x409   : > { %v4441_v30 = vadd.f32 %v4185_v38, %v3927_v42  ;;  %v2550_v12 = vpop.xlane.xlu2 %2549  ;;  %v2547_v21 = vpop.xlane.xlu1 %2546  ;;  %v3677_v42 = vmul.f32 %v6824_v7, %v1879_v36  ;;  %v1626_v28 = vadd.f32 %v6803_v43, %v9811_v34  ;;  %v1625_v22 = vadd.f32 %v6803_v43, %v9812_v17  ;;  %v9815_v36 = vld [vmem:[#allocation55_spill] sm:$0xff] }
 0x40a   : > { %4700 = vst.msk [vmem:[%s6862_s25 + $0x260] sm:$0xff] %vm4623_vm1, %v4443_v18  ;;  %v3160_v1 = vadd.f32 %v6826_v44, %v2550_v12  ;;  %v3159_v3 = vadd.f32 %v6826_v44, %v2547_v21  ;;  %v2544_v23 = vpop.xlane.xlu0 %2543  ;;  %v2686_v61 = vsel %vm770_vm0, %v2180_v49, 0.0  ;;  %v3933_v26 = vadd.f32 %v6834_v35, %v3675_v25 }
 0x40b   : > { %4699 = vst.msk [vmem:[%s6862_s25 + $0x258] sm:$0xff] %vm4623_vm1, %v4442_v54  ;;  %v3158_v62 = vadd.f32 %v6826_v44, %v2544_v23  ;;  %v2692_v54 = vsel %vm770_vm0, %v2182_v45, 0.0  ;;  %v3935_v57 = vadd.f32 %v6834_v35, %v3677_v42  ;;  %v1882_v20 = vmax.f32 %v1626_v28, 0.0 }
 0x40c   : > { %4698 = vst.msk [vmem:[%s6862_s25 + $0x250] sm:$0xff] %vm4623_vm1, %v4441_v30  ;;  %v3416_v14 = vmax.f32 %v3160_v1, 0.0  ;;  %v3415_v63 = vmax.f32 %v3159_v3, 0.0  ;;  %v3934_v12 = vadd.f32 %v6834_v35, %v3676_v27  ;;  %v1881_v21 = vmax.f32 %v1625_v22, 0.0  ;;  %v5138_v3 = vld [vmem:[%s5391_s11 + $0x410] sm:$0xff] }
 0x40d   : > { %v3414_v32 = vmax.f32 %v3158_v62, 0.0  ;;  %v2185_v23 = vmul.f32 %v5138_v3, %v7597_v53  ;;  %v2184_v62 = vmul.f32 %v5139_v8, %v7597_v53  ;;  %v9819_v8 = vld [vmem:[#allocation54_spill] sm:$0xff] }
 0x40e   : > { %v4190_v52 = vmul.f32 %v6848_v16, %v3416_v14  ;;  %v4189_v37 = vmul.f32 %v6848_v16, %v3415_v63  ;;  %2684 = vadd.xlane.f32.xlu2 %v2683_v24  ;;  %2681 = vadd.xlane.f32.xlu1 %v2680_v31  ;;  %v5140_v14 = vld [vmem:[%s5391_s11 + $0x400] sm:$0xff] }
 0x40f   : > { %v4188_v33 = vmul.f32 %v6848_v16, %v3414_v32  ;;  %2678 = vadd.xlane.f32.xlu0 %v2677_v58  ;;  %v2183_v63 = vmul.f32 %v5140_v14, %v7597_v53  ;;  %v9814_v58 = vld [vmem:[#allocation51_spill] sm:$0xff]  ;;  %v1629_v32 = vadd.f32 %v6803_v43, %v9815_v36  ;;  %v2698_v13 = vsel %vm770_vm0, %v2184_v62, 0.0 }
 0x410   : > { %v4446_v4 = vadd.f32 %v4190_v52, %v3932_v47  ;;  %v4445_v60 = vadd.f32 %v4189_v37, %v3931_v48  ;;  %v1627_v9 = vadd.f32 %v6803_v43, %v9814_v58  ;;  %v3680_v47 = vmul.f32 %v6824_v7, %v1882_v20 }
 0x411   : > { %v4444_v56 = vadd.f32 %v4188_v33, %v3930_v46  ;;  %v2559_v10 = vpop.xlane.xlu2 %2558  ;;  %v2556_v40 = vpop.xlane.xlu1 %2555  ;;  %v3679_v37 = vmul.f32 %v6824_v7, %v1881_v21  ;;  %v9816_v46 = vld [vmem:[#allocation56_spill] sm:$0xff]  ;;  %v2695_v42 = vsel %vm770_vm0, %v2183_v63, 0.0  ;;  %v1630_v62 = vadd.f32 %v6803_v43, %v9819_v8 }
 0x412   : > { %4703 = vst.msk [vmem:[%s6862_s25 + $0x278] sm:$0xff] %vm4623_vm1, %v4446_v4  ;;  %v3163_v38 = vadd.f32 %v6826_v44, %v2559_v10  ;;  %v3162_v50 = vadd.f32 %v6826_v44, %v2556_v40  ;;  %v2553_v6 = vpop.xlane.xlu0 %2552  ;;  %v1628_v33 = vadd.f32 %v6803_v43, %v9816_v46  ;;  %v1883_v34 = vmax.f32 %v1627_v9, 0.0 }
 0x413   : > { %4702 = vst.msk [vmem:[%s6862_s25 + $0x270] sm:$0xff] %vm4623_vm1, %v4445_v60  ;;  %v3161_v18 = vadd.f32 %v6826_v44, %v2553_v6  ;;  %v2701_v60 = vsel %vm770_vm0, %v2185_v23, 0.0  ;;  %v3938_v28 = vadd.f32 %v6834_v35, %v3680_v47  ;;  %v3937_v40 = vadd.f32 %v6834_v35, %v3679_v37  ;;  %v5141_v6 = vld [vmem:[%s5391_s11 + $0x428] sm:$0xff] }
 0x414   : > { %4701 = vst.msk [vmem:[%s6862_s25 + $0x268] sm:$0xff] %vm4623_vm1, %v4444_v56  ;;  %v3419_v19 = vmax.f32 %v3163_v38, 0.0  ;;  %v3418_v55 = vmax.f32 %v3162_v50, 0.0  ;;  %v1885_v56 = vmax.f32 %v1629_v32, 0.0  ;;  %v1884_v27 = vmax.f32 %v1628_v33, 0.0 }
 0x415   : > { %v3417_v30 = vmax.f32 %v3161_v18, 0.0  ;;  %v3936_v38 = vadd.f32 %v6834_v35, %v3678_v41  ;;  %v2188_v39 = vmul.f32 %v5141_v6, %v7597_v53  ;;  %v2187_v18 = vmul.f32 %v5142_v51, %v7597_v53  ;;  %v5145_v41 = vld [vmem:[%s5391_s11 + $0x438] sm:$0xff] }
 0x416   : > { %v4193_v2 = vmul.f32 %v6848_v16, %v3419_v19  ;;  %v4192_v5 = vmul.f32 %v6848_v16, %v3418_v55  ;;  %2693 = vadd.xlane.f32.xlu2 %v2692_v54  ;;  %2690 = vadd.xlane.f32.xlu1 %v2689_v0  ;;  %v5143_v19 = vld [vmem:[%s5391_s11 + $0x418] sm:$0xff]  ;;  %v1886_v33 = vmax.f32 %v1630_v62, 0.0  ;;  %v5148_v62 = vld [vmem:[%s5391_s11 + $0x450] sm:$0xff] }
 0x417   : > { %v4191_v1 = vmul.f32 %v6848_v16, %v3417_v30  ;;  %2687 = vadd.xlane.f32.xlu0 %v2686_v61  ;;  %v2186_v55 = vmul.f32 %v5143_v19, %v7597_v53  ;;  %v3681_v61 = vmul.f32 %v6824_v7, %v1883_v34  ;;  %v2707_v14 = vsel %vm770_vm0, %v2187_v18, 0.0 }
 0x418   : > { %v4449_v24 = vadd.f32 %v4193_v2, %v3935_v57  ;;  %v4448_v31 = vadd.f32 %v4192_v5, %v3934_v12  ;;  %v9817_v57 = vld [vmem:[#allocation58_spill] sm:$0xff]  ;;  %v3682_v2 = vmul.f32 %v6824_v7, %v1884_v27  ;;  %v9818_v5 = vld [vmem:[#allocation59_spill] sm:$0xff]  ;;  %v3684_v18 = vmul.f32 %v6824_v7, %v1886_v33 }
 0x419   : > { %v4447_v48 = vadd.f32 %v4191_v1, %v3933_v26  ;;  %v2568_v15 = vpop.xlane.xlu2 %2567  ;;  %v2565_v52 = vpop.xlane.xlu1 %2564  ;;  %v3683_v26 = vmul.f32 %v6824_v7, %v1885_v56  ;;  %v1632_v20 = vadd.f32 %v6803_v43, %v9817_v57  ;;  %v1631_v29 = vadd.f32 %v6803_v43, %v9818_v5  ;;  %v9821_v56 = vld [vmem:[#allocation61_spill] sm:$0xff] }
 0x41a   : > { %4706 = vst.msk [vmem:[%s6862_s25 + $0x290] sm:$0xff] %vm4623_vm1, %v4449_v24  ;;  %v3166_v11 = vadd.f32 %v6826_v44, %v2568_v15  ;;  %v3165_v45 = vadd.f32 %v6826_v44, %v2565_v52  ;;  %v2562_v59 = vpop.xlane.xlu0 %2561  ;;  %v2704_v9 = vsel %vm770_vm0, %v2186_v55, 0.0  ;;  %v3939_v47 = vadd.f32 %v6834_v35, %v3681_v61 }
 0x41b   : > { %4705 = vst.msk [vmem:[%s6862_s25 + $0x288] sm:$0xff] %vm4623_vm1, %v4448_v31  ;;  %v3164_v4 = vadd.f32 %v6826_v44, %v2562_v59  ;;  %v2710_v31 = vsel %vm770_vm0, %v2188_v39, 0.0  ;;  %v3941_v36 = vadd.f32 %v6834_v35, %v3683_v26  ;;  %v1888_v32 = vmax.f32 %v1632_v20, 0.0 }
 0x41c   : > { %4704 = vst.msk [vmem:[%s6862_s25 + $0x280] sm:$0xff] %vm4623_vm1, %v4447_v48  ;;  %v3422_v49 = vmax.f32 %v3166_v11, 0.0  ;;  %v3421_v25 = vmax.f32 %v3165_v45, 0.0  ;;  %v3940_v15 = vadd.f32 %v6834_v35, %v3682_v2  ;;  %v1887_v52 = vmax.f32 %v1631_v29, 0.0  ;;  %v5144_v45 = vld [vmem:[%s5391_s11 + $0x440] sm:$0xff] }
 0x41d   : > { %v3420_v10 = vmax.f32 %v3164_v4, 0.0  ;;  %v2191_v59 = vmul.f32 %v5144_v45, %v7597_v53  ;;  %v2190_v4 = vmul.f32 %v5145_v41, %v7597_v53  ;;  %v9825_v41 = vld [vmem:[#allocation60_spill] sm:$0xff] }
 0x41e   : > { %v4196_v17 = vmul.f32 %v6848_v16, %v3422_v49  ;;  %v4195_v22 = vmul.f32 %v6848_v16, %v3421_v25  ;;  %2702 = vadd.xlane.f32.xlu2 %v2701_v60  ;;  %2699 = vadd.xlane.f32.xlu1 %v2698_v13  ;;  %v5146_v49 = vld [vmem:[%s5391_s11 + $0x430] sm:$0xff] }
 0x41f   : > { %v4194_v50 = vmul.f32 %v6848_v16, %v3420_v10  ;;  %2696 = vadd.xlane.f32.xlu0 %v2695_v42  ;;  %v2189_v25 = vmul.f32 %v5146_v49, %v7597_v53  ;;  %v9820_v42 = vld [vmem:[#allocation57_spill] sm:$0xff]  ;;  %v1635_v10 = vadd.f32 %v6803_v43, %v9821_v56  ;;  %v2716_v19 = vsel %vm770_vm0, %v2190_v4, 0.0 }
 0x420   : > { %v4452_v54 = vadd.f32 %v4196_v17, %v3938_v28  ;;  %v4451_v0 = vadd.f32 %v4195_v22, %v3937_v40  ;;  %v1633_v34 = vadd.f32 %v6803_v43, %v9820_v42  ;;  %v3686_v28 = vmul.f32 %v6824_v7, %v1888_v32 }
 0x421   : > { %v4450_v30 = vadd.f32 %v4194_v50, %v3936_v38  ;;  %v2577_v12 = vpop.xlane.xlu2 %2576  ;;  %v2574_v21 = vpop.xlane.xlu1 %2573  ;;  %v3685_v22 = vmul.f32 %v6824_v7, %v1887_v52  ;;  %v9822_v38 = vld [vmem:[#allocation62_spill] sm:$0xff]  ;;  %v2713_v26 = vsel %vm770_vm0, %v2189_v25, 0.0  ;;  %v1636_v4 = vadd.f32 %v6803_v43, %v9825_v41 }
 0x422   : > { %4709 = vst.msk [vmem:[%s6862_s25 + $0x2a8] sm:$0xff] %vm4623_vm1, %v4452_v54  ;;  %v3169_v1 = vadd.f32 %v6826_v44, %v2577_v12  ;;  %v3168_v3 = vadd.f32 %v6826_v44, %v2574_v21  ;;  %v2571_v23 = vpop.xlane.xlu0 %2570  ;;  %v1634_v50 = vadd.f32 %v6803_v43, %v9822_v38  ;;  %v1889_v57 = vmax.f32 %v1633_v34, 0.0 }
 0x423   : > { %4708 = vst.msk [vmem:[%s6862_s25 + $0x2a0] sm:$0xff] %vm4623_vm1, %v4451_v0  ;;  %v3167_v24 = vadd.f32 %v6826_v44, %v2571_v23  ;;  %v2719_v0 = vsel %vm770_vm0, %v2191_v59, 0.0  ;;  %v3944_v20 = vadd.f32 %v6834_v35, %v3686_v28  ;;  %v3943_v21 = vadd.f32 %v6834_v35, %v3685_v22  ;;  %v5147_v23 = vld [vmem:[%s5391_s11 + $0x458] sm:$0xff] }
 0x424   : > { %4707 = vst.msk [vmem:[%s6862_s25 + $0x298] sm:$0xff] %vm4623_vm1, %v4450_v30  ;;  %v3425_v63 = vmax.f32 %v3169_v1, 0.0  ;;  %v3424_v58 = vmax.f32 %v3168_v3, 0.0  ;;  %v1891_v30 = vmax.f32 %v1635_v10, 0.0  ;;  %v1890_v2 = vmax.f32 %v1634_v50, 0.0 }
 0x425   : > { %v3423_v48 = vmax.f32 %v3167_v24, 0.0  ;;  %v3942_v1 = vadd.f32 %v6834_v35, %v3684_v18  ;;  %v2194_v8 = vmul.f32 %v5147_v23, %v7597_v53  ;;  %v2193_v24 = vmul.f32 %v5148_v62, %v7597_v53  ;;  %v5151_v18 = vld [vmem:[%s5391_s11 + $0x468] sm:$0xff] }
 0x426   : > { %v4199_v37 = vmul.f32 %v6848_v16, %v3425_v63  ;;  %v4198_v46 = vmul.f32 %v6848_v16, %v3424_v58  ;;  %2711 = vadd.xlane.f32.xlu2 %v2710_v31  ;;  %2708 = vadd.xlane.f32.xlu1 %v2707_v14  ;;  %v5149_v63 = vld [vmem:[%s5391_s11 + $0x448] sm:$0xff]  ;;  %v1892_v50 = vmax.f32 %v1636_v4, 0.0  ;;  %v5154_v4 = vld [vmem:[%s5391_s11 + $0x480] sm:$0xff] }
 0x427   : > { %v4197_v11 = vmul.f32 %v6848_v16, %v3423_v48  ;;  %2705 = vadd.xlane.f32.xlu0 %v2704_v9  ;;  %v2192_v58 = vmul.f32 %v5149_v63, %v7597_v53  ;;  %v3687_v9 = vmul.f32 %v6824_v7, %v1889_v57  ;;  %v2725_v49 = vsel %vm770_vm0, %v2193_v24, 0.0 }
 0x428   : > { %v4455_v60 = vadd.f32 %v4199_v37, %v3941_v36  ;;  %v4454_v13 = vadd.f32 %v4198_v46, %v3940_v15  ;;  %v9823_v36 = vld [vmem:[#allocation64_spill] sm:$0xff]  ;;  %v3688_v37 = vmul.f32 %v6824_v7, %v1890_v2  ;;  %v9824_v46 = vld [vmem:[#allocation65_spill] sm:$0xff]  ;;  %v3690_v24 = vmul.f32 %v6824_v7, %v1892_v50 }
 0x429   : > { %v4453_v40 = vadd.f32 %v4197_v11, %v3939_v47  ;;  %v2586_v27 = vpop.xlane.xlu2 %2585  ;;  %v2583_v17 = vpop.xlane.xlu1 %2582  ;;  %v3689_v47 = vmul.f32 %v6824_v7, %v1891_v30  ;;  %v1638_v32 = vadd.f32 %v6803_v43, %v9823_v36  ;;  %v1637_v33 = vadd.f32 %v6803_v43, %v9824_v46  ;;  %v9827_v30 = vld [vmem:[#allocation67_spill] sm:$0xff] }
 0x42a   : > { %4712 = vst.msk [vmem:[%s6862_s25 + $0x2c0] sm:$0xff] %vm4623_vm1, %v4455_v60  ;;  %v3172_v6 = vadd.f32 %v6826_v44, %v2586_v27  ;;  %v3171_v39 = vadd.f32 %v6826_v44, %v2583_v17  ;;  %v2580_v51 = vpop.xlane.xlu0 %2579  ;;  %v2722_v34 = vsel %vm770_vm0, %v2192_v58, 0.0  ;;  %v3945_v28 = vadd.f32 %v6834_v35, %v3687_v9 }
 0x42b   : > { %4711 = vst.msk [vmem:[%s6862_s25 + $0x2b8] sm:$0xff] %vm4623_vm1, %v4454_v13  ;;  %v3170_v54 = vadd.f32 %v6826_v44, %v2580_v51  ;;  %v2728_v13 = vsel %vm770_vm0, %v2194_v8, 0.0  ;;  %v3947_v56 = vadd.f32 %v6834_v35, %v3689_v47  ;;  %v1894_v10 = vmax.f32 %v1638_v32, 0.0 }
 0x42c   : > { %4710 = vst.msk [vmem:[%s6862_s25 + $0x2b0] sm:$0xff] %vm4623_vm1, %v4453_v40  ;;  %v3428_v55 = vmax.f32 %v3172_v6, 0.0  ;;  %v3427_v61 = vmax.f32 %v3171_v39, 0.0  ;;  %v3946_v27 = vadd.f32 %v6834_v35, %v3688_v37  ;;  %v1893_v17 = vmax.f32 %v1637_v33, 0.0  ;;  %v5150_v39 = vld [vmem:[%s5391_s11 + $0x470] sm:$0xff] }
 0x42d   : > { %v3426_v12 = vmax.f32 %v3170_v54, 0.0  ;;  %v2197_v51 = vmul.f32 %v5150_v39, %v7597_v53  ;;  %v2196_v54 = vmul.f32 %v5151_v18, %v7597_v53  ;;  %v9831_v18 = vld [vmem:[#allocation66_spill] sm:$0xff] }
 0x42e   : > { %v4202_v5 = vmul.f32 %v6848_v16, %v3428_v55  ;;  %v4201_v29 = vmul.f32 %v6848_v16, %v3427_v61  ;;  %2720 = vadd.xlane.f32.xlu2 %v2719_v0  ;;  %2717 = vadd.xlane.f32.xlu1 %v2716_v19  ;;  %v5152_v55 = vld [vmem:[%s5391_s11 + $0x460] sm:$0xff] }
 0x42f   : > { %v4200_v3 = vmul.f32 %v6848_v16, %v3426_v12  ;;  %2714 = vadd.xlane.f32.xlu0 %v2713_v26  ;;  %v2195_v61 = vmul.f32 %v5152_v55, %v7597_v53  ;;  %v9826_v26 = vld [vmem:[#allocation63_spill] sm:$0xff]  ;;  %v1641_v12 = vadd.f32 %v6803_v43, %v9827_v30  ;;  %v2734_v63 = vsel %vm770_vm0, %v2196_v54, 0.0 }
 0x430   : > { %v4458_v31 = vadd.f32 %v4202_v5, %v3944_v20  ;;  %v4457_v14 = vadd.f32 %v4201_v29, %v3943_v21  ;;  %v1639_v57 = vadd.f32 %v6803_v43, %v9826_v26  ;;  %v3692_v20 = vmul.f32 %v6824_v7, %v1894_v10 }
 0x431   : > { %v4456_v48 = vadd.f32 %v4200_v3, %v3942_v1  ;;  %v2595_v15 = vpop.xlane.xlu2 %2594  ;;  %v2592_v52 = vpop.xlane.xlu1 %2591  ;;  %v3691_v29 = vmul.f32 %v6824_v7, %v1893_v17  ;;  %v9828_v1 = vld [vmem:[#allocation68_spill] sm:$0xff]  ;;  %v2731_v47 = vsel %vm770_vm0, %v2195_v61, 0.0  ;;  %v1642_v54 = vadd.f32 %v6803_v43, %v9831_v18 }
 0x432   : > { %4715 = vst.msk [vmem:[%s6862_s25 + $0x2d8] sm:$0xff] %vm4623_vm1, %v4458_v31  ;;  %v3175_v11 = vadd.f32 %v6826_v44, %v2595_v15  ;;  %v3174_v45 = vadd.f32 %v6826_v44, %v2592_v52  ;;  %v2589_v59 = vpop.xlane.xlu0 %2588  ;;  %v1640_v3 = vadd.f32 %v6803_v43, %v9828_v1  ;;  %v1895_v36 = vmax.f32 %v1639_v57, 0.0 }
 0x433   : > { %4714 = vst.msk [vmem:[%s6862_s25 + $0x2d0] sm:$0xff] %vm4623_vm1, %v4457_v14  ;;  %v3173_v60 = vadd.f32 %v6826_v44, %v2589_v59  ;;  %v2737_v14 = vsel %vm770_vm0, %v2197_v51, 0.0  ;;  %v3950_v32 = vadd.f32 %v6834_v35, %v3692_v20  ;;  %v3949_v52 = vadd.f32 %v6834_v35, %v3691_v29  ;;  %v5153_v59 = vld [vmem:[%s5391_s11 + $0x488] sm:$0xff] }
 0x434   : > { %4713 = vst.msk [vmem:[%s6862_s25 + $0x2c8] sm:$0xff] %vm4623_vm1, %v4456_v48  ;;  %v3431_v25 = vmax.f32 %v3175_v11, 0.0  ;;  %v3430_v42 = vmax.f32 %v3174_v45, 0.0  ;;  %v1897_v48 = vmax.f32 %v1641_v12, 0.0  ;;  %v1896_v37 = vmax.f32 %v1640_v3, 0.0 }
 0x435   : > { %v3429_v40 = vmax.f32 %v3173_v60, 0.0  ;;  %v3948_v11 = vadd.f32 %v6834_v35, %v3690_v24  ;;  %v2200_v41 = vmul.f32 %v5153_v59, %v7597_v53  ;;  %v2199_v60 = vmul.f32 %v5154_v4, %v7597_v53  ;;  %v5157_v24 = vld [vmem:[%s5391_s11 + $0x498] sm:$0xff] }
 0x436   : > { %v4205_v22 = vmul.f32 %v6848_v16, %v3431_v25  ;;  %v4204_v38 = vmul.f32 %v6848_v16, %v3430_v42  ;;  %2729 = vadd.xlane.f32.xlu2 %v2728_v13  ;;  %2726 = vadd.xlane.f32.xlu1 %v2725_v49  ;;  %v5155_v25 = vld [vmem:[%s5391_s11 + $0x478] sm:$0xff]  ;;  %v1898_v3 = vmax.f32 %v1642_v54, 0.0  ;;  %v5160_v54 = vld [vmem:[%s5391_s11 + $0x4b0] sm:$0xff] }
 0x437   : > { %v4203_v6 = vmul.f32 %v6848_v16, %v3429_v40  ;;  %2723 = vadd.xlane.f32.xlu0 %v2722_v34  ;;  %v2198_v42 = vmul.f32 %v5155_v25, %v7597_v53  ;;  %v3693_v34 = vmul.f32 %v6824_v7, %v1895_v36  ;;  %v2743_v55 = vsel %vm770_vm0, %v2199_v60, 0.0 }
 0x438   : > { %v4461_v0 = vadd.f32 %v4205_v22, %v3947_v56  ;;  %v4460_v19 = vadd.f32 %v4204_v38, %v3946_v27  ;;  %v9829_v56 = vld [vmem:[#allocation70_spill] sm:$0xff]  ;;  %v3694_v22 = vmul.f32 %v6824_v7, %v1896_v37  ;;  %v9830_v38 = vld [vmem:[#allocation71_spill] sm:$0xff]  ;;  %v3696_v60 = vmul.f32 %v6824_v7, %v1898_v3 }
 0x439   : > { %v4459_v21 = vadd.f32 %v4203_v6, %v3945_v28  ;;  %v2604_v2 = vpop.xlane.xlu2 %2603  ;;  %v2601_v5 = vpop.xlane.xlu1 %2600  ;;  %v3695_v28 = vmul.f32 %v6824_v7, %v1897_v48  ;;  %v1644_v10 = vadd.f32 %v6803_v43, %v9829_v56  ;;  %v1643_v50 = vadd.f32 %v6803_v43, %v9830_v38  ;;  %v9833_v48 = vld [vmem:[#allocation73_spill] sm:$0xff] }
 0x43a   : > { %4718 = vst.msk [vmem:[%s6862_s25 + $0x2f0] sm:$0xff] %vm4623_vm1, %v4461_v0  ;;  %v3178_v23 = vadd.f32 %v6826_v44, %v2604_v2  ;;  %v3177_v8 = vadd.f32 %v6826_v44, %v2601_v5  ;;  %v2598_v62 = vpop.xlane.xlu0 %2597  ;;  %v2740_v57 = vsel %vm770_vm0, %v2198_v42, 0.0  ;;  %v3951_v20 = vadd.f32 %v6834_v35, %v3693_v34 }
 0x43b   : > { %4717 = vst.msk [vmem:[%s6862_s25 + $0x2e8] sm:$0xff] %vm4623_vm1, %v4460_v19  ;;  %v3176_v31 = vadd.f32 %v6826_v44, %v2598_v62  ;;  %v2746_v19 = vsel %vm770_vm0, %v2200_v41, 0.0  ;;  %v3953_v30 = vadd.f32 %v6834_v35, %v3695_v28  ;;  %v1900_v12 = vmax.f32 %v1644_v10, 0.0 }
 0x43c   : > { %4716 = vst.msk [vmem:[%s6862_s25 + $0x2e0] sm:$0xff] %vm4623_vm1, %v4459_v21  ;;  %v3434_v58 = vmax.f32 %v3178_v23, 0.0  ;;  %v3433_v9 = vmax.f32 %v3177_v8, 0.0  ;;  %v3952_v2 = vadd.f32 %v6834_v35, %v3694_v22  ;;  %v1899_v5 = vmax.f32 %v1643_v50, 0.0  ;;  %v5156_v8 = vld [vmem:[%s5391_s11 + $0x4a0] sm:$0xff] }
 0x43d   : > { %v3432_v15 = vmax.f32 %v3176_v31, 0.0  ;;  %v2203_v62 = vmul.f32 %v5156_v8, %v7597_v53  ;;  %v2202_v31 = vmul.f32 %v5157_v24, %v7597_v53  ;;  %v9837_v24 = vld [vmem:[#allocation72_spill] sm:$0xff] }
 0x43e   : > { %v4208_v46 = vmul.f32 %v6848_v16, %v3434_v58  ;;  %v4207_v33 = vmul.f32 %v6848_v16, %v3433_v9  ;;  %2738 = vadd.xlane.f32.xlu2 %v2737_v14  ;;  %2735 = vadd.xlane.f32.xlu1 %v2734_v63  ;;  %v5158_v58 = vld [vmem:[%s5391_s11 + $0x490] sm:$0xff] }
 0x43f   : > { %v4206_v45 = vmul.f32 %v6848_v16, %v3432_v15  ;;  %2732 = vadd.xlane.f32.xlu0 %v2731_v47  ;;  %v2201_v9 = vmul.f32 %v5158_v58, %v7597_v53  ;;  %v9832_v47 = vld [vmem:[#allocation69_spill] sm:$0xff]  ;;  %v1647_v15 = vadd.f32 %v6803_v43, %v9833_v48  ;;  %v2752_v25 = vsel %vm770_vm0, %v2202_v31, 0.0 }
 0x440   : > { %v4464_v13 = vadd.f32 %v4208_v46, %v3950_v32  ;;  %v4463_v49 = vadd.f32 %v4207_v33, %v3949_v52  ;;  %v1645_v36 = vadd.f32 %v6803_v43, %v9832_v47  ;;  %v3698_v32 = vmul.f32 %v6824_v7, %v1900_v12 }
 0x441   : > { %v4462_v40 = vadd.f32 %v4206_v45, %v3948_v11  ;;  %v2613_v27 = vpop.xlane.xlu2 %2612  ;;  %v2610_v17 = vpop.xlane.xlu1 %2609  ;;  %v3697_v33 = vmul.f32 %v6824_v7, %v1899_v5  ;;  %v9834_v11 = vld [vmem:[#allocation74_spill] sm:$0xff]  ;;  %v2749_v28 = vsel %vm770_vm0, %v2201_v9, 0.0  ;;  %v1648_v31 = vadd.f32 %v6803_v43, %v9837_v24 }
 0x442   : > { %4721 = vst.msk [vmem:[%s6862_s25 + $0x308] sm:$0xff] %vm4623_vm1, %v4464_v13  ;;  %v3181_v6 = vadd.f32 %v6826_v44, %v2613_v27  ;;  %v3180_v39 = vadd.f32 %v6826_v44, %v2610_v17  ;;  %v2607_v51 = vpop.xlane.xlu0 %2606  ;;  %v1646_v45 = vadd.f32 %v6803_v43, %v9834_v11  ;;  %v1901_v56 = vmax.f32 %v1645_v36, 0.0 }
 0x443   : > { %4720 = vst.msk [vmem:[%s6862_s25 + $0x300] sm:$0xff] %vm4623_vm1, %v4463_v49  ;;  %v3179_v0 = vadd.f32 %v6826_v44, %v2607_v51  ;;  %v2755_v49 = vsel %vm770_vm0, %v2203_v62, 0.0  ;;  %v3956_v10 = vadd.f32 %v6834_v35, %v3698_v32  ;;  %v3955_v17 = vadd.f32 %v6834_v35, %v3697_v33  ;;  %v5159_v51 = vld [vmem:[%s5391_s11 + $0x4b8] sm:$0xff] }
 0x444   : > { %4719 = vst.msk [vmem:[%s6862_s25 + $0x2f8] sm:$0xff] %vm4623_vm1, %v4462_v40  ;;  %v3437_v61 = vmax.f32 %v3181_v6, 0.0  ;;  %v3436_v26 = vmax.f32 %v3180_v39, 0.0  ;;  %v1903_v40 = vmax.f32 %v1647_v15, 0.0  ;;  %v1902_v22 = vmax.f32 %v1646_v45, 0.0 }
 0x445   : > { %v3435_v21 = vmax.f32 %v3179_v0, 0.0  ;;  %v3954_v6 = vadd.f32 %v6834_v35, %v3696_v60  ;;  %v2206_v18 = vmul.f32 %v5159_v51, %v7597_v53  ;;  %v2205_v0 = vmul.f32 %v5160_v54, %v7597_v53  ;;  %v5163_v60 = vld [vmem:[%s5391_s11 + $0x4c8] sm:$0xff] }
 0x446   : > { %v4211_v29 = vmul.f32 %v6848_v16, %v3437_v61  ;;  %v4210_v1 = vmul.f32 %v6848_v16, %v3436_v26  ;;  %2747 = vadd.xlane.f32.xlu2 %v2746_v19  ;;  %2744 = vadd.xlane.f32.xlu1 %v2743_v55  ;;  %v5161_v61 = vld [vmem:[%s5391_s11 + $0x4a8] sm:$0xff]  ;;  %v1904_v45 = vmax.f32 %v1648_v31, 0.0  ;;  %v5167_v31 = vld [vmem:[%s5391_s11 + $0x4e0] sm:$0xff] }
 0x447   : > { %v4209_v23 = vmul.f32 %v6848_v16, %v3435_v21  ;;  %2741 = vadd.xlane.f32.xlu0 %v2740_v57  ;;  %v2204_v26 = vmul.f32 %v5161_v61, %v7597_v53  ;;  %v3699_v57 = vmul.f32 %v6824_v7, %v1901_v56  ;;  %v2761_v58 = vsel %vm770_vm0, %v2205_v0, 0.0 }
 0x448   : > { %v4467_v14 = vadd.f32 %v4211_v29, %v3953_v30  ;;  %v4466_v63 = vadd.f32 %v4210_v1, %v3952_v2  ;;  %v9835_v30 = vld [vmem:[#allocation76_spill] sm:$0xff]  ;;  %v3700_v29 = vmul.f32 %v6824_v7, %v1902_v22  ;;  %v9836_v1 = vld [vmem:[#allocation77_spill] sm:$0xff]  ;;  %v3702_v54 = vmul.f32 %v6824_v7, %v1904_v45 }
 0x449   : > { %v4465_v52 = vadd.f32 %v4209_v23, %v3951_v20  ;;  %v2622_v37 = vpop.xlane.xlu2 %2621  ;;  %v2619_v46 = vpop.xlane.xlu1 %2618  ;;  %v3701_v20 = vmul.f32 %v6824_v7, %v1903_v40  ;;  %v1650_v12 = vadd.f32 %v6803_v43, %v9835_v30  ;;  %v1649_v3 = vadd.f32 %v6803_v43, %v9836_v1  ;;  %v9839_v40 = vld [vmem:[#allocation79_spill] sm:$0xff] }
 0x44a   : > { %4724 = vst.msk [vmem:[%s6862_s25 + $0x320] sm:$0xff] %vm4623_vm1, %v4467_v14  ;;  %v3184_v59 = vadd.f32 %v6826_v44, %v2622_v37  ;;  %v3183_v41 = vadd.f32 %v6826_v44, %v2619_v46  ;;  %v2616_v4 = vpop.xlane.xlu0 %2615  ;;  %v2758_v36 = vsel %vm770_vm0, %v2204_v26, 0.0  ;;  %v3957_v32 = vadd.f32 %v6834_v35, %v3699_v57 }
 0x44b   : > { %4723 = vst.msk [vmem:[%s6862_s25 + $0x318] sm:$0xff] %vm4623_vm1, %v4466_v63  ;;  %v3182_v13 = vadd.f32 %v6826_v44, %v2616_v4  ;;  %v2764_v63 = vsel %vm770_vm0, %v2206_v18, 0.0  ;;  %v3959_v48 = vadd.f32 %v6834_v35, %v3701_v20  ;;  %v1906_v15 = vmax.f32 %v1650_v12, 0.0 }
 0x44c   : > { %4722 = vst.msk [vmem:[%s6862_s25 + $0x310] sm:$0xff] %vm4623_vm1, %v4465_v52  ;;  %v3440_v42 = vmax.f32 %v3184_v59, 0.0  ;;  %v3439_v34 = vmax.f32 %v3183_v41, 0.0  ;;  %v3958_v37 = vadd.f32 %v6834_v35, %v3700_v29  ;;  %v1905_v46 = vmax.f32 %v1649_v3, 0.0  ;;  %v5162_v41 = vld [vmem:[%s5391_s11 + $0x4d0] sm:$0xff] }
 0x44d   : > { %v3438_v27 = vmax.f32 %v3182_v13, 0.0  ;;  %v2209_v4 = vmul.f32 %v5162_v41, %v7597_v53  ;;  %v2208_v13 = vmul.f32 %v5163_v60, %v7597_v53  ;;  %v3960_v3 = vadd.f32 %v6834_v35, %v3702_v54  ;;  %v9843_v60 = vld [vmem:[#allocation78_spill] sm:$0xff]  ;;  %v5170_v54 = vld [vmem:[%s5391_s11 + $0x4f8] sm:$0xff] }
 0x44e   : > { %v4214_v38 = vmul.f32 %v6848_v16, %v3440_v42  ;;  %v4213_v50 = vmul.f32 %v6848_v16, %v3439_v34  ;;  %2756 = vadd.xlane.f32.xlu2 %v2755_v49  ;;  %2753 = vadd.xlane.f32.xlu1 %v2752_v25  ;;  %v5164_v42 = vld [vmem:[%s5391_s11 + $0x4c0] sm:$0xff] }
 0x44f   : > { %v4212_v39 = vmul.f32 %v6848_v16, %v3438_v27  ;;  %2750 = vadd.xlane.f32.xlu0 %v2749_v28  ;;  %v2207_v34 = vmul.f32 %v5164_v42, %v7597_v53  ;;  %v9838_v28 = vld [vmem:[#allocation75_spill] sm:$0xff]  ;;  %v1653_v27 = vadd.f32 %v6803_v43, %v9839_v40 }
 0x450   : > { %v4470_v19 = vadd.f32 %v4214_v38, %v3956_v10  ;;  %v4469_v55 = vadd.f32 %v4213_v50, %v3955_v17  ;;  %v1651_v56 = vadd.f32 %v6803_v43, %v9838_v28  ;;  %v3704_v10 = vmul.f32 %v6824_v7, %v1906_v15 }
 0x451   : > { %v4468_v21 = vadd.f32 %v4212_v39, %v3954_v6  ;;  %v2631_v2 = vpop.xlane.xlu2 %2630  ;;  %v2628_v5 = vpop.xlane.xlu1 %2627  ;;  %v3703_v50 = vmul.f32 %v6824_v7, %v1905_v46  ;;  %v9840_v6 = vld [vmem:[#allocation80_spill] sm:$0xff]  ;;  %v2767_v57 = vsel %vm770_vm0, %v2207_v34, 0.0  ;;  %v1909_v12 = vmax.f32 %v1653_v27, 0.0 }
 0x452   : > { %4727 = vst.msk [vmem:[%s6862_s25 + $0x338] sm:$0xff] %vm4623_vm1, %v4470_v19  ;;  %v3187_v23 = vadd.f32 %v6826_v44, %v2631_v2  ;;  %v3186_v8 = vadd.f32 %v6826_v44, %v2628_v5  ;;  %v2625_v62 = vpop.xlane.xlu0 %2624  ;;  %v1652_v39 = vadd.f32 %v6803_v43, %v9840_v6  ;;  %v2773_v19 = vsel %vm770_vm0, %v2209_v4, 0.0 }
 0x453   : > { %4726 = vst.msk [vmem:[%s6862_s25 + $0x330] sm:$0xff] %vm4623_vm1, %v4469_v55  ;;  %v3185_v14 = vadd.f32 %v6826_v44, %v2625_v62  ;;  %v2770_v55 = vsel %vm770_vm0, %v2208_v13, 0.0  ;;  %v1907_v20 = vmax.f32 %v1651_v56, 0.0  ;;  %v3962_v30 = vadd.f32 %v6834_v35, %v3704_v10  ;;  %v8064_v62 = vld [vmem:[%s9550_s1 + $0x1] ss:$0 sm:$0xff] }
 0x454   : > { %4725 = vst.msk [vmem:[%s6862_s25 + $0x328] sm:$0xff] %vm4623_vm1, %v4468_v21  ;;  %v3443_v9 = vmax.f32 %v3187_v23, 0.0  ;;  %v3442_v47 = vmax.f32 %v3186_v8, 0.0  ;;  %v3961_v2 = vadd.f32 %v6834_v35, %v3703_v50  ;;  %v1908_v5 = vmax.f32 %v1652_v39, 0.0  ;;  %v5165_v8 = vld [vmem:[%s5391_s11 + $0x4e8] sm:$0xff] }
 0x455   : > { %v3441_v52 = vmax.f32 %v3185_v14, 0.0  ;;  %v2212_v24 = vmul.f32 %v8064_v62, %v5165_v8  ;;  %v2211_v14 = vmul.f32 %v5167_v31, %v8064_v62  ;;  %v1654_v13 = vadd.f32 %v6803_v43, %v9843_v60 }
 0x456   : > { %v4217_v33 = vmul.f32 %v6848_v16, %v3443_v9  ;;  %v4216_v11 = vmul.f32 %v6848_v16, %v3442_v47  ;;  %2765 = vadd.xlane.f32.xlu2 %v2764_v63  ;;  %2762 = vadd.xlane.f32.xlu1 %v2761_v58  ;;  %v5168_v9 = vld [vmem:[%s5391_s11 + $0x4d8] sm:$0xff] }
 0x457   : > { %v4215_v59 = vmul.f32 %v6848_v16, %v3441_v52  ;;  %2759 = vadd.xlane.f32.xlu0 %v2758_v36  ;;  %v2210_v47 = vmul.f32 %v5168_v9, %v8064_v62  ;;  %v3705_v36 = vmul.f32 %v6824_v7, %v1907_v20  ;;  %v2779_v42 = vsel %vm770_vm0, %v2211_v14, 0.0 }
 0x458   : > { %v4473_v49 = vadd.f32 %v4217_v33, %v3959_v48  ;;  %v4472_v25 = vadd.f32 %v4216_v11, %v3958_v37  ;;  %v9841_v48 = vld [vmem:[#allocation82_spill] sm:$0xff]  ;;  %v3706_v33 = vmul.f32 %v6824_v7, %v1908_v5  ;;  %v9842_v11 = vld [vmem:[#allocation83_spill] sm:$0xff]  ;;  %v1910_v39 = vmax.f32 %v1654_v13, 0.0 }
 0x459   : > { %v4471_v17 = vadd.f32 %v4215_v59, %v3957_v32  ;;  %v2640_v22 = vpop.xlane.xlu2 %2639  ;;  %v2637_v38 = vpop.xlane.xlu1 %2636  ;;  %v3707_v32 = vmul.f32 %v6824_v7, %v1909_v12  ;;  %v1656_v15 = vadd.f32 %v6803_v43, %v9841_v48  ;;  %v1655_v45 = vadd.f32 %v6803_v43, %v9842_v11  ;;  %v9845_v12 = vld [vmem:[#allocation85_spill] sm:$0xff]  ;;  %v5173_v13 = vld [vmem:[%s5391_s11 + $0x510] sm:$0xff] }
 0x45a   : > { %4730 = vst.msk [vmem:[%s6862_s25 + $0x350] sm:$0xff] %vm4623_vm1, %v4473_v49  ;;  %v3190_v53 = vadd.f32 %v6826_v44, %v2640_v22  ;;  %v3189_v51 = vadd.f32 %v6826_v44, %v2637_v38  ;;  %v2634_v18 = vpop.xlane.xlu0 %2633  ;;  %v2776_v56 = vsel %vm770_vm0, %v2210_v47, 0.0  ;;  %v3963_v10 = vadd.f32 %v6834_v35, %v3705_v36 }
 0x45b   : > { %4729 = vst.msk [vmem:[%s6862_s25 + $0x348] sm:$0xff] %vm4623_vm1, %v4472_v25  ;;  %v3188_v0 = vadd.f32 %v6826_v44, %v2634_v18  ;;  %v2782_v25 = vsel %vm770_vm0, %v2212_v24, 0.0  ;;  %v3965_v40 = vadd.f32 %v6834_v35, %v3707_v32  ;;  %v1912_v27 = vmax.f32 %v1656_v15, 0.0 }
 0x45c   : > { %4728 = vst.msk [vmem:[%s6862_s25 + $0x340] sm:$0xff] %vm4623_vm1, %v4471_v17  ;;  %v3446_v61 = vmax.f32 %v3190_v53, 0.0  ;;  %v3445_v26 = vmax.f32 %v3189_v51, 0.0  ;;  %v3964_v22 = vadd.f32 %v6834_v35, %v3706_v33  ;;  %v1911_v38 = vmax.f32 %v1655_v45, 0.0  ;;  %v5169_v51 = vld [vmem:[%s5391_s11 + $0x500] sm:$0xff] }
 0x45d   : > { %v3444_v21 = vmax.f32 %v3188_v0, 0.0  ;;  %v2215_v18 = vmul.f32 %v5169_v51, %v8064_v62  ;;  %v2214_v0 = vmul.f32 %v5170_v54, %v8064_v62  ;;  %v3708_v14 = vmul.f32 %v6824_v7, %v1910_v39  ;;  %v9849_v54 = vld [vmem:[#allocation84_spill] sm:$0xff] }
 0x45e   : > { %v4220_v29 = vmul.f32 %v6848_v16, %v3446_v61  ;;  %v4219_v1 = vmul.f32 %v6848_v16, %v3445_v26  ;;  %2774 = vadd.xlane.f32.xlu2 %v2773_v19  ;;  %2771 = vadd.xlane.f32.xlu1 %v2770_v55  ;;  %v5171_v61 = vld [vmem:[%s5391_s11 + $0x4f0] sm:$0xff] }
 0x45f   : > { %v4218_v23 = vmul.f32 %v6848_v16, %v3444_v21  ;;  %2768 = vadd.xlane.f32.xlu0 %v2767_v57  ;;  %v2213_v26 = vmul.f32 %v5171_v61, %v8064_v62  ;;  %v9844_v57 = vld [vmem:[#allocation81_spill] sm:$0xff]  ;;  %v1659_v21 = vadd.f32 %v6803_v43, %v9845_v12  ;;  %v2788_v9 = vsel %vm770_vm0, %v2214_v0, 0.0 }
 0x460   : > { %v4476_v63 = vadd.f32 %v4220_v29, %v3962_v30  ;;  %v4475_v58 = vadd.f32 %v4219_v1, %v3961_v2  ;;  %v1657_v20 = vadd.f32 %v6803_v43, %v9844_v57  ;;  %v3710_v30 = vmul.f32 %v6824_v7, %v1912_v27 }
 0x461   : > { %v4474_v52 = vadd.f32 %v4218_v23, %v3960_v3  ;;  %v2649_v37 = vpop.xlane.xlu2 %2648  ;;  %v2646_v46 = vpop.xlane.xlu1 %2645  ;;  %v3709_v1 = vmul.f32 %v6824_v7, %v1911_v38  ;;  %v9846_v3 = vld [vmem:[#allocation86_spill] sm:$0xff]  ;;  %v2785_v32 = vsel %vm770_vm0, %v2213_v26, 0.0  ;;  %v1660_v0 = vadd.f32 %v6803_v43, %v9849_v54 }
 0x462   : > { %4733 = vst.msk [vmem:[%s6862_s25 + $0x368] sm:$0xff] %vm4623_vm1, %v4476_v63  ;;  %v3193_v59 = vadd.f32 %v6826_v44, %v2649_v37  ;;  %v3192_v41 = vadd.f32 %v6826_v44, %v2646_v46  ;;  %v2643_v4 = vpop.xlane.xlu0 %2642  ;;  %v1658_v23 = vadd.f32 %v6803_v43, %v9846_v3  ;;  %v1913_v48 = vmax.f32 %v1657_v20, 0.0 }
 0x463   : > { %4732 = vst.msk [vmem:[%s6862_s25 + $0x360] sm:$0xff] %vm4623_vm1, %v4475_v58  ;;  %v3191_v49 = vadd.f32 %v6826_v44, %v2643_v4  ;;  %v2791_v58 = vsel %vm770_vm0, %v2215_v18, 0.0  ;;  %v3968_v15 = vadd.f32 %v6834_v35, %v3710_v30  ;;  %v3967_v46 = vadd.f32 %v6834_v35, %v3709_v1  ;;  %v5172_v4 = vld [vmem:[%s5391_s11 + $0x518] sm:$0xff] }
 0x464   : > { %4731 = vst.msk [vmem:[%s6862_s25 + $0x358] sm:$0xff] %vm4623_vm1, %v4474_v52  ;;  %v3449_v34 = vmax.f32 %v3193_v59, 0.0  ;;  %v3448_v28 = vmax.f32 %v3192_v41, 0.0  ;;  %v1915_v52 = vmax.f32 %v1659_v21, 0.0  ;;  %v1914_v33 = vmax.f32 %v1658_v23, 0.0 }
 0x465   : > { %v3447_v17 = vmax.f32 %v3191_v49, 0.0  ;;  %v3966_v59 = vadd.f32 %v6834_v35, %v3708_v14  ;;  %v2218_v60 = vmul.f32 %v5172_v4, %v8064_v62  ;;  %v2217_v49 = vmul.f32 %v5173_v13, %v8064_v62  ;;  %v5176_v14 = vld [vmem:[%s5391_s11 + $0x528] sm:$0xff] }
 0x466   : > { %v4223_v50 = vmul.f32 %v6848_v16, %v3449_v34  ;;  %v4222_v6 = vmul.f32 %v6848_v16, %v3448_v28  ;;  %2783 = vadd.xlane.f32.xlu2 %v2782_v25  ;;  %2780 = vadd.xlane.f32.xlu1 %v2779_v42  ;;  %v5174_v34 = vld [vmem:[%s5391_s11 + $0x508] sm:$0xff]  ;;  %v1916_v23 = vmax.f32 %v1660_v0, 0.0  ;;  %v5179_v0 = vld [vmem:[%s5391_s11 + $0x540] sm:$0xff] }
 0x467   : > { %v4221_v53 = vmul.f32 %v6848_v16, %v3447_v17  ;;  %2777 = vadd.xlane.f32.xlu0 %v2776_v56  ;;  %v2216_v28 = vmul.f32 %v5174_v34, %v8064_v62  ;;  %v3711_v56 = vmul.f32 %v6824_v7, %v1913_v48  ;;  %v2797_v61 = vsel %vm770_vm0, %v2217_v49, 0.0 }
 0x468   : > { %v4479_v19 = vadd.f32 %v4223_v50, %v3965_v40  ;;  %v4478_v55 = vadd.f32 %v4222_v6, %v3964_v22  ;;  %v9847_v40 = vld [vmem:[#allocation88_spill] sm:$0xff]  ;;  %v3712_v50 = vmul.f32 %v6824_v7, %v1914_v33  ;;  %v9848_v6 = vld [vmem:[#allocation89_spill] sm:$0xff]  ;;  %v3714_v49 = vmul.f32 %v6824_v7, %v1916_v23 }
 0x469   : > { %v4477_v2 = vadd.f32 %v4221_v53, %v3963_v10  ;;  %v2658_v5 = vpop.xlane.xlu2 %2657  ;;  %v2655_v29 = vpop.xlane.xlu1 %2654  ;;  %v3713_v10 = vmul.f32 %v6824_v7, %v1915_v52  ;;  %v1662_v27 = vadd.f32 %v6803_v43, %v9847_v40  ;;  %v1661_v39 = vadd.f32 %v6803_v43, %v9848_v6  ;;  %v9851_v52 = vld [vmem:[#allocation91_spill] sm:$0xff] }
 0x46a   : > { %4736 = vst.msk [vmem:[%s6862_s25 + $0x380] sm:$0xff] %vm4623_vm1, %v4479_v19  ;;  %v3196_v8 = vadd.f32 %v6826_v44, %v2658_v5  ;;  %v3195_v24 = vadd.f32 %v6826_v44, %v2655_v29  ;;  %v2652_v31 = vpop.xlane.xlu0 %2651  ;;  %v2794_v20 = vsel %vm770_vm0, %v2216_v28, 0.0  ;;  %v3969_v30 = vadd.f32 %v6834_v35, %v3711_v56 }
 0x46b   : > { %4735 = vst.msk [vmem:[%s6862_s25 + $0x378] sm:$0xff] %vm4623_vm1, %v4478_v55  ;;  %v3194_v63 = vadd.f32 %v6826_v44, %v2652_v31  ;;  %v2800_v55 = vsel %vm770_vm0, %v2218_v60, 0.0  ;;  %v3971_v12 = vadd.f32 %v6834_v35, %v3713_v10  ;;  %v1918_v21 = vmax.f32 %v1662_v27, 0.0 }
 0x46c   : > { %4734 = vst.msk [vmem:[%s6862_s25 + $0x370] sm:$0xff] %vm4623_vm1, %v4477_v2  ;;  %v3452_v47 = vmax.f32 %v3196_v8, 0.0  ;;  %v3451_v36 = vmax.f32 %v3195_v24, 0.0  ;;  %v3970_v5 = vadd.f32 %v6834_v35, %v3712_v50  ;;  %v1917_v29 = vmax.f32 %v1661_v39, 0.0  ;;  %v5175_v24 = vld [vmem:[%s5391_s11 + $0x530] sm:$0xff] }
 0x46d   : > { %v3450_v37 = vmax.f32 %v3194_v63, 0.0  ;;  %v2221_v31 = vmul.f32 %v5175_v24, %v8064_v62  ;;  %v2220_v63 = vmul.f32 %v5176_v14, %v8064_v62  ;;  %v9855_v14 = vld [vmem:[#allocation90_spill] sm:$0xff] }
 0x46e   : > { %v4226_v11 = vmul.f32 %v6848_v16, %v3452_v47  ;;  %v4225_v45 = vmul.f32 %v6848_v16, %v3451_v36  ;;  %2792 = vadd.xlane.f32.xlu2 %v2791_v58  ;;  %2789 = vadd.xlane.f32.xlu1 %v2788_v9  ;;  %v5177_v47 = vld [vmem:[%s5391_s11 + $0x520] sm:$0xff] }
 0x46f   : > { %v4224_v41 = vmul.f32 %v6848_v16, %v3450_v37  ;;  %2786 = vadd.xlane.f32.xlu0 %v2785_v32  ;;  %v2219_v36 = vmul.f32 %v5177_v47, %v8064_v62  ;;  %v9850_v32 = vld [vmem:[#allocation87_spill] sm:$0xff]  ;;  %v1665_v37 = vadd.f32 %v6803_v43, %v9851_v52  ;;  %v2806_v34 = vsel %vm770_vm0, %v2220_v63, 0.0 }
 0x470   : > { %v4482_v25 = vadd.f32 %v4226_v11, %v3968_v15  ;;  %v4481_v42 = vadd.f32 %v4225_v45, %v3967_v46  ;;  %v1663_v48 = vadd.f32 %v6803_v43, %v9850_v32  ;;  %v3716_v15 = vmul.f32 %v6824_v7, %v1918_v21 }
 0x471   : > { %v4480_v17 = vadd.f32 %v4224_v41, %v3966_v59  ;;  %v2667_v22 = vpop.xlane.xlu2 %2666  ;;  %v2664_v38 = vpop.xlane.xlu1 %2663  ;;  %v3715_v45 = vmul.f32 %v6824_v7, %v1917_v29  ;;  %v9852_v59 = vld [vmem:[#allocation92_spill] sm:$0xff]  ;;  %v2803_v10 = vsel %vm770_vm0, %v2219_v36, 0.0  ;;  %v1666_v63 = vadd.f32 %v6803_v43, %v9855_v14 }
 0x472   : > { %4739 = vst.msk [vmem:[%s6862_s25 + $0x398] sm:$0xff] %vm4623_vm1, %v4482_v25  ;;  %v3199_v53 = vadd.f32 %v6826_v44, %v2667_v22  ;;  %v3198_v51 = vadd.f32 %v6826_v44, %v2664_v38  ;;  %v2661_v18 = vpop.xlane.xlu0 %2660  ;;  %v1664_v41 = vadd.f32 %v6803_v43, %v9852_v59  ;;  %v1919_v40 = vmax.f32 %v1663_v48, 0.0 }
 0x473   : > { %4738 = vst.msk [vmem:[%s6862_s25 + $0x390] sm:$0xff] %vm4623_vm1, %v4481_v42  ;;  %v3197_v19 = vadd.f32 %v6826_v44, %v2661_v18  ;;  %v2809_v42 = vsel %vm770_vm0, %v2221_v31, 0.0  ;;  %v3974_v27 = vadd.f32 %v6834_v35, %v3716_v15  ;;  %v3973_v38 = vadd.f32 %v6834_v35, %v3715_v45  ;;  %v5178_v18 = vld [vmem:[%s5391_s11 + $0x548] sm:$0xff] }
 0x474   : > { %4737 = vst.msk [vmem:[%s6862_s25 + $0x388] sm:$0xff] %vm4623_vm1, %v4480_v17  ;;  %v3455_v26 = vmax.f32 %v3199_v53, 0.0  ;;  %v3454_v57 = vmax.f32 %v3198_v51, 0.0  ;;  %v1921_v17 = vmax.f32 %v1665_v37, 0.0  ;;  %v1920_v50 = vmax.f32 %v1664_v41, 0.0 }
 0x475   : > { %v3453_v2 = vmax.f32 %v3197_v19, 0.0  ;;  %v3972_v53 = vadd.f32 %v6834_v35, %v3714_v49  ;;  %v2224_v54 = vmul.f32 %v5178_v18, %v8064_v62  ;;  %v2223_v19 = vmul.f32 %v5179_v0, %v8064_v62  ;;  %v5182_v49 = vld [vmem:[%s5391_s11 + $0x558] sm:$0xff] }
 0x476   : > { %v4229_v1 = vmul.f32 %v6848_v16, %v3455_v26  ;;  %v4228_v3 = vmul.f32 %v6848_v16, %v3454_v57  ;;  %2801 = vadd.xlane.f32.xlu2 %v2800_v55  ;;  %2798 = vadd.xlane.f32.xlu1 %v2797_v61  ;;  %v5180_v26 = vld [vmem:[%s5391_s11 + $0x538] sm:$0xff]  ;;  %v1922_v41 = vmax.f32 %v1666_v63, 0.0  ;;  %v5185_v63 = vld [vmem:[%s5391_s11 + $0x570] sm:$0xff] }
 0x477   : > { %v4227_v8 = vmul.f32 %v6848_v16, %v3453_v2  ;;  %2795 = vadd.xlane.f32.xlu0 %v2794_v20  ;;  %v2222_v57 = vmul.f32 %v5180_v26, %v8064_v62  ;;  %v3717_v20 = vmul.f32 %v6824_v7, %v1919_v40  ;;  %v2815_v47 = vsel %vm770_vm0, %v2223_v19, 0.0 }
 0x478   : > { %v4485_v58 = vadd.f32 %v4229_v1, %v3971_v12  ;;  %v4484_v9 = vadd.f32 %v4228_v3, %v3970_v5  ;;  %v9853_v12 = vld [vmem:[#allocation94_spill] sm:$0xff]  ;;  %v3718_v1 = vmul.f32 %v6824_v7, %v1920_v50  ;;  %v9854_v3 = vld [vmem:[#allocation95_spill] sm:$0xff]  ;;  %v3720_v19 = vmul.f32 %v6824_v7, %v1922_v41 }
 0x479   : > { %v4483_v46 = vadd.f32 %v4227_v8, %v3969_v30  ;;  %v2676_v33 = vpop.xlane.xlu2 %2675  ;;  %v2673_v11 = vpop.xlane.xlu1 %2672  ;;  %v3719_v30 = vmul.f32 %v6824_v7, %v1921_v17  ;;  %v1668_v21 = vadd.f32 %v6803_v43, %v9853_v12  ;;  %v1667_v23 = vadd.f32 %v6803_v43, %v9854_v3  ;;  %v9857_v17 = vld [vmem:[#allocation97_spill] sm:$0xff] }
 0x47a   : > { %4742 = vst.msk [vmem:[%s6862_s25 + $0x3b0] sm:$0xff] %vm4623_vm1, %v4485_v58  ;;  %v3202_v4 = vadd.f32 %v6826_v44, %v2676_v33  ;;  %v3201_v60 = vadd.f32 %v6826_v44, %v2673_v11  ;;  %v2670_v13 = vpop.xlane.xlu0 %2669  ;;  %v2812_v48 = vsel %vm770_vm0, %v2222_v57, 0.0  ;;  %v3975_v15 = vadd.f32 %v6834_v35, %v3717_v20 }
 0x47b   : > { %4741 = vst.msk [vmem:[%s6862_s25 + $0x3a8] sm:$0xff] %vm4623_vm1, %v4484_v9  ;;  %v3200_v25 = vadd.f32 %v6826_v44, %v2670_v13  ;;  %v2818_v9 = vsel %vm770_vm0, %v2224_v54, 0.0  ;;  %v3977_v52 = vadd.f32 %v6834_v35, %v3719_v30  ;;  %v1924_v37 = vmax.f32 %v1668_v21, 0.0 }
 0x47c   : > { %4740 = vst.msk [vmem:[%s6862_s25 + $0x3a0] sm:$0xff] %vm4623_vm1, %v4483_v46  ;;  %v3458_v28 = vmax.f32 %v3202_v4, 0.0  ;;  %v3457_v56 = vmax.f32 %v3201_v60, 0.0  ;;  %v3976_v33 = vadd.f32 %v6834_v35, %v3718_v1  ;;  %v1923_v11 = vmax.f32 %v1667_v23, 0.0  ;;  %v5181_v60 = vld [vmem:[%s5391_s11 + $0x560] sm:$0xff] }
 0x47d   : > { %v3456_v22 = vmax.f32 %v3200_v25, 0.0  ;;  %v2227_v13 = vmul.f32 %v5181_v60, %v8064_v62  ;;  %v2226_v25 = vmul.f32 %v5182_v49, %v8064_v62  ;;  %v9861_v49 = vld [vmem:[#allocation96_spill] sm:$0xff] }
 0x47e   : > { %v4232_v6 = vmul.f32 %v6848_v16, %v3458_v28  ;;  %v4231_v39 = vmul.f32 %v6848_v16, %v3457_v56  ;;  %2810 = vadd.xlane.f32.xlu2 %v2809_v42  ;;  %2807 = vadd.xlane.f32.xlu1 %v2806_v34  ;;  %v5183_v28 = vld [vmem:[%s5391_s11 + $0x550] sm:$0xff] }
 0x47f   : > { %v4230_v51 = vmul.f32 %v6848_v16, %v3456_v22  ;;  %2804 = vadd.xlane.f32.xlu0 %v2803_v10  ;;  %v2225_v56 = vmul.f32 %v5183_v28, %v8064_v62  ;;  %v9856_v10 = vld [vmem:[#allocation93_spill] sm:$0xff]  ;;  %v1671_v22 = vadd.f32 %v6803_v43, %v9857_v17  ;;  %v2824_v26 = vsel %vm770_vm0, %v2226_v25, 0.0 }
 0x480   : > { %v4488_v55 = vadd.f32 %v4232_v6, %v3974_v27  ;;  %v4487_v61 = vadd.f32 %v4231_v39, %v3973_v38  ;;  %v1669_v40 = vadd.f32 %v6803_v43, %v9856_v10  ;;  %v3722_v27 = vmul.f32 %v6824_v7, %v1924_v37 }
 0x481   : > { %v4486_v2 = vadd.f32 %v4230_v51, %v3972_v53  ;;  %v2685_v5 = vpop.xlane.xlu2 %2684  ;;  %v2682_v29 = vpop.xlane.xlu1 %2681  ;;  %v3721_v39 = vmul.f32 %v6824_v7, %v1923_v11  ;;  %v9858_v53 = vld [vmem:[#allocation98_spill] sm:$0xff]  ;;  %v2821_v30 = vsel %vm770_vm0, %v2225_v56, 0.0  ;;  %v1672_v25 = vadd.f32 %v6803_v43, %v9861_v49 }
 0x482   : > { %4745 = vst.msk [vmem:[%s6862_s25 + $0x3c8] sm:$0xff] %vm4623_vm1, %v4488_v55  ;;  %v3205_v8 = vadd.f32 %v6826_v44, %v2685_v5  ;;  %v3204_v24 = vadd.f32 %v6826_v44, %v2682_v29  ;;  %v2679_v31 = vpop.xlane.xlu0 %2678  ;;  %v1670_v51 = vadd.f32 %v6803_v43, %v9858_v53  ;;  %v1925_v12 = vmax.f32 %v1669_v40, 0.0 }
 0x483   : > { %4744 = vst.msk [vmem:[%s6862_s25 + $0x3c0] sm:$0xff] %vm4623_vm1, %v4487_v61  ;;  %v3203_v58 = vadd.f32 %v6826_v44, %v2679_v31  ;;  %v2827_v61 = vsel %vm770_vm0, %v2227_v13, 0.0  ;;  %v3980_v21 = vadd.f32 %v6834_v35, %v3722_v27  ;;  %v3979_v29 = vadd.f32 %v6834_v35, %v3721_v39  ;;  %v5184_v31 = vld [vmem:[%s5391_s11 + $0x578] sm:$0xff] }
 0x484   : > { %4743 = vst.msk [vmem:[%s6862_s25 + $0x3b8] sm:$0xff] %vm4623_vm1, %v4486_v2  ;;  %v3461_v36 = vmax.f32 %v3205_v8, 0.0  ;;  %v3460_v32 = vmax.f32 %v3204_v24, 0.0  ;;  %v1927_v2 = vmax.f32 %v1671_v22, 0.0  ;;  %v1926_v1 = vmax.f32 %v1670_v51, 0.0 }
 0x485   : > { %v3459_v46 = vmax.f32 %v3203_v58, 0.0  ;;  %v3978_v8 = vadd.f32 %v6834_v35, %v3720_v19  ;;  %v2230_v14 = vmul.f32 %v5184_v31, %v8064_v62  ;;  %v2229_v58 = vmul.f32 %v5185_v63, %v8064_v62  ;;  %v5188_v19 = vld [vmem:[%s5391_s11 + $0x588] sm:$0xff] }
 0x486   : > { %v4235_v45 = vmul.f32 %v6848_v16, %v3461_v36  ;;  %v4234_v59 = vmul.f32 %v6848_v16, %v3460_v32  ;;  %2819 = vadd.xlane.f32.xlu2 %v2818_v9  ;;  %2816 = vadd.xlane.f32.xlu1 %v2815_v47  ;;  %v5186_v36 = vld [vmem:[%s5391_s11 + $0x568] sm:$0xff]  ;;  %v1928_v51 = vmax.f32 %v1672_v25, 0.0  ;;  %v5191_v25 = vld [vmem:[%s5391_s11 + $0x5a0] sm:$0xff] }
 0x487   : > { %v4233_v4 = vmul.f32 %v6848_v16, %v3459_v46  ;;  %2813 = vadd.xlane.f32.xlu0 %v2812_v48  ;;  %v2228_v32 = vmul.f32 %v5186_v36, %v8064_v62  ;;  %v3723_v48 = vmul.f32 %v6824_v7, %v1925_v12  ;;  %v2833_v28 = vsel %vm770_vm0, %v2229_v58, 0.0 }
 0x488   : > { %v4491_v42 = vadd.f32 %v4235_v45, %v3977_v52  ;;  %v4490_v34 = vadd.f32 %v4234_v59, %v3976_v33  ;;  %v9859_v52 = vld [vmem:[#allocation100_spill] sm:$0xff]  ;;  %v3724_v45 = vmul.f32 %v6824_v7, %v1926_v1  ;;  %v9860_v59 = vld [vmem:[#allocation101_spill] sm:$0xff]  ;;  %v3726_v58 = vmul.f32 %v6824_v7, %v1928_v51 }
 0x489   : > { %v4489_v38 = vadd.f32 %v4233_v4, %v3975_v15  ;;  %v2694_v50 = vpop.xlane.xlu2 %2693  ;;  %v2691_v6 = vpop.xlane.xlu1 %2690  ;;  %v3725_v15 = vmul.f32 %v6824_v7, %v1927_v2  ;;  %v1674_v37 = vadd.f32 %v6803_v43, %v9859_v52  ;;  %v1673_v41 = vadd.f32 %v6803_v43, %v9860_v59  ;;  %v9863_v2 = vld [vmem:[#allocation103_spill] sm:$0xff] }
 0x48a   : > { %4748 = vst.msk [vmem:[%s6862_s25 + $0x3e0] sm:$0xff] %vm4623_vm1, %v4491_v42  ;;  %v3208_v18 = vadd.f32 %v6826_v44, %v2694_v50  ;;  %v3207_v54 = vadd.f32 %v6826_v44, %v2691_v6  ;;  %v2688_v0 = vpop.xlane.xlu0 %2687  ;;  %v2830_v40 = vsel %vm770_vm0, %v2228_v32, 0.0  ;;  %v3981_v27 = vadd.f32 %v6834_v35, %v3723_v48 }
 0x48b   : > { %4747 = vst.msk [vmem:[%s6862_s25 + $0x3d8] sm:$0xff] %vm4623_vm1, %v4490_v34  ;;  %v3206_v55 = vadd.f32 %v6826_v44, %v2688_v0  ;;  %v2836_v34 = vsel %vm770_vm0, %v2230_v14, 0.0  ;;  %v3983_v17 = vadd.f32 %v6834_v35, %v3725_v15  ;;  %v1930_v22 = vmax.f32 %v1674_v37, 0.0 }
 0x48c   : > { %4746 = vst.msk [vmem:[%s6862_s25 + $0x3d0] sm:$0xff] %vm4623_vm1, %v4489_v38  ;;  %v3464_v57 = vmax.f32 %v3208_v18, 0.0  ;;  %v3463_v20 = vmax.f32 %v3207_v54, 0.0  ;;  %v3982_v50 = vadd.f32 %v6834_v35, %v3724_v45  ;;  %v1929_v6 = vmax.f32 %v1673_v41, 0.0  ;;  %v5187_v54 = vld [vmem:[%s5391_s11 + $0x590] sm:$0xff] }
 0x48d   : > { %v3462_v5 = vmax.f32 %v3206_v55, 0.0  ;;  %v2233_v0 = vmul.f32 %v5187_v54, %v8064_v62  ;;  %v2232_v55 = vmul.f32 %v5188_v19, %v8064_v62  ;;  %v9867_v19 = vld [vmem:[#allocation102_spill] sm:$0xff] }
 0x48e   : > { %v4238_v3 = vmul.f32 %v6848_v16, %v3464_v57  ;;  %v4237_v23 = vmul.f32 %v6848_v16, %v3463_v20  ;;  %2828 = vadd.xlane.f32.xlu2 %v2827_v61  ;;  %2825 = vadd.xlane.f32.xlu1 %v2824_v26  ;;  %v5189_v57 = vld [vmem:[%s5391_s11 + $0x580] sm:$0xff] }
 0x48f   : > { %v4236_v24 = vmul.f32 %v6848_v16, %v3462_v5  ;;  %2822 = vadd.xlane.f32.xlu0 %v2821_v30  ;;  %v2231_v20 = vmul.f32 %v5189_v57, %v8064_v62  ;;  %v9862_v30 = vld [vmem:[#allocation99_spill] sm:$0xff]  ;;  %v1677_v5 = vadd.f32 %v6803_v43, %v9863_v2  ;;  %v2842_v36 = vsel %vm770_vm0, %v2232_v55, 0.0 }
 0x490   : > { %v4494_v9 = vadd.f32 %v4238_v3, %v3980_v21  ;;  %v4493_v47 = vadd.f32 %v4237_v23, %v3979_v29  ;;  %v1675_v12 = vadd.f32 %v6803_v43, %v9862_v30  ;;  %v3728_v21 = vmul.f32 %v6824_v7, %v1930_v22 }
 0x491   : > { %v4492_v46 = vadd.f32 %v4236_v24, %v3978_v8  ;;  %v2703_v33 = vpop.xlane.xlu2 %2702  ;;  %v2700_v11 = vpop.xlane.xlu1 %2699  ;;  %v3727_v23 = vmul.f32 %v6824_v7, %v1929_v6  ;;  %v9864_v8 = vld [vmem:[#allocation104_spill] sm:$0xff]  ;;  %v2839_v15 = vsel %vm770_vm0, %v2231_v20, 0.0  ;;  %v1678_v55 = vadd.f32 %v6803_v43, %v9867_v19 }
 0x492   : > { %4751 = vst.msk [vmem:[%s6862_s25 + $0x3f8] sm:$0xff] %vm4623_vm1, %v4494_v9  ;;  %v3211_v4 = vadd.f32 %v6826_v44, %v2703_v33  ;;  %v3210_v60 = vadd.f32 %v6826_v44, %v2700_v11  ;;  %v2697_v13 = vpop.xlane.xlu0 %2696  ;;  %v1676_v24 = vadd.f32 %v6803_v43, %v9864_v8  ;;  %v1931_v52 = vmax.f32 %v1675_v12, 0.0 }
 0x493   : > { %4750 = vst.msk [vmem:[%s6862_s25 + $0x3f0] sm:$0xff] %vm4623_vm1, %v4493_v47  ;;  %v3209_v42 = vadd.f32 %v6826_v44, %v2697_v13  ;;  %v2845_v47 = vsel %vm770_vm0, %v2233_v0, 0.0  ;;  %v3986_v37 = vadd.f32 %v6834_v35, %v3728_v21  ;;  %v3985_v11 = vadd.f32 %v6834_v35, %v3727_v23  ;;  %v5190_v13 = vld [vmem:[%s5391_s11 + $0x5a8] sm:$0xff] }
 0x494   : > { %4749 = vst.msk [vmem:[%s6862_s25 + $0x3e8] sm:$0xff] %vm4623_vm1, %v4492_v46  ;;  %v3467_v56 = vmax.f32 %v3211_v4, 0.0  ;;  %v3466_v10 = vmax.f32 %v3210_v60, 0.0  ;;  %v1933_v46 = vmax.f32 %v1677_v5, 0.0  ;;  %v1932_v45 = vmax.f32 %v1676_v24, 0.0 }
 0x495   : > { %v3465_v38 = vmax.f32 %v3209_v42, 0.0  ;;  %v3984_v4 = vadd.f32 %v6834_v35, %v3726_v58  ;;  %v2236_v49 = vmul.f32 %v5190_v13, %v8064_v62  ;;  %v2235_v42 = vmul.f32 %v5191_v25, %v8064_v62  ;;  %v5194_v58 = vld [vmem:[%s5391_s11 + $0x5b8] sm:$0xff] }
 0x496   : > { %v4241_v39 = vmul.f32 %v6848_v16, %v3467_v56  ;;  %v4240_v53 = vmul.f32 %v6848_v16, %v3466_v10  ;;  %2837 = vadd.xlane.f32.xlu2 %v2836_v34  ;;  %2834 = vadd.xlane.f32.xlu1 %v2833_v28  ;;  %v5192_v56 = vld [vmem:[%s5391_s11 + $0x598] sm:$0xff]  ;;  %v1934_v24 = vmax.f32 %v1678_v55, 0.0  ;;  %v5197_v55 = vld [vmem:[%s5391_s11 + $0x5d0] sm:$0xff] }
 0x497   : > { %v4239_v18 = vmul.f32 %v6848_v16, %v3465_v38  ;;  %2831 = vadd.xlane.f32.xlu0 %v2830_v40  ;;  %v2234_v10 = vmul.f32 %v5192_v56, %v8064_v62  ;;  %v3729_v40 = vmul.f32 %v6824_v7, %v1931_v52  ;;  %v2851_v57 = vsel %vm770_vm0, %v2235_v42, 0.0 }
 0x498   : > { %v4497_v61 = vadd.f32 %v4241_v39, %v3983_v17  ;;  %v4496_v26 = vadd.f32 %v4240_v53, %v3982_v50  ;;  %v9865_v17 = vld [vmem:[#allocation106_spill] sm:$0xff]  ;;  %v3730_v39 = vmul.f32 %v6824_v7, %v1932_v45  ;;  %v9866_v53 = vld [vmem:[#allocation107_spill] sm:$0xff]  ;;  %v3732_v42 = vmul.f32 %v6824_v7, %v1934_v24 }
 0x499   : > { %v4495_v29 = vadd.f32 %v4239_v18, %v3981_v27  ;;  %v2712_v1 = vpop.xlane.xlu2 %2711  ;;  %v2709_v3 = vpop.xlane.xlu1 %2708  ;;  %v3731_v27 = vmul.f32 %v6824_v7, %v1933_v46  ;;  %v1680_v22 = vadd.f32 %v6803_v43, %v9865_v17  ;;  %v1679_v51 = vadd.f32 %v6803_v43, %v9866_v53  ;;  %v9869_v46 = vld [vmem:[#allocation109_spill] sm:$0xff] }
 0x49a   : > { %4754 = vst.msk [vmem:[%s6862_s25 + $0x410] sm:$0xff] %vm4623_vm1, %v4497_v61  ;;  %v3214_v31 = vadd.f32 %v6826_v44, %v2712_v1  ;;  %v3213_v14 = vadd.f32 %v6826_v44, %v2709_v3  ;;  %v2706_v63 = vpop.xlane.xlu0 %2705  ;;  %v2848_v12 = vsel %vm770_vm0, %v2234_v10, 0.0  ;;  %v3987_v21 = vadd.f32 %v6834_v35, %v3729_v40 }
 0x49b   : > { %4753 = vst.msk [vmem:[%s6862_s25 + $0x408] sm:$0xff] %vm4623_vm1, %v4496_v26  ;;  %v3212_v9 = vadd.f32 %v6826_v44, %v2706_v63  ;;  %v2854_v26 = vsel %vm770_vm0, %v2236_v49, 0.0  ;;  %v3989_v2 = vadd.f32 %v6834_v35, %v3731_v27  ;;  %v1936_v5 = vmax.f32 %v1680_v22, 0.0 }
 0x49c   : > { %4752 = vst.msk [vmem:[%s6862_s25 + $0x400] sm:$0xff] %vm4623_vm1, %v4495_v29  ;;  %v3470_v32 = vmax.f32 %v3214_v31, 0.0  ;;  %v3469_v48 = vmax.f32 %v3213_v14, 0.0  ;;  %v3988_v1 = vadd.f32 %v6834_v35, %v3730_v39  ;;  %v1935_v3 = vmax.f32 %v1679_v51, 0.0  ;;  %v5193_v14 = vld [vmem:[%s5391_s11 + $0x5c0] sm:$0xff] }
 0x49d   : > { %v3468_v33 = vmax.f32 %v3212_v9, 0.0  ;;  %v2239_v63 = vmul.f32 %v5193_v14, %v8064_v62  ;;  %v2238_v9 = vmul.f32 %v5194_v58, %v8064_v62  ;;  %v9873_v58 = vld [vmem:[#allocation108_spill] sm:$0xff] }
 0x49e   : > { %v4244_v59 = vmul.f32 %v6848_v16, %v3470_v32  ;;  %v4243_v41 = vmul.f32 %v6848_v16, %v3469_v48  ;;  %2846 = vadd.xlane.f32.xlu2 %v2845_v47  ;;  %2843 = vadd.xlane.f32.xlu1 %v2842_v36  ;;  %v5195_v32 = vld [vmem:[%s5391_s11 + $0x5b0] sm:$0xff] }
 0x49f   : > { %v4242_v60 = vmul.f32 %v6848_v16, %v3468_v33  ;;  %2840 = vadd.xlane.f32.xlu0 %v2839_v15  ;;  %v2237_v48 = vmul.f32 %v5195_v32, %v8064_v62  ;;  %v9868_v15 = vld [vmem:[#allocation105_spill] sm:$0xff]  ;;  %v1683_v33 = vadd.f32 %v6803_v43, %v9869_v46  ;;  %v2860_v56 = vsel %vm770_vm0, %v2238_v9, 0.0 }
 0x4a0   : > { %v4500_v34 = vadd.f32 %v4244_v59, %v3986_v37  ;;  %v4499_v28 = vadd.f32 %v4243_v41, %v3985_v11  ;;  %v1681_v52 = vadd.f32 %v6803_v43, %v9868_v15  ;;  %v3734_v37 = vmul.f32 %v6824_v7, %v1936_v5 }
 0x4a1   : > { %v4498_v38 = vadd.f32 %v4242_v60, %v3984_v4  ;;  %v2721_v50 = vpop.xlane.xlu2 %2720  ;;  %v2718_v6 = vpop.xlane.xlu1 %2717  ;;  %v3733_v41 = vmul.f32 %v6824_v7, %v1935_v3  ;;  %v9870_v4 = vld [vmem:[#allocation110_spill] sm:$0xff]  ;;  %v2857_v27 = vsel %vm770_vm0, %v2237_v48, 0.0  ;;  %v1684_v9 = vadd.f32 %v6803_v43, %v9873_v58 }
 0x4a2   : > { %4757 = vst.msk [vmem:[%s6862_s25 + $0x428] sm:$0xff] %vm4623_vm1, %v4500_v34  ;;  %v3217_v18 = vadd.f32 %v6826_v44, %v2721_v50  ;;  %v3216_v54 = vadd.f32 %v6826_v44, %v2718_v6  ;;  %v2715_v0 = vpop.xlane.xlu0 %2714  ;;  %v1682_v60 = vadd.f32 %v6803_v43, %v9870_v4  ;;  %v1937_v17 = vmax.f32 %v1681_v52, 0.0 }
 0x4a3   : > { %4756 = vst.msk [vmem:[%s6862_s25 + $0x420] sm:$0xff] %vm4623_vm1, %v4499_v28  ;;  %v3215_v61 = vadd.f32 %v6826_v44, %v2715_v0  ;;  %v2863_v28 = vsel %vm770_vm0, %v2239_v63, 0.0  ;;  %v3992_v22 = vadd.f32 %v6834_v35, %v3734_v37  ;;  %v3991_v6 = vadd.f32 %v6834_v35, %v3733_v41  ;;  %v5196_v0 = vld [vmem:[%s5391_s11 + $0x5d8] sm:$0xff] }
 0x4a4   : > { %4755 = vst.msk [vmem:[%s6862_s25 + $0x418] sm:$0xff] %vm4623_vm1, %v4498_v38  ;;  %v3473_v20 = vmax.f32 %v3217_v18, 0.0  ;;  %v3472_v30 = vmax.f32 %v3216_v54, 0.0  ;;  %v1939_v38 = vmax.f32 %v1683_v33, 0.0  ;;  %v1938_v39 = vmax.f32 %v1682_v60, 0.0 }
 0x4a5   : > { %v3471_v29 = vmax.f32 %v3215_v61, 0.0  ;;  %v3990_v18 = vadd.f32 %v6834_v35, %v3732_v42  ;;  %v2242_v19 = vmul.f32 %v5196_v0, %v8064_v62  ;;  %v2241_v61 = vmul.f32 %v5197_v55, %v8064_v62  ;;  %v5200_v42 = vld [vmem:[%s5391_s11 + $0x5e8] sm:$0xff] }
 0x4a6   : > { %v4247_v23 = vmul.f32 %v6848_v16, %v3473_v20  ;;  %v4246_v8 = vmul.f32 %v6848_v16, %v3472_v30  ;;  %2855 = vadd.xlane.f32.xlu2 %v2854_v26  ;;  %2852 = vadd.xlane.f32.xlu1 %v2851_v57  ;;  %v5198_v20 = vld [vmem:[%s5391_s11 + $0x5c8] sm:$0xff]  ;;  %v1940_v60 = vmax.f32 %v1684_v9, 0.0  ;;  %v5203_v9 = vld [vmem:[%s5391_s11 + $0x600] sm:$0xff] }
 0x4a7   : > { %v4245_v31 = vmul.f32 %v6848_v16, %v3471_v29  ;;  %2849 = vadd.xlane.f32.xlu0 %v2848_v12  ;;  %v2240_v30 = vmul.f32 %v5198_v20, %v8064_v62  ;;  %v3735_v12 = vmul.f32 %v6824_v7, %v1937_v17  ;;  %v2869_v32 = vsel %vm770_vm0, %v2241_v61, 0.0 }
 0x4a8   : > { %v4503_v47 = vadd.f32 %v4247_v23, %v3989_v2  ;;  %v4502_v36 = vadd.f32 %v4246_v8, %v3988_v1  ;;  %v9871_v2 = vld [vmem:[#allocation112_spill] sm:$0xff]  ;;  %v3736_v23 = vmul.f32 %v6824_v7, %v1938_v39  ;;  %v9872_v8 = vld [vmem:[#allocation113_spill] sm:$0xff]  ;;  %v3738_v61 = vmul.f32 %v6824_v7, %v1940_v60 }
 0x4a9   : > { %v4501_v11 = vadd.f32 %v4245_v31, %v3987_v21  ;;  %v2730_v45 = vpop.xlane.xlu2 %2729  ;;  %v2727_v59 = vpop.xlane.xlu1 %2726  ;;  %v3737_v21 = vmul.f32 %v6824_v7, %v1939_v38  ;;  %v1686_v5 = vadd.f32 %v6803_v43, %v9871_v2  ;;  %v1685_v24 = vadd.f32 %v6803_v43, %v9872_v8  ;;  %v9875_v38 = vld [vmem:[#allocation115_spill] sm:$0xff] }
 0x4aa   : > { %4760 = vst.msk [vmem:[%s6862_s25 + $0x440] sm:$0xff] %vm4623_vm1, %v4503_v47  ;;  %v3220_v13 = vadd.f32 %v6826_v44, %v2730_v45  ;;  %v3219_v49 = vadd.f32 %v6826_v44, %v2727_v59  ;;  %v2724_v25 = vpop.xlane.xlu0 %2723  ;;  %v2866_v52 = vsel %vm770_vm0, %v2240_v30, 0.0  ;;  %v3993_v37 = vadd.f32 %v6834_v35, %v3735_v12 }
 0x4ab   : > { %4759 = vst.msk [vmem:[%s6862_s25 + $0x438] sm:$0xff] %vm4623_vm1, %v4502_v36  ;;  %v3218_v34 = vadd.f32 %v6826_v44, %v2724_v25  ;;  %v2872_v36 = vsel %vm770_vm0, %v2242_v19, 0.0  ;;  %v3995_v46 = vadd.f32 %v6834_v35, %v3737_v21  ;;  %v1942_v33 = vmax.f32 %v1686_v5, 0.0 }
 0x4ac   : > { %4758 = vst.msk [vmem:[%s6862_s25 + $0x430] sm:$0xff] %vm4623_vm1, %v4501_v11  ;;  %v3476_v10 = vmax.f32 %v3220_v13, 0.0  ;;  %v3475_v40 = vmax.f32 %v3219_v49, 0.0  ;;  %v3994_v45 = vadd.f32 %v6834_v35, %v3736_v23  ;;  %v1941_v59 = vmax.f32 %v1685_v24, 0.0  ;;  %v5199_v49 = vld [vmem:[%s5391_s11 + $0x5f0] sm:$0xff] }
 0x4ad   : > { %v3474_v50 = vmax.f32 %v3218_v34, 0.0  ;;  %v2245_v25 = vmul.f32 %v5199_v49, %v8064_v62  ;;  %v2244_v34 = vmul.f32 %v5200_v42, %v8064_v62  ;;  %v9879_v42 = vld [vmem:[#allocation114_spill] sm:$0xff] }
 0x4ae   : > { %v4250_v53 = vmul.f32 %v6848_v16, %v3476_v10  ;;  %v4249_v51 = vmul.f32 %v6848_v16, %v3475_v40  ;;  %2864 = vadd.xlane.f32.xlu2 %v2863_v28  ;;  %2861 = vadd.xlane.f32.xlu1 %v2860_v56  ;;  %v5201_v10 = vld [vmem:[%s5391_s11 + $0x5e0] sm:$0xff] }
 0x4af   : > { %v4248_v54 = vmul.f32 %v6848_v16, %v3474_v50  ;;  %2858 = vadd.xlane.f32.xlu0 %v2857_v27  ;;  %v2243_v40 = vmul.f32 %v5201_v10, %v8064_v62  ;;  %v9874_v27 = vld [vmem:[#allocation111_spill] sm:$0xff]  ;;  %v1689_v50 = vadd.f32 %v6803_v43, %v9875_v38  ;;  %v2878_v20 = vsel %vm770_vm0, %v2244_v34, 0.0 }
 0x4b0   : > { %v4506_v26 = vadd.f32 %v4250_v53, %v3992_v22  ;;  %v4505_v57 = vadd.f32 %v4249_v51, %v3991_v6  ;;  %v1687_v17 = vadd.f32 %v6803_v43, %v9874_v27  ;;  %v3740_v22 = vmul.f32 %v6824_v7, %v1942_v33 }
 0x4b1   : > { %v4504_v29 = vadd.f32 %v4248_v54, %v3990_v18  ;;  %v2739_v1 = vpop.xlane.xlu2 %2738  ;;  %v2736_v3 = vpop.xlane.xlu1 %2735  ;;  %v3739_v51 = vmul.f32 %v6824_v7, %v1941_v59  ;;  %v9876_v18 = vld [vmem:[#allocation116_spill] sm:$0xff]  ;;  %v2875_v21 = vsel %vm770_vm0, %v2243_v40, 0.0  ;;  %v1690_v34 = vadd.f32 %v6803_v43, %v9879_v42 }
 0x4b2   : > { %4763 = vst.msk [vmem:[%s6862_s25 + $0x458] sm:$0xff] %vm4623_vm1, %v4506_v26  ;;  %v3223_v31 = vadd.f32 %v6826_v44, %v2739_v1  ;;  %v3222_v14 = vadd.f32 %v6826_v44, %v2736_v3  ;;  %v2733_v63 = vpop.xlane.xlu0 %2732  ;;  %v1688_v54 = vadd.f32 %v6803_v43, %v9876_v18  ;;  %v1943_v2 = vmax.f32 %v1687_v17, 0.0 }
 0x4b3   : > { %4762 = vst.msk [vmem:[%s6862_s25 + $0x450] sm:$0xff] %vm4623_vm1, %v4505_v57  ;;  %v3221_v47 = vadd.f32 %v6826_v44, %v2733_v63  ;;  %v2881_v57 = vsel %vm770_vm0, %v2245_v25, 0.0  ;;  %v3998_v5 = vadd.f32 %v6834_v35, %v3740_v22  ;;  %v3997_v3 = vadd.f32 %v6834_v35, %v3739_v51  ;;  %v5202_v63 = vld [vmem:[%s5391_s11 + $0x608] sm:$0xff] }
 0x4b4   : > { %4761 = vst.msk [vmem:[%s6862_s25 + $0x448] sm:$0xff] %vm4623_vm1, %v4504_v29  ;;  %v3479_v48 = vmax.f32 %v3223_v31, 0.0  ;;  %v3478_v15 = vmax.f32 %v3222_v14, 0.0  ;;  %v1945_v29 = vmax.f32 %v1689_v50, 0.0  ;;  %v1944_v23 = vmax.f32 %v1688_v54, 0.0 }
 0x4b5   : > { %v3477_v11 = vmax.f32 %v3221_v47, 0.0  ;;  %v3996_v31 = vadd.f32 %v6834_v35, %v3738_v61  ;;  %v2248_v58 = vmul.f32 %v5202_v63, %v8064_v62  ;;  %v2247_v47 = vmul.f32 %v5203_v9, %v8064_v62  ;;  %v5206_v61 = vld [vmem:[%s5391_s11 + $0x618] sm:$0xff] }
 0x4b6   : > { %v4253_v41 = vmul.f32 %v6848_v16, %v3479_v48  ;;  %v4252_v4 = vmul.f32 %v6848_v16, %v3478_v15  ;;  %2873 = vadd.xlane.f32.xlu2 %v2872_v36  ;;  %2870 = vadd.xlane.f32.xlu1 %v2869_v32  ;;  %v5204_v48 = vld [vmem:[%s5391_s11 + $0x5f8] sm:$0xff]  ;;  %v1946_v54 = vmax.f32 %v1690_v34, 0.0  ;;  %v5210_v34 = vld [vmem:[%s5391_s11 + $0x630] sm:$0xff] }
 0x4b7   : > { %v4251_v13 = vmul.f32 %v6848_v16, %v3477_v11  ;;  %2867 = vadd.xlane.f32.xlu0 %v2866_v52  ;;  %v2246_v15 = vmul.f32 %v5204_v48, %v8064_v62  ;;  %v3741_v52 = vmul.f32 %v6824_v7, %v1943_v2  ;;  %v2887_v10 = vsel %vm770_vm0, %v2247_v47, 0.0 }
 0x4b8   : > { %v4509_v28 = vadd.f32 %v4253_v41, %v3995_v46  ;;  %v4508_v56 = vadd.f32 %v4252_v4, %v3994_v45  ;;  %v9877_v46 = vld [vmem:[#allocation118_spill] sm:$0xff]  ;;  %v3742_v41 = vmul.f32 %v6824_v7, %v1944_v23  ;;  %v9878_v4 = vld [vmem:[#allocation119_spill] sm:$0xff]  ;;  %v3744_v9 = vmul.f32 %v6824_v7, %v1946_v54 }
 0x4b9   : > { %v4507_v6 = vadd.f32 %v4251_v13, %v3993_v37  ;;  %v2748_v39 = vpop.xlane.xlu2 %2747  ;;  %v2745_v53 = vpop.xlane.xlu1 %2744  ;;  %v3743_v37 = vmul.f32 %v6824_v7, %v1945_v29  ;;  %v1692_v33 = vadd.f32 %v6803_v43, %v9877_v46  ;;  %v1691_v60 = vadd.f32 %v6803_v43, %v9878_v4  ;;  %v9881_v29 = vld [vmem:[#allocation121_spill] sm:$0xff] }
 0x4ba   : > { %4766 = vst.msk [vmem:[%s6862_s25 + $0x470] sm:$0xff] %vm4623_vm1, %v4509_v28  ;;  %v3226_v0 = vadd.f32 %v6826_v44, %v2748_v39  ;;  %v3225_v19 = vadd.f32 %v6826_v44, %v2745_v53  ;;  %v2742_v55 = vpop.xlane.xlu0 %2741  ;;  %v2884_v17 = vsel %vm770_vm0, %v2246_v15, 0.0  ;;  %v3999_v22 = vadd.f32 %v6834_v35, %v3741_v52 }
 0x4bb   : > { %4765 = vst.msk [vmem:[%s6862_s25 + $0x468] sm:$0xff] %vm4623_vm1, %v4508_v56  ;;  %v3224_v26 = vadd.f32 %v6826_v44, %v2742_v55  ;;  %v2890_v56 = vsel %vm770_vm0, %v2248_v58, 0.0  ;;  %v4001_v38 = vadd.f32 %v6834_v35, %v3743_v37  ;;  %v1948_v50 = vmax.f32 %v1692_v33, 0.0 }
 0x4bc   : > { %4764 = vst.msk [vmem:[%s6862_s25 + $0x460] sm:$0xff] %vm4623_vm1, %v4507_v6  ;;  %v3482_v30 = vmax.f32 %v3226_v0, 0.0  ;;  %v3481_v12 = vmax.f32 %v3225_v19, 0.0  ;;  %v4000_v39 = vadd.f32 %v6834_v35, %v3742_v41  ;;  %v1947_v53 = vmax.f32 %v1691_v60, 0.0  ;;  %v5205_v19 = vld [vmem:[%s5391_s11 + $0x620] sm:$0xff] }
 0x4bd   : > { %v3480_v1 = vmax.f32 %v3224_v26, 0.0  ;;  %v2251_v55 = vmul.f32 %v5205_v19, %v8064_v62  ;;  %v2250_v26 = vmul.f32 %v5206_v61, %v8064_v62  ;;  %v4002_v60 = vadd.f32 %v6834_v35, %v3744_v9  ;;  %v9885_v61 = vld [vmem:[#allocation120_spill] sm:$0xff]  ;;  %v5213_v9 = vld [vmem:[%s5391_s11 + $0x648] sm:$0xff] }
 0x4be   : > { %v4256_v8 = vmul.f32 %v6848_v16, %v3482_v30  ;;  %v4255_v24 = vmul.f32 %v6848_v16, %v3481_v12  ;;  %2882 = vadd.xlane.f32.xlu2 %v2881_v57  ;;  %2879 = vadd.xlane.f32.xlu1 %v2878_v20  ;;  %v5207_v30 = vld [vmem:[%s5391_s11 + $0x610] sm:$0xff] }
 0x4bf   : > { %v4254_v14 = vmul.f32 %v6848_v16, %v3480_v1  ;;  %2876 = vadd.xlane.f32.xlu0 %v2875_v21  ;;  %v2249_v12 = vmul.f32 %v5207_v30, %v8064_v62  ;;  %v9880_v21 = vld [vmem:[#allocation117_spill] sm:$0xff]  ;;  %v1695_v1 = vadd.f32 %v6803_v43, %v9881_v29 }
 0x4c0   : > { %v4512_v36 = vadd.f32 %v4256_v8, %v3998_v5  ;;  %v4511_v32 = vadd.f32 %v4255_v24, %v3997_v3  ;;  %v1693_v2 = vadd.f32 %v6803_v43, %v9880_v21  ;;  %v3746_v5 = vmul.f32 %v6824_v7, %v1948_v50 }
 0x4c1   : > { %v4510_v11 = vadd.f32 %v4254_v14, %v3996_v31  ;;  %v2757_v45 = vpop.xlane.xlu2 %2756  ;;  %v2754_v59 = vpop.xlane.xlu1 %2753  ;;  %v3745_v24 = vmul.f32 %v6824_v7, %v1947_v53  ;;  %v9882_v31 = vld [vmem:[#allocation122_spill] sm:$0xff]  ;;  %v2893_v52 = vsel %vm770_vm0, %v2249_v12, 0.0  ;;  %v1951_v33 = vmax.f32 %v1695_v1, 0.0 }
 0x4c2   : > { %4769 = vst.msk [vmem:[%s6862_s25 + $0x488] sm:$0xff] %vm4623_vm1, %v4512_v36  ;;  %v3229_v13 = vadd.f32 %v6826_v44, %v2757_v45  ;;  %v3228_v49 = vadd.f32 %v6826_v44, %v2754_v59  ;;  %v2751_v25 = vpop.xlane.xlu0 %2750  ;;  %v1694_v14 = vadd.f32 %v6803_v43, %v9882_v31  ;;  %v2899_v36 = vsel %vm770_vm0, %v2251_v55, 0.0 }
 0x4c3   : > { %4768 = vst.msk [vmem:[%s6862_s25 + $0x480] sm:$0xff] %vm4623_vm1, %v4511_v32  ;;  %v3227_v28 = vadd.f32 %v6826_v44, %v2751_v25  ;;  %v2896_v32 = vsel %vm770_vm0, %v2250_v26, 0.0  ;;  %v1949_v37 = vmax.f32 %v1693_v2, 0.0  ;;  %v4004_v46 = vadd.f32 %v6834_v35, %v3746_v5  ;;  %v8531_v25 = vld [vmem:[%s9550_s1 + $0x1] ss:$0 sm:$0xff] }
 0x4c4   : > { %4767 = vst.msk [vmem:[%s6862_s25 + $0x478] sm:$0xff] %vm4623_vm1, %v4510_v11  ;;  %v3485_v40 = vmax.f32 %v3229_v13, 0.0  ;;  %v3484_v27 = vmax.f32 %v3228_v49, 0.0  ;;  %v4003_v45 = vadd.f32 %v6834_v35, %v3745_v24  ;;  %v1950_v59 = vmax.f32 %v1694_v14, 0.0  ;;  %v5208_v49 = vld [vmem:[%s5391_s11 + $0x638] sm:$0xff] }
 0x4c5   : > { %v3483_v6 = vmax.f32 %v3227_v28, 0.0  ;;  %v2254_v42 = vmul.f32 %v8531_v25, %v5208_v49  ;;  %v2253_v28 = vmul.f32 %v5210_v34, %v8531_v25  ;;  %v1696_v26 = vadd.f32 %v6803_v43, %v9885_v61 }
 0x4c6   : > { %v4259_v51 = vmul.f32 %v6848_v16, %v3485_v40  ;;  %v4258_v18 = vmul.f32 %v6848_v16, %v3484_v27  ;;  %2891 = vadd.xlane.f32.xlu2 %v2890_v56  ;;  %2888 = vadd.xlane.f32.xlu1 %v2887_v10  ;;  %v5211_v40 = vld [vmem:[%s5391_s11 + $0x628] sm:$0xff] }
 0x4c7   : > { %v4257_v0 = vmul.f32 %v6848_v16, %v3483_v6  ;;  %2885 = vadd.xlane.f32.xlu0 %v2884_v17  ;;  %v2252_v27 = vmul.f32 %v5211_v40, %v8531_v25  ;;  %v3747_v17 = vmul.f32 %v6824_v7, %v1949_v37  ;;  %v2905_v30 = vsel %vm770_vm0, %v2253_v28, 0.0 }
 0x4c8   : > { %v4515_v57 = vadd.f32 %v4259_v51, %v4001_v38  ;;  %v4514_v20 = vadd.f32 %v4258_v18, %v4000_v39  ;;  %v9883_v38 = vld [vmem:[#allocation124_spill] sm:$0xff]  ;;  %v3748_v51 = vmul.f32 %v6824_v7, %v1950_v59  ;;  %v9884_v18 = vld [vmem:[#allocation125_spill] sm:$0xff]  ;;  %v1952_v14 = vmax.f32 %v1696_v26, 0.0 }
 0x4c9   : > { %v4513_v3 = vadd.f32 %v4257_v0, %v3999_v22  ;;  %v2766_v23 = vpop.xlane.xlu2 %2765  ;;  %v2763_v8 = vpop.xlane.xlu1 %2762  ;;  %v3749_v22 = vmul.f32 %v6824_v7, %v1951_v33  ;;  %v1698_v50 = vadd.f32 %v6803_v43, %v9883_v38  ;;  %v1697_v54 = vadd.f32 %v6803_v43, %v9884_v18  ;;  %v9887_v33 = vld [vmem:[#allocation127_spill] sm:$0xff]  ;;  %v5216_v26 = vld [vmem:[%s5391_s11 + $0x660] sm:$0xff] }
 0x4ca   : > { %4772 = vst.msk [vmem:[%s6862_s25 + $0x4a0] sm:$0xff] %vm4623_vm1, %v4515_v57  ;;  %v3232_v62 = vadd.f32 %v6826_v44, %v2766_v23  ;;  %v3231_v63 = vadd.f32 %v6826_v44, %v2763_v8  ;;  %v2760_v58 = vpop.xlane.xlu0 %2759  ;;  %v2902_v2 = vsel %vm770_vm0, %v2252_v27, 0.0  ;;  %v4005_v5 = vadd.f32 %v6834_v35, %v3747_v17 }
 0x4cb   : > { %4771 = vst.msk [vmem:[%s6862_s25 + $0x498] sm:$0xff] %vm4623_vm1, %v4514_v20  ;;  %v3230_v47 = vadd.f32 %v6826_v44, %v2760_v58  ;;  %v2908_v20 = vsel %vm770_vm0, %v2254_v42, 0.0  ;;  %v4007_v29 = vadd.f32 %v6834_v35, %v3749_v22  ;;  %v1954_v1 = vmax.f32 %v1698_v50, 0.0 }
 0x4cc   : > { %4770 = vst.msk [vmem:[%s6862_s25 + $0x490] sm:$0xff] %vm4623_vm1, %v4513_v3  ;;  %v3488_v48 = vmax.f32 %v3232_v62, 0.0  ;;  %v3487_v15 = vmax.f32 %v3231_v63, 0.0  ;;  %v4006_v23 = vadd.f32 %v6834_v35, %v3748_v51  ;;  %v1953_v8 = vmax.f32 %v1697_v54, 0.0  ;;  %v5212_v63 = vld [vmem:[%s5391_s11 + $0x650] sm:$0xff] }
 0x4cd   : > { %v3486_v11 = vmax.f32 %v3230_v47, 0.0  ;;  %v2257_v58 = vmul.f32 %v5212_v63, %v8531_v25  ;;  %v2256_v47 = vmul.f32 %v5213_v9, %v8531_v25  ;;  %v3750_v28 = vmul.f32 %v6824_v7, %v1952_v14  ;;  %v9891_v9 = vld [vmem:[#allocation126_spill] sm:$0xff] }
 0x4ce   : > { %v4262_v41 = vmul.f32 %v6848_v16, %v3488_v48  ;;  %v4261_v4 = vmul.f32 %v6848_v16, %v3487_v15  ;;  %2900 = vadd.xlane.f32.xlu2 %v2899_v36  ;;  %2897 = vadd.xlane.f32.xlu1 %v2896_v32  ;;  %v5214_v48 = vld [vmem:[%s5391_s11 + $0x640] sm:$0xff] }
 0x4cf   : > { %v4260_v13 = vmul.f32 %v6848_v16, %v3486_v11  ;;  %2894 = vadd.xlane.f32.xlu0 %v2893_v52  ;;  %v2255_v15 = vmul.f32 %v5214_v48, %v8531_v25  ;;  %v9886_v52 = vld [vmem:[#allocation123_spill] sm:$0xff]  ;;  %v1701_v11 = vadd.f32 %v6803_v43, %v9887_v33  ;;  %v2914_v40 = vsel %vm770_vm0, %v2256_v47, 0.0 }
 0x4d0   : > { %v4518_v56 = vadd.f32 %v4262_v41, %v4004_v46  ;;  %v4517_v10 = vadd.f32 %v4261_v4, %v4003_v45  ;;  %v1699_v37 = vadd.f32 %v6803_v43, %v9886_v52  ;;  %v3752_v46 = vmul.f32 %v6824_v7, %v1954_v1 }
 0x4d1   : > { %v4516_v6 = vadd.f32 %v4260_v13, %v4002_v60  ;;  %v2775_v39 = vpop.xlane.xlu2 %2774  ;;  %v2772_v53 = vpop.xlane.xlu1 %2771  ;;  %v3751_v4 = vmul.f32 %v6824_v7, %v1953_v8  ;;  %v9888_v60 = vld [vmem:[#allocation128_spill] sm:$0xff]  ;;  %v2911_v22 = vsel %vm770_vm0, %v2255_v15, 0.0  ;;  %v1702_v47 = vadd.f32 %v6803_v43, %v9891_v9 }
 0x4d2   : > { %4775 = vst.msk [vmem:[%s6862_s25 + $0x4b8] sm:$0xff] %vm4623_vm1, %v4518_v56  ;;  %v3235_v0 = vadd.f32 %v6826_v44, %v2775_v39  ;;  %v3234_v19 = vadd.f32 %v6826_v44, %v2772_v53  ;;  %v2769_v55 = vpop.xlane.xlu0 %2768  ;;  %v1700_v13 = vadd.f32 %v6803_v43, %v9888_v60  ;;  %v1955_v38 = vmax.f32 %v1699_v37, 0.0 }
 0x4d3   : > { %4774 = vst.msk [vmem:[%s6862_s25 + $0x4b0] sm:$0xff] %vm4623_vm1, %v4517_v10  ;;  %v3233_v57 = vadd.f32 %v6826_v44, %v2769_v55  ;;  %v2917_v10 = vsel %vm770_vm0, %v2257_v58, 0.0  ;;  %v4010_v50 = vadd.f32 %v6834_v35, %v3752_v46  ;;  %v4009_v53 = vadd.f32 %v6834_v35, %v3751_v4  ;;  %v5215_v55 = vld [vmem:[%s5391_s11 + $0x668] sm:$0xff] }
 0x4d4   : > { %4773 = vst.msk [vmem:[%s6862_s25 + $0x4a8] sm:$0xff] %vm4623_vm1, %v4516_v6  ;;  %v3491_v12 = vmax.f32 %v3235_v0, 0.0  ;;  %v3490_v21 = vmax.f32 %v3234_v19, 0.0  ;;  %v1957_v6 = vmax.f32 %v1701_v11, 0.0  ;;  %v1956_v51 = vmax.f32 %v1700_v13, 0.0 }
 0x4d5   : > { %v3489_v3 = vmax.f32 %v3233_v57, 0.0  ;;  %v4008_v0 = vadd.f32 %v6834_v35, %v3750_v28  ;;  %v2260_v61 = vmul.f32 %v5215_v55, %v8531_v25  ;;  %v2259_v57 = vmul.f32 %v5216_v26, %v8531_v25  ;;  %v5219_v28 = vld [vmem:[%s5391_s11 + $0x678] sm:$0xff] }
 0x4d6   : > { %v4265_v24 = vmul.f32 %v6848_v16, %v3491_v12  ;;  %v4264_v31 = vmul.f32 %v6848_v16, %v3490_v21  ;;  %2909 = vadd.xlane.f32.xlu2 %v2908_v20  ;;  %2906 = vadd.xlane.f32.xlu1 %v2905_v30  ;;  %v5217_v12 = vld [vmem:[%s5391_s11 + $0x658] sm:$0xff]  ;;  %v1958_v13 = vmax.f32 %v1702_v47, 0.0  ;;  %v5222_v47 = vld [vmem:[%s5391_s11 + $0x690] sm:$0xff] }
 0x4d7   : > { %v4263_v62 = vmul.f32 %v6848_v16, %v3489_v3  ;;  %2903 = vadd.xlane.f32.xlu0 %v2902_v2  ;;  %v2258_v21 = vmul.f32 %v5217_v12, %v8531_v25  ;;  %v3753_v2 = vmul.f32 %v6824_v7, %v1955_v38  ;;  %v2923_v48 = vsel %vm770_vm0, %v2259_v57, 0.0 }
 0x4d8   : > { %v4521_v36 = vadd.f32 %v4265_v24, %v4007_v29  ;;  %v4520_v32 = vadd.f32 %v4264_v31, %v4006_v23  ;;  %v9889_v29 = vld [vmem:[#allocation130_spill] sm:$0xff]  ;;  %v3754_v24 = vmul.f32 %v6824_v7, %v1956_v51  ;;  %v9890_v31 = vld [vmem:[#allocation131_spill] sm:$0xff]  ;;  %v3756_v57 = vmul.f32 %v6824_v7, %v1958_v13 }
 0x4d9   : > { %v4519_v45 = vadd.f32 %v4263_v62, %v4005_v5  ;;  %v2784_v59 = vpop.xlane.xlu2 %2783  ;;  %v2781_v41 = vpop.xlane.xlu1 %2780  ;;  %v3755_v5 = vmul.f32 %v6824_v7, %v1957_v6  ;;  %v1704_v1 = vadd.f32 %v6803_v43, %v9889_v29  ;;  %v1703_v14 = vadd.f32 %v6803_v43, %v9890_v31  ;;  %v9893_v6 = vld [vmem:[#allocation133_spill] sm:$0xff] }
 0x4da   : > { %4778 = vst.msk [vmem:[%s6862_s25 + $0x4d0] sm:$0xff] %vm4623_vm1, %v4521_v36  ;;  %v3238_v49 = vadd.f32 %v6826_v44, %v2784_v59  ;;  %v3237_v42 = vadd.f32 %v6826_v44, %v2781_v41  ;;  %v2778_v34 = vpop.xlane.xlu0 %2777  ;;  %v2920_v37 = vsel %vm770_vm0, %v2258_v21, 0.0  ;;  %v4011_v46 = vadd.f32 %v6834_v35, %v3753_v2 }
 0x4db   : > { %4777 = vst.msk [vmem:[%s6862_s25 + $0x4c8] sm:$0xff] %vm4623_vm1, %v4520_v32  ;;  %v3236_v56 = vadd.f32 %v6826_v44, %v2778_v34  ;;  %v2926_v32 = vsel %vm770_vm0, %v2260_v61, 0.0  ;;  %v4013_v33 = vadd.f32 %v6834_v35, %v3755_v5  ;;  %v1960_v11 = vmax.f32 %v1704_v1, 0.0 }
 0x4dc   : > { %4776 = vst.msk [vmem:[%s6862_s25 + $0x4c0] sm:$0xff] %vm4623_vm1, %v4519_v45  ;;  %v3494_v27 = vmax.f32 %v3238_v49, 0.0  ;;  %v3493_v17 = vmax.f32 %v3237_v42, 0.0  ;;  %v4012_v59 = vadd.f32 %v6834_v35, %v3754_v24  ;;  %v1959_v41 = vmax.f32 %v1703_v14, 0.0  ;;  %v5218_v42 = vld [vmem:[%s5391_s11 + $0x680] sm:$0xff] }
 0x4dd   : > { %v3492_v39 = vmax.f32 %v3236_v56, 0.0  ;;  %v2263_v34 = vmul.f32 %v5218_v42, %v8531_v25  ;;  %v2262_v56 = vmul.f32 %v5219_v28, %v8531_v25  ;;  %v9897_v28 = vld [vmem:[#allocation132_spill] sm:$0xff] }
 0x4de   : > { %v4268_v18 = vmul.f32 %v6848_v16, %v3494_v27  ;;  %v4267_v54 = vmul.f32 %v6848_v16, %v3493_v17  ;;  %2918 = vadd.xlane.f32.xlu2 %v2917_v10  ;;  %2915 = vadd.xlane.f32.xlu1 %v2914_v40  ;;  %v5220_v27 = vld [vmem:[%s5391_s11 + $0x670] sm:$0xff] }
 0x4df   : > { %v4266_v19 = vmul.f32 %v6848_v16, %v3492_v39  ;;  %2912 = vadd.xlane.f32.xlu0 %v2911_v22  ;;  %v2261_v17 = vmul.f32 %v5220_v27, %v8531_v25  ;;  %v9892_v22 = vld [vmem:[#allocation129_spill] sm:$0xff]  ;;  %v1707_v39 = vadd.f32 %v6803_v43, %v9893_v6  ;;  %v2932_v12 = vsel %vm770_vm0, %v2262_v56, 0.0 }
 0x4e0   : > { %v4524_v20 = vadd.f32 %v4268_v18, %v4010_v50  ;;  %v4523_v30 = vadd.f32 %v4267_v54, %v4009_v53  ;;  %v1705_v38 = vadd.f32 %v6803_v43, %v9892_v22  ;;  %v3758_v50 = vmul.f32 %v6824_v7, %v1960_v11 }
 0x4e1   : > { %v4522_v3 = vadd.f32 %v4266_v19, %v4008_v0  ;;  %v2793_v23 = vpop.xlane.xlu2 %2792  ;;  %v2790_v8 = vpop.xlane.xlu1 %2789  ;;  %v3757_v54 = vmul.f32 %v6824_v7, %v1959_v41  ;;  %v9894_v0 = vld [vmem:[#allocation134_spill] sm:$0xff]  ;;  %v2929_v5 = vsel %vm770_vm0, %v2261_v17, 0.0  ;;  %v1708_v56 = vadd.f32 %v6803_v43, %v9897_v28 }
 0x4e2   : > { %4781 = vst.msk [vmem:[%s6862_s25 + $0x4e8] sm:$0xff] %vm4623_vm1, %v4524_v20  ;;  %v3241_v62 = vadd.f32 %v6826_v44, %v2793_v23  ;;  %v3240_v63 = vadd.f32 %v6826_v44, %v2790_v8  ;;  %v2787_v58 = vpop.xlane.xlu0 %2786  ;;  %v1706_v19 = vadd.f32 %v6803_v43, %v9894_v0  ;;  %v1961_v29 = vmax.f32 %v1705_v38, 0.0 }
 0x4e3   : > { %4780 = vst.msk [vmem:[%s6862_s25 + $0x4e0] sm:$0xff] %vm4623_vm1, %v4523_v30  ;;  %v3239_v36 = vadd.f32 %v6826_v44, %v2787_v58  ;;  %v2935_v30 = vsel %vm770_vm0, %v2263_v34, 0.0  ;;  %v4016_v1 = vadd.f32 %v6834_v35, %v3758_v50  ;;  %v4015_v8 = vadd.f32 %v6834_v35, %v3757_v54  ;;  %v5221_v58 = vld [vmem:[%s5391_s11 + $0x698] sm:$0xff] }
 0x4e4   : > { %4779 = vst.msk [vmem:[%s6862_s25 + $0x4d8] sm:$0xff] %vm4623_vm1, %v4522_v3  ;;  %v3497_v15 = vmax.f32 %v3241_v62, 0.0  ;;  %v3496_v52 = vmax.f32 %v3240_v63, 0.0  ;;  %v1963_v3 = vmax.f32 %v1707_v39, 0.0  ;;  %v1962_v24 = vmax.f32 %v1706_v19, 0.0 }
 0x4e5   : > { %v3495_v45 = vmax.f32 %v3239_v36, 0.0  ;;  %v4014_v62 = vadd.f32 %v6834_v35, %v3756_v57  ;;  %v2266_v9 = vmul.f32 %v5221_v58, %v8531_v25  ;;  %v2265_v36 = vmul.f32 %v5222_v47, %v8531_v25  ;;  %v5225_v57 = vld [vmem:[%s5391_s11 + $0x6a8] sm:$0xff] }
 0x4e6   : > { %v4271_v4 = vmul.f32 %v6848_v16, %v3497_v15  ;;  %v4270_v60 = vmul.f32 %v6848_v16, %v3496_v52  ;;  %2927 = vadd.xlane.f32.xlu2 %v2926_v32  ;;  %2924 = vadd.xlane.f32.xlu1 %v2923_v48  ;;  %v5223_v15 = vld [vmem:[%s5391_s11 + $0x688] sm:$0xff]  ;;  %v1964_v19 = vmax.f32 %v1708_v56, 0.0  ;;  %v5228_v56 = vld [vmem:[%s5391_s11 + $0x6c0] sm:$0xff] }
 0x4e7   : > { %v4269_v49 = vmul.f32 %v6848_v16, %v3495_v45  ;;  %2921 = vadd.xlane.f32.xlu0 %v2920_v37  ;;  %v2264_v52 = vmul.f32 %v5223_v15, %v8531_v25  ;;  %v3759_v37 = vmul.f32 %v6824_v7, %v1961_v29  ;;  %v2941_v27 = vsel %vm770_vm0, %v2265_v36, 0.0 }
 0x4e8   : > { %v4527_v10 = vadd.f32 %v4271_v4, %v4013_v33  ;;  %v4526_v40 = vadd.f32 %v4270_v60, %v4012_v59  ;;  %v9895_v33 = vld [vmem:[#allocation136_spill] sm:$0xff]  ;;  %v3760_v4 = vmul.f32 %v6824_v7, %v1962_v24  ;;  %v9896_v60 = vld [vmem:[#allocation137_spill] sm:$0xff]  ;;  %v3762_v36 = vmul.f32 %v6824_v7, %v1964_v19 }
 0x4e9   : > { %v4525_v53 = vadd.f32 %v4269_v49, %v4011_v46  ;;  %v2802_v51 = vpop.xlane.xlu2 %2801  ;;  %v2799_v18 = vpop.xlane.xlu1 %2798  ;;  %v3761_v46 = vmul.f32 %v6824_v7, %v1963_v3  ;;  %v1710_v11 = vadd.f32 %v6803_v43, %v9895_v33  ;;  %v1709_v13 = vadd.f32 %v6803_v43, %v9896_v60  ;;  %v9899_v3 = vld [vmem:[#allocation139_spill] sm:$0xff] }
 0x4ea   : > { %4784 = vst.msk [vmem:[%s6862_s25 + $0x500] sm:$0xff] %vm4623_vm1, %v4527_v10  ;;  %v3244_v55 = vadd.f32 %v6826_v44, %v2802_v51  ;;  %v3243_v61 = vadd.f32 %v6826_v44, %v2799_v18  ;;  %v2796_v26 = vpop.xlane.xlu0 %2795  ;;  %v2938_v38 = vsel %vm770_vm0, %v2264_v52, 0.0  ;;  %v4017_v50 = vadd.f32 %v6834_v35, %v3759_v37 }
 0x4eb   : > { %4783 = vst.msk [vmem:[%s6862_s25 + $0x4f8] sm:$0xff] %vm4623_vm1, %v4526_v40  ;;  %v3242_v20 = vadd.f32 %v6826_v44, %v2796_v26  ;;  %v2944_v40 = vsel %vm770_vm0, %v2266_v9, 0.0  ;;  %v4019_v6 = vadd.f32 %v6834_v35, %v3761_v46  ;;  %v1966_v39 = vmax.f32 %v1710_v11, 0.0 }
 0x4ec   : > { %4782 = vst.msk [vmem:[%s6862_s25 + $0x4f0] sm:$0xff] %vm4623_vm1, %v4525_v53  ;;  %v3500_v21 = vmax.f32 %v3244_v55, 0.0  ;;  %v3499_v2 = vmax.f32 %v3243_v61, 0.0  ;;  %v4018_v51 = vadd.f32 %v6834_v35, %v3760_v4  ;;  %v1965_v18 = vmax.f32 %v1709_v13, 0.0  ;;  %v5224_v61 = vld [vmem:[%s5391_s11 + $0x6b0] sm:$0xff] }
 0x4ed   : > { %v3498_v23 = vmax.f32 %v3242_v20, 0.0  ;;  %v2269_v26 = vmul.f32 %v5224_v61, %v8531_v25  ;;  %v2268_v20 = vmul.f32 %v5225_v57, %v8531_v25  ;;  %v9903_v57 = vld [vmem:[#allocation138_spill] sm:$0xff] }
 0x4ee   : > { %v4274_v31 = vmul.f32 %v6848_v16, %v3500_v21  ;;  %v4273_v14 = vmul.f32 %v6848_v16, %v3499_v2  ;;  %2936 = vadd.xlane.f32.xlu2 %v2935_v30  ;;  %2933 = vadd.xlane.f32.xlu1 %v2932_v12  ;;  %v5226_v21 = vld [vmem:[%s5391_s11 + $0x6a0] sm:$0xff] }
 0x4ef   : > { %v4272_v63 = vmul.f32 %v6848_v16, %v3498_v23  ;;  %2930 = vadd.xlane.f32.xlu0 %v2929_v5  ;;  %v2267_v2 = vmul.f32 %v5226_v21, %v8531_v25  ;;  %v9898_v5 = vld [vmem:[#allocation135_spill] sm:$0xff]  ;;  %v1713_v23 = vadd.f32 %v6803_v43, %v9899_v3  ;;  %v2950_v15 = vsel %vm770_vm0, %v2268_v20, 0.0 }
 0x4f0   : > { %v4530_v32 = vadd.f32 %v4274_v31, %v4016_v1  ;;  %v4529_v48 = vadd.f32 %v4273_v14, %v4015_v8  ;;  %v1711_v29 = vadd.f32 %v6803_v43, %v9898_v5  ;;  %v3764_v1 = vmul.f32 %v6824_v7, %v1966_v39 }
 0x4f1   : > { %v4528_v45 = vadd.f32 %v4272_v63, %v4014_v62  ;;  %v2811_v59 = vpop.xlane.xlu2 %2810  ;;  %v2808_v41 = vpop.xlane.xlu1 %2807  ;;  %v3763_v14 = vmul.f32 %v6824_v7, %v1965_v18  ;;  %v9900_v62 = vld [vmem:[#allocation140_spill] sm:$0xff]  ;;  %v2947_v46 = vsel %vm770_vm0, %v2267_v2, 0.0  ;;  %v1714_v20 = vadd.f32 %v6803_v43, %v9903_v57 }
 0x4f2   : > { %4787 = vst.msk [vmem:[%s6862_s25 + $0x518] sm:$0xff] %vm4623_vm1, %v4530_v32  ;;  %v3247_v49 = vadd.f32 %v6826_v44, %v2811_v59  ;;  %v3246_v42 = vadd.f32 %v6826_v44, %v2808_v41  ;;  %v2805_v34 = vpop.xlane.xlu0 %2804  ;;  %v1712_v63 = vadd.f32 %v6803_v43, %v9900_v62  ;;  %v1967_v33 = vmax.f32 %v1711_v29, 0.0 }
 0x4f3   : > { %4786 = vst.msk [vmem:[%s6862_s25 + $0x510] sm:$0xff] %vm4623_vm1, %v4529_v48  ;;  %v3245_v10 = vadd.f32 %v6826_v44, %v2805_v34  ;;  %v2953_v48 = vsel %vm770_vm0, %v2269_v26, 0.0  ;;  %v4022_v11 = vadd.f32 %v6834_v35, %v3764_v1  ;;  %v4021_v41 = vadd.f32 %v6834_v35, %v3763_v14  ;;  %v5227_v34 = vld [vmem:[%s5391_s11 + $0x6c8] sm:$0xff] }
 0x4f4   : > { %4785 = vst.msk [vmem:[%s6862_s25 + $0x508] sm:$0xff] %vm4623_vm1, %v4528_v45  ;;  %v3503_v17 = vmax.f32 %v3247_v49, 0.0  ;;  %v3502_v22 = vmax.f32 %v3246_v42, 0.0  ;;  %v1969_v45 = vmax.f32 %v1713_v23, 0.0  ;;  %v1968_v4 = vmax.f32 %v1712_v63, 0.0 }
 0x4f5   : > { %v3501_v53 = vmax.f32 %v3245_v10, 0.0  ;;  %v4020_v49 = vadd.f32 %v6834_v35, %v3762_v36  ;;  %v2272_v28 = vmul.f32 %v5227_v34, %v8531_v25  ;;  %v2271_v10 = vmul.f32 %v5228_v56, %v8531_v25  ;;  %v5231_v36 = vld [vmem:[%s5391_s11 + $0x6d8] sm:$0xff] }
 0x4f6   : > { %v4277_v54 = vmul.f32 %v6848_v16, %v3503_v17  ;;  %v4276_v0 = vmul.f32 %v6848_v16, %v3502_v22  ;;  %2945 = vadd.xlane.f32.xlu2 %v2944_v40  ;;  %2942 = vadd.xlane.f32.xlu1 %v2941_v27  ;;  %v5229_v17 = vld [vmem:[%s5391_s11 + $0x6b8] sm:$0xff]  ;;  %v1970_v63 = vmax.f32 %v1714_v20, 0.0  ;;  %v5234_v20 = vld [vmem:[%s5391_s11 + $0x6f0] sm:$0xff] }
 0x4f7   : > { %v4275_v55 = vmul.f32 %v6848_v16, %v3501_v53  ;;  %2939 = vadd.xlane.f32.xlu0 %v2938_v38  ;;  %v2270_v22 = vmul.f32 %v5229_v17, %v8531_v25  ;;  %v3765_v38 = vmul.f32 %v6824_v7, %v1967_v33  ;;  %v2959_v21 = vsel %vm770_vm0, %v2271_v10, 0.0 }
 0x4f8   : > { %v4533_v30 = vadd.f32 %v4277_v54, %v4019_v6  ;;  %v4532_v12 = vadd.f32 %v4276_v0, %v4018_v51  ;;  %v9901_v6 = vld [vmem:[#allocation142_spill] sm:$0xff]  ;;  %v3766_v54 = vmul.f32 %v6824_v7, %v1968_v4  ;;  %v9902_v0 = vld [vmem:[#allocation143_spill] sm:$0xff]  ;;  %v3768_v10 = vmul.f32 %v6824_v7, %v1970_v63 }
 0x4f9   : > { %v4531_v8 = vadd.f32 %v4275_v55, %v4017_v50  ;;  %v2820_v24 = vpop.xlane.xlu2 %2819  ;;  %v2817_v31 = vpop.xlane.xlu1 %2816  ;;  %v3767_v50 = vmul.f32 %v6824_v7, %v1969_v45  ;;  %v1716_v39 = vadd.f32 %v6803_v43, %v9901_v6  ;;  %v1715_v19 = vadd.f32 %v6803_v43, %v9902_v0  ;;  %v9905_v45 = vld [vmem:[#allocation145_spill] sm:$0xff] }
 0x4fa   : > { %4790 = vst.msk [vmem:[%s6862_s25 + $0x530] sm:$0xff] %vm4623_vm1, %v4533_v30  ;;  %v3250_v58 = vadd.f32 %v6826_v44, %v2820_v24  ;;  %v3249_v9 = vadd.f32 %v6826_v44, %v2817_v31  ;;  %v2814_v47 = vpop.xlane.xlu0 %2813  ;;  %v2956_v29 = vsel %vm770_vm0, %v2270_v22, 0.0  ;;  %v4023_v1 = vadd.f32 %v6834_v35, %v3765_v38 }
 0x4fb   : > { %4789 = vst.msk [vmem:[%s6862_s25 + $0x528] sm:$0xff] %vm4623_vm1, %v4532_v12  ;;  %v3248_v32 = vadd.f32 %v6826_v44, %v2814_v47  ;;  %v2962_v12 = vsel %vm770_vm0, %v2272_v28, 0.0  ;;  %v4025_v3 = vadd.f32 %v6834_v35, %v3767_v50  ;;  %v1972_v23 = vmax.f32 %v1716_v39, 0.0 }
 0x4fc   : > { %4788 = vst.msk [vmem:[%s6862_s25 + $0x520] sm:$0xff] %vm4623_vm1, %v4531_v8  ;;  %v3506_v52 = vmax.f32 %v3250_v58, 0.0  ;;  %v3505_v37 = vmax.f32 %v3249_v9, 0.0  ;;  %v4024_v24 = vadd.f32 %v6834_v35, %v3766_v54  ;;  %v1971_v31 = vmax.f32 %v1715_v19, 0.0  ;;  %v5230_v9 = vld [vmem:[%s5391_s11 + $0x6e0] sm:$0xff] }
 0x4fd   : > { %v3504_v59 = vmax.f32 %v3248_v32, 0.0  ;;  %v2275_v47 = vmul.f32 %v5230_v9, %v8531_v25  ;;  %v2274_v32 = vmul.f32 %v5231_v36, %v8531_v25  ;;  %v9909_v36 = vld [vmem:[#allocation144_spill] sm:$0xff] }
 0x4fe   : > { %v4280_v60 = vmul.f32 %v6848_v16, %v3506_v52  ;;  %v4279_v13 = vmul.f32 %v6848_v16, %v3505_v37  ;;  %2954 = vadd.xlane.f32.xlu2 %v2953_v48  ;;  %2951 = vadd.xlane.f32.xlu1 %v2950_v15  ;;  %v5232_v52 = vld [vmem:[%s5391_s11 + $0x6d0] sm:$0xff] }
 0x4ff   : > { %v4278_v42 = vmul.f32 %v6848_v16, %v3504_v59  ;;  %2948 = vadd.xlane.f32.xlu0 %v2947_v46  ;;  %v2273_v37 = vmul.f32 %v5232_v52, %v8531_v25  ;;  %v9904_v46 = vld [vmem:[#allocation141_spill] sm:$0xff]  ;;  %v1719_v59 = vadd.f32 %v6803_v43, %v9905_v45  ;;  %v2968_v17 = vsel %vm770_vm0, %v2274_v32, 0.0 }
 0x500   : > { %v4536_v40 = vadd.f32 %v4280_v60, %v4022_v11  ;;  %v4535_v27 = vadd.f32 %v4279_v13, %v4021_v41  ;;  %v1717_v33 = vadd.f32 %v6803_v43, %v9904_v46  ;;  %v3770_v11 = vmul.f32 %v6824_v7, %v1972_v23 }
 0x501   : > { %v4534_v53 = vadd.f32 %v4278_v42, %v4020_v49  ;;  %v2829_v51 = vpop.xlane.xlu2 %2828  ;;  %v2826_v18 = vpop.xlane.xlu1 %2825  ;;  %v3769_v13 = vmul.f32 %v6824_v7, %v1971_v31  ;;  %v9906_v49 = vld [vmem:[#allocation146_spill] sm:$0xff]  ;;  %v2965_v50 = vsel %vm770_vm0, %v2273_v37, 0.0  ;;  %v1720_v32 = vadd.f32 %v6803_v43, %v9909_v36 }
 0x502   : > { %4793 = vst.msk [vmem:[%s6862_s25 + $0x548] sm:$0xff] %vm4623_vm1, %v4536_v40  ;;  %v3253_v55 = vadd.f32 %v6826_v44, %v2829_v51  ;;  %v3252_v61 = vadd.f32 %v6826_v44, %v2826_v18  ;;  %v2823_v26 = vpop.xlane.xlu0 %2822  ;;  %v1718_v42 = vadd.f32 %v6803_v43, %v9906_v49  ;;  %v1973_v6 = vmax.f32 %v1717_v33, 0.0 }
 0x503   : > { %4792 = vst.msk [vmem:[%s6862_s25 + $0x540] sm:$0xff] %vm4623_vm1, %v4535_v27  ;;  %v3251_v30 = vadd.f32 %v6826_v44, %v2823_v26  ;;  %v2971_v27 = vsel %vm770_vm0, %v2275_v47, 0.0  ;;  %v4028_v39 = vadd.f32 %v6834_v35, %v3770_v11  ;;  %v4027_v18 = vadd.f32 %v6834_v35, %v3769_v13  ;;  %v5233_v26 = vld [vmem:[%s5391_s11 + $0x6f8] sm:$0xff] }
 0x504   : > { %4791 = vst.msk [vmem:[%s6862_s25 + $0x538] sm:$0xff] %vm4623_vm1, %v4534_v53  ;;  %v3509_v2 = vmax.f32 %v3253_v55, 0.0  ;;  %v3508_v5 = vmax.f32 %v3252_v61, 0.0  ;;  %v1975_v53 = vmax.f32 %v1719_v59, 0.0  ;;  %v1974_v54 = vmax.f32 %v1718_v42, 0.0 }
 0x505   : > { %v3507_v8 = vmax.f32 %v3251_v30, 0.0  ;;  %v4026_v55 = vadd.f32 %v6834_v35, %v3768_v10  ;;  %v2278_v57 = vmul.f32 %v5233_v26, %v8531_v25  ;;  %v2277_v30 = vmul.f32 %v5234_v20, %v8531_v25  ;;  %v5237_v10 = vld [vmem:[%s5391_s11 + $0x708] sm:$0xff] }
 0x506   : > { %v4283_v14 = vmul.f32 %v6848_v16, %v3509_v2  ;;  %v4282_v62 = vmul.f32 %v6848_v16, %v3508_v5  ;;  %2963 = vadd.xlane.f32.xlu2 %v2962_v12  ;;  %2960 = vadd.xlane.f32.xlu1 %v2959_v21  ;;  %v5235_v2 = vld [vmem:[%s5391_s11 + $0x6e8] sm:$0xff]  ;;  %v1976_v42 = vmax.f32 %v1720_v32, 0.0  ;;  %v5240_v32 = vld [vmem:[%s5391_s11 + $0x720] sm:$0xff] }
 0x507   : > { %v4281_v58 = vmul.f32 %v6848_v16, %v3507_v8  ;;  %2957 = vadd.xlane.f32.xlu0 %v2956_v29  ;;  %v2276_v5 = vmul.f32 %v5235_v2, %v8531_v25  ;;  %v3771_v29 = vmul.f32 %v6824_v7, %v1973_v6  ;;  %v2977_v52 = vsel %vm770_vm0, %v2277_v30, 0.0 }
 0x508   : > { %v4539_v48 = vadd.f32 %v4283_v14, %v4025_v3  ;;  %v4538_v15 = vadd.f32 %v4282_v62, %v4024_v24  ;;  %v9907_v3 = vld [vmem:[#allocation148_spill] sm:$0xff]  ;;  %v3772_v14 = vmul.f32 %v6824_v7, %v1974_v54  ;;  %v9908_v62 = vld [vmem:[#allocation149_spill] sm:$0xff]  ;;  %v3774_v30 = vmul.f32 %v6824_v7, %v1976_v42 }
 0x509   : > { %v4537_v41 = vadd.f32 %v4281_v58, %v4023_v1  ;;  %v2838_v4 = vpop.xlane.xlu2 %2837  ;;  %v2835_v60 = vpop.xlane.xlu1 %2834  ;;  %v3773_v1 = vmul.f32 %v6824_v7, %v1975_v53  ;;  %v1722_v23 = vadd.f32 %v6803_v43, %v9907_v3  ;;  %v1721_v63 = vadd.f32 %v6803_v43, %v9908_v62  ;;  %v9911_v53 = vld [vmem:[#allocation151_spill] sm:$0xff] }
 0x50a   : > { %4796 = vst.msk [vmem:[%s6862_s25 + $0x560] sm:$0xff] %vm4623_vm1, %v4539_v48  ;;  %v3256_v34 = vadd.f32 %v6826_v44, %v2838_v4  ;;  %v3255_v28 = vadd.f32 %v6826_v44, %v2835_v60  ;;  %v2832_v56 = vpop.xlane.xlu0 %2831  ;;  %v2974_v33 = vsel %vm770_vm0, %v2276_v5, 0.0  ;;  %v4029_v11 = vadd.f32 %v6834_v35, %v3771_v29 }
 0x50b   : > { %4795 = vst.msk [vmem:[%s6862_s25 + $0x558] sm:$0xff] %vm4623_vm1, %v4538_v15  ;;  %v3254_v40 = vadd.f32 %v6826_v44, %v2832_v56  ;;  %v2980_v15 = vsel %vm770_vm0, %v2278_v57, 0.0  ;;  %v4031_v45 = vadd.f32 %v6834_v35, %v3773_v1  ;;  %v1978_v59 = vmax.f32 %v1722_v23, 0.0 }
 0x50c   : > { %4794 = vst.msk [vmem:[%s6862_s25 + $0x550] sm:$0xff] %vm4623_vm1, %v4537_v41  ;;  %v3512_v22 = vmax.f32 %v3256_v34, 0.0  ;;  %v3511_v38 = vmax.f32 %v3255_v28, 0.0  ;;  %v4030_v4 = vadd.f32 %v6834_v35, %v3772_v14  ;;  %v1977_v60 = vmax.f32 %v1721_v63, 0.0  ;;  %v5236_v28 = vld [vmem:[%s5391_s11 + $0x710] sm:$0xff] }
 0x50d   : > { %v3510_v51 = vmax.f32 %v3254_v40, 0.0  ;;  %v2281_v56 = vmul.f32 %v5236_v28, %v8531_v25  ;;  %v2280_v40 = vmul.f32 %v5237_v10, %v8531_v25  ;;  %v9915_v10 = vld [vmem:[#allocation150_spill] sm:$0xff] }
 0x50e   : > { %v4286_v0 = vmul.f32 %v6848_v16, %v3512_v22  ;;  %v4285_v19 = vmul.f32 %v6848_v16, %v3511_v38  ;;  %2972 = vadd.xlane.f32.xlu2 %v2971_v27  ;;  %2969 = vadd.xlane.f32.xlu1 %v2968_v17  ;;  %v5238_v22 = vld [vmem:[%s5391_s11 + $0x700] sm:$0xff] }
 0x50f   : > { %v4284_v61 = vmul.f32 %v6848_v16, %v3510_v51  ;;  %2966 = vadd.xlane.f32.xlu0 %v2965_v50  ;;  %v2279_v38 = vmul.f32 %v5238_v22, %v8531_v25  ;;  %v9910_v50 = vld [vmem:[#allocation147_spill] sm:$0xff]  ;;  %v1725_v51 = vadd.f32 %v6803_v43, %v9911_v53  ;;  %v2986_v2 = vsel %vm770_vm0, %v2280_v40, 0.0 }
 0x510   : > { %v4542_v12 = vadd.f32 %v4286_v0, %v4028_v39  ;;  %v4541_v21 = vadd.f32 %v4285_v19, %v4027_v18  ;;  %v1723_v6 = vadd.f32 %v6803_v43, %v9910_v50  ;;  %v3776_v39 = vmul.f32 %v6824_v7, %v1978_v59 }
 0x511   : > { %v4540_v8 = vadd.f32 %v4284_v61, %v4026_v55  ;;  %v2847_v24 = vpop.xlane.xlu2 %2846  ;;  %v2844_v31 = vpop.xlane.xlu1 %2843  ;;  %v3775_v19 = vmul.f32 %v6824_v7, %v1977_v60  ;;  %v9912_v55 = vld [vmem:[#allocation152_spill] sm:$0xff]  ;;  %v2983_v1 = vsel %vm770_vm0, %v2279_v38, 0.0  ;;  %v1726_v40 = vadd.f32 %v6803_v43, %v9915_v10 }
 0x512   : > { %4799 = vst.msk [vmem:[%s6862_s25 + $0x578] sm:$0xff] %vm4623_vm1, %v4542_v12  ;;  %v3259_v58 = vadd.f32 %v6826_v44, %v2847_v24  ;;  %v3258_v9 = vadd.f32 %v6826_v44, %v2844_v31  ;;  %v2841_v47 = vpop.xlane.xlu0 %2840  ;;  %v1724_v61 = vadd.f32 %v6803_v43, %v9912_v55  ;;  %v1979_v3 = vmax.f32 %v1723_v6, 0.0 }
 0x513   : > { %4798 = vst.msk [vmem:[%s6862_s25 + $0x570] sm:$0xff] %vm4623_vm1, %v4541_v21  ;;  %v3257_v48 = vadd.f32 %v6826_v44, %v2841_v47  ;;  %v2989_v21 = vsel %vm770_vm0, %v2281_v56, 0.0  ;;  %v4034_v23 = vadd.f32 %v6834_v35, %v3776_v39  ;;  %v4033_v31 = vadd.f32 %v6834_v35, %v3775_v19  ;;  %v5239_v47 = vld [vmem:[%s5391_s11 + $0x728] sm:$0xff] }
 0x514   : > { %4797 = vst.msk [vmem:[%s6862_s25 + $0x568] sm:$0xff] %vm4623_vm1, %v4540_v8  ;;  %v3515_v37 = vmax.f32 %v3259_v58, 0.0  ;;  %v3514_v46 = vmax.f32 %v3258_v9, 0.0  ;;  %v1981_v8 = vmax.f32 %v1725_v51, 0.0  ;;  %v1980_v14 = vmax.f32 %v1724_v61, 0.0 }
 0x515   : > { %v3513_v41 = vmax.f32 %v3257_v48, 0.0  ;;  %v4032_v58 = vadd.f32 %v6834_v35, %v3774_v30  ;;  %v2284_v36 = vmul.f32 %v5239_v47, %v8531_v25  ;;  %v2283_v48 = vmul.f32 %v5240_v32, %v8531_v25  ;;  %v5243_v30 = vld [vmem:[%s5391_s11 + $0x738] sm:$0xff] }
 0x516   : > { %v4289_v13 = vmul.f32 %v6848_v16, %v3515_v37  ;;  %v4288_v49 = vmul.f32 %v6848_v16, %v3514_v46  ;;  %2981 = vadd.xlane.f32.xlu2 %v2980_v15  ;;  %2978 = vadd.xlane.f32.xlu1 %v2977_v52  ;;  %v5241_v37 = vld [vmem:[%s5391_s11 + $0x718] sm:$0xff]  ;;  %v1982_v61 = vmax.f32 %v1726_v40, 0.0  ;;  %v5246_v40 = vld [vmem:[%s5391_s11 + $0x750] sm:$0xff] }
 0x517   : > { %v4287_v34 = vmul.f32 %v6848_v16, %v3513_v41  ;;  %2975 = vadd.xlane.f32.xlu0 %v2974_v33  ;;  %v2282_v46 = vmul.f32 %v5241_v37, %v8531_v25  ;;  %v3777_v33 = vmul.f32 %v6824_v7, %v1979_v3  ;;  %v2995_v22 = vsel %vm770_vm0, %v2283_v48, 0.0 }
 0x518   : > { %v4545_v27 = vadd.f32 %v4289_v13, %v4031_v45  ;;  %v4544_v17 = vadd.f32 %v4288_v49, %v4030_v4  ;;  %v9913_v45 = vld [vmem:[#allocation154_spill] sm:$0xff]  ;;  %v3778_v13 = vmul.f32 %v6824_v7, %v1980_v14  ;;  %v9914_v49 = vld [vmem:[#allocation155_spill] sm:$0xff]  ;;  %v3780_v48 = vmul.f32 %v6824_v7, %v1982_v61 }
 0x519   : > { %v4543_v18 = vadd.f32 %v4287_v34, %v4029_v11  ;;  %v2856_v54 = vpop.xlane.xlu2 %2855  ;;  %v2853_v0 = vpop.xlane.xlu1 %2852  ;;  %v3779_v11 = vmul.f32 %v6824_v7, %v1981_v8  ;;  %v1728_v59 = vadd.f32 %v6803_v43, %v9913_v45  ;;  %v1727_v42 = vadd.f32 %v6803_v43, %v9914_v49  ;;  %v9917_v8 = vld [vmem:[#allocation157_spill] sm:$0xff] }
 0x51a   : > { %4802 = vst.msk [vmem:[%s6862_s25 + $0x590] sm:$0xff] %vm4623_vm1, %v4545_v27  ;;  %v3262_v26 = vadd.f32 %v6826_v44, %v2856_v54  ;;  %v3261_v57 = vadd.f32 %v6826_v44, %v2853_v0  ;;  %v2850_v20 = vpop.xlane.xlu0 %2849  ;;  %v2992_v6 = vsel %vm770_vm0, %v2282_v46, 0.0  ;;  %v4035_v39 = vadd.f32 %v6834_v35, %v3777_v33 }
 0x51b   : > { %4801 = vst.msk [vmem:[%s6862_s25 + $0x588] sm:$0xff] %vm4623_vm1, %v4544_v17  ;;  %v3260_v12 = vadd.f32 %v6826_v44, %v2850_v20  ;;  %v2998_v17 = vsel %vm770_vm0, %v2284_v36, 0.0  ;;  %v4037_v53 = vadd.f32 %v6834_v35, %v3779_v11  ;;  %v1984_v51 = vmax.f32 %v1728_v59, 0.0 }
 0x51c   : > { %4800 = vst.msk [vmem:[%s6862_s25 + $0x580] sm:$0xff] %vm4623_vm1, %v4543_v18  ;;  %v3518_v5 = vmax.f32 %v3262_v26, 0.0  ;;  %v3517_v29 = vmax.f32 %v3261_v57, 0.0  ;;  %v4036_v54 = vadd.f32 %v6834_v35, %v3778_v13  ;;  %v1983_v0 = vmax.f32 %v1727_v42, 0.0  ;;  %v5242_v57 = vld [vmem:[%s5391_s11 + $0x740] sm:$0xff] }
 0x51d   : > { %v3516_v24 = vmax.f32 %v3260_v12, 0.0  ;;  %v2287_v20 = vmul.f32 %v5242_v57, %v8531_v25  ;;  %v2286_v12 = vmul.f32 %v5243_v30, %v8531_v25  ;;  %v9921_v30 = vld [vmem:[#allocation156_spill] sm:$0xff] }
 0x51e   : > { %v4292_v62 = vmul.f32 %v6848_v16, %v3518_v5  ;;  %v4291_v63 = vmul.f32 %v6848_v16, %v3517_v29  ;;  %2990 = vadd.xlane.f32.xlu2 %v2989_v21  ;;  %2987 = vadd.xlane.f32.xlu1 %v2986_v2  ;;  %v5244_v5 = vld [vmem:[%s5391_s11 + $0x730] sm:$0xff] }
 0x51f   : > { %v4290_v9 = vmul.f32 %v6848_v16, %v3516_v24  ;;  %2984 = vadd.xlane.f32.xlu0 %v2983_v1  ;;  %v2285_v29 = vmul.f32 %v5244_v5, %v8531_v25  ;;  %v9916_v1 = vld [vmem:[#allocation153_spill] sm:$0xff]  ;;  %v1731_v24 = vadd.f32 %v6803_v43, %v9917_v8  ;;  %v3004_v37 = vsel %vm770_vm0, %v2286_v12, 0.0 }
 0x520   : > { %v4548_v15 = vadd.f32 %v4292_v62, %v4034_v23  ;;  %v4547_v52 = vadd.f32 %v4291_v63, %v4033_v31  ;;  %v1729_v3 = vadd.f32 %v6803_v43, %v9916_v1  ;;  %v3782_v23 = vmul.f32 %v6824_v7, %v1984_v51 }
 0x521   : > { %v4546_v41 = vadd.f32 %v4290_v9, %v4032_v58  ;;  %v2865_v4 = vpop.xlane.xlu2 %2864  ;;  %v2862_v60 = vpop.xlane.xlu1 %2861  ;;  %v3781_v63 = vmul.f32 %v6824_v7, %v1983_v0  ;;  %v9918_v58 = vld [vmem:[#allocation158_spill] sm:$0xff]  ;;  %v3001_v11 = vsel %vm770_vm0, %v2285_v29, 0.0  ;;  %v1732_v12 = vadd.f32 %v6803_v43, %v9921_v30 }
 0x522   : > { %4805 = vst.msk [vmem:[%s6862_s25 + $0x5a8] sm:$0xff] %vm4623_vm1, %v4548_v15  ;;  %v3265_v34 = vadd.f32 %v6826_v44, %v2865_v4  ;;  %v3264_v28 = vadd.f32 %v6826_v44, %v2862_v60  ;;  %v2859_v56 = vpop.xlane.xlu0 %2858  ;;  %v1730_v9 = vadd.f32 %v6803_v43, %v9918_v58  ;;  %v1985_v45 = vmax.f32 %v1729_v3, 0.0 }
 0x523   : > { %4804 = vst.msk [vmem:[%s6862_s25 + $0x5a0] sm:$0xff] %vm4623_vm1, %v4547_v52  ;;  %v3263_v27 = vadd.f32 %v6826_v44, %v2859_v56  ;;  %v3007_v52 = vsel %vm770_vm0, %v2287_v20, 0.0  ;;  %v4040_v59 = vadd.f32 %v6834_v35, %v3782_v23  ;;  %v4039_v60 = vadd.f32 %v6834_v35, %v3781_v63  ;;  %v5245_v56 = vld [vmem:[%s5391_s11 + $0x758] sm:$0xff] }
 0x524   : > { %4803 = vst.msk [vmem:[%s6862_s25 + $0x598] sm:$0xff] %vm4623_vm1, %v4546_v41  ;;  %v3521_v38 = vmax.f32 %v3265_v34, 0.0  ;;  %v3520_v50 = vmax.f32 %v3264_v28, 0.0  ;;  %v1987_v41 = vmax.f32 %v1731_v24, 0.0  ;;  %v1986_v13 = vmax.f32 %v1730_v9, 0.0 }
 0x525   : > { %v3519_v18 = vmax.f32 %v3263_v27, 0.0  ;;  %v4038_v34 = vadd.f32 %v6834_v35, %v3780_v48  ;;  %v2290_v10 = vmul.f32 %v5245_v56, %v8531_v25  ;;  %v2289_v27 = vmul.f32 %v5246_v40, %v8531_v25  ;;  %v5249_v48 = vld [vmem:[%s5391_s11 + $0x768] sm:$0xff] }
 0x526   : > { %v4295_v19 = vmul.f32 %v6848_v16, %v3521_v38  ;;  %v4294_v55 = vmul.f32 %v6848_v16, %v3520_v50  ;;  %2999 = vadd.xlane.f32.xlu2 %v2998_v17  ;;  %2996 = vadd.xlane.f32.xlu1 %v2995_v22  ;;  %v5247_v38 = vld [vmem:[%s5391_s11 + $0x748] sm:$0xff]  ;;  %v1988_v9 = vmax.f32 %v1732_v12, 0.0  ;;  %v5253_v12 = vld [vmem:[%s5391_s11 + $0x780] sm:$0xff] }
 0x527   : > { %v4293_v26 = vmul.f32 %v6848_v16, %v3519_v18  ;;  %2993 = vadd.xlane.f32.xlu0 %v2992_v6  ;;  %v2288_v50 = vmul.f32 %v5247_v38, %v8531_v25  ;;  %v3783_v6 = vmul.f32 %v6824_v7, %v1985_v45  ;;  %v3013_v5 = vsel %vm770_vm0, %v2289_v27, 0.0 }
 0x528   : > { %v4551_v21 = vadd.f32 %v4295_v19, %v4037_v53  ;;  %v4550_v2 = vadd.f32 %v4294_v55, %v4036_v54  ;;  %v9919_v53 = vld [vmem:[#allocation160_spill] sm:$0xff]  ;;  %v3784_v19 = vmul.f32 %v6824_v7, %v1986_v13  ;;  %v9920_v55 = vld [vmem:[#allocation161_spill] sm:$0xff]  ;;  %v3786_v40 = vmul.f32 %v6824_v7, %v1988_v9 }
 0x529   : > { %v4549_v31 = vadd.f32 %v4293_v26, %v4035_v39  ;;  %v2874_v14 = vpop.xlane.xlu2 %2873  ;;  %v2871_v62 = vpop.xlane.xlu1 %2870  ;;  %v3785_v39 = vmul.f32 %v6824_v7, %v1987_v41  ;;  %v1734_v51 = vadd.f32 %v6803_v43, %v9919_v53  ;;  %v1733_v61 = vadd.f32 %v6803_v43, %v9920_v55  ;;  %v9923_v41 = vld [vmem:[#allocation163_spill] sm:$0xff] }
 0x52a   : > { %4808 = vst.msk [vmem:[%s6862_s25 + $0x5c0] sm:$0xff] %vm4623_vm1, %v4551_v21  ;;  %v3268_v47 = vadd.f32 %v6826_v44, %v2874_v14  ;;  %v3267_v36 = vadd.f32 %v6826_v44, %v2871_v62  ;;  %v2868_v32 = vpop.xlane.xlu0 %2867  ;;  %v3010_v3 = vsel %vm770_vm0, %v2288_v50, 0.0  ;;  %v4041_v23 = vadd.f32 %v6834_v35, %v3783_v6 }
 0x52b   : > { %4807 = vst.msk [vmem:[%s6862_s25 + $0x5b8] sm:$0xff] %vm4623_vm1, %v4550_v2  ;;  %v3266_v15 = vadd.f32 %v6826_v44, %v2868_v32  ;;  %v3016_v2 = vsel %vm770_vm0, %v2290_v10, 0.0  ;;  %v4043_v8 = vadd.f32 %v6834_v35, %v3785_v39  ;;  %v1990_v24 = vmax.f32 %v1734_v51, 0.0 }
 0x52c   : > { %4806 = vst.msk [vmem:[%s6862_s25 + $0x5b0] sm:$0xff] %vm4623_vm1, %v4549_v31  ;;  %v3524_v46 = vmax.f32 %v3268_v47, 0.0  ;;  %v3523_v33 = vmax.f32 %v3267_v36, 0.0  ;;  %v4042_v14 = vadd.f32 %v6834_v35, %v3784_v19  ;;  %v1989_v62 = vmax.f32 %v1733_v61, 0.0  ;;  %v5248_v36 = vld [vmem:[%s5391_s11 + $0x770] sm:$0xff] }
 0x52d   : > { %v3522_v4 = vmax.f32 %v3266_v15, 0.0  ;;  %v2293_v32 = vmul.f32 %v5248_v36, %v8531_v25  ;;  %v2292_v15 = vmul.f32 %v5249_v48, %v8531_v25  ;;  %v4044_v61 = vadd.f32 %v6834_v35, %v3786_v40  ;;  %v9927_v48 = vld [vmem:[#allocation162_spill] sm:$0xff]  ;;  %v5256_v40 = vld [vmem:[%s5391_s11 + $0x798] sm:$0xff] }
 0x52e   : > { %v4298_v49 = vmul.f32 %v6848_v16, %v3524_v46  ;;  %v4297_v42 = vmul.f32 %v6848_v16, %v3523_v33  ;;  %3008 = vadd.xlane.f32.xlu2 %v3007_v52  ;;  %3005 = vadd.xlane.f32.xlu1 %v3004_v37  ;;  %v5250_v46 = vld [vmem:[%s5391_s11 + $0x760] sm:$0xff] }
 0x52f   : > { %v4296_v28 = vmul.f32 %v6848_v16, %v3522_v4  ;;  %3002 = vadd.xlane.f32.xlu0 %v3001_v11  ;;  %v2291_v33 = vmul.f32 %v5250_v46, %v8531_v25  ;;  %v9922_v11 = vld [vmem:[#allocation159_spill] sm:$0xff]  ;;  %v1737_v4 = vadd.f32 %v6803_v43, %v9923_v41 }
 0x530   : > { %v4554_v17 = vadd.f32 %v4298_v49, %v4040_v59  ;;  %v4553_v22 = vadd.f32 %v4297_v42, %v4039_v60  ;;  %v1735_v45 = vadd.f32 %v6803_v43, %v9922_v11  ;;  %v3788_v59 = vmul.f32 %v6824_v7, %v1990_v24 }
 0x531   : > { %v4552_v18 = vadd.f32 %v4296_v28, %v4038_v34  ;;  %v2883_v54 = vpop.xlane.xlu2 %2882  ;;  %v2880_v0 = vpop.xlane.xlu1 %2879  ;;  %v3787_v42 = vmul.f32 %v6824_v7, %v1989_v62  ;;  %v9924_v34 = vld [vmem:[#allocation164_spill] sm:$0xff]  ;;  %v3019_v6 = vsel %vm770_vm0, %v2291_v33, 0.0  ;;  %v1993_v51 = vmax.f32 %v1737_v4, 0.0 }
 0x532   : > { %4811 = vst.msk [vmem:[%s6862_s25 + $0x5d8] sm:$0xff] %vm4623_vm1, %v4554_v17  ;;  %v3271_v26 = vadd.f32 %v6826_v44, %v2883_v54  ;;  %v3270_v57 = vadd.f32 %v6826_v44, %v2880_v0  ;;  %v2877_v20 = vpop.xlane.xlu0 %2876  ;;  %v1736_v28 = vadd.f32 %v6803_v43, %v9924_v34  ;;  %v3025_v17 = vsel %vm770_vm0, %v2293_v32, 0.0 }
 0x533   : > { %4810 = vst.msk [vmem:[%s6862_s25 + $0x5d0] sm:$0xff] %vm4623_vm1, %v4553_v22  ;;  %v3269_v21 = vadd.f32 %v6826_v44, %v2877_v20  ;;  %v3022_v22 = vsel %vm770_vm0, %v2292_v15, 0.0  ;;  %v1991_v39 = vmax.f32 %v1735_v45, 0.0  ;;  %v4046_v53 = vadd.f32 %v6834_v35, %v3788_v59  ;;  %v8998_v20 = vld [vmem:[%s9550_s1 + $0x1] ss:$0 sm:$0xff] }
 0x534   : > { %4809 = vst.msk [vmem:[%s6862_s25 + $0x5c8] sm:$0xff] %vm4623_vm1, %v4552_v18  ;;  %v3527_v29 = vmax.f32 %v3271_v26, 0.0  ;;  %v3526_v1 = vmax.f32 %v3270_v57, 0.0  ;;  %v4045_v54 = vadd.f32 %v6834_v35, %v3787_v42  ;;  %v1992_v0 = vmax.f32 %v1736_v28, 0.0  ;;  %v5251_v57 = vld [vmem:[%s5391_s11 + $0x788] sm:$0xff] }
 0x535   : > { %v3525_v31 = vmax.f32 %v3269_v21, 0.0  ;;  %v2296_v30 = vmul.f32 %v8998_v20, %v5251_v57  ;;  %v2295_v21 = vmul.f32 %v5253_v12, %v8998_v20  ;;  %v1738_v15 = vadd.f32 %v6803_v43, %v9927_v48 }
 0x536   : > { %v4301_v63 = vmul.f32 %v6848_v16, %v3527_v29  ;;  %v4300_v58 = vmul.f32 %v6848_v16, %v3526_v1  ;;  %3017 = vadd.xlane.f32.xlu2 %v3016_v2  ;;  %3014 = vadd.xlane.f32.xlu1 %v3013_v5  ;;  %v5254_v29 = vld [vmem:[%s5391_s11 + $0x778] sm:$0xff] }
 0x537   : > { %v4299_v47 = vmul.f32 %v6848_v16, %v3525_v31  ;;  %3011 = vadd.xlane.f32.xlu0 %v3010_v3  ;;  %v2294_v1 = vmul.f32 %v5254_v29, %v8998_v20  ;;  %v3789_v3 = vmul.f32 %v6824_v7, %v1991_v39  ;;  %v3031_v46 = vsel %vm770_vm0, %v2295_v21, 0.0 }
 0x538   : > { %v4557_v52 = vadd.f32 %v4301_v63, %v4043_v8  ;;  %v4556_v37 = vadd.f32 %v4300_v58, %v4042_v14  ;;  %v9925_v8 = vld [vmem:[#allocation166_spill] sm:$0xff]  ;;  %v3790_v63 = vmul.f32 %v6824_v7, %v1992_v0  ;;  %v9926_v58 = vld [vmem:[#allocation167_spill] sm:$0xff]  ;;  %v1994_v28 = vmax.f32 %v1738_v15, 0.0 }
 0x539   : > { %v4555_v60 = vadd.f32 %v4299_v47, %v4041_v23  ;;  %v2892_v13 = vpop.xlane.xlu2 %2891  ;;  %v2889_v49 = vpop.xlane.xlu1 %2888  ;;  %v3791_v23 = vmul.f32 %v6824_v7, %v1993_v51  ;;  %v1740_v24 = vadd.f32 %v6803_v43, %v9925_v8  ;;  %v1739_v9 = vadd.f32 %v6803_v43, %v9926_v58  ;;  %v9929_v51 = vld [vmem:[#allocation169_spill] sm:$0xff]  ;;  %v5259_v15 = vld [vmem:[%s5391_s11 + $0x7b0] sm:$0xff] }
 0x53a   : > { %4814 = vst.msk [vmem:[%s6862_s25 + $0x5f0] sm:$0xff] %vm4623_vm1, %v4557_v52  ;;  %v3274_v25 = vadd.f32 %v6826_v44, %v2892_v13  ;;  %v3273_v56 = vadd.f32 %v6826_v44, %v2889_v49  ;;  %v2886_v10 = vpop.xlane.xlu0 %2885  ;;  %v3028_v45 = vsel %vm770_vm0, %v2294_v1, 0.0  ;;  %v4047_v59 = vadd.f32 %v6834_v35, %v3789_v3 }
 0x53b   : > { %4813 = vst.msk [vmem:[%s6862_s25 + $0x5e8] sm:$0xff] %vm4623_vm1, %v4556_v37  ;;  %v3272_v27 = vadd.f32 %v6826_v44, %v2886_v10  ;;  %v3034_v37 = vsel %vm770_vm0, %v2296_v30, 0.0  ;;  %v4049_v41 = vadd.f32 %v6834_v35, %v3791_v23  ;;  %v1996_v4 = vmax.f32 %v1740_v24, 0.0 }
 0x53c   : > { %4812 = vst.msk [vmem:[%s6862_s25 + $0x5e0] sm:$0xff] %vm4623_vm1, %v4555_v60  ;;  %v3530_v38 = vmax.f32 %v3274_v25, 0.0  ;;  %v3529_v50 = vmax.f32 %v3273_v56, 0.0  ;;  %v4048_v13 = vadd.f32 %v6834_v35, %v3790_v63  ;;  %v1995_v49 = vmax.f32 %v1739_v9, 0.0  ;;  %v5255_v56 = vld [vmem:[%s5391_s11 + $0x7a0] sm:$0xff] }
 0x53d   : > { %v3528_v18 = vmax.f32 %v3272_v27, 0.0  ;;  %v2299_v10 = vmul.f32 %v5255_v56, %v8998_v20  ;;  %v2298_v27 = vmul.f32 %v5256_v40, %v8998_v20  ;;  %v3792_v21 = vmul.f32 %v6824_v7, %v1994_v28  ;;  %v9933_v40 = vld [vmem:[#allocation168_spill] sm:$0xff] }
 0x53e   : > { %v4304_v19 = vmul.f32 %v6848_v16, %v3530_v38  ;;  %v4303_v55 = vmul.f32 %v6848_v16, %v3529_v50  ;;  %3026 = vadd.xlane.f32.xlu2 %v3025_v17  ;;  %3023 = vadd.xlane.f32.xlu1 %v3022_v22  ;;  %v5257_v38 = vld [vmem:[%s5391_s11 + $0x790] sm:$0xff] }
 0x53f   : > { %v4302_v26 = vmul.f32 %v6848_v16, %v3528_v18  ;;  %3020 = vadd.xlane.f32.xlu0 %v3019_v6  ;;  %v2297_v50 = vmul.f32 %v5257_v38, %v8998_v20  ;;  %v9928_v6 = vld [vmem:[#allocation165_spill] sm:$0xff]  ;;  %v1743_v18 = vadd.f32 %v6803_v43, %v9929_v51  ;;  %v3040_v29 = vsel %vm770_vm0, %v2298_v27, 0.0 }
 0x540   : > { %v4560_v2 = vadd.f32 %v4304_v19, %v4046_v53  ;;  %v4559_v5 = vadd.f32 %v4303_v55, %v4045_v54  ;;  %v1741_v39 = vadd.f32 %v6803_v43, %v9928_v6  ;;  %v3794_v53 = vmul.f32 %v6824_v7, %v1996_v4 }
 0x541   : > { %v4558_v31 = vadd.f32 %v4302_v26, %v4044_v61  ;;  %v2901_v14 = vpop.xlane.xlu2 %2900  ;;  %v2898_v62 = vpop.xlane.xlu1 %2897  ;;  %v3793_v55 = vmul.f32 %v6824_v7, %v1995_v49  ;;  %v9930_v61 = vld [vmem:[#allocation170_spill] sm:$0xff]  ;;  %v3037_v23 = vsel %vm770_vm0, %v2297_v50, 0.0  ;;  %v1744_v27 = vadd.f32 %v6803_v43, %v9933_v40 }
 0x542   : > { %4817 = vst.msk [vmem:[%s6862_s25 + $0x608] sm:$0xff] %vm4623_vm1, %v4560_v2  ;;  %v3277_v47 = vadd.f32 %v6826_v44, %v2901_v14  ;;  %v3276_v36 = vadd.f32 %v6826_v44, %v2898_v62  ;;  %v2895_v32 = vpop.xlane.xlu0 %2894  ;;  %v1742_v26 = vadd.f32 %v6803_v43, %v9930_v61  ;;  %v1997_v8 = vmax.f32 %v1741_v39, 0.0 }
 0x543   : > { %4816 = vst.msk [vmem:[%s6862_s25 + $0x600] sm:$0xff] %vm4623_vm1, %v4559_v5  ;;  %v3275_v52 = vadd.f32 %v6826_v44, %v2895_v32  ;;  %v3043_v5 = vsel %vm770_vm0, %v2299_v10, 0.0  ;;  %v4052_v24 = vadd.f32 %v6834_v35, %v3794_v53  ;;  %v4051_v62 = vadd.f32 %v6834_v35, %v3793_v55  ;;  %v5258_v32 = vld [vmem:[%s5391_s11 + $0x7b8] sm:$0xff] }
 0x544   : > { %4815 = vst.msk [vmem:[%s6862_s25 + $0x5f8] sm:$0xff] %vm4623_vm1, %v4558_v31  ;;  %v3533_v33 = vmax.f32 %v3277_v47, 0.0  ;;  %v3532_v11 = vmax.f32 %v3276_v36, 0.0  ;;  %v1999_v31 = vmax.f32 %v1743_v18, 0.0  ;;  %v1998_v63 = vmax.f32 %v1742_v26, 0.0 }
 0x545   : > { %v3531_v60 = vmax.f32 %v3275_v52, 0.0  ;;  %v4050_v47 = vadd.f32 %v6834_v35, %v3792_v21  ;;  %v2302_v48 = vmul.f32 %v5258_v32, %v8998_v20  ;;  %v2301_v52 = vmul.f32 %v5259_v15, %v8998_v20  ;;  %v5262_v21 = vld [vmem:[%s5391_s11 + $0x7c8] sm:$0xff] }
 0x546   : > { %v4307_v42 = vmul.f32 %v6848_v16, %v3533_v33  ;;  %v4306_v34 = vmul.f32 %v6848_v16, %v3532_v11  ;;  %3035 = vadd.xlane.f32.xlu2 %v3034_v37  ;;  %3032 = vadd.xlane.f32.xlu1 %v3031_v46  ;;  %v5260_v33 = vld [vmem:[%s5391_s11 + $0x7a8] sm:$0xff]  ;;  %v2000_v26 = vmax.f32 %v1744_v27, 0.0  ;;  %v5265_v27 = vld [vmem:[%s5391_s11 + $0x7e0] sm:$0xff] }
 0x547   : > { %v4305_v25 = vmul.f32 %v6848_v16, %v3531_v60  ;;  %3029 = vadd.xlane.f32.xlu0 %v3028_v45  ;;  %v2300_v11 = vmul.f32 %v5260_v33, %v8998_v20  ;;  %v3795_v45 = vmul.f32 %v6824_v7, %v1997_v8  ;;  %v3049_v38 = vsel %vm770_vm0, %v2301_v52, 0.0 }
 0x548   : > { %v4563_v17 = vadd.f32 %v4307_v42, %v4049_v41  ;;  %v4562_v22 = vadd.f32 %v4306_v34, %v4048_v13  ;;  %v9931_v41 = vld [vmem:[#allocation172_spill] sm:$0xff]  ;;  %v3796_v42 = vmul.f32 %v6824_v7, %v1998_v63  ;;  %v9932_v34 = vld [vmem:[#allocation173_spill] sm:$0xff]  ;;  %v3798_v52 = vmul.f32 %v6824_v7, %v2000_v26 }
 0x549   : > { %v4561_v54 = vadd.f32 %v4305_v25, %v4047_v59  ;;  %v2910_v0 = vpop.xlane.xlu2 %2909  ;;  %v2907_v19 = vpop.xlane.xlu1 %2906  ;;  %v3797_v59 = vmul.f32 %v6824_v7, %v1999_v31  ;;  %v1746_v4 = vadd.f32 %v6803_v43, %v9931_v41  ;;  %v1745_v28 = vadd.f32 %v6803_v43, %v9932_v34  ;;  %v9935_v31 = vld [vmem:[#allocation175_spill] sm:$0xff] }
 0x54a   : > { %4820 = vst.msk [vmem:[%s6862_s25 + $0x620] sm:$0xff] %vm4623_vm1, %v4563_v17  ;;  %v3280_v57 = vadd.f32 %v6826_v44, %v2910_v0  ;;  %v3279_v30 = vadd.f32 %v6826_v44, %v2907_v19  ;;  %v2904_v12 = vpop.xlane.xlu0 %2903  ;;  %v3046_v39 = vsel %vm770_vm0, %v2300_v11, 0.0  ;;  %v4053_v53 = vadd.f32 %v6834_v35, %v3795_v45 }
 0x54b   : > { %4819 = vst.msk [vmem:[%s6862_s25 + $0x618] sm:$0xff] %vm4623_vm1, %v4562_v22  ;;  %v3278_v2 = vadd.f32 %v6826_v44, %v2904_v12  ;;  %v3052_v22 = vsel %vm770_vm0, %v2302_v48, 0.0  ;;  %v4055_v51 = vadd.f32 %v6834_v35, %v3797_v59  ;;  %v2002_v18 = vmax.f32 %v1746_v4, 0.0 }
 0x54c   : > { %4818 = vst.msk [vmem:[%s6862_s25 + $0x610] sm:$0xff] %vm4623_vm1, %v4561_v54  ;;  %v3536_v1 = vmax.f32 %v3280_v57, 0.0  ;;  %v3535_v3 = vmax.f32 %v3279_v30, 0.0  ;;  %v4054_v0 = vadd.f32 %v6834_v35, %v3796_v42  ;;  %v2001_v19 = vmax.f32 %v1745_v28, 0.0  ;;  %v5261_v30 = vld [vmem:[%s5391_s11 + $0x7d0] sm:$0xff] }
 0x54d   : > { %v3534_v14 = vmax.f32 %v3278_v2, 0.0  ;;  %v2305_v12 = vmul.f32 %v5261_v30, %v8998_v20  ;;  %v2304_v2 = vmul.f32 %v5262_v21, %v8998_v20  ;;  %v9939_v21 = vld [vmem:[#allocation174_spill] sm:$0xff] }
 0x54e   : > { %v4310_v58 = vmul.f32 %v6848_v16, %v3536_v1  ;;  %v4309_v9 = vmul.f32 %v6848_v16, %v3535_v3  ;;  %3044 = vadd.xlane.f32.xlu2 %v3043_v5  ;;  %3041 = vadd.xlane.f32.xlu1 %v3040_v29  ;;  %v5263_v1 = vld [vmem:[%s5391_s11 + $0x7c0] sm:$0xff] }
 0x54f   : > { %v4308_v36 = vmul.f32 %v6848_v16, %v3534_v14  ;;  %3038 = vadd.xlane.f32.xlu0 %v3037_v23  ;;  %v2303_v3 = vmul.f32 %v5263_v1, %v8998_v20  ;;  %v9934_v23 = vld [vmem:[#allocation171_spill] sm:$0xff]  ;;  %v1749_v14 = vadd.f32 %v6803_v43, %v9935_v31  ;;  %v3058_v33 = vsel %vm770_vm0, %v2304_v2, 0.0 }
 0x550   : > { %v4566_v37 = vadd.f32 %v4310_v58, %v4052_v24  ;;  %v4565_v46 = vadd.f32 %v4309_v9, %v4051_v62  ;;  %v1747_v8 = vadd.f32 %v6803_v43, %v9934_v23  ;;  %v3800_v24 = vmul.f32 %v6824_v7, %v2002_v18 }
 0x551   : > { %v4564_v60 = vadd.f32 %v4308_v36, %v4050_v47  ;;  %v2919_v13 = vpop.xlane.xlu2 %2918  ;;  %v2916_v49 = vpop.xlane.xlu1 %2915  ;;  %v3799_v9 = vmul.f32 %v6824_v7, %v2001_v19  ;;  %v9936_v47 = vld [vmem:[#allocation176_spill] sm:$0xff]  ;;  %v3055_v59 = vsel %vm770_vm0, %v2303_v3, 0.0  ;;  %v1750_v2 = vadd.f32 %v6803_v43, %v9939_v21 }
 0x552   : > { %4823 = vst.msk [vmem:[%s6862_s25 + $0x638] sm:$0xff] %vm4623_vm1, %v4566_v37  ;;  %v3283_v25 = vadd.f32 %v6826_v44, %v2919_v13  ;;  %v3282_v56 = vadd.f32 %v6826_v44, %v2916_v49  ;;  %v2913_v10 = vpop.xlane.xlu0 %2912  ;;  %v1748_v36 = vadd.f32 %v6803_v43, %v9936_v47  ;;  %v2003_v41 = vmax.f32 %v1747_v8, 0.0 }
 0x553   : > { %4822 = vst.msk [vmem:[%s6862_s25 + $0x630] sm:$0xff] %vm4623_vm1, %v4565_v46  ;;  %v3281_v17 = vadd.f32 %v6826_v44, %v2913_v10  ;;  %v3061_v46 = vsel %vm770_vm0, %v2305_v12, 0.0  ;;  %v4058_v4 = vadd.f32 %v6834_v35, %v3800_v24  ;;  %v4057_v49 = vadd.f32 %v6834_v35, %v3799_v9  ;;  %v5264_v10 = vld [vmem:[%s5391_s11 + $0x7e8] sm:$0xff] }
 0x554   : > { %4821 = vst.msk [vmem:[%s6862_s25 + $0x628] sm:$0xff] %vm4623_vm1, %v4564_v60  ;;  %v3539_v50 = vmax.f32 %v3283_v25, 0.0  ;;  %v3538_v6 = vmax.f32 %v3282_v56, 0.0  ;;  %v2005_v60 = vmax.f32 %v1749_v14, 0.0  ;;  %v2004_v42 = vmax.f32 %v1748_v36, 0.0 }
 0x555   : > { %v3537_v54 = vmax.f32 %v3281_v17, 0.0  ;;  %v4056_v25 = vadd.f32 %v6834_v35, %v3798_v52  ;;  %v2308_v40 = vmul.f32 %v5264_v10, %v8998_v20  ;;  %v2307_v17 = vmul.f32 %v5265_v27, %v8998_v20 }
 0x556   : > { %v4313_v55 = vmul.f32 %v6848_v16, %v3539_v50  ;;  %v4312_v61 = vmul.f32 %v6848_v16, %v3538_v6  ;;  %3053 = vadd.xlane.f32.xlu2 %v3052_v22  ;;  %3050 = vadd.xlane.f32.xlu1 %v3049_v38  ;;  %v5266_v50 = vld [vmem:[%s5391_s11 + $0x7d8] sm:$0xff]  ;;  %v2006_v36 = vmax.f32 %v1750_v2, 0.0 }
 0x557   : > { %v4311_v57 = vmul.f32 %v6848_v16, %v3537_v54  ;;  %3047 = vadd.xlane.f32.xlu0 %v3046_v39  ;;  %v2306_v6 = vmul.f32 %v5266_v50, %v8998_v20  ;;  %v3801_v39 = vmul.f32 %v6824_v7, %v2003_v41  ;;  %v3067_v1 = vsel %vm770_vm0, %v2307_v17, 0.0 }
 0x558   : > { %v4569_v5 = vadd.f32 %v4313_v55, %v4055_v51  ;;  %v4568_v29 = vadd.f32 %v4312_v61, %v4054_v0  ;;  %v9937_v51 = vld [vmem:[#allocation178_spill] sm:$0xff]  ;;  %v3802_v55 = vmul.f32 %v6824_v7, %v2004_v42  ;;  %v9938_v61 = vld [vmem:[#allocation179_spill] sm:$0xff] }
 0x559   : > { %v4567_v62 = vadd.f32 %v4311_v57, %v4053_v53  ;;  %v2928_v63 = vpop.xlane.xlu2 %2927  ;;  %v2925_v58 = vpop.xlane.xlu1 %2924  ;;  %v3803_v53 = vmul.f32 %v6824_v7, %v2005_v60  ;;  %v1752_v18 = vadd.f32 %v6803_v43, %v9937_v51  ;;  %v1751_v26 = vadd.f32 %v6803_v43, %v9938_v61 }
 0x55a   : > { %4826 = vst.msk [vmem:[%s6862_s25 + $0x650] sm:$0xff] %vm4623_vm1, %v4569_v5  ;;  %v3286_v32 = vadd.f32 %v6826_v44, %v2928_v63  ;;  %v3285_v48 = vadd.f32 %v6826_v44, %v2925_v58  ;;  %v2922_v15 = vpop.xlane.xlu0 %2921  ;;  %v3064_v8 = vsel %vm770_vm0, %v2306_v6, 0.0  ;;  %v4059_v47 = vadd.f32 %v6834_v35, %v3801_v39 }
 0x55b   : > { %4825 = vst.msk [vmem:[%s6862_s25 + $0x648] sm:$0xff] %vm4623_vm1, %v4568_v29  ;;  %v3284_v37 = vadd.f32 %v6826_v44, %v2922_v15  ;;  %v3070_v29 = vsel %vm770_vm0, %v2308_v40, 0.0  ;;  %v4061_v24 = vadd.f32 %v6834_v35, %v3803_v53  ;;  %v2008_v31 = vmax.f32 %v1752_v18, 0.0 }
 0x55c   : > { %4824 = vst.msk [vmem:[%s6862_s25 + $0x640] sm:$0xff] %vm4623_vm1, %v4567_v62  ;;  %v3542_v11 = vmax.f32 %v3286_v32, 0.0  ;;  %v3541_v45 = vmax.f32 %v3285_v48, 0.0  ;;  %v4060_v62 = vadd.f32 %v6834_v35, %v3802_v55  ;;  %v2007_v63 = vmax.f32 %v1751_v26, 0.0  ;;  %v5267_v48 = vld [vmem:[%s5391_s11 + $0x7f8] sm:$0xff] }
 0x55d   : > { %v3540_v13 = vmax.f32 %v3284_v37, 0.0  ;;  %v2310_v15 = vmul.f32 %v5267_v48, %v8998_v20 }
 0x55e   : > { %v4316_v34 = vmul.f32 %v6848_v16, %v3542_v11  ;;  %v4315_v28 = vmul.f32 %v6848_v16, %v3541_v45  ;;  %3062 = vadd.xlane.f32.xlu2 %v3061_v46  ;;  %3059 = vadd.xlane.f32.xlu1 %v3058_v33  ;;  %v5268_v46 = vld [vmem:[%s5391_s11 + $0x7f0] sm:$0xff]  ;;  %v3806_v11 = vmul.f32 %v6824_v7, %v2008_v31  ;;  %v9940_v45 = vld [vmem:[#allocation181_spill] sm:$0xff] }
 0x55f   : > { %v4314_v56 = vmul.f32 %v6848_v16, %v3540_v13  ;;  %3056 = vadd.xlane.f32.xlu0 %v3055_v59  ;;  %v2309_v33 = vmul.f32 %v5268_v46, %v8998_v20  ;;  %v1755_v59 = vadd.f32 %v6803_v43, %v9940_v45  ;;  %v3805_v13 = vmul.f32 %v6824_v7, %v2007_v63 }
 0x560   : > { %v4572_v22 = vadd.f32 %v4316_v34, %v4058_v4  ;;  %v4571_v38 = vadd.f32 %v4315_v28, %v4057_v49  ;;  %v9941_v49 = vld [vmem:[#allocation182_spill] sm:$0xff]  ;;  %v3076_v27 = vsel %vm770_vm0, %v2310_v15, 0.0  ;;  %v4064_v50 = vadd.f32 %v6834_v35, %v3806_v11 }
 0x561   : > { %v4570_v54 = vadd.f32 %v4314_v56, %v4056_v25  ;;  %v2937_v0 = vpop.xlane.xlu2 %2936  ;;  %v2934_v19 = vpop.xlane.xlu1 %2933  ;;  %v1754_v42 = vadd.f32 %v6803_v43, %v9941_v49  ;;  %v3804_v25 = vmul.f32 %v6824_v7, %v2006_v36  ;;  %v9942_v56 = vld [vmem:[#allocation177_spill] sm:$0xff]  ;;  %v2011_v6 = vmax.f32 %v1755_v59, 0.0 }
 0x562   : > { %4829 = vst.msk [vmem:[%s6862_s25 + $0x668] sm:$0xff] %vm4623_vm1, %v4572_v22  ;;  %v3289_v57 = vadd.f32 %v6826_v44, %v2937_v0  ;;  %v3288_v30 = vadd.f32 %v6826_v44, %v2934_v19  ;;  %v2931_v12 = vpop.xlane.xlu0 %2930  ;;  %v1753_v10 = vadd.f32 %v6803_v43, %v9942_v56  ;;  %v4063_v53 = vadd.f32 %v6834_v35, %v3805_v13 }
 0x563   : > { %4828 = vst.msk [vmem:[%s6862_s25 + $0x660] sm:$0xff] %vm4623_vm1, %v4571_v38  ;;  %v3287_v5 = vadd.f32 %v6826_v44, %v2931_v12  ;;  %v3073_v38 = vsel %vm770_vm0, %v2309_v33, 0.0  ;;  %v2010_v51 = vmax.f32 %v1754_v42, 0.0  ;;  %v4062_v0 = vadd.f32 %v6834_v35, %v3804_v25 }
 0x564   : > { %4827 = vst.msk [vmem:[%s6862_s25 + $0x658] sm:$0xff] %vm4623_vm1, %v4570_v54  ;;  %v3545_v3 = vmax.f32 %v3289_v57, 0.0  ;;  %v3544_v23 = vmax.f32 %v3288_v30, 0.0  ;;  %v2009_v19 = vmax.f32 %v1753_v10, 0.0  ;;  %v3809_v57 = vmul.f32 %v6824_v7, %v2011_v6  ;;  %v9943_v30 = vld [vmem:[#allocation184_spill] sm:$0xff] }
 0x565   : > { %v3543_v14 = vmax.f32 %v3287_v5, 0.0  ;;  %v1758_v12 = vadd.f32 %v6803_v43, %v9943_v30 }
 0x566   : > { %v4319_v58 = vmul.f32 %v6848_v16, %v3545_v3  ;;  %v4318_v9 = vmul.f32 %v6848_v16, %v3544_v23  ;;  %3071 = vadd.xlane.f32.xlu2 %v3070_v29  ;;  %3068 = vadd.xlane.f32.xlu1 %v3067_v1  ;;  %v3808_v29 = vmul.f32 %v6824_v7, %v2010_v51  ;;  %v9944_v1 = vld [vmem:[#allocation185_spill] sm:$0xff] }
 0x567   : > { %v4317_v32 = vmul.f32 %v6848_v16, %v3543_v14  ;;  %3065 = vadd.xlane.f32.xlu0 %v3064_v8  ;;  %v1757_v3 = vadd.f32 %v6803_v43, %v9944_v1  ;;  %v3807_v31 = vmul.f32 %v6824_v7, %v2009_v19  ;;  %v9945_v14 = vld [vmem:[#allocation180_spill] sm:$0xff]  ;;  %v2014_v36 = vmax.f32 %v1758_v12, 0.0  ;;  %v9949_v12 = vld [vmem:[#allocation190_spill] sm:$0xff] }
 0x568   : > { %v4575_v52 = vadd.f32 %v4319_v58, %v4061_v24  ;;  %v4574_v37 = vadd.f32 %v4318_v9, %v4060_v62  ;;  %v1756_v62 = vadd.f32 %v6803_v43, %v9945_v14  ;;  %v4066_v48 = vadd.f32 %v6834_v35, %v3808_v29 }
 0x569   : > { %v4573_v41 = vadd.f32 %v4317_v32, %v4059_v47  ;;  %v2946_v4 = vpop.xlane.xlu2 %2945  ;;  %v2943_v60 = vpop.xlane.xlu1 %2942  ;;  %v4067_v47 = vadd.f32 %v6834_v35, %v3809_v57  ;;  %v2013_v15 = vmax.f32 %v1757_v3, 0.0  ;;  %v4065_v46 = vadd.f32 %v6834_v35, %v3807_v31  ;;  %v9950_v3 = vld [vmem:[#allocation191_spill] sm:$0xff] }
 0x56a   : > { %4832 = vst.msk [vmem:[%s6862_s25 + $0x680] sm:$0xff] %vm4623_vm1, %v4575_v52  ;;  %v3292_v34 = vadd.f32 %v6826_v44, %v2946_v4  ;;  %v3291_v20 = vadd.f32 %v6826_v44, %v2943_v60  ;;  %v2940_v28 = vpop.xlane.xlu0 %2939  ;;  %v2012_v33 = vmax.f32 %v1756_v62, 0.0  ;;  %v9946_v4 = vld [vmem:[#allocation187_spill] sm:$0xff]  ;;  %v9951_v62 = vld [vmem:[#allocation186_spill] sm:$0xff] }
 0x56b   : > { %4831 = vst.msk [vmem:[%s6862_s25 + $0x678] sm:$0xff] %vm4623_vm1, %v4574_v37  ;;  %v3290_v40 = vadd.f32 %v6826_v44, %v2940_v28  ;;  %v1761_v60 = vadd.f32 %v6803_v43, %v9946_v4 }
 0x56c   : > { %4830 = vst.msk [vmem:[%s6862_s25 + $0x670] sm:$0xff] %vm4623_vm1, %v4573_v41  ;;  %v3548_v17 = vmax.f32 %v3292_v34, 0.0  ;;  %v3547_v22 = vmax.f32 %v3291_v20, 0.0  ;;  %v3812_v41 = vmul.f32 %v6824_v7, %v2014_v36  ;;  %v3811_v34 = vmul.f32 %v6824_v7, %v2013_v15  ;;  %v9947_v20 = vld [vmem:[#allocation188_spill] sm:$0xff] }
 0x56d   : > { %v3546_v39 = vmax.f32 %v3290_v40, 0.0  ;;  %v1760_v28 = vadd.f32 %v6803_v43, %v9947_v20  ;;  %v3810_v40 = vmul.f32 %v6824_v7, %v2012_v33 }
 0x56e   : > { %v4322_v18 = vmul.f32 %v6848_v16, %v3548_v17  ;;  %v4321_v54 = vmul.f32 %v6848_v16, %v3547_v22  ;;  %3077 = vadd.xlane.f32.xlu1 %v3076_v27  ;;  %v9948_v27 = vld [vmem:[#allocation183_spill] sm:$0xff]  ;;  %v4070_v6 = vadd.f32 %v6834_v35, %v3812_v41  ;;  %v4069_v51 = vadd.f32 %v6834_v35, %v3811_v34 }
 0x56f   : > { %v4320_v55 = vmul.f32 %v6848_v16, %v3546_v39  ;;  %3074 = vadd.xlane.f32.xlu0 %v3073_v38  ;;  %v1759_v17 = vadd.f32 %v6803_v43, %v9948_v27  ;;  %v2017_v39 = vmax.f32 %v1761_v60, 0.0  ;;  %v4068_v19 = vadd.f32 %v6834_v35, %v3810_v40  ;;  %v9952_v60 = vld [vmem:[#allocation193_spill] sm:$0xff] }
 0x570   : > { %v4578_v61 = vadd.f32 %v4322_v18, %v4064_v50  ;;  %v4577_v26 = vadd.f32 %v4321_v54, %v4063_v53  ;;  %v2016_v18 = vmax.f32 %v1760_v28, 0.0  ;;  %v9953_v28 = vld [vmem:[#allocation194_spill] sm:$0xff] }
 0x571   : > { %v4576_v21 = vadd.f32 %v4320_v55, %v4062_v0  ;;  %v2955_v2 = vpop.xlane.xlu2 %2954  ;;  %v2952_v5 = vpop.xlane.xlu1 %2951  ;;  %v2015_v55 = vmax.f32 %v1759_v17, 0.0  ;;  %v3815_v30 = vmul.f32 %v6824_v7, %v2017_v39  ;;  %v9954_v17 = vld [vmem:[#allocation189_spill] sm:$0xff] }
 0x572   : > { %4835 = vst.msk [vmem:[%s6862_s25 + $0x698] sm:$0xff] %vm4623_vm1, %v4578_v61  ;;  %v3295_v23 = vadd.f32 %v6826_v44, %v2955_v2  ;;  %v3294_v8 = vadd.f32 %v6826_v44, %v2952_v5  ;;  %v2949_v24 = vpop.xlane.xlu0 %2948  ;;  %v3814_v1 = vmul.f32 %v6824_v7, %v2016_v18 }
 0x573   : > { %4834 = vst.msk [vmem:[%s6862_s25 + $0x690] sm:$0xff] %vm4623_vm1, %v4577_v26  ;;  %v3293_v63 = vadd.f32 %v6826_v44, %v2949_v24  ;;  %v3813_v14 = vmul.f32 %v6824_v7, %v2015_v55  ;;  %v4073_v36 = vadd.f32 %v6834_v35, %v3815_v30 }
 0x574   : > { %4833 = vst.msk [vmem:[%s6862_s25 + $0x688] sm:$0xff] %vm4623_vm1, %v4576_v21  ;;  %v3551_v58 = vmax.f32 %v3295_v23, 0.0  ;;  %v3550_v9 = vmax.f32 %v3294_v8, 0.0  ;;  %v1764_v21 = vadd.f32 %v6803_v43, %v9949_v12  ;;  %v1763_v23 = vadd.f32 %v6803_v43, %v9950_v3 }
 0x575   : > { %v3549_v32 = vmax.f32 %v3293_v63, 0.0  ;;  %v1762_v63 = vadd.f32 %v6803_v43, %v9951_v62  ;;  %v4072_v15 = vadd.f32 %v6834_v35, %v3814_v1  ;;  %v4071_v33 = vadd.f32 %v6834_v35, %v3813_v14 }
 0x576   : > { %v4325_v52 = vmul.f32 %v6848_v16, %v3551_v58  ;;  %v4324_v37 = vmul.f32 %v6848_v16, %v3550_v9 }
 0x577   : > { %v4323_v11 = vmul.f32 %v6848_v16, %v3549_v32  ;;  %v2020_v32 = vmax.f32 %v1764_v21, 0.0  ;;  %v9955_v21 = vld [vmem:[#allocation196_spill] sm:$0xff] }
 0x578   : > { %v4581_v45 = vadd.f32 %v4325_v52, %v4067_v47  ;;  %v4580_v59 = vadd.f32 %v4324_v37, %v4066_v48  ;;  %v2019_v52 = vmax.f32 %v1763_v23, 0.0  ;;  %v9956_v23 = vld [vmem:[#allocation197_spill] sm:$0xff] }
 0x579   : > { %v4579_v13 = vadd.f32 %v4323_v11, %v4065_v46  ;;  %v2964_v49 = vpop.xlane.xlu2 %2963  ;;  %v2961_v42 = vpop.xlane.xlu1 %2960  ;;  %v2018_v11 = vmax.f32 %v1762_v63, 0.0  ;;  %v3818_v4 = vmul.f32 %v6824_v7, %v2020_v32  ;;  %v9957_v63 = vld [vmem:[#allocation192_spill] sm:$0xff] }
 0x57a   : > { %4838 = vst.msk [vmem:[%s6862_s25 + $0x6b0] sm:$0xff] %vm4623_vm1, %v4581_v45  ;;  %v3298_v25 = vadd.f32 %v6826_v44, %v2964_v49  ;;  %v3297_v56 = vadd.f32 %v6826_v44, %v2961_v42  ;;  %v2958_v10 = vpop.xlane.xlu0 %2957  ;;  %v3817_v20 = vmul.f32 %v6824_v7, %v2019_v52 }
 0x57b   : > { %4837 = vst.msk [vmem:[%s6862_s25 + $0x6a8] sm:$0xff] %vm4623_vm1, %v4580_v59  ;;  %v3296_v22 = vadd.f32 %v6826_v44, %v2958_v10  ;;  %v3816_v27 = vmul.f32 %v6824_v7, %v2018_v11  ;;  %v4076_v39 = vadd.f32 %v6834_v35, %v3818_v4 }
 0x57c   : > { %4836 = vst.msk [vmem:[%s6862_s25 + $0x6a0] sm:$0xff] %vm4623_vm1, %v4579_v13  ;;  %v3554_v38 = vmax.f32 %v3298_v25, 0.0  ;;  %v3553_v50 = vmax.f32 %v3297_v56, 0.0  ;;  %v1767_v13 = vadd.f32 %v6803_v43, %v9952_v60  ;;  %v1766_v25 = vadd.f32 %v6803_v43, %v9953_v28 }
 0x57d   : > { %v3552_v53 = vmax.f32 %v3296_v22, 0.0  ;;  %v1765_v22 = vadd.f32 %v6803_v43, %v9954_v17  ;;  %v4075_v18 = vadd.f32 %v6834_v35, %v3817_v20  ;;  %v4074_v55 = vadd.f32 %v6834_v35, %v3816_v27 }
 0x57e   : > { %v4328_v54 = vmul.f32 %v6848_v16, %v3554_v38  ;;  %v4327_v0 = vmul.f32 %v6848_v16, %v3553_v50 }
 0x57f   : > { %v4326_v61 = vmul.f32 %v6848_v16, %v3552_v53  ;;  %v2023_v53 = vmax.f32 %v1767_v13, 0.0  ;;  %v9958_v13 = vld [vmem:[#allocation199_spill] sm:$0xff] }
 0x580   : > { %v4584_v26 = vadd.f32 %v4328_v54, %v4070_v6  ;;  %v4583_v57 = vadd.f32 %v4327_v0, %v4069_v51  ;;  %v2022_v54 = vmax.f32 %v1766_v25, 0.0  ;;  %v9959_v25 = vld [vmem:[#allocation200_spill] sm:$0xff] }
 0x581   : > { %v4582_v2 = vadd.f32 %v4326_v61, %v4068_v19  ;;  %v2973_v5 = vpop.xlane.xlu2 %2972  ;;  %v2970_v29 = vpop.xlane.xlu1 %2969  ;;  %v2021_v61 = vmax.f32 %v1765_v22, 0.0  ;;  %v3821_v12 = vmul.f32 %v6824_v7, %v2023_v53  ;;  %v9960_v22 = vld [vmem:[#allocation195_spill] sm:$0xff] }
 0x582   : > { %4841 = vst.msk [vmem:[%s6862_s25 + $0x6c8] sm:$0xff] %vm4623_vm1, %v4584_v26  ;;  %v3301_v8 = vadd.f32 %v6826_v44, %v2973_v5  ;;  %v3300_v24 = vadd.f32 %v6826_v44, %v2970_v29  ;;  %v2967_v31 = vpop.xlane.xlu0 %2966  ;;  %v3820_v3 = vmul.f32 %v6824_v7, %v2022_v54 }
 0x583   : > { %4840 = vst.msk [vmem:[%s6862_s25 + $0x6c0] sm:$0xff] %vm4623_vm1, %v4583_v57  ;;  %v3299_v58 = vadd.f32 %v6826_v44, %v2967_v31  ;;  %v3819_v62 = vmul.f32 %v6824_v7, %v2021_v61  ;;  %v4079_v32 = vadd.f32 %v6834_v35, %v3821_v12 }
 0x584   : > { %4839 = vst.msk [vmem:[%s6862_s25 + $0x6b8] sm:$0xff] %vm4623_vm1, %v4582_v2  ;;  %v3557_v9 = vmax.f32 %v3301_v8, 0.0  ;;  %v3556_v47 = vmax.f32 %v3300_v24, 0.0  ;;  %v1770_v2 = vadd.f32 %v6803_v43, %v9955_v21  ;;  %v1769_v8 = vadd.f32 %v6803_v43, %v9956_v23 }
 0x585   : > { %v3555_v48 = vmax.f32 %v3299_v58, 0.0  ;;  %v1768_v58 = vadd.f32 %v6803_v43, %v9957_v63  ;;  %v4078_v52 = vadd.f32 %v6834_v35, %v3820_v3  ;;  %v4077_v11 = vadd.f32 %v6834_v35, %v3819_v62 }
 0x586   : > { %v4331_v37 = vmul.f32 %v6848_v16, %v3557_v9  ;;  %v4330_v46 = vmul.f32 %v6848_v16, %v3556_v47 }
 0x587   : > { %v4329_v45 = vmul.f32 %v6848_v16, %v3555_v48  ;;  %v2026_v48 = vmax.f32 %v1770_v2, 0.0  ;;  %v9961_v2 = vld [vmem:[#allocation202_spill] sm:$0xff] }
 0x588   : > { %v4587_v59 = vadd.f32 %v4331_v37, %v4073_v36  ;;  %v4586_v41 = vadd.f32 %v4330_v46, %v4072_v15  ;;  %v2025_v37 = vmax.f32 %v1769_v8, 0.0  ;;  %v9962_v8 = vld [vmem:[#allocation203_spill] sm:$0xff] }
 0x589   : > { %v4585_v49 = vadd.f32 %v4329_v45, %v4071_v33  ;;  %v2982_v42 = vpop.xlane.xlu2 %2981  ;;  %v2979_v34 = vpop.xlane.xlu1 %2978  ;;  %v2024_v45 = vmax.f32 %v1768_v58, 0.0  ;;  %v3824_v60 = vmul.f32 %v6824_v7, %v2026_v48  ;;  %v9963_v58 = vld [vmem:[#allocation198_spill] sm:$0xff] }
 0x58a   : > { %4844 = vst.msk [vmem:[%s6862_s25 + $0x6e0] sm:$0xff] %vm4623_vm1, %v4587_v59  ;;  %v3304_v56 = vadd.f32 %v6826_v44, %v2982_v42  ;;  %v3303_v10 = vadd.f32 %v6826_v44, %v2979_v34  ;;  %v2976_v40 = vpop.xlane.xlu0 %2975  ;;  %v3823_v28 = vmul.f32 %v6824_v7, %v2025_v37 }
 0x58b   : > { %4843 = vst.msk [vmem:[%s6862_s25 + $0x6d8] sm:$0xff] %vm4623_vm1, %v4586_v41  ;;  %v3302_v38 = vadd.f32 %v6826_v44, %v2976_v40  ;;  %v3822_v17 = vmul.f32 %v6824_v7, %v2024_v45  ;;  %v4082_v53 = vadd.f32 %v6834_v35, %v3824_v60 }
 0x58c   : > { %4842 = vst.msk [vmem:[%s6862_s25 + $0x6d0] sm:$0xff] %vm4623_vm1, %v4585_v49  ;;  %v3560_v50 = vmax.f32 %v3304_v56, 0.0  ;;  %v3559_v6 = vmax.f32 %v3303_v10, 0.0  ;;  %v1773_v49 = vadd.f32 %v6803_v43, %v9958_v13  ;;  %v1772_v56 = vadd.f32 %v6803_v43, %v9959_v25 }
 0x58d   : > { %v3558_v51 = vmax.f32 %v3302_v38, 0.0  ;;  %v1771_v38 = vadd.f32 %v6803_v43, %v9960_v22  ;;  %v4081_v54 = vadd.f32 %v6834_v35, %v3823_v28  ;;  %v4080_v61 = vadd.f32 %v6834_v35, %v3822_v17 }
 0x58e   : > { %v4334_v0 = vmul.f32 %v6848_v16, %v3560_v50  ;;  %v4333_v19 = vmul.f32 %v6848_v16, %v3559_v6 }
 0x58f   : > { %v4332_v26 = vmul.f32 %v6848_v16, %v3558_v51  ;;  %v2029_v51 = vmax.f32 %v1773_v49, 0.0  ;;  %v9964_v49 = vld [vmem:[#allocation205_spill] sm:$0xff] }
 0x590   : > { %v4590_v57 = vadd.f32 %v4334_v0, %v4076_v39  ;;  %v4589_v30 = vadd.f32 %v4333_v19, %v4075_v18  ;;  %v2028_v0 = vmax.f32 %v1772_v56, 0.0  ;;  %v9965_v56 = vld [vmem:[#allocation206_spill] sm:$0xff] }
 0x591   : > { %v4588_v5 = vadd.f32 %v4332_v26, %v4074_v55  ;;  %v2991_v29 = vpop.xlane.xlu2 %2990  ;;  %v2988_v1 = vpop.xlane.xlu1 %2987  ;;  %v2027_v26 = vmax.f32 %v1771_v38, 0.0  ;;  %v3827_v21 = vmul.f32 %v6824_v7, %v2029_v51  ;;  %v9966_v38 = vld [vmem:[#allocation201_spill] sm:$0xff] }
 0x592   : > { %4847 = vst.msk [vmem:[%s6862_s25 + $0x6f8] sm:$0xff] %vm4623_vm1, %v4590_v57  ;;  %v3307_v24 = vadd.f32 %v6826_v44, %v2991_v29  ;;  %v3306_v31 = vadd.f32 %v6826_v44, %v2988_v1  ;;  %v2985_v14 = vpop.xlane.xlu0 %2984  ;;  %v3826_v23 = vmul.f32 %v6824_v7, %v2028_v0 }
 0x593   : > { %4846 = vst.msk [vmem:[%s6862_s25 + $0x6f0] sm:$0xff] %vm4623_vm1, %v4589_v30  ;;  %v3305_v9 = vadd.f32 %v6826_v44, %v2985_v14  ;;  %v3825_v63 = vmul.f32 %v6824_v7, %v2027_v26  ;;  %v4085_v48 = vadd.f32 %v6834_v35, %v3827_v21 }
 0x594   : > { %4845 = vst.msk [vmem:[%s6862_s25 + $0x6e8] sm:$0xff] %vm4623_vm1, %v4588_v5  ;;  %v3563_v47 = vmax.f32 %v3307_v24, 0.0  ;;  %v3562_v36 = vmax.f32 %v3306_v31, 0.0  ;;  %v1776_v5 = vadd.f32 %v6803_v43, %v9961_v2  ;;  %v1775_v24 = vadd.f32 %v6803_v43, %v9962_v8 }
 0x595   : > { %v3561_v15 = vmax.f32 %v3305_v9, 0.0  ;;  %v1774_v9 = vadd.f32 %v6803_v43, %v9963_v58  ;;  %v4084_v37 = vadd.f32 %v6834_v35, %v3826_v23  ;;  %v4083_v45 = vadd.f32 %v6834_v35, %v3825_v63 }
 0x596   : > { %v4337_v46 = vmul.f32 %v6848_v16, %v3563_v47  ;;  %v4336_v33 = vmul.f32 %v6848_v16, %v3562_v36 }
 0x597   : > { %v4335_v59 = vmul.f32 %v6848_v16, %v3561_v15  ;;  %v2032_v15 = vmax.f32 %v1776_v5, 0.0  ;;  %v9967_v5 = vld [vmem:[#allocation208_spill] sm:$0xff] }
 0x598   : > { %v4593_v41 = vadd.f32 %v4337_v46, %v4079_v32  ;;  %v4592_v4 = vadd.f32 %v4336_v33, %v4078_v52  ;;  %v2031_v46 = vmax.f32 %v1775_v24, 0.0  ;;  %v9968_v24 = vld [vmem:[#allocation209_spill] sm:$0xff] }
 0x599   : > { %v4591_v42 = vadd.f32 %v4335_v59, %v4077_v11  ;;  %v3000_v34 = vpop.xlane.xlu2 %2999  ;;  %v2997_v20 = vpop.xlane.xlu1 %2996  ;;  %v2030_v59 = vmax.f32 %v1774_v9, 0.0  ;;  %v3830_v13 = vmul.f32 %v6824_v7, %v2032_v15  ;;  %v9969_v9 = vld [vmem:[#allocation204_spill] sm:$0xff] }
 0x59a   : > { %4850 = vst.msk [vmem:[%s6862_s25 + $0x710] sm:$0xff] %vm4623_vm1, %v4593_v41  ;;  %v3310_v10 = vadd.f32 %v6826_v44, %v3000_v34  ;;  %v3309_v40 = vadd.f32 %v6826_v44, %v2997_v20  ;;  %v2994_v27 = vpop.xlane.xlu0 %2993  ;;  %v3829_v25 = vmul.f32 %v6824_v7, %v2031_v46 }
 0x59b   : > { %4849 = vst.msk [vmem:[%s6862_s25 + $0x708] sm:$0xff] %vm4623_vm1, %v4592_v4  ;;  %v3308_v50 = vadd.f32 %v6826_v44, %v2994_v27  ;;  %v3828_v22 = vmul.f32 %v6824_v7, %v2030_v59  ;;  %v4088_v51 = vadd.f32 %v6834_v35, %v3830_v13 }
 0x59c   : > { %4848 = vst.msk [vmem:[%s6862_s25 + $0x700] sm:$0xff] %vm4623_vm1, %v4591_v42  ;;  %v3566_v6 = vmax.f32 %v3310_v10, 0.0  ;;  %v3565_v39 = vmax.f32 %v3309_v40, 0.0  ;;  %v1779_v42 = vadd.f32 %v6803_v43, %v9964_v49  ;;  %v1778_v10 = vadd.f32 %v6803_v43, %v9965_v56 }
 0x59d   : > { %v3564_v18 = vmax.f32 %v3308_v50, 0.0  ;;  %v1777_v50 = vadd.f32 %v6803_v43, %v9966_v38  ;;  %v4087_v0 = vadd.f32 %v6834_v35, %v3829_v25  ;;  %v4086_v26 = vadd.f32 %v6834_v35, %v3828_v22 }
 0x59e   : > { %v4340_v19 = vmul.f32 %v6848_v16, %v3566_v6  ;;  %v4339_v55 = vmul.f32 %v6848_v16, %v3565_v39 }
 0x59f   : > { %v4338_v57 = vmul.f32 %v6848_v16, %v3564_v18  ;;  %v2035_v18 = vmax.f32 %v1779_v42, 0.0  ;;  %v9970_v42 = vld [vmem:[#allocation211_spill] sm:$0xff] }
 0x5a0   : > { %v4596_v30 = vadd.f32 %v4340_v19, %v4082_v53  ;;  %v4595_v12 = vadd.f32 %v4339_v55, %v4081_v54  ;;  %v2034_v19 = vmax.f32 %v1778_v10, 0.0  ;;  %v9971_v10 = vld [vmem:[#allocation212_spill] sm:$0xff] }
 0x5a1   : > { %v4594_v29 = vadd.f32 %v4338_v57, %v4080_v61  ;;  %v3009_v1 = vpop.xlane.xlu2 %3008  ;;  %v3006_v3 = vpop.xlane.xlu1 %3005  ;;  %v2033_v57 = vmax.f32 %v1777_v50, 0.0  ;;  %v3833_v2 = vmul.f32 %v6824_v7, %v2035_v18  ;;  %v9972_v50 = vld [vmem:[#allocation207_spill] sm:$0xff] }
 0x5a2   : > { %4853 = vst.msk [vmem:[%s6862_s25 + $0x728] sm:$0xff] %vm4623_vm1, %v4596_v30  ;;  %v3313_v31 = vadd.f32 %v6826_v44, %v3009_v1  ;;  %v3312_v14 = vadd.f32 %v6826_v44, %v3006_v3  ;;  %v3003_v62 = vpop.xlane.xlu0 %3002  ;;  %v3832_v8 = vmul.f32 %v6824_v7, %v2034_v19 }
 0x5a3   : > { %4852 = vst.msk [vmem:[%s6862_s25 + $0x720] sm:$0xff] %vm4623_vm1, %v4595_v12  ;;  %v3311_v47 = vadd.f32 %v6826_v44, %v3003_v62  ;;  %v3831_v58 = vmul.f32 %v6824_v7, %v2033_v57  ;;  %v4091_v15 = vadd.f32 %v6834_v35, %v3833_v2 }
 0x5a4   : > { %4851 = vst.msk [vmem:[%s6862_s25 + $0x718] sm:$0xff] %vm4623_vm1, %v4594_v29  ;;  %v3569_v36 = vmax.f32 %v3313_v31, 0.0  ;;  %v3568_v32 = vmax.f32 %v3312_v14, 0.0  ;;  %v1782_v29 = vadd.f32 %v6803_v43, %v9967_v5  ;;  %v1781_v31 = vadd.f32 %v6803_v43, %v9968_v24 }
 0x5a5   : > { %v3567_v52 = vmax.f32 %v3311_v47, 0.0  ;;  %v1780_v47 = vadd.f32 %v6803_v43, %v9969_v9  ;;  %v4090_v46 = vadd.f32 %v6834_v35, %v3832_v8  ;;  %v4089_v59 = vadd.f32 %v6834_v35, %v3831_v58 }
 0x5a6   : > { %v4343_v33 = vmul.f32 %v6848_v16, %v3569_v36  ;;  %v4342_v11 = vmul.f32 %v6848_v16, %v3568_v32 }
 0x5a7   : > { %v4341_v41 = vmul.f32 %v6848_v16, %v3567_v52  ;;  %v2038_v52 = vmax.f32 %v1782_v29, 0.0  ;;  %v9973_v29 = vld [vmem:[#allocation214_spill] sm:$0xff] }
 0x5a8   : > { %v4599_v4 = vadd.f32 %v4343_v33, %v4085_v48  ;;  %v4598_v60 = vadd.f32 %v4342_v11, %v4084_v37  ;;  %v2037_v33 = vmax.f32 %v1781_v31, 0.0  ;;  %v9974_v31 = vld [vmem:[#allocation215_spill] sm:$0xff] }
 0x5a9   : > { %v4597_v34 = vadd.f32 %v4341_v41, %v4083_v45  ;;  %v3018_v20 = vpop.xlane.xlu2 %3017  ;;  %v3015_v28 = vpop.xlane.xlu1 %3014  ;;  %v2036_v41 = vmax.f32 %v1780_v47, 0.0  ;;  %v3836_v49 = vmul.f32 %v6824_v7, %v2038_v52  ;;  %v9975_v47 = vld [vmem:[#allocation210_spill] sm:$0xff] }
 0x5aa   : > { %4856 = vst.msk [vmem:[%s6862_s25 + $0x740] sm:$0xff] %vm4623_vm1, %v4599_v4  ;;  %v3316_v40 = vadd.f32 %v6826_v44, %v3018_v20  ;;  %v3315_v27 = vadd.f32 %v6826_v44, %v3015_v28  ;;  %v3012_v17 = vpop.xlane.xlu0 %3011  ;;  %v3835_v56 = vmul.f32 %v6824_v7, %v2037_v33 }
 0x5ab   : > { %4855 = vst.msk [vmem:[%s6862_s25 + $0x738] sm:$0xff] %vm4623_vm1, %v4598_v60  ;;  %v3314_v6 = vadd.f32 %v6826_v44, %v3012_v17  ;;  %v3834_v38 = vmul.f32 %v6824_v7, %v2036_v41  ;;  %v4094_v18 = vadd.f32 %v6834_v35, %v3836_v49 }
 0x5ac   : > { %4854 = vst.msk [vmem:[%s6862_s25 + $0x730] sm:$0xff] %vm4623_vm1, %v4597_v34  ;;  %v3572_v39 = vmax.f32 %v3316_v40, 0.0  ;;  %v3571_v53 = vmax.f32 %v3315_v27, 0.0  ;;  %v1785_v34 = vadd.f32 %v6803_v43, %v9970_v42  ;;  %v1784_v40 = vadd.f32 %v6803_v43, %v9971_v10 }
 0x5ad   : > { %v3570_v54 = vmax.f32 %v3314_v6, 0.0  ;;  %v1783_v6 = vadd.f32 %v6803_v43, %v9972_v50  ;;  %v4093_v19 = vadd.f32 %v6834_v35, %v3835_v56  ;;  %v4092_v57 = vadd.f32 %v6834_v35, %v3834_v38 }
 0x5ae   : > { %v4346_v55 = vmul.f32 %v6848_v16, %v3572_v39  ;;  %v4345_v61 = vmul.f32 %v6848_v16, %v3571_v53 }
 0x5af   : > { %v4344_v30 = vmul.f32 %v6848_v16, %v3570_v54  ;;  %v2041_v54 = vmax.f32 %v1785_v34, 0.0  ;;  %v9976_v34 = vld [vmem:[#allocation217_spill] sm:$0xff] }
 0x5b0   : > { %v4602_v12 = vadd.f32 %v4346_v55, %v4088_v51  ;;  %v4601_v21 = vadd.f32 %v4345_v61, %v4087_v0  ;;  %v2040_v55 = vmax.f32 %v1784_v40, 0.0  ;;  %v9977_v40 = vld [vmem:[#allocation218_spill] sm:$0xff] }
 0x5b1   : > { %v4600_v1 = vadd.f32 %v4344_v30, %v4086_v26  ;;  %v3027_v3 = vpop.xlane.xlu2 %3026  ;;  %v3024_v23 = vpop.xlane.xlu1 %3023  ;;  %v2039_v30 = vmax.f32 %v1783_v6, 0.0  ;;  %v3839_v5 = vmul.f32 %v6824_v7, %v2041_v54  ;;  %v9978_v6 = vld [vmem:[#allocation213_spill] sm:$0xff] }
 0x5b2   : > { %4859 = vst.msk [vmem:[%s6862_s25 + $0x758] sm:$0xff] %vm4623_vm1, %v4602_v12  ;;  %v3319_v14 = vadd.f32 %v6826_v44, %v3027_v3  ;;  %v3318_v62 = vadd.f32 %v6826_v44, %v3024_v23  ;;  %v3021_v63 = vpop.xlane.xlu0 %3020  ;;  %v3838_v24 = vmul.f32 %v6824_v7, %v2040_v55 }
 0x5b3   : > { %4858 = vst.msk [vmem:[%s6862_s25 + $0x750] sm:$0xff] %vm4623_vm1, %v4601_v21  ;;  %v3317_v36 = vadd.f32 %v6826_v44, %v3021_v63  ;;  %v3837_v9 = vmul.f32 %v6824_v7, %v2039_v30  ;;  %v4097_v52 = vadd.f32 %v6834_v35, %v3839_v5 }
 0x5b4   : > { %4857 = vst.msk [vmem:[%s6862_s25 + $0x748] sm:$0xff] %vm4623_vm1, %v4600_v1  ;;  %v3575_v32 = vmax.f32 %v3319_v14, 0.0  ;;  %v3574_v48 = vmax.f32 %v3318_v62, 0.0  ;;  %v1788_v1 = vadd.f32 %v6803_v43, %v9973_v29  ;;  %v1787_v14 = vadd.f32 %v6803_v43, %v9974_v31 }
 0x5b5   : > { %v3573_v37 = vmax.f32 %v3317_v36, 0.0  ;;  %v1786_v36 = vadd.f32 %v6803_v43, %v9975_v47  ;;  %v4096_v33 = vadd.f32 %v6834_v35, %v3838_v24  ;;  %v4095_v41 = vadd.f32 %v6834_v35, %v3837_v9 }
 0x5b6   : > { %v4349_v11 = vmul.f32 %v6848_v16, %v3575_v32  ;;  %v4348_v45 = vmul.f32 %v6848_v16, %v3574_v48 }
 0x5b7   : > { %v4347_v4 = vmul.f32 %v6848_v16, %v3573_v37  ;;  %v2044_v37 = vmax.f32 %v1788_v1, 0.0  ;;  %v9979_v1 = vld [vmem:[#allocation220_spill] sm:$0xff] }
 0x5b8   : > { %v4605_v60 = vadd.f32 %v4349_v11, %v4091_v15  ;;  %v4604_v13 = vadd.f32 %v4348_v45, %v4090_v46  ;;  %v2043_v11 = vmax.f32 %v1787_v14, 0.0  ;;  %v9980_v14 = vld [vmem:[#allocation221_spill] sm:$0xff] }
 0x5b9   : > { %v4603_v20 = vadd.f32 %v4347_v4, %v4089_v59  ;;  %v3036_v28 = vpop.xlane.xlu2 %3035  ;;  %v3033_v25 = vpop.xlane.xlu1 %3032  ;;  %v2042_v4 = vmax.f32 %v1786_v36, 0.0  ;;  %v3842_v42 = vmul.f32 %v6824_v7, %v2044_v37  ;;  %v9981_v36 = vld [vmem:[#allocation216_spill] sm:$0xff] }
 0x5ba   : > { %4862 = vst.msk [vmem:[%s6862_s25 + $0x770] sm:$0xff] %vm4623_vm1, %v4605_v60  ;;  %v3322_v27 = vadd.f32 %v6826_v44, %v3036_v28  ;;  %v3321_v17 = vadd.f32 %v6826_v44, %v3033_v25  ;;  %v3030_v22 = vpop.xlane.xlu0 %3029  ;;  %v3841_v10 = vmul.f32 %v6824_v7, %v2043_v11 }
 0x5bb   : > { %4861 = vst.msk [vmem:[%s6862_s25 + $0x768] sm:$0xff] %vm4623_vm1, %v4604_v13  ;;  %v3320_v39 = vadd.f32 %v6826_v44, %v3030_v22  ;;  %v3840_v50 = vmul.f32 %v6824_v7, %v2042_v4  ;;  %v4100_v54 = vadd.f32 %v6834_v35, %v3842_v42 }
 0x5bc   : > { %4860 = vst.msk [vmem:[%s6862_s25 + $0x760] sm:$0xff] %vm4623_vm1, %v4603_v20  ;;  %v3578_v53 = vmax.f32 %v3322_v27, 0.0  ;;  %v3577_v51 = vmax.f32 %v3321_v17, 0.0  ;;  %v1791_v20 = vadd.f32 %v6803_v43, %v9976_v34  ;;  %v1790_v27 = vadd.f32 %v6803_v43, %v9977_v40 }
 0x5bd   : > { %v3576_v0 = vmax.f32 %v3320_v39, 0.0  ;;  %v1789_v39 = vadd.f32 %v6803_v43, %v9978_v6  ;;  %v4099_v55 = vadd.f32 %v6834_v35, %v3841_v10  ;;  %v4098_v30 = vadd.f32 %v6834_v35, %v3840_v50  ;;  %v9982_v10 = vld [vmem:[#allocation222_spill] sm:$0xff]  ;;  %v9983_v50 = vld [vmem:[#allocation219_spill] sm:$0xff] }
 0x5be   : > { %v4352_v61 = vmul.f32 %v6848_v16, %v3578_v53  ;;  %v4351_v26 = vmul.f32 %v6848_v16, %v3577_v51  ;;  %v1796_v40 = vadd.f32 %v6803_v43, %v9982_v10  ;;  %v1795_v6 = vadd.f32 %v6803_v43, %v9983_v50 }
 0x5bf   : > { %v4350_v12 = vmul.f32 %v6848_v16, %v3576_v0  ;;  %v2047_v0 = vmax.f32 %v1791_v20, 0.0 }
 0x5c0   : > { %v4608_v21 = vadd.f32 %v4352_v61, %v4094_v18  ;;  %v4607_v2 = vadd.f32 %v4351_v26, %v4093_v19  ;;  %v2046_v61 = vmax.f32 %v1790_v27, 0.0 }
 0x5c1   : > { %v4606_v3 = vadd.f32 %v4350_v12, %v4092_v57  ;;  %v3045_v23 = vpop.xlane.xlu2 %3044  ;;  %v3042_v8 = vpop.xlane.xlu1 %3041  ;;  %v2045_v12 = vmax.f32 %v1789_v39, 0.0  ;;  %v3845_v29 = vmul.f32 %v6824_v7, %v2047_v0 }
 0x5c2   : > { %4865 = vst.msk [vmem:[%s6862_s25 + $0x788] sm:$0xff] %vm4623_vm1, %v4608_v21  ;;  %v3325_v62 = vadd.f32 %v6826_v44, %v3045_v23  ;;  %v3324_v63 = vadd.f32 %v6826_v44, %v3042_v8  ;;  %v3039_v58 = vpop.xlane.xlu0 %3038  ;;  %v3844_v31 = vmul.f32 %v6824_v7, %v2046_v61 }
 0x5c3   : > { %4864 = vst.msk [vmem:[%s6862_s25 + $0x780] sm:$0xff] %vm4623_vm1, %v4607_v2  ;;  %v3323_v32 = vadd.f32 %v6826_v44, %v3039_v58  ;;  %v3843_v47 = vmul.f32 %v6824_v7, %v2045_v12  ;;  %v4103_v37 = vadd.f32 %v6834_v35, %v3845_v29 }
 0x5c4   : > { %4863 = vst.msk [vmem:[%s6862_s25 + $0x778] sm:$0xff] %vm4623_vm1, %v4606_v3  ;;  %v3581_v48 = vmax.f32 %v3325_v62, 0.0  ;;  %v3580_v15 = vmax.f32 %v3324_v63, 0.0  ;;  %v1794_v3 = vadd.f32 %v6803_v43, %v9979_v1  ;;  %v1793_v62 = vadd.f32 %v6803_v43, %v9980_v14 }
 0x5c5   : > { %v3579_v46 = vmax.f32 %v3323_v32, 0.0  ;;  %v1792_v32 = vadd.f32 %v6803_v43, %v9981_v36  ;;  %v4102_v11 = vadd.f32 %v6834_v35, %v3844_v31  ;;  %v4101_v4 = vadd.f32 %v6834_v35, %v3843_v47 }
 0x5c6   : > { %v4355_v45 = vmul.f32 %v6848_v16, %v3581_v48  ;;  %v4354_v59 = vmul.f32 %v6848_v16, %v3580_v15 }
 0x5c7   : > { %v4353_v60 = vmul.f32 %v6848_v16, %v3579_v46  ;;  %v2050_v46 = vmax.f32 %v1794_v3, 0.0 }
 0x5c8   : > { %v4611_v13 = vadd.f32 %v4355_v45, %v4097_v52  ;;  %v4610_v49 = vadd.f32 %v4354_v59, %v4096_v33  ;;  %v2049_v45 = vmax.f32 %v1793_v62, 0.0 }
 0x5c9   : > { %v4609_v28 = vadd.f32 %v4353_v60, %v4095_v41  ;;  %v3054_v25 = vpop.xlane.xlu2 %3053  ;;  %v3051_v56 = vpop.xlane.xlu1 %3050  ;;  %v2048_v60 = vmax.f32 %v1792_v32, 0.0  ;;  %v3848_v34 = vmul.f32 %v6824_v7, %v2050_v46 }
 0x5ca   : > { %4868 = vst.msk [vmem:[%s6862_s25 + $0x7a0] sm:$0xff] %vm4623_vm1, %v4611_v13  ;;  %v3328_v17 = vadd.f32 %v6826_v44, %v3054_v25  ;;  %v3327_v22 = vadd.f32 %v6826_v44, %v3051_v56  ;;  %v3048_v38 = vpop.xlane.xlu0 %3047  ;;  %v3847_v56 = vmul.f32 %v6824_v7, %v2049_v45 }
 0x5cb   : > { %4867 = vst.msk [vmem:[%s6862_s25 + $0x798] sm:$0xff] %vm4623_vm1, %v4610_v49  ;;  %v3326_v53 = vadd.f32 %v6826_v44, %v3048_v38  ;;  %v3846_v38 = vmul.f32 %v6824_v7, %v2048_v60 }
 0x5cc   : > { %4866 = vst.msk [vmem:[%s6862_s25 + $0x790] sm:$0xff] %vm4623_vm1, %v4609_v28  ;;  %v3584_v51 = vmax.f32 %v3328_v17, 0.0  ;;  %v3583_v18 = vmax.f32 %v3327_v22, 0.0  ;;  %v4105_v0 = vadd.f32 %v6834_v35, %v3847_v56 }
 0x5cd   : > { %v3582_v19 = vmax.f32 %v3326_v53, 0.0  ;;  %v4104_v61 = vadd.f32 %v6834_v35, %v3846_v38 }
 0x5ce   : > { %v4358_v26 = vmul.f32 %v6848_v16, %v3584_v51  ;;  %v4357_v57 = vmul.f32 %v6848_v16, %v3583_v18  ;;  %v4106_v18 = vadd.f32 %v6834_v35, %v3848_v34 }
 0x5cf   : > { %v4356_v21 = vmul.f32 %v6848_v16, %v3582_v19  ;;  %v2052_v19 = vmax.f32 %v1796_v40, 0.0 }
 0x5d0   : > { %v4614_v2 = vadd.f32 %v4358_v26, %v4100_v54  ;;  %v4613_v5 = vadd.f32 %v4357_v57, %v4099_v55  ;;  %v2051_v26 = vmax.f32 %v1795_v6, 0.0 }
 0x5d1   : > { %v4612_v23 = vadd.f32 %v4356_v21, %v4098_v30  ;;  %v3063_v8 = vpop.xlane.xlu2 %3062  ;;  %v3060_v24 = vpop.xlane.xlu1 %3059 }
 0x5d2   : > { %4871 = vst.msk [vmem:[%s6862_s25 + $0x7b8] sm:$0xff] %vm4623_vm1, %v4614_v2  ;;  %v3331_v63 = vadd.f32 %v6826_v44, %v3063_v8  ;;  %v3330_v58 = vadd.f32 %v6826_v44, %v3060_v24  ;;  %v3057_v9 = vpop.xlane.xlu0 %3056  ;;  %v3849_v3 = vmul.f32 %v6824_v7, %v2051_v26 }
 0x5d3   : > { %4870 = vst.msk [vmem:[%s6862_s25 + $0x7b0] sm:$0xff] %vm4623_vm1, %v4613_v5  ;;  %v3329_v48 = vadd.f32 %v6826_v44, %v3057_v9  ;;  %v3850_v5 = vmul.f32 %v6824_v7, %v2052_v19 }
 0x5d4   : > { %4869 = vst.msk [vmem:[%s6862_s25 + $0x7a8] sm:$0xff] %vm4623_vm1, %v4612_v23  ;;  %v3587_v15 = vmax.f32 %v3331_v63, 0.0  ;;  %v3586_v52 = vmax.f32 %v3330_v58, 0.0  ;;  %v4107_v62 = vadd.f32 %v6834_v35, %v3849_v3 }
 0x5d5   : > { %v3585_v33 = vmax.f32 %v3329_v48, 0.0  ;;  %v4108_v31 = vadd.f32 %v6834_v35, %v3850_v5 }
 0x5d6   : > { %v4361_v59 = vmul.f32 %v6848_v16, %v3587_v15  ;;  %v4360_v41 = vmul.f32 %v6848_v16, %v3586_v52 }
 0x5d7   : > { %v4359_v13 = vmul.f32 %v6848_v16, %v3585_v33 }
 0x5d8   : > { %v4617_v49 = vadd.f32 %v4361_v59, %v4103_v37  ;;  %v4616_v42 = vadd.f32 %v4360_v41, %v4102_v11 }
 0x5d9   : > { %v4615_v20 = vadd.f32 %v4359_v13, %v4101_v4  ;;  %v3072_v28 = vpop.xlane.xlu2 %3071  ;;  %v3069_v25 = vpop.xlane.xlu1 %3068 }
 0x5da   : > { %4874 = vst.msk [vmem:[%s6862_s25 + $0x7d0] sm:$0xff] %vm4623_vm1, %v4617_v49  ;;  %v3334_v27 = vadd.f32 %v6826_v44, %v3072_v28  ;;  %v3333_v17 = vadd.f32 %v6826_v44, %v3069_v25  ;;  %v3066_v22 = vpop.xlane.xlu0 %3065 }
 0x5db   : > { %4873 = vst.msk [vmem:[%s6862_s25 + $0x7c8] sm:$0xff] %vm4623_vm1, %v4616_v42  ;;  %v3332_v39 = vadd.f32 %v6826_v44, %v3066_v22 }
 0x5dc   : > { %4872 = vst.msk [vmem:[%s6862_s25 + $0x7c0] sm:$0xff] %vm4623_vm1, %v4615_v20  ;;  %v3590_v53 = vmax.f32 %v3334_v27, 0.0  ;;  %v3589_v51 = vmax.f32 %v3333_v17, 0.0 }
 0x5dd   : > { %v3588_v54 = vmax.f32 %v3332_v39, 0.0 }
 0x5de   : > { %v4364_v55 = vmul.f32 %v6848_v16, %v3590_v53  ;;  %v4363_v43 = vmul.f32 %v6848_v16, %v3589_v51 }
 0x5df   : > { %v4362_v57 = vmul.f32 %v6848_v16, %v3588_v54 }
 0x5e0   : > { %v4620_v30 = vadd.f32 %v4364_v55, %v4106_v18  ;;  %v4619_v12 = vadd.f32 %v4363_v43, %v4105_v0 }
 0x5e1   : > { %v4618_v21 = vadd.f32 %v4362_v57, %v4104_v61  ;;  %v3078_v2 = vpop.xlane.xlu1 %3077 }
 0x5e2   : > { %4877 = vst.msk [vmem:[%s6862_s25 + $0x7e8] sm:$0xff] %vm4623_vm1, %v4620_v30  ;;  %v3336_v29 = vadd.f32 %v6826_v44, %v3078_v2  ;;  %v3075_v1 = vpop.xlane.xlu0 %3074 }
 0x5e3   : > { %4876 = vst.msk [vmem:[%s6862_s25 + $0x7e0] sm:$0xff] %vm4623_vm1, %v4619_v12  ;;  %v3335_v23 = vadd.f32 %v6826_v44, %v3075_v1 }
 0x5e4   : > { %4875 = vst.msk [vmem:[%s6862_s25 + $0x7d8] sm:$0xff] %vm4623_vm1, %v4618_v21  ;;  %v3592_v8 = vmax.f32 %v3336_v29, 0.0 }
 0x5e5   : > { %v3591_v24 = vmax.f32 %v3335_v23, 0.0 }
 0x5e6   : > { %v4366_v14 = vmul.f32 %v6848_v16, %v3592_v8 }
 0x5e7   : > { %v4365_v63 = vmul.f32 %v6848_v16, %v3591_v24 }
 0x5e8   : > { %v4622_v58 = vadd.f32 %v4366_v14, %v4108_v31 }
 0x5e9   : > { %v4621_v9 = vadd.f32 %v4365_v63, %v4107_v62 }
 0x5ea   : > { %4879 = vst.msk [vmem:[%s6862_s25 + $0x7f8] sm:$0xff] %vm4623_vm1, %v4622_v58 }
 0x5eb   : > { %4878 = vst.msk [vmem:[%s6862_s25 + $0x7f0] sm:$0xff] %vm4623_vm1, %v4621_v9 }
 0x5ec PF: > { %s18_s20 = sadd.s32 1, %s5313_s20  }
 0x5ed   : > { %p15_p7 = scmp.ge.s32.totalorder %s18_s20, 4  }
 0x5ef   :  { %17 = sbr.rel (!%p15_p7) target bundleno = 4 (0x4), region = 79 }
 0x5f4   :  { %4902 = vsyncpa [#allocation4], 1 }
 0x5f5   :  { %4904 = vsyncpa [#allocation4 + $0x1], 1 }
 0x5f6   :  { %4905 = vsyncpa [#allocation6], 1 }

</bundles_post_ra>
